<compile_context>
chip_gen: v7x
topology: tpu7x:2x2x1
jax: 0.10.0
libtpu: 0.0.40
codegen_flags: <defaults>
</compile_context>

<pallas_src>
import jax
import jax.numpy as jnp
import numpy as np
from jax.experimental import pallas as pl
from jax.experimental.pallas import tpu as pltpu


# ----------------------------- fused Pallas kernel -------------------------

def simple_cnn_kernel(x_ref, w1_ref, b1_ref, s1_ref,
                      w2_ref, b2_ref, s2_ref,
                      wf1_ref, bf1_ref, wf2_ref, bf2_ref,
                      o_ref,
                      colmax1, x2pad, colmax2):
    f32 = jnp.float32

    # ---- conv1 + bias + ReLU: three banded matmuls (one per kernel row) ----
    # x_ref: (34, 128) padded image rows, lane = w_pad*3 + ci (zero-padded lanes)
    y1 = jnp.dot(x_ref[pl.ds(0, 32), :], w1_ref[0], preferred_element_type=f32)
    y1 = y1 + jnp.dot(x_ref[pl.ds(1, 32), :], w1_ref[1], preferred_element_type=f32)
    y1 = y1 + jnp.dot(x_ref[pl.ds(2, 32), :], w1_ref[2], preferred_element_type=f32)
    z1 = jnp.maximum(y1 + b1_ref[...], 0.0)            # (32, 512), lane = w*16 + c

    # ---- 2x2 max-pool, width half: max(z, z shifted left by 16 lanes) ----
    z1_shift = jnp.dot(z1, s1_ref[...], preferred_element_type=f32)
    colmax1[...] = jnp.maximum(z1, z1_shift)            # valid at lanes 32*j + c

    # ---- 2x2 max-pool, height half -> padded conv2 input (rows 0/17 zero) --
    x2pad[...] = jnp.zeros_like(x2pad)
    for i in range(16):
        a = colmax1[pl.ds(2 * i, 1), :]
        b = colmax1[pl.ds(2 * i + 1, 1), :]
        x2pad[pl.ds(i + 1, 1), :] = jnp.maximum(a, b)

    # ---- conv2 + bias + ReLU: three banded matmuls -------------------------
    y2 = jnp.dot(x2pad[pl.ds(0, 16), :], w2_ref[0], preferred_element_type=f32)
    y2 = y2 + jnp.dot(x2pad[pl.ds(1, 16), :], w2_ref[1], preferred_element_type=f32)
    y2 = y2 + jnp.dot(x2pad[pl.ds(2, 16), :], w2_ref[2], preferred_element_type=f32)
    z2 = jnp.maximum(y2 + b2_ref[...], 0.0)              # (16, 512), lane = w*32 + c

    z2_shift = jnp.dot(z2, s2_ref[...], preferred_element_type=f32)
    colmax2[...] = jnp.maximum(z2, z2_shift)             # valid at lanes 64*j + c

    # ---- pool2 height half fused with fc1 (+ bias + ReLU) ------------------
    h1 = bf1_ref[...]                                     # (1, 128)
    for r in range(8):
        a = colmax2[pl.ds(2 * r, 1), :]
        b = colmax2[pl.ds(2 * r + 1, 1), :]
        row = jnp.maximum(a, b)                           # (1, 512) pooled row r
        h1 = h1 + jnp.dot(row, wf1_ref[r], preferred_element_type=f32)
    h1 = jnp.maximum(h1, 0.0)

    # ---- fc2 ----------------------------------------------------------------
    o_ref[...] = jnp.dot(h1, wf2_ref[...], preferred_element_type=f32) + bf2_ref[...]


# ----------------------------- wrapper --------------------------------------

def simple_cnn_forward(x_nchw, kp):
    """Full forward pass in a single pallas_call (one grid step per image)."""
    B = x_nchw.shape[0]
    # NCHW -> NHWC, zero-pad spatially, fold (w, c) into a 128-lane row layout.
    x = jnp.transpose(x_nchw, (0, 2, 3, 1))
    x = jnp.pad(x, ((0, 0), (1, 1), (1, 1), (0, 0)))          # (B, 34, 34, 3)
    x = x.reshape(B, 34, 34 * 3)
    x = jnp.pad(x, ((0, 0), (0, 0), (0, 128 - 34 * 3)))       # (B, 34, 128)

    out = pl.pallas_call(
        simple_cnn_kernel,
        out_shape=jax.ShapeDtypeStruct((B, 1, 10), jnp.float32),
        grid=(B,),
        in_specs=[
            pl.BlockSpec((None, 34, 128), lambda b: (b, 0, 0)),   # image
            pl.BlockSpec((3, 128, 512), lambda b: (0, 0, 0)),     # conv1 banded
            pl.BlockSpec((1, 512), lambda b: (0, 0)),             # conv1 bias (tiled)
            pl.BlockSpec((512, 512), lambda b: (0, 0)),           # lane shift-16
            pl.BlockSpec((3, 512, 512), lambda b: (0, 0, 0)),     # conv2 banded
            pl.BlockSpec((1, 512), lambda b: (0, 0)),             # conv2 bias (tiled)
            pl.BlockSpec((512, 512), lambda b: (0, 0)),           # lane shift-32
            pl.BlockSpec((8, 512, 128), lambda b: (0, 0, 0)),     # fc1 (permuted)
            pl.BlockSpec((1, 128), lambda b: (0, 0)),             # fc1 bias
            pl.BlockSpec((128, 10), lambda b: (0, 0)),            # fc2
            pl.BlockSpec((1, 10), lambda b: (0, 0)),              # fc2 bias
        ],
        out_specs=pl.BlockSpec((None, 1, 10), lambda b: (b, 0, 0)),
        scratch_shapes=[
            pltpu.VMEM((32, 512), jnp.float32),   # conv1 after width-pool
            pltpu.VMEM((18, 512), jnp.float32),   # zero-padded conv2 input
            pltpu.VMEM((16, 512), jnp.float32),   # conv2 after width-pool
        ],
        compiler_params=pltpu.CompilerParams(
            dimension_semantics=("parallel",),
            vmem_limit_bytes=48 * 1024 * 1024),
    )(x, kp["w1"], kp["b1"], kp["s1"], kp["w2"], kp["b2"], kp["s2"],
      kp["wf1"], kp["bf1"], kp["wf2"], kp["bf2"])
    return out[:, 0, :]


# ------------------- one-time host-side weight repacking --------------------

def prepare_params(p):
    """Repack PyTorch-layout weights into the kernel's lane-dense layout.

    Done once, outside the forward pass (no per-call weight transposes).
    """
    c1 = np.asarray(p["conv1_w"], np.float32)   # (16, 3, 3, 3)  (co, ci, kh, kw)
    cb1 = np.asarray(p["conv1_b"], np.float32)
    c2 = np.asarray(p["conv2_w"], np.float32)   # (32, 16, 3, 3)
    cb2 = np.asarray(p["conv2_b"], np.float32)
    f1 = np.asarray(p["fc1_w"], np.float32)     # (128, 2048)
    fb1 = np.asarray(p["fc1_b"], np.float32)
    f2 = np.asarray(p["fc2_w"], np.float32)     # (10, 128)
    fb2 = np.asarray(p["fc2_b"], np.float32)

    # conv1 banded matrices: rows = padded_w*3 + ci (lane-padded to 128),
    # cols = w*16 + co.  One matrix per kernel row kh.
    w1 = np.zeros((3, 128, 32 * 16), np.float32)
    for kh in range(3):
        for kw in range(3):
            blk = c1[:, :, kh, kw].T                      # (ci=3, co=16)
            for w in range(32):
                r0 = (w + kw) * 3
                w1[kh, r0:r0 + 3, w * 16:(w + 1) * 16] = blk

    # conv2 banded matrices over the pooled conv1 lane layout:
    # rows = w_in*32 + ci (ci < 16 valid, rest stay 0), cols = w*32 + co.
    w2 = np.zeros((3, 512, 512), np.float32)
    for kh in range(3):
        for kw in range(3):
            blk = c2[:, :, kh, kw].T                      # (ci=16, co=32)
            for w in range(16):
                wi = w + kw - 1                           # width zero-padding
                if 0 <= wi < 16:
                    w2[kh, wi * 32:wi * 32 + 16, w * 32:(w + 1) * 32] = blk

    # 0/1 lane-shift matrices: (z @ s)[:, l] == z[:, l + C]  (C = 16, 32).
    s1 = np.zeros((512, 512), np.float32)
    s1[np.arange(16, 512), np.arange(0, 496)] = 1.0
    s2 = np.zeros((512, 512), np.float32)
    s2[np.arange(32, 512), np.arange(0, 480)] = 1.0

    # biases tiled to the lane layout.
    b1 = np.tile(cb1, 32).reshape(1, 512)                 # lane = w*16 + co
    b2 = np.tile(cb2, 16).reshape(1, 512)                 # lane = w*32 + co

    # fc1: torch flattens the (32, 8, 8) NCHW tensor in (c, h, w) order.
    # Our pooled activation has row r = h and valid lane = 64*w + c.
    f1r = f1.reshape(128, 32, 8, 8)                       # (n, c, h, w)
    wf1 = np.zeros((8, 8, 64, 128), np.float32)
    wf1[:, :, :32, :] = np.transpose(f1r, (2, 3, 1, 0))   # (h, w, c, n)
    wf1 = wf1.reshape(8, 512, 128)

    return {
        "w1": jnp.asarray(w1), "b1": jnp.asarray(b1), "s1": jnp.asarray(s1),
        "w2": jnp.asarray(w2), "b2": jnp.asarray(b2), "s2": jnp.asarray(s2),
        "wf1": jnp.asarray(wf1),
        "bf1": jnp.asarray(fb1.reshape(1, 128)),
        "wf2": jnp.asarray(np.ascontiguousarray(f2.T)),
        "bf2": jnp.asarray(fb2.reshape(1, 10)),
    }


# ----------------------------- reference (pure JAX) -------------------------

def _ref_forward(x_nchw, p):
    x = jnp.transpose(x_nchw, (0, 2, 3, 1))

    def conv(x, w, b):
        y = jax.lax.conv_general_dilated(
            x, jnp.transpose(w, (2, 3, 1, 0)), (1, 1), "SAME",
            dimension_numbers=("NHWC", "HWIO", "NHWC"))
        return jnp.maximum(y + b, 0.0)

    def pool(x):
        B, H, W, C = x.shape
        return x.reshape(B, H // 2, 2, W // 2, 2, C).max(axis=(2, 4))

    x = pool(conv(x, p["conv1_w"], p["conv1_b"]))
    x = pool(conv(x, p["conv2_w"], p["conv2_b"]))
    B = x.shape[0]
    x = jnp.transpose(x, (0, 3, 1, 2)).reshape(B, 32 * 8 * 8)
    x = jnp.maximum(x @ p["fc1_w"].T + p["fc1_b"], 0.0)
    return x @ p["fc2_w"].T + p["fc2_b"]


# ----------------------------- main ------------------------------------------

def _init_params(key):
    ks = jax.random.split(key, 8)
    def init(k, shape, fan_in):
        return (jax.random.normal(k, shape, jnp.float32) / jnp.sqrt(fan_in))
    return {
        "conv1_w": init(ks[0], (16, 3, 3, 3), 3 * 9),
        "conv1_b": init(ks[1], (16,), 3 * 9),
        "conv2_w": init(ks[2], (32, 16, 3, 3), 16 * 9),
        "conv2_b": init(ks[3], (32,), 16 * 9),
        "fc1_w":   init(ks[4], (128, 2048), 2048),
        "fc1_b":   init(ks[5], (128,), 2048),
        "fc2_w":   init(ks[6], (10, 128), 128),
        "fc2_b":   init(ks[7], (10,), 128),
    }


if __name__ == "__main__":
    key = jax.random.PRNGKey(0)
    k_x, k_p = jax.random.split(key)
    # fc1 expects 32*8*8 features after two 2x2 pools => spatial must be 32x32.
    x = jax.random.normal(k_x, (2, 3, 32, 32), jnp.float32)
    params = _init_params(k_p)

    kparams = prepare_params(params)          # one-time host-side repack
    fwd = jax.jit(simple_cnn_forward)

    out = jax.block_until_ready(fwd(x, kparams))
    ref = jax.block_until_ready(_ref_forward(x, params))

    assert out.shape == (2, 10), out.shape
    assert jnp.allclose(out, ref, rtol=1e-4, atol=1e-4), float(
        jnp.max(jnp.abs(out - ref)))
    print("KERNEL_OK")
</pallas_src>

<mosaic_0001>
module attributes {stable_mosaic.version = 11 : i64} {
  func.func @simple_cnn_kernel(%arg0: i32, %arg1: memref<1x34x128xf32, #tpu.memory_space<vmem>>, %arg2: memref<3x128x512xf32, #tpu.memory_space<vmem>>, %arg3: memref<1x512xf32, #tpu.memory_space<vmem>>, %arg4: memref<512x512xf32, #tpu.memory_space<vmem>>, %arg5: memref<3x512x512xf32, #tpu.memory_space<vmem>>, %arg6: memref<1x512xf32, #tpu.memory_space<vmem>>, %arg7: memref<512x512xf32, #tpu.memory_space<vmem>>, %arg8: memref<8x512x128xf32, #tpu.memory_space<vmem>>, %arg9: memref<1x128xf32, #tpu.memory_space<vmem>>, %arg10: memref<128x10xf32, #tpu.memory_space<vmem>>, %arg11: memref<1x10xf32, #tpu.memory_space<vmem>>, %arg12: memref<1x1x10xf32, #tpu.memory_space<vmem>>, %arg13: memref<32x512xf32, #tpu.memory_space<vmem>>, %arg14: memref<18x512xf32, #tpu.memory_space<vmem>>, %arg15: memref<16x512xf32, #tpu.memory_space<vmem>>) attributes {dimension_semantics = [#tpu.dimension_semantics<parallel>], iteration_bounds = array<i64: 2>, scalar_prefetch = 0 : i64, scratch_operands = 3 : i64, tpu.core_type = #tpu.core_type<tc>, window_params = [{transform_indices = @transform_0, window_bounds = array<i64: 1, 34, 128>}, {pipeline_mode = #tpu.pipeline_mode<synchronous>, transform_indices = @transform_1, window_bounds = array<i64: 3, 128, 512>}, {pipeline_mode = #tpu.pipeline_mode<synchronous>, transform_indices = @transform_2, window_bounds = array<i64: 1, 512>}, {pipeline_mode = #tpu.pipeline_mode<synchronous>, transform_indices = @transform_3, window_bounds = array<i64: 512, 512>}, {pipeline_mode = #tpu.pipeline_mode<synchronous>, transform_indices = @transform_4, window_bounds = array<i64: 3, 512, 512>}, {pipeline_mode = #tpu.pipeline_mode<synchronous>, transform_indices = @transform_5, window_bounds = array<i64: 1, 512>}, {pipeline_mode = #tpu.pipeline_mode<synchronous>, transform_indices = @transform_6, window_bounds = array<i64: 512, 512>}, {pipeline_mode = #tpu.pipeline_mode<synchronous>, transform_indices = @transform_7, window_bounds = array<i64: 8, 512, 128>}, {pipeline_mode = #tpu.pipeline_mode<synchronous>, transform_indices = @transform_8, window_bounds = array<i64: 1, 128>}, {pipeline_mode = #tpu.pipeline_mode<synchronous>, transform_indices = @transform_9, window_bounds = array<i64: 128, 10>}, {pipeline_mode = #tpu.pipeline_mode<synchronous>, transform_indices = @transform_10, window_bounds = array<i64: 1, 10>}, {transform_indices = @transform_11, window_bounds = array<i64: 1, 1, 10>}]} {
    %c0 = arith.constant 0 : index
    %c0_0 = arith.constant 0 : index
    %c0_1 = arith.constant 0 : index
    %0 = vector.load %arg1[%c0, %c0_0, %c0_1] : memref<1x34x128xf32, #tpu.memory_space<vmem>>, vector<1x32x128xf32>
    %1 = vector.shape_cast %0 : vector<1x32x128xf32> to vector<32x128xf32>
    %c0_2 = arith.constant 0 : index
    %c0_3 = arith.constant 0 : index
    %c0_4 = arith.constant 0 : index
    %2 = vector.load %arg2[%c0_2, %c0_3, %c0_4] : memref<3x128x512xf32, #tpu.memory_space<vmem>>, vector<1x128x512xf32>
    %3 = vector.shape_cast %2 : vector<1x128x512xf32> to vector<128x512xf32>
    %cst = arith.constant dense<0.000000e+00> : vector<32x512xf32>
    %4 = tpu.matmul %1, %3, %cst {dimension_numbers = #tpu.dot_dimension_numbers<[1], [0], [0], [1], [0, 0, 1, 1], [], []>} : vector<32x128xf32>, vector<128x512xf32>, vector<32x512xf32> -> vector<32x512xf32>
    %c0_5 = arith.constant 0 : index
    %c1 = arith.constant 1 : index
    %c0_6 = arith.constant 0 : index
    %5 = vector.load %arg1[%c0_5, %c1, %c0_6] : memref<1x34x128xf32, #tpu.memory_space<vmem>>, vector<1x32x128xf32>
    %6 = vector.shape_cast %5 : vector<1x32x128xf32> to vector<32x128xf32>
    %c1_7 = arith.constant 1 : index
    %c0_8 = arith.constant 0 : index
    %c0_9 = arith.constant 0 : index
    %7 = vector.load %arg2[%c1_7, %c0_8, %c0_9] : memref<3x128x512xf32, #tpu.memory_space<vmem>>, vector<1x128x512xf32>
    %8 = vector.shape_cast %7 : vector<1x128x512xf32> to vector<128x512xf32>
    %cst_10 = arith.constant dense<0.000000e+00> : vector<32x512xf32>
    %9 = tpu.matmul %6, %8, %cst_10 {dimension_numbers = #tpu.dot_dimension_numbers<[1], [0], [0], [1], [0, 0, 1, 1], [], []>} : vector<32x128xf32>, vector<128x512xf32>, vector<32x512xf32> -> vector<32x512xf32>
    %10 = arith.addf %4, %9 : vector<32x512xf32>
    %c0_11 = arith.constant 0 : index
    %c2 = arith.constant 2 : index
    %c0_12 = arith.constant 0 : index
    %11 = vector.load %arg1[%c0_11, %c2, %c0_12] : memref<1x34x128xf32, #tpu.memory_space<vmem>>, vector<1x32x128xf32>
    %12 = vector.shape_cast %11 : vector<1x32x128xf32> to vector<32x128xf32>
    %c2_13 = arith.constant 2 : index
    %c0_14 = arith.constant 0 : index
    %c0_15 = arith.constant 0 : index
    %13 = vector.load %arg2[%c2_13, %c0_14, %c0_15] : memref<3x128x512xf32, #tpu.memory_space<vmem>>, vector<1x128x512xf32>
    %14 = vector.shape_cast %13 : vector<1x128x512xf32> to vector<128x512xf32>
    %cst_16 = arith.constant dense<0.000000e+00> : vector<32x512xf32>
    %15 = tpu.matmul %12, %14, %cst_16 {dimension_numbers = #tpu.dot_dimension_numbers<[1], [0], [0], [1], [0, 0, 1, 1], [], []>} : vector<32x128xf32>, vector<128x512xf32>, vector<32x512xf32> -> vector<32x512xf32>
    %16 = arith.addf %10, %15 : vector<32x512xf32>
    %c0_17 = arith.constant 0 : index
    %c0_18 = arith.constant 0 : index
    %17 = vector.load %arg3[%c0_17, %c0_18] : memref<1x512xf32, #tpu.memory_space<vmem>>, vector<1x512xf32>
    %18 = vector.broadcast %17 : vector<1x512xf32> to vector<32x512xf32>
    %19 = arith.addf %16, %18 : vector<32x512xf32>
    %cst_19 = arith.constant 0.000000e+00 : f32
    %20 = vector.broadcast %cst_19 : f32 to vector<32x512xf32>
    %21 = arith.maximumf %19, %20 : vector<32x512xf32>
    %c0_20 = arith.constant 0 : index
    %c0_21 = arith.constant 0 : index
    %22 = vector.load %arg4[%c0_20, %c0_21] : memref<512x512xf32, #tpu.memory_space<vmem>>, vector<512x512xf32>
    %cst_22 = arith.constant dense<0.000000e+00> : vector<32x512xf32>
    %23 = tpu.matmul %21, %22, %cst_22 {dimension_numbers = #tpu.dot_dimension_numbers<[1], [0], [0], [1], [0, 0, 1, 1], [], []>} : vector<32x512xf32>, vector<512x512xf32>, vector<32x512xf32> -> vector<32x512xf32>
    %24 = arith.maximumf %21, %23 : vector<32x512xf32>
    %c0_23 = arith.constant 0 : index
    %c0_24 = arith.constant 0 : index
    %25 = vector.load %arg13[%c0_23, %c0_24] : memref<32x512xf32, #tpu.memory_space<vmem>>, vector<32x512xf32>
    tpu.vector_store %arg13[%c0_23, %c0_24], %24 {strides = array<i32>} : memref<32x512xf32, #tpu.memory_space<vmem>>, vector<32x512xf32>,
    %cst_25 = arith.constant 0.000000e+00 : f32
    %26 = vector.broadcast %cst_25 : f32 to vector<18x512xf32>
    %c0_26 = arith.constant 0 : index
    %c0_27 = arith.constant 0 : index
    %27 = vector.load %arg14[%c0_26, %c0_27] : memref<18x512xf32, #tpu.memory_space<vmem>>, vector<18x512xf32>
    tpu.vector_store %arg14[%c0_26, %c0_27], %26 {strides = array<i32>} : memref<18x512xf32, #tpu.memory_space<vmem>>, vector<18x512xf32>,
    %c0_28 = arith.constant 0 : index
    %c0_29 = arith.constant 0 : index
    %28 = vector.load %arg13[%c0_28, %c0_29] : memref<32x512xf32, #tpu.memory_space<vmem>>, vector<1x512xf32>
    %c1_30 = arith.constant 1 : index
    %c0_31 = arith.constant 0 : index
    %29 = vector.load %arg13[%c1_30, %c0_31] : memref<32x512xf32, #tpu.memory_space<vmem>>, vector<1x512xf32>
    %30 = arith.maximumf %28, %29 : vector<1x512xf32>
    %c1_32 = arith.constant 1 : index
    %c0_33 = arith.constant 0 : index
    %31 = vector.load %arg14[%c1_32, %c0_33] : memref<18x512xf32, #tpu.memory_space<vmem>>, vector<1x512xf32>
    tpu.vector_store %arg14[%c1_32, %c0_33], %30 {strides = array<i32>} : memref<18x512xf32, #tpu.memory_space<vmem>>, vector<1x512xf32>,
    %c2_34 = arith.constant 2 : index
    %c0_35 = arith.constant 0 : index
    %32 = vector.load %arg13[%c2_34, %c0_35] : memref<32x512xf32, #tpu.memory_space<vmem>>, vector<1x512xf32>
    %c3 = arith.constant 3 : index
    %c0_36 = arith.constant 0 : index
    %33 = vector.load %arg13[%c3, %c0_36] : memref<32x512xf32, #tpu.memory_space<vmem>>, vector<1x512xf32>
    %34 = arith.maximumf %32, %33 : vector<1x512xf32>
    %c2_37 = arith.constant 2 : index
    %c0_38 = arith.constant 0 : index
    %35 = vector.load %arg14[%c2_37, %c0_38] : memref<18x512xf32, #tpu.memory_space<vmem>>, vector<1x512xf32>
    tpu.vector_store %arg14[%c2_37, %c0_38], %34 {strides = array<i32>} : memref<18x512xf32, #tpu.memory_space<vmem>>, vector<1x512xf32>,
    %c4 = arith.constant 4 : index
    %c0_39 = arith.constant 0 : index
    %36 = vector.load %arg13[%c4, %c0_39] : memref<32x512xf32, #tpu.memory_space<vmem>>, vector<1x512xf32>
    %c5 = arith.constant 5 : index
    %c0_40 = arith.constant 0 : index
    %37 = vector.load %arg13[%c5, %c0_40] : memref<32x512xf32, #tpu.memory_space<vmem>>, vector<1x512xf32>
    %38 = arith.maximumf %36, %37 : vector<1x512xf32>
    %c3_41 = arith.constant 3 : index
    %c0_42 = arith.constant 0 : index
    %39 = vector.load %arg14[%c3_41, %c0_42] : memref<18x512xf32, #tpu.memory_space<vmem>>, vector<1x512xf32>
    tpu.vector_store %arg14[%c3_41, %c0_42], %38 {strides = array<i32>} : memref<18x512xf32, #tpu.memory_space<vmem>>, vector<1x512xf32>,
    %c6 = arith.constant 6 : index
    %c0_43 = arith.constant 0 : index
    %40 = vector.load %arg13[%c6, %c0_43] : memref<32x512xf32, #tpu.memory_space<vmem>>, vector<1x512xf32>
    %c7 = arith.constant 7 : index
    %c0_44 = arith.constant 0 : index
    %41 = vector.load %arg13[%c7, %c0_44] : memref<32x512xf32, #tpu.memory_space<vmem>>, vector<1x512xf32>
    %42 = arith.maximumf %40, %41 : vector<1x512xf32>
    %c4_45 = arith.constant 4 : index
    %c0_46 = arith.constant 0 : index
    %43 = vector.load %arg14[%c4_45, %c0_46] : memref<18x512xf32, #tpu.memory_space<vmem>>, vector<1x512xf32>
    tpu.vector_store %arg14[%c4_45, %c0_46], %42 {strides = array<i32>} : memref<18x512xf32, #tpu.memory_space<vmem>>, vector<1x512xf32>,
    %c8 = arith.constant 8 : index
    %c0_47 = arith.constant 0 : index
    %44 = vector.load %arg13[%c8, %c0_47] : memref<32x512xf32, #tpu.memory_space<vmem>>, vector<1x512xf32>
    %c9 = arith.constant 9 : index
    %c0_48 = arith.constant 0 : index
    %45 = vector.load %arg13[%c9, %c0_48] : memref<32x512xf32, #tpu.memory_space<vmem>>, vector<1x512xf32>
    %46 = arith.maximumf %44, %45 : vector<1x512xf32>
    %c5_49 = arith.constant 5 : index
    %c0_50 = arith.constant 0 : index
    %47 = vector.load %arg14[%c5_49, %c0_50] : memref<18x512xf32, #tpu.memory_space<vmem>>, vector<1x512xf32>
    tpu.vector_store %arg14[%c5_49, %c0_50], %46 {strides = array<i32>} : memref<18x512xf32, #tpu.memory_space<vmem>>, vector<1x512xf32>,
    %c10 = arith.constant 10 : index
    %c0_51 = arith.constant 0 : index
    %48 = vector.load %arg13[%c10, %c0_51] : memref<32x512xf32, #tpu.memory_space<vmem>>, vector<1x512xf32>
    %c11 = arith.constant 11 : index
    %c0_52 = arith.constant 0 : index
    %49 = vector.load %arg13[%c11, %c0_52] : memref<32x512xf32, #tpu.memory_space<vmem>>, vector<1x512xf32>
    %50 = arith.maximumf %48, %49 : vector<1x512xf32>
    %c6_53 = arith.constant 6 : index
    %c0_54 = arith.constant 0 : index
    %51 = vector.load %arg14[%c6_53, %c0_54] : memref<18x512xf32, #tpu.memory_space<vmem>>, vector<1x512xf32>
    tpu.vector_store %arg14[%c6_53, %c0_54], %50 {strides = array<i32>} : memref<18x512xf32, #tpu.memory_space<vmem>>, vector<1x512xf32>,
    %c12 = arith.constant 12 : index
    %c0_55 = arith.constant 0 : index
    %52 = vector.load %arg13[%c12, %c0_55] : memref<32x512xf32, #tpu.memory_space<vmem>>, vector<1x512xf32>
    %c13 = arith.constant 13 : index
    %c0_56 = arith.constant 0 : index
    %53 = vector.load %arg13[%c13, %c0_56] : memref<32x512xf32, #tpu.memory_space<vmem>>, vector<1x512xf32>
    %54 = arith.maximumf %52, %53 : vector<1x512xf32>
    %c7_57 = arith.constant 7 : index
    %c0_58 = arith.constant 0 : index
    %55 = vector.load %arg14[%c7_57, %c0_58] : memref<18x512xf32, #tpu.memory_space<vmem>>, vector<1x512xf32>
    tpu.vector_store %arg14[%c7_57, %c0_58], %54 {strides = array<i32>} : memref<18x512xf32, #tpu.memory_space<vmem>>, vector<1x512xf32>,
    %c14 = arith.constant 14 : index
    %c0_59 = arith.constant 0 : index
    %56 = vector.load %arg13[%c14, %c0_59] : memref<32x512xf32, #tpu.memory_space<vmem>>, vector<1x512xf32>
    %c15 = arith.constant 15 : index
    %c0_60 = arith.constant 0 : index
    %57 = vector.load %arg13[%c15, %c0_60] : memref<32x512xf32, #tpu.memory_space<vmem>>, vector<1x512xf32>
    %58 = arith.maximumf %56, %57 : vector<1x512xf32>
    %c8_61 = arith.constant 8 : index
    %c0_62 = arith.constant 0 : index
    %59 = vector.load %arg14[%c8_61, %c0_62] : memref<18x512xf32, #tpu.memory_space<vmem>>, vector<1x512xf32>
    tpu.vector_store %arg14[%c8_61, %c0_62], %58 {strides = array<i32>} : memref<18x512xf32, #tpu.memory_space<vmem>>, vector<1x512xf32>,
    %c16 = arith.constant 16 : index
    %c0_63 = arith.constant 0 : index
    %60 = vector.load %arg13[%c16, %c0_63] : memref<32x512xf32, #tpu.memory_space<vmem>>, vector<1x512xf32>
    %c17 = arith.constant 17 : index
    %c0_64 = arith.constant 0 : index
    %61 = vector.load %arg13[%c17, %c0_64] : memref<32x512xf32, #tpu.memory_space<vmem>>, vector<1x512xf32>
    %62 = arith.maximumf %60, %61 : vector<1x512xf32>
    %c9_65 = arith.constant 9 : index
    %c0_66 = arith.constant 0 : index
    %63 = vector.load %arg14[%c9_65, %c0_66] : memref<18x512xf32, #tpu.memory_space<vmem>>, vector<1x512xf32>
    tpu.vector_store %arg14[%c9_65, %c0_66], %62 {strides = array<i32>} : memref<18x512xf32, #tpu.memory_space<vmem>>, vector<1x512xf32>,
    %c18 = arith.constant 18 : index
    %c0_67 = arith.constant 0 : index
    %64 = vector.load %arg13[%c18, %c0_67] : memref<32x512xf32, #tpu.memory_space<vmem>>, vector<1x512xf32>
    %c19 = arith.constant 19 : index
    %c0_68 = arith.constant 0 : index
    %65 = vector.load %arg13[%c19, %c0_68] : memref<32x512xf32, #tpu.memory_space<vmem>>, vector<1x512xf32>
    %66 = arith.maximumf %64, %65 : vector<1x512xf32>
    %c10_69 = arith.constant 10 : index
    %c0_70 = arith.constant 0 : index
    %67 = vector.load %arg14[%c10_69, %c0_70] : memref<18x512xf32, #tpu.memory_space<vmem>>, vector<1x512xf32>
    tpu.vector_store %arg14[%c10_69, %c0_70], %66 {strides = array<i32>} : memref<18x512xf32, #tpu.memory_space<vmem>>, vector<1x512xf32>,
    %c20 = arith.constant 20 : index
    %c0_71 = arith.constant 0 : index
    %68 = vector.load %arg13[%c20, %c0_71] : memref<32x512xf32, #tpu.memory_space<vmem>>, vector<1x512xf32>
    %c21 = arith.constant 21 : index
    %c0_72 = arith.constant 0 : index
    %69 = vector.load %arg13[%c21, %c0_72] : memref<32x512xf32, #tpu.memory_space<vmem>>, vector<1x512xf32>
    %70 = arith.maximumf %68, %69 : vector<1x512xf32>
    %c11_73 = arith.constant 11 : index
    %c0_74 = arith.constant 0 : index
    %71 = vector.load %arg14[%c11_73, %c0_74] : memref<18x512xf32, #tpu.memory_space<vmem>>, vector<1x512xf32>
    tpu.vector_store %arg14[%c11_73, %c0_74], %70 {strides = array<i32>} : memref<18x512xf32, #tpu.memory_space<vmem>>, vector<1x512xf32>,
    %c22 = arith.constant 22 : index
    %c0_75 = arith.constant 0 : index
    %72 = vector.load %arg13[%c22, %c0_75] : memref<32x512xf32, #tpu.memory_space<vmem>>, vector<1x512xf32>
    %c23 = arith.constant 23 : index
    %c0_76 = arith.constant 0 : index
    %73 = vector.load %arg13[%c23, %c0_76] : memref<32x512xf32, #tpu.memory_space<vmem>>, vector<1x512xf32>
    %74 = arith.maximumf %72, %73 : vector<1x512xf32>
    %c12_77 = arith.constant 12 : index
    %c0_78 = arith.constant 0 : index
    %75 = vector.load %arg14[%c12_77, %c0_78] : memref<18x512xf32, #tpu.memory_space<vmem>>, vector<1x512xf32>
    tpu.vector_store %arg14[%c12_77, %c0_78], %74 {strides = array<i32>} : memref<18x512xf32, #tpu.memory_space<vmem>>, vector<1x512xf32>,
    %c24 = arith.constant 24 : index
    %c0_79 = arith.constant 0 : index
    %76 = vector.load %arg13[%c24, %c0_79] : memref<32x512xf32, #tpu.memory_space<vmem>>, vector<1x512xf32>
    %c25 = arith.constant 25 : index
    %c0_80 = arith.constant 0 : index
    %77 = vector.load %arg13[%c25, %c0_80] : memref<32x512xf32, #tpu.memory_space<vmem>>, vector<1x512xf32>
    %78 = arith.maximumf %76, %77 : vector<1x512xf32>
    %c13_81 = arith.constant 13 : index
    %c0_82 = arith.constant 0 : index
    %79 = vector.load %arg14[%c13_81, %c0_82] : memref<18x512xf32, #tpu.memory_space<vmem>>, vector<1x512xf32>
    tpu.vector_store %arg14[%c13_81, %c0_82], %78 {strides = array<i32>} : memref<18x512xf32, #tpu.memory_space<vmem>>, vector<1x512xf32>,
    %c26 = arith.constant 26 : index
    %c0_83 = arith.constant 0 : index
    %80 = vector.load %arg13[%c26, %c0_83] : memref<32x512xf32, #tpu.memory_space<vmem>>, vector<1x512xf32>
    %c27 = arith.constant 27 : index
    %c0_84 = arith.constant 0 : index
    %81 = vector.load %arg13[%c27, %c0_84] : memref<32x512xf32, #tpu.memory_space<vmem>>, vector<1x512xf32>
    %82 = arith.maximumf %80, %81 : vector<1x512xf32>
    %c14_85 = arith.constant 14 : index
    %c0_86 = arith.constant 0 : index
    %83 = vector.load %arg14[%c14_85, %c0_86] : memref<18x512xf32, #tpu.memory_space<vmem>>, vector<1x512xf32>
    tpu.vector_store %arg14[%c14_85, %c0_86], %82 {strides = array<i32>} : memref<18x512xf32, #tpu.memory_space<vmem>>, vector<1x512xf32>,
    %c28 = arith.constant 28 : index
    %c0_87 = arith.constant 0 : index
    %84 = vector.load %arg13[%c28, %c0_87] : memref<32x512xf32, #tpu.memory_space<vmem>>, vector<1x512xf32>
    %c29 = arith.constant 29 : index
    %c0_88 = arith.constant 0 : index
    %85 = vector.load %arg13[%c29, %c0_88] : memref<32x512xf32, #tpu.memory_space<vmem>>, vector<1x512xf32>
    %86 = arith.maximumf %84, %85 : vector<1x512xf32>
    %c15_89 = arith.constant 15 : index
    %c0_90 = arith.constant 0 : index
    %87 = vector.load %arg14[%c15_89, %c0_90] : memref<18x512xf32, #tpu.memory_space<vmem>>, vector<1x512xf32>
    tpu.vector_store %arg14[%c15_89, %c0_90], %86 {strides = array<i32>} : memref<18x512xf32, #tpu.memory_space<vmem>>, vector<1x512xf32>,
    %c30 = arith.constant 30 : index
    %c0_91 = arith.constant 0 : index
    %88 = vector.load %arg13[%c30, %c0_91] : memref<32x512xf32, #tpu.memory_space<vmem>>, vector<1x512xf32>
    %c31 = arith.constant 31 : index
    %c0_92 = arith.constant 0 : index
    %89 = vector.load %arg13[%c31, %c0_92] : memref<32x512xf32, #tpu.memory_space<vmem>>, vector<1x512xf32>
    %90 = arith.maximumf %88, %89 : vector<1x512xf32>
    %c16_93 = arith.constant 16 : index
    %c0_94 = arith.constant 0 : index
    %91 = vector.load %arg14[%c16_93, %c0_94] : memref<18x512xf32, #tpu.memory_space<vmem>>, vector<1x512xf32>
    tpu.vector_store %arg14[%c16_93, %c0_94], %90 {strides = array<i32>} : memref<18x512xf32, #tpu.memory_space<vmem>>, vector<1x512xf32>,
    %c0_95 = arith.constant 0 : index
    %c0_96 = arith.constant 0 : index
    %92 = vector.load %arg14[%c0_95, %c0_96] : memref<18x512xf32, #tpu.memory_space<vmem>>, vector<16x512xf32>
    %c0_97 = arith.constant 0 : index
    %c0_98 = arith.constant 0 : index
    %c0_99 = arith.constant 0 : index
    %93 = vector.load %arg5[%c0_97, %c0_98, %c0_99] : memref<3x512x512xf32, #tpu.memory_space<vmem>>, vector<1x512x512xf32>
    %94 = vector.shape_cast %93 : vector<1x512x512xf32> to vector<512x512xf32>
    %cst_100 = arith.constant dense<0.000000e+00> : vector<16x512xf32>
    %95 = tpu.matmul %92, %94, %cst_100 {dimension_numbers = #tpu.dot_dimension_numbers<[1], [0], [0], [1], [0, 0, 1, 1], [], []>} : vector<16x512xf32>, vector<512x512xf32>, vector<16x512xf32> -> vector<16x512xf32>
    %c1_101 = arith.constant 1 : index
    %c0_102 = arith.constant 0 : index
    %96 = vector.load %arg14[%c1_101, %c0_102] : memref<18x512xf32, #tpu.memory_space<vmem>>, vector<16x512xf32>
    %c1_103 = arith.constant 1 : index
    %c0_104 = arith.constant 0 : index
    %c0_105 = arith.constant 0 : index
    %97 = vector.load %arg5[%c1_103, %c0_104, %c0_105] : memref<3x512x512xf32, #tpu.memory_space<vmem>>, vector<1x512x512xf32>
    %98 = vector.shape_cast %97 : vector<1x512x512xf32> to vector<512x512xf32>
    %cst_106 = arith.constant dense<0.000000e+00> : vector<16x512xf32>
    %99 = tpu.matmul %96, %98, %cst_106 {dimension_numbers = #tpu.dot_dimension_numbers<[1], [0], [0], [1], [0, 0, 1, 1], [], []>} : vector<16x512xf32>, vector<512x512xf32>, vector<16x512xf32> -> vector<16x512xf32>
    %100 = arith.addf %95, %99 : vector<16x512xf32>
    %c2_107 = arith.constant 2 : index
    %c0_108 = arith.constant 0 : index
    %101 = vector.load %arg14[%c2_107, %c0_108] : memref<18x512xf32, #tpu.memory_space<vmem>>, vector<16x512xf32>
    %c2_109 = arith.constant 2 : index
    %c0_110 = arith.constant 0 : index
    %c0_111 = arith.constant 0 : index
    %102 = vector.load %arg5[%c2_109, %c0_110, %c0_111] : memref<3x512x512xf32, #tpu.memory_space<vmem>>, vector<1x512x512xf32>
    %103 = vector.shape_cast %102 : vector<1x512x512xf32> to vector<512x512xf32>
    %cst_112 = arith.constant dense<0.000000e+00> : vector<16x512xf32>
    %104 = tpu.matmul %101, %103, %cst_112 {dimension_numbers = #tpu.dot_dimension_numbers<[1], [0], [0], [1], [0, 0, 1, 1], [], []>} : vector<16x512xf32>, vector<512x512xf32>, vector<16x512xf32> -> vector<16x512xf32>
    %105 = arith.addf %100, %104 : vector<16x512xf32>
    %c0_113 = arith.constant 0 : index
    %c0_114 = arith.constant 0 : index
    %106 = vector.load %arg6[%c0_113, %c0_114] : memref<1x512xf32, #tpu.memory_space<vmem>>, vector<1x512xf32>
    %107 = vector.broadcast %106 : vector<1x512xf32> to vector<16x512xf32>
    %108 = arith.addf %105, %107 : vector<16x512xf32>
    %cst_115 = arith.constant 0.000000e+00 : f32
    %109 = vector.broadcast %cst_115 : f32 to vector<16x512xf32>
    %110 = arith.maximumf %108, %109 : vector<16x512xf32>
    %c0_116 = arith.constant 0 : index
    %c0_117 = arith.constant 0 : index
    %111 = vector.load %arg7[%c0_116, %c0_117] : memref<512x512xf32, #tpu.memory_space<vmem>>, vector<512x512xf32>
    %cst_118 = arith.constant dense<0.000000e+00> : vector<16x512xf32>
    %112 = tpu.matmul %110, %111, %cst_118 {dimension_numbers = #tpu.dot_dimension_numbers<[1], [0], [0], [1], [0, 0, 1, 1], [], []>} : vector<16x512xf32>, vector<512x512xf32>, vector<16x512xf32> -> vector<16x512xf32>
    %113 = arith.maximumf %110, %112 : vector<16x512xf32>
    %c0_119 = arith.constant 0 : index
    %c0_120 = arith.constant 0 : index
    %114 = vector.load %arg15[%c0_119, %c0_120] : memref<16x512xf32, #tpu.memory_space<vmem>>, vector<16x512xf32>
    tpu.vector_store %arg15[%c0_119, %c0_120], %113 {strides = array<i32>} : memref<16x512xf32, #tpu.memory_space<vmem>>, vector<16x512xf32>,
    %c0_121 = arith.constant 0 : index
    %c0_122 = arith.constant 0 : index
    %115 = vector.load %arg9[%c0_121, %c0_122] : memref<1x128xf32, #tpu.memory_space<vmem>>, vector<1x128xf32>
    %c0_123 = arith.constant 0 : index
    %c0_124 = arith.constant 0 : index
    %116 = vector.load %arg15[%c0_123, %c0_124] : memref<16x512xf32, #tpu.memory_space<vmem>>, vector<1x512xf32>
    %c1_125 = arith.constant 1 : index
    %c0_126 = arith.constant 0 : index
    %117 = vector.load %arg15[%c1_125, %c0_126] : memref<16x512xf32, #tpu.memory_space<vmem>>, vector<1x512xf32>
    %118 = arith.maximumf %116, %117 : vector<1x512xf32>
    %c0_127 = arith.constant 0 : index
    %c0_128 = arith.constant 0 : index
    %c0_129 = arith.constant 0 : index
    %119 = vector.load %arg8[%c0_127, %c0_128, %c0_129] : memref<8x512x128xf32, #tpu.memory_space<vmem>>, vector<1x512x128xf32>
    %120 = vector.shape_cast %119 : vector<1x512x128xf32> to vector<512x128xf32>
    %cst_130 = arith.constant dense<0.000000e+00> : vector<1x128xf32>
    %121 = tpu.matmul %118, %120, %cst_130 {dimension_numbers = #tpu.dot_dimension_numbers<[1], [0], [0], [1], [0, 0, 1, 1], [], []>} : vector<1x512xf32>, vector<512x128xf32>, vector<1x128xf32> -> vector<1x128xf32>
    %122 = arith.addf %115, %121 : vector<1x128xf32>
    %c2_131 = arith.constant 2 : index
    %c0_132 = arith.constant 0 : index
    %123 = vector.load %arg15[%c2_131, %c0_132] : memref<16x512xf32, #tpu.memory_space<vmem>>, vector<1x512xf32>
    %c3_133 = arith.constant 3 : index
    %c0_134 = arith.constant 0 : index
    %124 = vector.load %arg15[%c3_133, %c0_134] : memref<16x512xf32, #tpu.memory_space<vmem>>, vector<1x512xf32>
    %125 = arith.maximumf %123, %124 : vector<1x512xf32>
    %c1_135 = arith.constant 1 : index
    %c0_136 = arith.constant 0 : index
    %c0_137 = arith.constant 0 : index
    %126 = vector.load %arg8[%c1_135, %c0_136, %c0_137] : memref<8x512x128xf32, #tpu.memory_space<vmem>>, vector<1x512x128xf32>
    %127 = vector.shape_cast %126 : vector<1x512x128xf32> to vector<512x128xf32>
    %cst_138 = arith.constant dense<0.000000e+00> : vector<1x128xf32>
    %128 = tpu.matmul %125, %127, %cst_138 {dimension_numbers = #tpu.dot_dimension_numbers<[1], [0], [0], [1], [0, 0, 1, 1], [], []>} : vector<1x512xf32>, vector<512x128xf32>, vector<1x128xf32> -> vector<1x128xf32>
    %129 = arith.addf %122, %128 : vector<1x128xf32>
    %c4_139 = arith.constant 4 : index
    %c0_140 = arith.constant 0 : index
    %130 = vector.load %arg15[%c4_139, %c0_140] : memref<16x512xf32, #tpu.memory_space<vmem>>, vector<1x512xf32>
    %c5_141 = arith.constant 5 : index
    %c0_142 = arith.constant 0 : index
    %131 = vector.load %arg15[%c5_141, %c0_142] : memref<16x512xf32, #tpu.memory_space<vmem>>, vector<1x512xf32>
    %132 = arith.maximumf %130, %131 : vector<1x512xf32>
    %c2_143 = arith.constant 2 : index
    %c0_144 = arith.constant 0 : index
    %c0_145 = arith.constant 0 : index
    %133 = vector.load %arg8[%c2_143, %c0_144, %c0_145] : memref<8x512x128xf32, #tpu.memory_space<vmem>>, vector<1x512x128xf32>
    %134 = vector.shape_cast %133 : vector<1x512x128xf32> to vector<512x128xf32>
    %cst_146 = arith.constant dense<0.000000e+00> : vector<1x128xf32>
    %135 = tpu.matmul %132, %134, %cst_146 {dimension_numbers = #tpu.dot_dimension_numbers<[1], [0], [0], [1], [0, 0, 1, 1], [], []>} : vector<1x512xf32>, vector<512x128xf32>, vector<1x128xf32> -> vector<1x128xf32>
    %136 = arith.addf %129, %135 : vector<1x128xf32>
    %c6_147 = arith.constant 6 : index
    %c0_148 = arith.constant 0 : index
    %137 = vector.load %arg15[%c6_147, %c0_148] : memref<16x512xf32, #tpu.memory_space<vmem>>, vector<1x512xf32>
    %c7_149 = arith.constant 7 : index
    %c0_150 = arith.constant 0 : index
    %138 = vector.load %arg15[%c7_149, %c0_150] : memref<16x512xf32, #tpu.memory_space<vmem>>, vector<1x512xf32>
    %139 = arith.maximumf %137, %138 : vector<1x512xf32>
    %c3_151 = arith.constant 3 : index
    %c0_152 = arith.constant 0 : index
    %c0_153 = arith.constant 0 : index
    %140 = vector.load %arg8[%c3_151, %c0_152, %c0_153] : memref<8x512x128xf32, #tpu.memory_space<vmem>>, vector<1x512x128xf32>
    %141 = vector.shape_cast %140 : vector<1x512x128xf32> to vector<512x128xf32>
    %cst_154 = arith.constant dense<0.000000e+00> : vector<1x128xf32>
    %142 = tpu.matmul %139, %141, %cst_154 {dimension_numbers = #tpu.dot_dimension_numbers<[1], [0], [0], [1], [0, 0, 1, 1], [], []>} : vector<1x512xf32>, vector<512x128xf32>, vector<1x128xf32> -> vector<1x128xf32>
    %143 = arith.addf %136, %142 : vector<1x128xf32>
    %c8_155 = arith.constant 8 : index
    %c0_156 = arith.constant 0 : index
    %144 = vector.load %arg15[%c8_155, %c0_156] : memref<16x512xf32, #tpu.memory_space<vmem>>, vector<1x512xf32>
    %c9_157 = arith.constant 9 : index
    %c0_158 = arith.constant 0 : index
    %145 = vector.load %arg15[%c9_157, %c0_158] : memref<16x512xf32, #tpu.memory_space<vmem>>, vector<1x512xf32>
    %146 = arith.maximumf %144, %145 : vector<1x512xf32>
    %c4_159 = arith.constant 4 : index
    %c0_160 = arith.constant 0 : index
    %c0_161 = arith.constant 0 : index
    %147 = vector.load %arg8[%c4_159, %c0_160, %c0_161] : memref<8x512x128xf32, #tpu.memory_space<vmem>>, vector<1x512x128xf32>
    %148 = vector.shape_cast %147 : vector<1x512x128xf32> to vector<512x128xf32>
    %cst_162 = arith.constant dense<0.000000e+00> : vector<1x128xf32>
    %149 = tpu.matmul %146, %148, %cst_162 {dimension_numbers = #tpu.dot_dimension_numbers<[1], [0], [0], [1], [0, 0, 1, 1], [], []>} : vector<1x512xf32>, vector<512x128xf32>, vector<1x128xf32> -> vector<1x128xf32>
    %150 = arith.addf %143, %149 : vector<1x128xf32>
    %c10_163 = arith.constant 10 : index
    %c0_164 = arith.constant 0 : index
    %151 = vector.load %arg15[%c10_163, %c0_164] : memref<16x512xf32, #tpu.memory_space<vmem>>, vector<1x512xf32>
    %c11_165 = arith.constant 11 : index
    %c0_166 = arith.constant 0 : index
    %152 = vector.load %arg15[%c11_165, %c0_166] : memref<16x512xf32, #tpu.memory_space<vmem>>, vector<1x512xf32>
    %153 = arith.maximumf %151, %152 : vector<1x512xf32>
    %c5_167 = arith.constant 5 : index
    %c0_168 = arith.constant 0 : index
    %c0_169 = arith.constant 0 : index
    %154 = vector.load %arg8[%c5_167, %c0_168, %c0_169] : memref<8x512x128xf32, #tpu.memory_space<vmem>>, vector<1x512x128xf32>
    %155 = vector.shape_cast %154 : vector<1x512x128xf32> to vector<512x128xf32>
    %cst_170 = arith.constant dense<0.000000e+00> : vector<1x128xf32>
    %156 = tpu.matmul %153, %155, %cst_170 {dimension_numbers = #tpu.dot_dimension_numbers<[1], [0], [0], [1], [0, 0, 1, 1], [], []>} : vector<1x512xf32>, vector<512x128xf32>, vector<1x128xf32> -> vector<1x128xf32>
    %157 = arith.addf %150, %156 : vector<1x128xf32>
    %c12_171 = arith.constant 12 : index
    %c0_172 = arith.constant 0 : index
    %158 = vector.load %arg15[%c12_171, %c0_172] : memref<16x512xf32, #tpu.memory_space<vmem>>, vector<1x512xf32>
    %c13_173 = arith.constant 13 : index
    %c0_174 = arith.constant 0 : index
    %159 = vector.load %arg15[%c13_173, %c0_174] : memref<16x512xf32, #tpu.memory_space<vmem>>, vector<1x512xf32>
    %160 = arith.maximumf %158, %159 : vector<1x512xf32>
    %c6_175 = arith.constant 6 : index
    %c0_176 = arith.constant 0 : index
    %c0_177 = arith.constant 0 : index
    %161 = vector.load %arg8[%c6_175, %c0_176, %c0_177] : memref<8x512x128xf32, #tpu.memory_space<vmem>>, vector<1x512x128xf32>
    %162 = vector.shape_cast %161 : vector<1x512x128xf32> to vector<512x128xf32>
    %cst_178 = arith.constant dense<0.000000e+00> : vector<1x128xf32>
    %163 = tpu.matmul %160, %162, %cst_178 {dimension_numbers = #tpu.dot_dimension_numbers<[1], [0], [0], [1], [0, 0, 1, 1], [], []>} : vector<1x512xf32>, vector<512x128xf32>, vector<1x128xf32> -> vector<1x128xf32>
    %164 = arith.addf %157, %163 : vector<1x128xf32>
    %c14_179 = arith.constant 14 : index
    %c0_180 = arith.constant 0 : index
    %165 = vector.load %arg15[%c14_179, %c0_180] : memref<16x512xf32, #tpu.memory_space<vmem>>, vector<1x512xf32>
    %c15_181 = arith.constant 15 : index
    %c0_182 = arith.constant 0 : index
    %166 = vector.load %arg15[%c15_181, %c0_182] : memref<16x512xf32, #tpu.memory_space<vmem>>, vector<1x512xf32>
    %167 = arith.maximumf %165, %166 : vector<1x512xf32>
    %c7_183 = arith.constant 7 : index
    %c0_184 = arith.constant 0 : index
    %c0_185 = arith.constant 0 : index
    %168 = vector.load %arg8[%c7_183, %c0_184, %c0_185] : memref<8x512x128xf32, #tpu.memory_space<vmem>>, vector<1x512x128xf32>
    %169 = vector.shape_cast %168 : vector<1x512x128xf32> to vector<512x128xf32>
    %cst_186 = arith.constant dense<0.000000e+00> : vector<1x128xf32>
    %170 = tpu.matmul %167, %169, %cst_186 {dimension_numbers = #tpu.dot_dimension_numbers<[1], [0], [0], [1], [0, 0, 1, 1], [], []>} : vector<1x512xf32>, vector<512x128xf32>, vector<1x128xf32> -> vector<1x128xf32>
    %171 = arith.addf %164, %170 : vector<1x128xf32>
    %cst_187 = arith.constant 0.000000e+00 : f32
    %172 = vector.broadcast %cst_187 : f32 to vector<1x128xf32>
    %173 = arith.maximumf %171, %172 : vector<1x128xf32>
    %c0_188 = arith.constant 0 : index
    %c0_189 = arith.constant 0 : index
    %174 = vector.load %arg10[%c0_188, %c0_189] : memref<128x10xf32, #tpu.memory_space<vmem>>, vector<128x10xf32>
    %cst_190 = arith.constant dense<0.000000e+00> : vector<1x10xf32>
    %175 = tpu.matmul %173, %174, %cst_190 {dimension_numbers = #tpu.dot_dimension_numbers<[1], [0], [0], [1], [0, 0, 1, 1], [], []>} : vector<1x128xf32>, vector<128x10xf32>, vector<1x10xf32> -> vector<1x10xf32>
    %c0_191 = arith.constant 0 : index
    %c0_192 = arith.constant 0 : index
    %176 = vector.load %arg11[%c0_191, %c0_192] : memref<1x10xf32, #tpu.memory_space<vmem>>, vector<1x10xf32>
    %177 = arith.addf %175, %176 : vector<1x10xf32>
    %c0_193 = arith.constant 0 : index
    %c0_194 = arith.constant 0 : index
    %c0_195 = arith.constant 0 : index
    %178 = vector.load %arg12[%c0_193, %c0_194, %c0_195] : memref<1x1x10xf32, #tpu.memory_space<vmem>>, vector<1x1x10xf32>
    %179 = vector.shape_cast %178 : vector<1x1x10xf32> to vector<1x10xf32>
    %180 = vector.shape_cast %177 : vector<1x10xf32> to vector<1x1x10xf32>
    tpu.vector_store %arg12[%c0_193, %c0_194, %c0_195], %180 {strides = array<i32>} : memref<1x1x10xf32, #tpu.memory_space<vmem>>, vector<1x1x10xf32>,
    return
  }
  func.func @transform_0(%arg0: i32) -> (i32, i32, i32) {
    %c0_i32 = arith.constant 0 : i32
    %c0_i32_0 = arith.constant 0 : i32
    %c0_i32_1 = arith.constant 0 : i32
    return %arg0, %c0_i32, %c0_i32_0 : i32, i32, i32
  }
  func.func @transform_1(%arg0: i32) -> (i32, i32, i32) {
    %c0_i32 = arith.constant 0 : i32
    %c0_i32_0 = arith.constant 0 : i32
    %c0_i32_1 = arith.constant 0 : i32
    %c0_i32_2 = arith.constant 0 : i32
    return %c0_i32, %c0_i32_0, %c0_i32_1 : i32, i32, i32
  }
  func.func @transform_2(%arg0: i32) -> (i32, i32) {
    %c0_i32 = arith.constant 0 : i32
    %c0_i32_0 = arith.constant 0 : i32
    %c0_i32_1 = arith.constant 0 : i32
    return %c0_i32, %c0_i32_0 : i32, i32
  }
  func.func @transform_3(%arg0: i32) -> (i32, i32) {
    %c0_i32 = arith.constant 0 : i32
    %c0_i32_0 = arith.constant 0 : i32
    %c0_i32_1 = arith.constant 0 : i32
    return %c0_i32, %c0_i32_0 : i32, i32
  }
  func.func @transform_4(%arg0: i32) -> (i32, i32, i32) {
    %c0_i32 = arith.constant 0 : i32
    %c0_i32_0 = arith.constant 0 : i32
    %c0_i32_1 = arith.constant 0 : i32
    %c0_i32_2 = arith.constant 0 : i32
    return %c0_i32, %c0_i32_0, %c0_i32_1 : i32, i32, i32
  }
  func.func @transform_5(%arg0: i32) -> (i32, i32) {
    %c0_i32 = arith.constant 0 : i32
    %c0_i32_0 = arith.constant 0 : i32
    %c0_i32_1 = arith.constant 0 : i32
    return %c0_i32, %c0_i32_0 : i32, i32
  }
  func.func @transform_6(%arg0: i32) -> (i32, i32) {
    %c0_i32 = arith.constant 0 : i32
    %c0_i32_0 = arith.constant 0 : i32
    %c0_i32_1 = arith.constant 0 : i32
    return %c0_i32, %c0_i32_0 : i32, i32
  }
  func.func @transform_7(%arg0: i32) -> (i32, i32, i32) {
    %c0_i32 = arith.constant 0 : i32
    %c0_i32_0 = arith.constant 0 : i32
    %c0_i32_1 = arith.constant 0 : i32
    %c0_i32_2 = arith.constant 0 : i32
    return %c0_i32, %c0_i32_0, %c0_i32_1 : i32, i32, i32
  }
  func.func @transform_8(%arg0: i32) -> (i32, i32) {
    %c0_i32 = arith.constant 0 : i32
    %c0_i32_0 = arith.constant 0 : i32
    %c0_i32_1 = arith.constant 0 : i32
    return %c0_i32, %c0_i32_0 : i32, i32
  }
  func.func @transform_9(%arg0: i32) -> (i32, i32) {
    %c0_i32 = arith.constant 0 : i32
    %c0_i32_0 = arith.constant 0 : i32
    %c0_i32_1 = arith.constant 0 : i32
    return %c0_i32, %c0_i32_0 : i32, i32
  }
  func.func @transform_10(%arg0: i32) -> (i32, i32) {
    %c0_i32 = arith.constant 0 : i32
    %c0_i32_0 = arith.constant 0 : i32
    %c0_i32_1 = arith.constant 0 : i32
    return %c0_i32, %c0_i32_0 : i32, i32
  }
  func.func @transform_11(%arg0: i32) -> (i32, i32, i32) {
    %c0_i32 = arith.constant 0 : i32
    %c0_i32_0 = arith.constant 0 : i32
    %c0_i32_1 = arith.constant 0 : i32
    return %arg0, %c0_i32, %c0_i32_0 : i32, i32, i32
  }
}

</mosaic_0001>

<bundles_post_ra>
// kernel: simple_cnn_forward.1
= control target key start
LH: loop header
LB: loop body
LE: loop exit
PB: predicated region body
PF: predicated region fallthrough
CT: control target
= control target key end

     0   :  { %s10722_s0 = inlined_call_operand.vmem [shape: f32[2,34,128], index: 0, kind: input, shape index: {}]   ;;  %s10723_s1 = inlined_call_operand.hbm [shape: f32[3,128,512], index: 1, kind: input, shape index: {}]   ;;  %s10724_s2 = inlined_call_operand.hbm [shape: f32[1,512], index: 2, kind: input, shape index: {}]   ;;  %s10725_s3 = inlined_call_operand.hbm [shape: f32[512,512], index: 3, kind: input, shape index: {}]   ;;  %s10726_s4 = inlined_call_operand.hbm [shape: f32[3,512,512], index: 4, kind: input, shape index: {}]   ;;  %s10727_s5 = inlined_call_operand.hbm [shape: f32[1,512], index: 5, kind: input, shape index: {}]   ;;  %s10728_s6 = inlined_call_operand.hbm [shape: f32[512,512], index: 6, kind: input, shape index: {}]   ;;  %s10729_s7 = inlined_call_operand.hbm [shape: f32[8,512,128], index: 7, kind: input, shape index: {}]   ;;  %s10730_s8 = inlined_call_operand.hbm [shape: f32[1,128], index: 8, kind: input, shape index: {}]   ;;  %s10731_s9 = inlined_call_operand.vmem [shape: f32[128,10], index: 9, kind: input, shape index: {}]   ;;  %s10732_s10 = inlined_call_operand.hbm [shape: f32[1,10], index: 10, kind: input, shape index: {}]   ;;  %s10733_s11 = inlined_call_operand.hbm [shape: f32[2,1,10], index: 11, kind: output, shape index: {}]  }
   0x1   :  { %10743 = sst [smem:[#allocation33_spill]] %s10724_s2 }
   0x2   :  { %10744 = sst [smem:[#allocation34_spill]] %s10726_s4 }
   0x3   :  { %16 = vsyncpa [#allocation6], 0 }
   0x4   :  { %17 = vsyncpa [#allocation9], 0 }
   0x5   :  { %18 = vsyncpa [#allocation12], 0 }
   0x6   :  { %19 = vsyncpa [#allocation15], 0 }
   0x7   :  { %20 = vsyncpa [#allocation18], 0 }
   0x8   :  { %21 = vsyncpa [#allocation7], 0 }
   0x9   :  { %23 = vsyncpa [#allocation7 + $0x1], 0  ;;  %s9925_s17 = smov 0   ;;  %s9927_s18 = smov 0  }
   0xa   :  { %s9929_s19 = smov 0   ;;  %s9931_s20 = smov 0  }
   0xb LB: > { %10745 = sst [smem:[#allocation27_spill]] %s9834_s17  ;;  %s9946_s21 = sadd.s32 4294967295, %s9846_s20   ;;  %s9846_s20 = sphi %s9931_s20, %s10776_s20   ;;  %s9842_s19 = sphi %s9929_s19, %s10778_s19   ;;  %s9838_s18 = sphi %s9927_s18, %s10780_s18   ;;  %s9834_s17 = sphi %s9925_s17, %s10779_s17  }
   0xc   : > { %10746 = sst [smem:[#allocation28_spill]] %s9842_s19  ;;  %s6627_s22 = sadd.s32 4294967294, %s9846_s20  }
   0xd   : > { %10747 = sst [smem:[#allocation29_spill]] %s9846_s20  ;;  %s9950_s23 = sadd.s32 1, %s9846_s20  }
   0xe   : > { %10748 = sst [smem:[#allocation30_spill]] %s9950_s23  ;;  %s272_s24 = sadd.s32 1, %s9842_s19 }
   0xf   : > { %s269_s25 = ssub.s32 %s9846_s20, %s9950_s23  ;;  %p282_p0 = scmp.ne.s32.totalorder %s9842_s19, %s9838_s18 }
  0x10   : > { %p270_p1 = scmp.eq.s32.totalorder %s269_s25, 0  ;;  %p283_p2 = scmp.eq.s32.totalorder %s9946_s21, 1 }
  0x11   : > { %p288_p3 = scmp.ne.s32.totalorder %s9838_s18, %s9834_s17  ;;  %p289_p4 = scmp.eq.s32.totalorder %s6627_s22, 1 }
  0x12   : > { %s9961_s26 = scalar_select %p270_p1, %s9842_s19, %s272_s24  }
  0x13   : > { %p9963_p5 = por %p283_p2, %p282_p0  ;;  %p9967_p6 = por %p289_p4, %p288_p3 }
  0x14   : > { %10749 = sst [smem:[#allocation31_spill]] %s9961_s26  ;;  %p6628_p7 = scmp.ge.s32.totalorder %s9846_s20, 1 }
  0x15   : > { %s10750_s27 = scalar_select %p9963_p5, 1, 0 }
  0x16   : > { %s10751_s28 = scalar_select %p9967_p6, 1, 0 }
  0x17   : > { %p296_p8 = scmp.lt.s32.totalorder %s9846_s20, 3  ;;  %p10737_p9 = scmp.eq.s32.totalorder %s9946_s21, 0 }
  0x18   : > { %10752 = sst [smem:[#allocation32_spill]] %s10751_s28  ;;  %s9848_s30 = smov [#allocation8]  }
  0x19   : > { %p9974_p10 = pnand %p6628_p7, %p296_p8  ;;  %s322_s12 = sshll.u32 %s9848_s30, 4  ;;  %s323_s12 = int_to_ptr.vmem [resolvable:$true] %s322_s12 }
  0x1a   : > { %s9849_s14 = smov [#allocation11]   ;;  %s9850_s16 = smov [#allocation14]  }
  0x1b   : > { %s10753_s29 = scalar_select %p9974_p10, 1, 0 }
  0x1c   : > { %p9408_p11 = pneg %p9974_p10  ;;  %s345_s15 = sshll.u32 %s9849_s14, 4  ;;  %s9986_s15 = int_to_ptr.vmem [resolvable:$true] %s345_s15 }
  0x1d   : > { %s9988_s22 = sshll.u32 %s9850_s16, 4  ;;  %s10755_s2 = sld [smem:[#allocation33_spill]]  ;;  %s370_s22 = int_to_ptr.vmem [resolvable:$true] %s9988_s22 }
  0x1e   : > { %p9982_p12 = pnand %p10737_p9, %p9408_p11 }
  0x20   : > { %p9998_p0 = pneg %p9982_p12 }
  0x23   : > { %s9512_s30 = scalar_lea.hbm %s10755_s2, 64 }
  0x24   : > { %p9513_p13 = scmp.ne.s32.totalorder %s10755_s2, %s9512_s30  ;;  %p9519_p3 = scmp.lt.u32.totalorder %s9512_s30, %s10755_s2 }
  0x26   : > { %p9515_p1 = pnand %p9998_p0, %p9513_p13 }
  0x28   : > { %p9516_p2 = pneg %p9515_p1 }
  0x2a   : > { %p9521_p4 = pnand %p9519_p3, %p9516_p2 }
  0x2c   : > { %9524 = shalt.err (!%p9521_p4)
}
  0x2d   : > { %s9525_s24 = scalar_lea.vmem %s323_s12, 64  ;;  %p9533_p9 = scmp.lt.s32.totalorder %s323_s12, %s323_s12 }
  0x2e   : > { %p9526_p7 = scmp.ne.s32.totalorder %s323_s12, %s9525_s24  ;;  %p9534_p6 = scmp.lt.s32.totalorder %s9525_s24, %s9525_s24 }
  0x30   : > { %p9528_p8 = pnand %p9526_p7, %p9998_p0  ;;  %p9535_p5 = por %p9534_p6, %p9533_p9 }
  0x32   : > { %p9529_p11 = pneg %p9528_p8 }
  0x34   : > { %p9536_p10 = pnand %p9535_p5, %p9529_p11 }
  0x36   : > { %9539 = shalt.err (!%p9536_p10)
}
  0x37   : > { %9414 = dma.hbm_to_vmem [thread:$0]  (!%p9982_p12), %s10755_s2, 64, %s323_s12, [#allocation9]  }
  0x38   : > { %s10757_s4 = sld [smem:[#allocation34_spill]] }
  0x3e   : > { %s9540_s14 = scalar_lea.hbm %s10757_s4, 98304 }
  0x3f   : > { %p9541_p13 = scmp.ne.s32.totalorder %s10757_s4, %s9540_s14  ;;  %p9547_p5 = scmp.lt.u32.totalorder %s9540_s14, %s10757_s4 }
  0x41   : > { %p9543_p1 = pnand %p9541_p13, %p9998_p0 }
  0x43   : > { %p9544_p6 = pneg %p9543_p1 }
  0x45   : > { %p9549_p9 = pnand %p9547_p5, %p9544_p6 }
  0x47   : > { %9552 = shalt.err (!%p9549_p9)
}
  0x48   : > { %s9553_s12 = scalar_lea.vmem %s9986_s15, 98304  ;;  %p9561_p4 = scmp.lt.s32.totalorder %s9986_s15, %s9986_s15 }
  0x49   : > { %p9554_p10 = scmp.ne.s32.totalorder %s9986_s15, %s9553_s12  ;;  %p9562_p7 = scmp.lt.s32.totalorder %s9553_s12, %s9553_s12 }
  0x4b   : > { %p9556_p2 = pnand %p9554_p10, %p9998_p0  ;;  %p9563_p8 = por %p9562_p7, %p9561_p4 }
  0x4d   : > { %p9557_p3 = pneg %p9556_p2 }
  0x4f   : > { %p9564_p11 = pnand %p9563_p8, %p9557_p3 }
  0x51   : > { %9567 = shalt.err (!%p9564_p11)
}
  0x52   : > { %s9851_s28 = smov 512   ;;  %s9852_s17 = smov 32  }
  0x53   : > { %9420 = dma.hbm_to_vmem [thread:$0]  (!%p9982_p12), %s10757_s4, 98304, %s9986_s15, [#allocation12], %s9851_s28, %s9851_s28, %s9852_s17  }
  0x54   : > { %s9568_s14 = scalar_lea.hbm %s10728_s6, 32768 }
  0x55   : > { %p9569_p13 = scmp.ne.s32.totalorder %s10728_s6, %s9568_s14  ;;  %p9575_p5 = scmp.lt.u32.totalorder %s9568_s14, %s10728_s6 }
  0x57   : > { %p9571_p1 = pnand %p9569_p13, %p9998_p0 }
  0x59   : > { %p9572_p6 = pneg %p9571_p1 }
  0x5b   : > { %p9577_p9 = pnand %p9575_p5, %p9572_p6 }
  0x5d   : > { %9580 = shalt.err (!%p9577_p9)
}
  0x5e   : > { %s9581_s19 = scalar_lea.vmem %s370_s22, 32768  ;;  %p9589_p4 = scmp.lt.s32.totalorder %s370_s22, %s370_s22 }
  0x5f   : > { %p9582_p10 = scmp.ne.s32.totalorder %s370_s22, %s9581_s19  ;;  %p9590_p7 = scmp.lt.s32.totalorder %s9581_s19, %s9581_s19 }
  0x61   : > { %p9584_p2 = pnand %p9582_p10, %p9998_p0  ;;  %p9591_p8 = por %p9590_p7, %p9589_p4 }
  0x63   : > { %p9585_p3 = pneg %p9584_p2 }
  0x65   : > { %p9592_p11 = pnand %p9591_p8, %p9585_p3 }
  0x67   : > { %9595 = shalt.err (!%p9592_p11)
}
  0x68   : > { %9426 = dma.hbm_to_vmem [thread:$0]  (!%p9982_p12), %s10728_s6, 32768, %s370_s22, [#allocation15], %s9851_s28, %s9851_s28, %s9852_s17  }
  0x69   : > { %s9853_s26 = smov [#allocation17]   ;;  %s9854_s30 = smov [#allocation5]  }
  0x6a   : > { %s396_s25 = sshll.u32 %s9853_s26, 4  ;;  %s308_s14 = sshll.u32 %s9854_s30, 4  ;;  %s397_s25 = int_to_ptr.vmem [resolvable:$true] %s396_s25  ;;  %s309_s14 = int_to_ptr.vmem [resolvable:$true] %s308_s14 }
  0x6b   : > { %s9596_s12 = scalar_lea.hbm %s10730_s8, 16 }
  0x6c   : > { %p9597_p13 = scmp.ne.s32.totalorder %s10730_s8, %s9596_s12  ;;  %p9603_p5 = scmp.lt.u32.totalorder %s9596_s12, %s10730_s8 }
  0x6e   : > { %p9599_p1 = pnand %p9597_p13, %p9998_p0 }
  0x70   : > { %p9600_p6 = pneg %p9599_p1 }
  0x72   : > { %p9605_p9 = pnand %p9603_p5, %p9600_p6 }
  0x74   : > { %9608 = shalt.err (!%p9605_p9)
}
  0x75   : > { %s9609_s22 = scalar_lea.vmem %s397_s25, 16  ;;  %s9616_s15 = scalar_lea.vmem %s397_s25, 32 }
  0x76   : > { %p9610_p10 = scmp.ne.s32.totalorder %s397_s25, %s9609_s22  ;;  %p9617_p4 = scmp.lt.s32.totalorder %s397_s25, %s397_s25 }
  0x77   : > { %p9618_p7 = scmp.lt.s32.totalorder %s9616_s15, %s9609_s22 }
  0x78   : > { %p9612_p2 = pnand %p9610_p10, %p9998_p0 }
  0x79   : > { %p9619_p8 = por %p9618_p7, %p9617_p4 }
  0x7a   : > { %p9613_p3 = pneg %p9612_p2 }
  0x7c   : > { %p9620_p11 = pnand %p9619_p8, %p9613_p3 }
  0x7e   : > { %9623 = shalt.err (!%p9620_p11)
}
  0x7f   : > { %9432 = dma.hbm_to_vmem [thread:$0]  (!%p9982_p12), %s10730_s8, 16, %s397_s25, [#allocation18]  }
  0x80   : > { %s9624_s16 = scalar_lea.hbm %s10723_s1, 24576 }
  0x81   : > { %p9625_p13 = scmp.ne.s32.totalorder %s10723_s1, %s9624_s16  ;;  %p9631_p5 = scmp.lt.u32.totalorder %s9624_s16, %s10723_s1 }
  0x83   : > { %p9627_p1 = pnand %p9625_p13, %p9998_p0 }
  0x85   : > { %p9628_p6 = pneg %p9627_p1 }
  0x87   : > { %p9633_p9 = pnand %p9631_p5, %p9628_p6 }
  0x89   : > { %9636 = shalt.err (!%p9633_p9)
}
  0x8a   : > { %s9637_s22 = scalar_lea.vmem %s309_s14, 24576  ;;  %p9645_p4 = scmp.lt.s32.totalorder %s309_s14, %s309_s14 }
  0x8b   : > { %p9638_p10 = scmp.ne.s32.totalorder %s309_s14, %s9637_s22  ;;  %p9646_p7 = scmp.lt.s32.totalorder %s9637_s22, %s9637_s22 }
  0x8d   : > { %p9640_p2 = pnand %p9638_p10, %p9998_p0  ;;  %p9647_p8 = por %p9646_p7, %p9645_p4 }
  0x8f   : > { %p9641_p3 = pneg %p9640_p2 }
  0x91   : > { %p9648_p11 = pnand %p9647_p8, %p9641_p3 }
  0x93   : > { %9651 = shalt.err (!%p9648_p11)
}
  0x94   : > { %9411 = dma.hbm_to_vmem [thread:$0]  (!%p9982_p12), %s10723_s1, 24576, %s309_s14, [#allocation6], %s9851_s28, %s9851_s28, %s9852_s17  }
  0x95   : > { %s9855_s4 = smov [#allocation10]   ;;  %s9856_s20 = smov [#allocation13]  }
  0x96   : > { %s332_s26 = sshll.u32 %s9855_s4, 4  ;;  %s359_s30 = sshll.u32 %s9856_s20, 4  ;;  %s333_s26 = int_to_ptr.vmem [resolvable:$true] %s332_s26  ;;  %s360_s30 = int_to_ptr.vmem [resolvable:$true] %s359_s30 }
  0x97   : > { %s9652_s12 = scalar_lea.hbm %s10725_s3, 32768 }
  0x98   : > { %p9653_p13 = scmp.ne.s32.totalorder %s10725_s3, %s9652_s12  ;;  %p9659_p5 = scmp.lt.u32.totalorder %s9652_s12, %s10725_s3 }
  0x9a   : > { %p9655_p1 = pnand %p9653_p13, %p9998_p0 }
  0x9c   : > { %p9656_p6 = pneg %p9655_p1 }
  0x9e   : > { %p9661_p9 = pnand %p9659_p5, %p9656_p6 }
  0xa0   : > { %9664 = shalt.err (!%p9661_p9)
}
  0xa1   : > { %s9665_s14 = scalar_lea.vmem %s333_s26, 32768  ;;  %p9673_p4 = scmp.lt.s32.totalorder %s333_s26, %s333_s26 }
  0xa2   : > { %p9666_p10 = scmp.ne.s32.totalorder %s333_s26, %s9665_s14  ;;  %p9674_p7 = scmp.lt.s32.totalorder %s9665_s14, %s9665_s14 }
  0xa4   : > { %p9668_p2 = pnand %p9666_p10, %p9998_p0  ;;  %p9675_p8 = por %p9674_p7, %p9673_p4 }
  0xa6   : > { %p9669_p3 = pneg %p9668_p2 }
  0xa8   : > { %p9676_p11 = pnand %p9675_p8, %p9669_p3 }
  0xaa   : > { %9679 = shalt.err (!%p9676_p11)
}
  0xab   : > { %9417 = dma.hbm_to_vmem [thread:$0]  (!%p9982_p12), %s10725_s3, 32768, %s333_s26, [#allocation9], %s9851_s28, %s9851_s28, %s9852_s17  }
  0xac   : > { %s9680_s24 = scalar_lea.hbm %s10727_s5, 64 }
  0xad   : > { %p9681_p13 = scmp.ne.s32.totalorder %s10727_s5, %s9680_s24  ;;  %p9687_p5 = scmp.lt.u32.totalorder %s9680_s24, %s10727_s5 }
  0xaf   : > { %p9683_p1 = pnand %p9681_p13, %p9998_p0 }
  0xb1   : > { %p9684_p6 = pneg %p9683_p1 }
  0xb3   : > { %p9689_p9 = pnand %p9687_p5, %p9684_p6 }
  0xb5   : > { %9692 = shalt.err (!%p9689_p9)
}
  0xb6   : > { %s9693_s25 = scalar_lea.vmem %s360_s30, 64  ;;  %p9701_p4 = scmp.lt.s32.totalorder %s360_s30, %s360_s30 }
  0xb7   : > { %p9694_p10 = scmp.ne.s32.totalorder %s360_s30, %s9693_s25  ;;  %p9702_p7 = scmp.lt.s32.totalorder %s9693_s25, %s9693_s25 }
  0xb9   : > { %p9696_p2 = pnand %p9694_p10, %p9998_p0  ;;  %p9703_p8 = por %p9702_p7, %p9701_p4 }
  0xbb   : > { %p9697_p3 = pneg %p9696_p2 }
  0xbd   : > { %p9704_p11 = pnand %p9703_p8, %p9697_p3 }
  0xbf   : > { %9707 = shalt.err (!%p9704_p11)
}
  0xc0   : > { %9423 = dma.hbm_to_vmem [thread:$0]  (!%p9982_p12), %s10727_s5, 64, %s360_s30, [#allocation12]  }
  0xc1   : > { %s9857_s26 = smov [#allocation16]   ;;  %s9708_s20 = scalar_lea.hbm %s10729_s7, 65536 }
  0xc2   : > { %s382_s14 = sshll.u32 %s9857_s26, 4  ;;  %p9709_p13 = scmp.ne.s32.totalorder %s10729_s7, %s9708_s20  ;;  %s383_s14 = int_to_ptr.vmem [resolvable:$true] %s382_s14 }
  0xc3   : > { %p9715_p5 = scmp.lt.u32.totalorder %s9708_s20, %s10729_s7 }
  0xc4   : > { %p9711_p1 = pnand %p9709_p13, %p9998_p0 }
  0xc6   : > { %p9712_p6 = pneg %p9711_p1 }
  0xc8   : > { %p9717_p9 = pnand %p9715_p5, %p9712_p6 }
  0xca   : > { %9720 = shalt.err (!%p9717_p9)
}
  0xcb   : > { %s9721_s30 = scalar_lea.vmem %s383_s14, 65536  ;;  %p9729_p4 = scmp.lt.s32.totalorder %s383_s14, %s383_s14 }
  0xcc   : > { %p9722_p10 = scmp.ne.s32.totalorder %s383_s14, %s9721_s30  ;;  %p9730_p7 = scmp.lt.s32.totalorder %s9721_s30, %s9721_s30 }
  0xce   : > { %p9724_p2 = pnand %p9722_p10, %p9998_p0  ;;  %p9731_p8 = por %p9730_p7, %p9729_p4 }
  0xd0   : > { %p9725_p3 = pneg %p9724_p2 }
  0xd2   : > { %p9732_p11 = pnand %p9731_p8, %p9725_p3 }
  0xd4   : > { %9735 = shalt.err (!%p9732_p11)
}
  0xd5   : > { %s9858_s2 = smov 128   ;;  %s9859_s22 = smov 8  }
  0xd6   : > { %9429 = dma.hbm_to_vmem [thread:$0]  (!%p9982_p12), %s10729_s7, 65536, %s383_s14, [#allocation15], %s9858_s2, %s9858_s2, %s9859_s22  }
  0xd7   : > { %s9860_s17 = smov [#allocation19]   ;;  %s9736_s20 = scalar_lea.hbm %s10732_s10, 16 }
  0xd8   : > { %s410_s26 = sshll.u32 %s9860_s17, 4  ;;  %p9737_p13 = scmp.ne.s32.totalorder %s10732_s10, %s9736_s20  ;;  %s411_s26 = int_to_ptr.vmem [resolvable:$true] %s410_s26 }
  0xd9   : > { %p9743_p5 = scmp.lt.u32.totalorder %s9736_s20, %s10732_s10 }
  0xda   : > { %p9739_p1 = pnand %p9737_p13, %p9998_p0 }
  0xdc   : > { %p9740_p6 = pneg %p9739_p1 }
  0xde   : > { %p9745_p9 = pnand %p9743_p5, %p9740_p6 }
  0xe0   : > { %9748 = shalt.err (!%p9745_p9)
}
  0xe1   : > { %s9749_s14 = scalar_lea.vmem %s411_s26, 16  ;;  %s9756_s30 = scalar_lea.vmem %s411_s26, 32 }
  0xe2   : > { %p9750_p10 = scmp.ne.s32.totalorder %s411_s26, %s9749_s14  ;;  %p9757_p4 = scmp.lt.s32.totalorder %s411_s26, %s411_s26 }
  0xe3   : > { %p9758_p7 = scmp.lt.s32.totalorder %s9756_s30, %s9749_s14 }
  0xe4   : > { %p9752_p2 = pnand %p9750_p10, %p9998_p0 }
  0xe5   : > { %p9759_p8 = por %p9758_p7, %p9757_p4 }
  0xe6   : > { %p9753_p3 = pneg %p9752_p2 }
  0xe8   : > { %p9760_p11 = pnand %p9759_p8, %p9753_p3 }
  0xea   : > { %9763 = shalt.err (!%p9760_p11)
}
  0xeb   : > { %9435 = dma.hbm_to_vmem [thread:$0]  (!%p9982_p12), %s10732_s10, 16, %s411_s26, [#allocation18]  }
  0xec   : > { %p10758_p13 = scmp.ne.s32.totalorder %s10753_s29, 0 }
  0xed   : > { %p10759_p1 = scmp.eq.s32.totalorder (!%p10758_p13), %s9946_s21, 0 }
  0xee   : > { %431 = sbr.rel (%p10758_p13) target bundleno = 2416 (0x970), region = 64 }
  0xf5   : > { %9809 = dma.done.wait (%p10759_p1), [#allocation6], 24576   ;;  %p10760_p0 = pmov %p10759_p1 }
  0xf7   : > { %9811 = vsyncadd (%p10760_p0), [#allocation6], 4294942720  ;;  %p10761_p6 = pmov %p10760_p0 }
  0xf8   : > { %p10762_p5 = pmov %p10760_p0 }
  0xf9   : > { %9813 = dma.done.wait (%p10761_p6), [#allocation9], 32832  }
  0xfa   : > { %9815 = vsyncadd (%p10762_p5), [#allocation9], 4294934464  ;;  %p10763_p9 = pmov %p10760_p0 }
  0xfb   : > { %p10764_p12 = pmov %p10760_p0 }
  0xfc   : > { %9817 = dma.done.wait (%p10763_p9), [#allocation12], 98368  }
  0xfd   : > { %9819 = vsyncadd (%p10764_p12), [#allocation12], 4294868928  ;;  %p10765_p10 = pmov %p10760_p0 }
  0xfe   : > { %p10766_p2 = pmov %p10760_p0 }
  0xff   : > { %9821 = dma.done.wait (%p10765_p10), [#allocation15], 98304  }
 0x100   : > { %9823 = vsyncadd (%p10766_p2), [#allocation15], 4294868992  ;;  %p10767_p3 = pmov %p10760_p0 }
 0x101   : > { %p10768_p4 = pmov %p10760_p0 }
 0x102   : > { %9825 = dma.done.wait (%p10767_p3), [#allocation18], 32  }
 0x103   : > { %9827 = vsyncadd (%p10768_p4), [#allocation18], 4294967264  ;;  %v9861_v0 = vmov 0.0   ;;  %v581_v1 = vld [vmem:[#allocation5 + $0x208] sm:$0xff]  ;;  %v583_v3 = vld [vmem:[#allocation5 + $0x218] sm:$0xff]  ;;  %p502_p7 = scmp.lt.s32.totalorder %s9946_s21, 1 }
 0x104   : > { %708 = vmatprep.mubr.f32.mxu0 %v9861_v0  ;;  %1961 = vst [vmem:[#allocation3] sm:$0xff] %v9861_v0  ;;  %1962 = vst [vmem:[#allocation3 + $0x8] sm:$0xff] %v9861_v0  ;;  %797 = vmatprep.mubr.f32.mxu1 %v9861_v0  ;;  %v585_v2 = vld [vmem:[#allocation5 + $0x228] sm:$0xff]  ;;  %v587_v5 = vld [vmem:[#allocation5 + $0x238] sm:$0xff]  ;;  %vm2645_vm1 = vcmask 1046528   ;;  %vm3563_vm2 = vcmask 1045504  }
 0x105   : > { %1963 = vst [vmem:[#allocation3 + $0x10] sm:$0xff] %v9861_v0  ;;  %1964 = vst [vmem:[#allocation3 + $0x18] sm:$0xff] %v9861_v0  ;;  %v7265_v4 = vpack.c.bf16 %v585_v2, %v581_v1  ;;  %v580_v6 = vld [vmem:[#allocation5 + $0x200] sm:$0xff]  ;;  %v7297_v8 = vpack.c.bf16 %v587_v5, %v583_v3  ;;  %v582_v10 = vld [vmem:[#allocation5 + $0x210] sm:$0xff]  ;;  %s10216_s23 = scalar_select %p502_p7, %s9946_s21, 1  ;;  %vm9863_vm3 = vmmov 0  }
 0x106   : > { %1965 = vst [vmem:[#allocation3 + $0x20] sm:$0xff] %v9861_v0  ;;  %1966 = vst [vmem:[#allocation3 + $0x28] sm:$0xff] %v9861_v0  ;;  %v584_v7 = vld [vmem:[#allocation5 + $0x220] sm:$0xff]  ;;  %v586_v11 = vld [vmem:[#allocation5 + $0x230] sm:$0xff]  ;;  %s6650_s13 = sshll.u32 %s9946_s21, 4  ;;  %vm6469_vm4 = vcmask 73728  }
 0x107   : > { %1967 = vst [vmem:[#allocation3 + $0x30] sm:$0xff] %v9861_v0  ;;  %1968 = vst [vmem:[#allocation3 + $0x38] sm:$0xff] %v9861_v0  ;;  %v7267_v9 = vpack.c.bf16 %v584_v7, %v580_v6  ;;  %v589_v12 = vld [vmem:[#allocation5 + $0x248] sm:$0xff]  ;;  %7266 = vmatprep.subr.bf16.mxu0 %v7265_v4  ;;  %v7299_v13 = vpack.c.bf16 %v586_v11, %v582_v10  ;;  %v591_v15 = vld [vmem:[#allocation5 + $0x258] sm:$0xff]  ;;  %7298 = vmatprep.subr.bf16.mxu1 %v7297_v8  ;;  %s9369_s29 = smul.u32 40, %s10216_s23  ;;  %s10680_s15 = scalar_lea.hbm %s10733_s11, %s6650_s13 }
 0x108   : > { %1969 = vst [vmem:[#allocation3 + $0x40] sm:$0x3] %v9861_v0  ;;  %1970 = vst [vmem:[#allocation3 + $0x48] sm:$0x3] %v9861_v0  ;;  %v593_v14 = vld [vmem:[#allocation5 + $0x268] sm:$0xff]  ;;  %v595_v16 = vld [vmem:[#allocation5 + $0x278] sm:$0xff] }
 0x109   : > { %1971 = vst [vmem:[#allocation3 + $0x50] sm:$0x3] %v9861_v0  ;;  %1972 = vst [vmem:[#allocation3 + $0x58] sm:$0x3] %v9861_v0  ;;  %7268 = vmatpush1.bf16.msra.mxu0 %v7267_v9  ;;  %v7269_v17 = vpack.c.bf16 %v593_v14, %v589_v12  ;;  %v7301_v18 = vpack.c.bf16 %v595_v16, %v591_v15  ;;  %v588_v19 = vld [vmem:[#allocation5 + $0x240] sm:$0xff]  ;;  %v590_v21 = vld [vmem:[#allocation5 + $0x250] sm:$0xff]  ;;  %7300 = vmatpush1.bf16.msra.mxu1 %v7299_v13  ;;  %s10222_s28 = scalar_lea.vmem %s10722_s0, %s9369_s29 }
 0x10a   : > { %v592_v20 = vld [vmem:[#allocation5 + $0x260] sm:$0xff]  ;;  %v594_v23 = vld [vmem:[#allocation5 + $0x270] sm:$0xff]  ;;  %v597_v24 = vld [vmem:[#allocation5 + $0x288] sm:$0xff]  ;;  %s500_s29 = sand.u32 1, %s9838_s18   ;;  %p10771_p11 = scmp.ne.s32.totalorder %s10750_s27, 0 }
 0x10b   : > { %v7271_v22 = vpack.c.bf16 %v592_v20, %v588_v19  ;;  %v601_v25 = vld [vmem:[#allocation5 + $0x2a8] sm:$0xff]  ;;  %7270 = vmatprep.subr.bf16.mxu0 %v7269_v17  ;;  %7302 = vmatprep.subr.bf16.mxu1 %v7301_v18  ;;  %v7303_v26 = vpack.c.bf16 %v594_v23, %v590_v21  ;;  %v599_v28 = vld [vmem:[#allocation5 + $0x298] sm:$0xff]  ;;  %v596_v30 = vld [vmem:[#allocation5 + $0x280] sm:$0xff]  ;;  %s501_s25 = scalar_lea.vmem [#allocation20], %s500_s29  ;;  %s6472_s4 = scalar_lea.sflag [#allocation7], %s500_s29 }
 0x10c   : > { %v7273_v27 = vpack.c.bf16 %v601_v25, %v597_v24  ;;  %v603_v29 = vld [vmem:[#allocation5 + $0x2b8] sm:$0xff]  ;;  %v600_v32 = vld [vmem:[#allocation5 + $0x2a0] sm:$0xff]  ;;  %v598_v33 = vld [vmem:[#allocation5 + $0x290] sm:$0xff]  ;;  %s9864_s21 = smov [#allocation20]  }
 0x10d   : > { %v7305_v31 = vpack.c.bf16 %v603_v29, %v599_v28  ;;  %v602_v34 = vld [vmem:[#allocation5 + $0x2b0] sm:$0xff]  ;;  %7272 = vmatpush1.bf16.msra.mxu0 %v7271_v22  ;;  %v7275_v35 = vpack.c.bf16 %v600_v32, %v596_v30  ;;  %v605_v36 = vld [vmem:[#allocation5 + $0x2c8] sm:$0xff]  ;;  %v607_v38 = vld [vmem:[#allocation5 + $0x2d8] sm:$0xff]  ;;  %7304 = vmatpush1.bf16.msra.mxu1 %v7303_v26  ;;  %s9768_s16 = sshll.u32 %s9864_s21, 4  ;;  %s9769_s16 = int_to_ptr.vmem [resolvable:$false] %s9768_s16 }
 0x10e   : > { %v609_v37 = vld [vmem:[#allocation5 + $0x2e8] sm:$0xff]  ;;  %7274 = vmatprep.subr.bf16.mxu0 %v7273_v27  ;;  %v7307_v39 = vpack.c.bf16 %v602_v34, %v598_v33  ;;  %v611_v41 = vld [vmem:[#allocation5 + $0x2f8] sm:$0xff]  ;;  %v604_v42 = vld [vmem:[#allocation5 + $0x2c0] sm:$0xff]  ;;  %s9770_s24 = scalar_lea.vmem %s9769_s16, 32 }
 0x10f   : > { %v7277_v40 = vpack.c.bf16 %v609_v37, %v605_v36  ;;  %v608_v43 = vld [vmem:[#allocation5 + $0x2e0] sm:$0xff]  ;;  %7306 = vmatprep.subr.bf16.mxu1 %v7305_v31  ;;  %v7309_v44 = vpack.c.bf16 %v611_v41, %v607_v38  ;;  %v606_v45 = vld [vmem:[#allocation5 + $0x2d0] sm:$0xff]  ;;  %v613_v47 = vld [vmem:[#allocation5 + $0x308] sm:$0xff] }
 0x110   : > { %v610_v46 = vld [vmem:[#allocation5 + $0x2f0] sm:$0xff]  ;;  %v617_v48 = vld [vmem:[#allocation5 + $0x328] sm:$0xff]  ;;  %v615_v49 = vld [vmem:[#allocation5 + $0x318] sm:$0xff]  ;;  %v7279_v51 = vpack.c.bf16 %v608_v43, %v604_v42 }
 0x111   : > { %v619_v50 = vld [vmem:[#allocation5 + $0x338] sm:$0xff]  ;;  %7276 = vmatpush1.bf16.msra.mxu0 %v7275_v35  ;;  %7308 = vmatpush1.bf16.msra.mxu1 %v7307_v39  ;;  %v7311_v52 = vpack.c.bf16 %v610_v46, %v606_v45  ;;  %v7281_v53 = vpack.c.bf16 %v617_v48, %v613_v47  ;;  %v612_v54 = vld [vmem:[#allocation5 + $0x300] sm:$0xff]  ;;  %v614_v56 = vld [vmem:[#allocation5 + $0x310] sm:$0xff] }
 0x112   : > { %7278 = vmatprep.subr.bf16.mxu0 %v7277_v40  ;;  %v616_v55 = vld [vmem:[#allocation5 + $0x320] sm:$0xff]  ;;  %7310 = vmatprep.subr.bf16.mxu1 %v7309_v44  ;;  %v7313_v57 = vpack.c.bf16 %v619_v50, %v615_v49  ;;  %v618_v58 = vld [vmem:[#allocation5 + $0x330] sm:$0xff]  ;;  %v621_v59 = vld [vmem:[#allocation5 + $0x348] sm:$0xff] }
 0x113   : > { %v625_v60 = vld [vmem:[#allocation5 + $0x368] sm:$0xff]  ;;  %v623_v61 = vld [vmem:[#allocation5 + $0x358] sm:$0xff]  ;;  %v7283_v63 = vpack.c.bf16 %v616_v55, %v612_v54  ;;  %v7315_v1 = vpack.c.bf16 %v618_v58, %v614_v56  ;;  %v620_v3 = vld [vmem:[#allocation5 + $0x340] sm:$0xff] }
 0x114   : > { %v627_v62 = vld [vmem:[#allocation5 + $0x378] sm:$0xff]  ;;  %v7285_v2 = vpack.c.bf16 %v625_v60, %v621_v59  ;;  %v624_v4 = vld [vmem:[#allocation5 + $0x360] sm:$0xff]  ;;  %v622_v5 = vld [vmem:[#allocation5 + $0x350] sm:$0xff] }
 0x115   : > { %7280 = vmatpush1.bf16.msra.mxu0 %v7279_v51  ;;  %7312 = vmatpush1.bf16.msra.mxu1 %v7311_v52  ;;  %v7317_v6 = vpack.c.bf16 %v627_v62, %v623_v61  ;;  %v626_v7 = vld [vmem:[#allocation5 + $0x370] sm:$0xff]  ;;  %v629_v8 = vld [vmem:[#allocation5 + $0x388] sm:$0xff]  ;;  %v631_v10 = vld [vmem:[#allocation5 + $0x398] sm:$0xff]  ;;  %v7287_v12 = vpack.c.bf16 %v624_v4, %v620_v3 }
 0x116   : > { %7282 = vmatprep.subr.bf16.mxu0 %v7281_v53  ;;  %7314 = vmatprep.subr.bf16.mxu1 %v7313_v57  ;;  %v633_v9 = vld [vmem:[#allocation5 + $0x3a8] sm:$0xff]  ;;  %v635_v11 = vld [vmem:[#allocation5 + $0x3b8] sm:$0xff]  ;;  %v7319_v13 = vpack.c.bf16 %v626_v7, %v622_v5  ;;  %v628_v15 = vld [vmem:[#allocation5 + $0x380] sm:$0xff] }
 0x117   : > { %v7289_v14 = vpack.c.bf16 %v633_v9, %v629_v8  ;;  %v632_v16 = vld [vmem:[#allocation5 + $0x3a0] sm:$0xff]  ;;  %v630_v17 = vld [vmem:[#allocation5 + $0x390] sm:$0xff]  ;;  %v7321_v18 = vpack.c.bf16 %v635_v11, %v631_v10  ;;  %v637_v20 = vld [vmem:[#allocation5 + $0x3c8] sm:$0xff] }
 0x118   : > { %v634_v19 = vld [vmem:[#allocation5 + $0x3b0] sm:$0xff]  ;;  %v641_v21 = vld [vmem:[#allocation5 + $0x3e8] sm:$0xff]  ;;  %v639_v22 = vld [vmem:[#allocation5 + $0x3d8] sm:$0xff]  ;;  %v7291_v24 = vpack.c.bf16 %v632_v16, %v628_v15 }
 0x119   : > { %7284 = vmatpush1.bf16.msra.mxu0 %v7283_v63  ;;  %7316 = vmatpush1.bf16.msra.mxu1 %v7315_v1  ;;  %v643_v23 = vld [vmem:[#allocation5 + $0x3f8] sm:$0xff]  ;;  %v7323_v25 = vpack.c.bf16 %v634_v19, %v630_v17  ;;  %v7293_v26 = vpack.c.bf16 %v641_v21, %v637_v20  ;;  %v636_v27 = vld [vmem:[#allocation5 + $0x3c0] sm:$0xff]  ;;  %v638_v29 = vld [vmem:[#allocation5 + $0x3d0] sm:$0xff] }
 0x11a   : > { %7286 = vmatprep.subr.bf16.mxu0 %v7285_v2  ;;  %7318 = vmatprep.subr.bf16.mxu1 %v7317_v6  ;;  %v640_v28 = vld [vmem:[#allocation5 + $0x3e0] sm:$0xff]  ;;  %v7325_v30 = vpack.c.bf16 %v643_v23, %v639_v22  ;;  %v642_v31 = vld [vmem:[#allocation5 + $0x3f0] sm:$0xff]  ;;  %v512_v32 = vld [vmem:[#allocation5 + $0x8] sm:$0xff] }
 0x11b   : > { %v516_v33 = vld [vmem:[#allocation5 + $0x28] sm:$0xff]  ;;  %v514_v34 = vld [vmem:[#allocation5 + $0x18] sm:$0xff]  ;;  %v7295_v36 = vpack.c.bf16 %v640_v28, %v636_v27  ;;  %v7327_v37 = vpack.c.bf16 %v642_v31, %v638_v29  ;;  %v511_v39 = vld [vmem:[#allocation5] sm:$0xff] }
 0x11c   : > { %v518_v35 = vld [vmem:[#allocation5 + $0x38] sm:$0xff]  ;;  %v7329_v38 = vpack.c.bf16 %v516_v33, %v512_v32  ;;  %v515_v40 = vld [vmem:[#allocation5 + $0x20] sm:$0xff]  ;;  %v513_v41 = vld [vmem:[#allocation5 + $0x10] sm:$0xff] }
 0x11d   : > { %7288 = vmatpush1.bf16.msra.mxu0 %v7287_v12  ;;  %7320 = vmatpush1.bf16.msra.mxu1 %v7319_v13  ;;  %v7361_v42 = vpack.c.bf16 %v518_v35, %v514_v34  ;;  %v517_v43 = vld [vmem:[#allocation5 + $0x30] sm:$0xff]  ;;  %v520_v44 = vld [vmem:[#allocation5 + $0x48] sm:$0xff]  ;;  %v522_v46 = vld [vmem:[#allocation5 + $0x58] sm:$0xff]  ;;  %v7331_v49 = vpack.c.bf16 %v515_v40, %v511_v39 }
 0x11e   : > { %7290 = vmatprep.subr.bf16.mxu0 %v7289_v14  ;;  %7322 = vmatprep.subr.bf16.mxu1 %v7321_v18  ;;  %v524_v45 = vld [vmem:[#allocation5 + $0x68] sm:$0xff]  ;;  %v526_v47 = vld [vmem:[#allocation5 + $0x78] sm:$0xff]  ;;  %v7363_v50 = vpack.c.bf16 %v517_v43, %v513_v41  ;;  %v519_v52 = vld [vmem:[#allocation5 + $0x40] sm:$0xff] }
 0x11f   : > { %v575_v48 = vld [vmem:[%s10222_s28 + $0x1] sm:$0xff]  ;;  %v7333_v51 = vpack.c.bf16 %v524_v45, %v520_v44  ;;  %v521_v54 = vld [vmem:[#allocation5 + $0x50] sm:$0xff]  ;;  %v7365_v55 = vpack.c.bf16 %v526_v47, %v522_v46  ;;  %v530_v59 = vld [vmem:[#allocation5 + $0x98] sm:$0xff] }
 0x120   : > { %v523_v53 = vld [vmem:[#allocation5 + $0x60] sm:$0xff]  ;;  %v525_v56 = vld [vmem:[#allocation5 + $0x70] sm:$0xff]  ;;  %v528_v57 = vld [vmem:[#allocation5 + $0x88] sm:$0xff] }
 0x121   : > { %7292 = vmatpush1.bf16.msra.mxu0 %v7291_v24  ;;  %7324 = vmatpush1.bf16.msra.mxu1 %v7323_v25  ;;  %v532_v58 = vld [vmem:[#allocation5 + $0xa8] sm:$0xff]  ;;  %v534_v60 = vld [vmem:[#allocation5 + $0xb8] sm:$0xff]  ;;  %v7335_v61 = vpack.c.bf16 %v523_v53, %v519_v52  ;;  %v7367_v63 = vpack.c.bf16 %v525_v56, %v521_v54  ;;  %v527_v2 = vld [vmem:[#allocation5 + $0x80] sm:$0xff] }
 0x122   : > { %7294 = vmatprep.subr.bf16.mxu0 %v7293_v26  ;;  %7326 = vmatprep.subr.bf16.mxu1 %v7325_v30  ;;  %v576_v62 = vld [vmem:[%s10222_s28 + $0x9] sm:$0xff]  ;;  %v7337_v1 = vpack.c.bf16 %v532_v58, %v528_v57  ;;  %v531_v3 = vld [vmem:[#allocation5 + $0xa0] sm:$0xff]  ;;  %v7369_v5 = vpack.c.bf16 %v534_v60, %v530_v59  ;;  %v538_v9 = vld [vmem:[#allocation5 + $0xd8] sm:$0xff] }
 0x123   : > { %v529_v4 = vld [vmem:[#allocation5 + $0x90] sm:$0xff]  ;;  %v536_v7 = vld [vmem:[#allocation5 + $0xc8] sm:$0xff]  ;;  %v542_v10 = vld [vmem:[#allocation5 + $0xf8] sm:$0xff]  ;;  %v7339_v11 = vpack.c.bf16 %v531_v3, %v527_v2 }
 0x124   : > { %v533_v6 = vld [vmem:[#allocation5 + $0xb0] sm:$0xff]  ;;  %v540_v8 = vld [vmem:[#allocation5 + $0xe8] sm:$0xff]  ;;  %v535_v15 = vld [vmem:[#allocation5 + $0xc0] sm:$0xff]  ;;  %v7373_v18 = vpack.c.bf16 %v542_v10, %v538_v9 }
 0x125   : > { %7296 = vmatpush1.bf16.msra.mxu0 %v7295_v36  ;;  %7328 = vmatpush1.bf16.msra.mxu1 %v7327_v37  ;;  %v577_v12 = vld [vmem:[%s10222_s28 + $0x11] sm:$0xff]  ;;  %v7371_v13 = vpack.c.bf16 %v533_v6, %v529_v4  ;;  %v7341_v14 = vpack.c.bf16 %v540_v8, %v536_v7  ;;  %v539_v16 = vld [vmem:[#allocation5 + $0xe0] sm:$0xff]  ;;  %v544_v20 = vld [vmem:[#allocation5 + $0x108] sm:$0xff] }
 0x126   : > { %7330 = vmatprep.subr.bf16.mxu0 %v7329_v38  ;;  %7362 = vmatprep.subr.bf16.mxu1 %v7361_v42  ;;  %v537_v17 = vld [vmem:[#allocation5 + $0xd0] sm:$0xff]  ;;  %v548_v21 = vld [vmem:[#allocation5 + $0x128] sm:$0xff]  ;;  %v546_v22 = vld [vmem:[#allocation5 + $0x118] sm:$0xff]  ;;  %v7343_v24 = vpack.c.bf16 %v539_v16, %v535_v15 }
 0x127   : > { %v541_v19 = vld [vmem:[#allocation5 + $0xf0] sm:$0xff]  ;;  %v550_v23 = vld [vmem:[#allocation5 + $0x138] sm:$0xff]  ;;  %v7345_v27 = vpack.c.bf16 %v548_v21, %v544_v20  ;;  %v543_v28 = vld [vmem:[#allocation5 + $0x100] sm:$0xff] }
 0x128   : > { %709 = vmatmul.mubr.f32.vlgmr.msra.gmra.mrb[0].mxu0 %v575_v48  ;;  %798 = vmatmul.mubr.f32.vlgmr.msra.gmra.mrb[0].mxu1 %v575_v48  ;;  %v578_v25 = vld [vmem:[%s10222_s28 + $0x19] sm:$0xff]  ;;  %v7375_v26 = vpack.c.bf16 %v541_v19, %v537_v17  ;;  %v545_v30 = vld [vmem:[#allocation5 + $0x110] sm:$0xff]  ;;  %v7377_v31 = vpack.c.bf16 %v550_v23, %v546_v22  ;;  %v552_v33 = vld [vmem:[#allocation5 + $0x148] sm:$0xff] }
 0x129   : > { %7332 = vmatpush1.bf16.msra.mxu0 %v7331_v49  ;;  %7364 = vmatpush1.bf16.msra.mxu1 %v7363_v50  ;;  %v547_v29 = vld [vmem:[#allocation5 + $0x120] sm:$0xff]  ;;  %v549_v32 = vld [vmem:[#allocation5 + $0x130] sm:$0xff]  ;;  %v556_v34 = vld [vmem:[#allocation5 + $0x168] sm:$0xff] }
 0x12a   : > { %7334 = vmatprep.subr.bf16.mxu0 %v7333_v51  ;;  %7366 = vmatprep.subr.bf16.mxu1 %v7365_v55  ;;  %v554_v35 = vld [vmem:[#allocation5 + $0x158] sm:$0xff]  ;;  %v7347_v37 = vpack.c.bf16 %v547_v29, %v543_v28  ;;  %v7379_v38 = vpack.c.bf16 %v549_v32, %v545_v30  ;;  %v7349_v39 = vpack.c.bf16 %v556_v34, %v552_v33  ;;  %v551_v40 = vld [vmem:[#allocation5 + $0x140] sm:$0xff]  ;;  %v553_v42 = vld [vmem:[#allocation5 + $0x150] sm:$0xff] }
 0x12b   : > { %714 = vmatprep.mubr.f32.mxu0 %v9861_v0  ;;  %803 = vmatprep.mubr.f32.mxu1 %v9861_v0  ;;  %v558_v36 = vld [vmem:[#allocation5 + $0x178] sm:$0xff]  ;;  %v555_v41 = vld [vmem:[#allocation5 + $0x160] sm:$0xff]  ;;  %v557_v44 = vld [vmem:[#allocation5 + $0x170] sm:$0xff] }
 0x12c   : > { %715 = vmatmul.mubr.f32.gmra.mrb[2].mxu0 %v576_v62  ;;  %804 = vmatmul.mubr.f32.gmra.mrb[2].mxu1 %v576_v62  ;;  %v7381_v43 = vpack.c.bf16 %v558_v36, %v554_v35  ;;  %v560_v45 = vld [vmem:[#allocation5 + $0x188] sm:$0xff]  ;;  %v562_v47 = vld [vmem:[#allocation5 + $0x198] sm:$0xff]  ;;  %v7351_v49 = vpack.c.bf16 %v555_v41, %v551_v40  ;;  %v7383_v50 = vpack.c.bf16 %v557_v44, %v553_v42  ;;  %v559_v52 = vld [vmem:[#allocation5 + $0x180] sm:$0xff] }
 0x12d   : > { %7336 = vmatpush1.bf16.msra.mxu0 %v7335_v61  ;;  %7368 = vmatpush1.bf16.msra.mxu1 %v7367_v63  ;;  %v564_v46 = vld [vmem:[#allocation5 + $0x1a8] sm:$0xff]  ;;  %v566_v48 = vld [vmem:[#allocation5 + $0x1b8] sm:$0xff]  ;;  %v563_v53 = vld [vmem:[#allocation5 + $0x1a0] sm:$0xff] }
 0x12e   : > { %7338 = vmatprep.subr.bf16.mxu0 %v7337_v1  ;;  %7370 = vmatprep.subr.bf16.mxu1 %v7369_v5  ;;  %v7353_v51 = vpack.c.bf16 %v564_v46, %v560_v45  ;;  %v561_v54 = vld [vmem:[#allocation5 + $0x190] sm:$0xff]  ;;  %v7385_v55 = vpack.c.bf16 %v566_v48, %v562_v47  ;;  %v568_v57 = vld [vmem:[#allocation5 + $0x1c8] sm:$0xff]  ;;  %v570_v59 = vld [vmem:[#allocation5 + $0x1d8] sm:$0xff]  ;;  %v7355_v61 = vpack.c.bf16 %v563_v53, %v559_v52 }
 0x12f   : > { %720 = vmatprep.mubr.f32.mxu0 %v9861_v0  ;;  %809 = vmatprep.mubr.f32.mxu1 %v9861_v0  ;;  %v565_v56 = vld [vmem:[#allocation5 + $0x1b0] sm:$0xff]  ;;  %v572_v58 = vld [vmem:[#allocation5 + $0x1e8] sm:$0xff]  ;;  %v574_v60 = vld [vmem:[#allocation5 + $0x1f8] sm:$0xff] }
 0x130   : > { %721 = vmatmul.mubr.f32.gmra.mrb[4].mxu0 %v577_v12  ;;  %810 = vmatmul.mubr.f32.gmra.mrb[4].mxu1 %v577_v12  ;;  %v7387_v62 = vpack.c.bf16 %v565_v56, %v561_v54  ;;  %v7357_v63 = vpack.c.bf16 %v572_v58, %v568_v57  ;;  %v567_v1 = vld [vmem:[#allocation5 + $0x1c0] sm:$0xff]  ;;  %v569_v3 = vld [vmem:[#allocation5 + $0x1d0] sm:$0xff]  ;;  %v7389_v4 = vpack.c.bf16 %v574_v60, %v570_v59  ;;  %v1006_v6 = vld [vmem:[#allocation5 + $0x408] sm:$0xff] }
 0x131   : > { %7340 = vmatpush1.bf16.msra.mxu0 %v7339_v11  ;;  %7372 = vmatpush1.bf16.msra.mxu1 %v7371_v13  ;;  %v571_v2 = vld [vmem:[#allocation5 + $0x1e0] sm:$0xff]  ;;  %v573_v5 = vld [vmem:[#allocation5 + $0x1f0] sm:$0xff]  ;;  %v1010_v7 = vld [vmem:[#allocation5 + $0x428] sm:$0xff] }
 0x132   : > { %7342 = vmatprep.subr.bf16.mxu0 %v7341_v14  ;;  %7374 = vmatprep.subr.bf16.mxu1 %v7373_v18  ;;  %v1008_v8 = vld [vmem:[#allocation5 + $0x418] sm:$0xff]  ;;  %v7359_v10 = vpack.c.bf16 %v571_v2, %v567_v1  ;;  %v7391_v11 = vpack.c.bf16 %v573_v5, %v569_v3  ;;  %v7393_v12 = vpack.c.bf16 %v1010_v7, %v1006_v6  ;;  %v1005_v13 = vld [vmem:[#allocation5 + $0x400] sm:$0xff]  ;;  %v1007_v15 = vld [vmem:[#allocation5 + $0x410] sm:$0xff] }
 0x133   : > { %726 = vmatprep.mubr.f32.mxu0 %v9861_v0  ;;  %815 = vmatprep.mubr.f32.mxu1 %v9861_v0  ;;  %v1012_v9 = vld [vmem:[#allocation5 + $0x438] sm:$0xff]  ;;  %v1009_v14 = vld [vmem:[#allocation5 + $0x420] sm:$0xff]  ;;  %v1011_v17 = vld [vmem:[#allocation5 + $0x430] sm:$0xff] }
 0x134   : > { %727 = vmatmul.mubr.f32.gmra.mrb[6].mxu0 %v578_v25  ;;  %816 = vmatmul.mubr.f32.gmra.mrb[6].mxu1 %v578_v25  ;;  %v7425_v16 = vpack.c.bf16 %v1012_v9, %v1008_v8  ;;  %v1014_v18 = vld [vmem:[#allocation5 + $0x448] sm:$0xff]  ;;  %v1016_v20 = vld [vmem:[#allocation5 + $0x458] sm:$0xff]  ;;  %v507_v22 = vld [vmem:[%s10222_s28] sm:$0xff]  ;;  %v7395_v23 = vpack.c.bf16 %v1009_v14, %v1005_v13 }
 0x135   : > { %7344 = vmatpush1.bf16.msra.mxu0 %v7343_v24  ;;  %7376 = vmatpush1.bf16.msra.mxu1 %v7375_v26  ;;  %v1018_v19 = vld [vmem:[#allocation5 + $0x468] sm:$0xff]  ;;  %v1020_v21 = vld [vmem:[#allocation5 + $0x478] sm:$0xff]  ;;  %v7427_v24 = vpack.c.bf16 %v1011_v17, %v1007_v15  ;;  %v1013_v26 = vld [vmem:[#allocation5 + $0x440] sm:$0xff] }
 0x136   : > { %7346 = vmatprep.subr.bf16.mxu0 %v7345_v27  ;;  %7378 = vmatprep.subr.bf16.mxu1 %v7377_v31  ;;  %v7397_v25 = vpack.c.bf16 %v1018_v19, %v1014_v18  ;;  %v1017_v27 = vld [vmem:[#allocation5 + $0x460] sm:$0xff]  ;;  %v1015_v28 = vld [vmem:[#allocation5 + $0x450] sm:$0xff]  ;;  %v7429_v29 = vpack.c.bf16 %v1020_v21, %v1016_v20  ;;  %v1022_v31 = vld [vmem:[#allocation5 + $0x488] sm:$0xff] }
 0x137   : > { %886 = vmatprep.mubr.f32.mxu0 %v9861_v0  ;;  %975 = vmatprep.mubr.f32.mxu1 %v9861_v0  ;;  %v1019_v30 = vld [vmem:[#allocation5 + $0x470] sm:$0xff]  ;;  %v1026_v32 = vld [vmem:[#allocation5 + $0x4a8] sm:$0xff]  ;;  %v1024_v33 = vld [vmem:[#allocation5 + $0x498] sm:$0xff]  ;;  %v7399_v35 = vpack.c.bf16 %v1017_v27, %v1013_v26 }
 0x138   : > { %v1028_v34 = vld [vmem:[#allocation5 + $0x4b8] sm:$0xff]  ;;  %v508_v36 = vld [vmem:[%s10222_s28 + $0x8] sm:$0xff]  ;;  %v1025_v40 = vld [vmem:[#allocation5 + $0x4a0] sm:$0xff] }
 0x139   : > { %7348 = vmatpush1.bf16.msra.mxu0 %v7347_v37  ;;  %7380 = vmatpush1.bf16.msra.mxu1 %v7379_v38  ;;  %v7431_v37 = vpack.c.bf16 %v1019_v30, %v1015_v28  ;;  %v7401_v38 = vpack.c.bf16 %v1026_v32, %v1022_v31  ;;  %v1023_v41 = vld [vmem:[#allocation5 + $0x490] sm:$0xff]  ;;  %v7433_v42 = vpack.c.bf16 %v1028_v34, %v1024_v33  ;;  %v1030_v44 = vld [vmem:[#allocation5 + $0x4c8] sm:$0xff]  ;;  %v1032_v46 = vld [vmem:[#allocation5 + $0x4d8] sm:$0xff] }
 0x13a   : > { %7350 = vmatprep.subr.bf16.mxu0 %v7349_v39  ;;  %7382 = vmatprep.subr.bf16.mxu1 %v7381_v43  ;;  %v1021_v39 = vld [vmem:[#allocation5 + $0x480] sm:$0xff]  ;;  %v1027_v43 = vld [vmem:[#allocation5 + $0x4b0] sm:$0xff]  ;;  %v1034_v45 = vld [vmem:[#allocation5 + $0x4e8] sm:$0xff] }
 0x13b   : > { %v1036_v47 = vld [vmem:[#allocation5 + $0x4f8] sm:$0xff]  ;;  %v7403_v48 = vpack.c.bf16 %v1025_v40, %v1021_v39  ;;  %v1029_v52 = vld [vmem:[#allocation5 + $0x4c0] sm:$0xff]  ;;  %v1031_v54 = vld [vmem:[#allocation5 + $0x4d0] sm:$0xff] }
 0x13c   : > { %v1033_v53 = vld [vmem:[#allocation5 + $0x4e0] sm:$0xff]  ;;  %v1035_v56 = vld [vmem:[#allocation5 + $0x4f0] sm:$0xff]  ;;  %v1038_v57 = vld [vmem:[#allocation5 + $0x508] sm:$0xff] }
 0x13d   : > { %7352 = vmatpush1.bf16.msra.mxu0 %v7351_v49  ;;  %7384 = vmatpush1.bf16.msra.mxu1 %v7383_v50  ;;  %v509_v49 = vld [vmem:[%s10222_s28 + $0x10] sm:$0xff]  ;;  %v7435_v50 = vpack.c.bf16 %v1027_v43, %v1023_v41  ;;  %v1042_v58 = vld [vmem:[#allocation5 + $0x528] sm:$0xff]  ;;  %v1040_v59 = vld [vmem:[#allocation5 + $0x518] sm:$0xff] }
 0x13e   : > { %7354 = vmatprep.subr.bf16.mxu0 %v7353_v51  ;;  %7386 = vmatprep.subr.bf16.mxu1 %v7385_v55  ;;  %v7405_v51 = vpack.c.bf16 %v1034_v45, %v1030_v44  ;;  %v7437_v55 = vpack.c.bf16 %v1036_v47, %v1032_v46  ;;  %v1044_v60 = vld [vmem:[#allocation5 + $0x538] sm:$0xff]  ;;  %v7409_v1 = vpack.c.bf16 %v1042_v58, %v1038_v57  ;;  %v1037_v2 = vld [vmem:[#allocation5 + $0x500] sm:$0xff]  ;;  %v1043_v6 = vld [vmem:[#allocation5 + $0x530] sm:$0xff] }
 0x13f   : > { %v1041_v3 = vld [vmem:[#allocation5 + $0x520] sm:$0xff]  ;;  %v7441_v5 = vpack.c.bf16 %v1044_v60, %v1040_v59  ;;  %v1046_v7 = vld [vmem:[#allocation5 + $0x548] sm:$0xff]  ;;  %v1048_v9 = vld [vmem:[#allocation5 + $0x558] sm:$0xff] }
 0x140   : > { %v1050_v8 = vld [vmem:[#allocation5 + $0x568] sm:$0xff]  ;;  %v1045_v14 = vld [vmem:[#allocation5 + $0x540] sm:$0xff]  ;;  %v1051_v18 = vld [vmem:[#allocation5 + $0x570] sm:$0xff] }
 0x141   : > { %7356 = vmatpush1.bf16.msra.mxu0 %v7355_v61  ;;  %7388 = vmatpush1.bf16.msra.mxu1 %v7387_v62  ;;  %v7407_v61 = vpack.c.bf16 %v1033_v53, %v1029_v52  ;;  %v510_v62 = vld [vmem:[%s10222_s28 + $0x18] sm:$0xff]  ;;  %v7413_v13 = vpack.c.bf16 %v1050_v8, %v1046_v7  ;;  %v1049_v15 = vld [vmem:[#allocation5 + $0x560] sm:$0xff]  ;;  %v1054_v19 = vld [vmem:[#allocation5 + $0x588] sm:$0xff] }
 0x142   : > { %7358 = vmatprep.subr.bf16.mxu0 %v7357_v63  ;;  %7390 = vmatprep.subr.bf16.mxu1 %v7389_v4  ;;  %v7439_v63 = vpack.c.bf16 %v1035_v56, %v1031_v54  ;;  %v1039_v4 = vld [vmem:[#allocation5 + $0x510] sm:$0xff]  ;;  %v1058_v20 = vld [vmem:[#allocation5 + $0x5a8] sm:$0xff]  ;;  %v1056_v21 = vld [vmem:[#allocation5 + $0x598] sm:$0xff] }
 0x143   : > { %v1053_v26 = vld [vmem:[#allocation5 + $0x580] sm:$0xff]  ;;  %v1055_v28 = vld [vmem:[#allocation5 + $0x590] sm:$0xff]  ;;  %v1062_v31 = vld [vmem:[#allocation5 + $0x5c8] sm:$0xff] }
 0x144   : > { %v1057_v27 = vld [vmem:[#allocation5 + $0x5a0] sm:$0xff]  ;;  %v1059_v30 = vld [vmem:[#allocation5 + $0x5b0] sm:$0xff]  ;;  %v1066_v32 = vld [vmem:[#allocation5 + $0x5e8] sm:$0xff] }
 0x145   : > { %7360 = vmatpush1.bf16.msra.mxu0 %v7359_v10  ;;  %7392 = vmatpush1.bf16.msra.mxu1 %v7391_v11  ;;  %v1052_v10 = vld [vmem:[#allocation5 + $0x578] sm:$0xff]  ;;  %v7411_v11 = vpack.c.bf16 %v1041_v3, %v1037_v2  ;;  %v1065_v39 = vld [vmem:[#allocation5 + $0x5e0] sm:$0xff]  ;;  %v1063_v40 = vld [vmem:[#allocation5 + $0x5d0] sm:$0xff] }
 0x146   : > { %7394 = vmatprep.subr.bf16.mxu0 %v7393_v12  ;;  %7426 = vmatprep.subr.bf16.mxu1 %v7425_v16  ;;  %v7443_v12 = vpack.c.bf16 %v1043_v6, %v1039_v4  ;;  %v1047_v16 = vld [vmem:[#allocation5 + $0x550] sm:$0xff]  ;;  %v7445_v17 = vpack.c.bf16 %v1052_v10, %v1048_v9  ;;  %v1064_v33 = vld [vmem:[#allocation5 + $0x5d8] sm:$0xff]  ;;  %v1321_v52 = vld [vmem:[#allocation10 + $0x20] sm:$0xff] }
 0x147   : > { %v1068_v34 = vld [vmem:[#allocation5 + $0x5f8] sm:$0xff]  ;;  %v1318_v43 = vld [vmem:[#allocation10 + $0x8] sm:$0xff]  ;;  %v1000_v57 = vld [vmem:[%s10222_s28 + $0x2] sm:$0xff] }
 0x148   : > { %887 = vmatmul.mubr.f32.vlgmr.msra.gmra.mrb[0].mxu0 %v507_v22  ;;  %976 = vmatmul.mubr.f32.vlgmr.msra.gmra.mrb[0].mxu1 %v507_v22  ;;  %v1060_v22 = vld [vmem:[#allocation5 + $0x5b8] sm:$0xff]  ;;  %v7453_v41 = vpack.c.bf16 %v1068_v34, %v1064_v33  ;;  %v1322_v44 = vld [vmem:[#allocation10 + $0x28] sm:$0xff] }
 0x149   : > { %7396 = vmatpush1.bf16.msra.mxu0 %v7395_v23  ;;  %7428 = vmatpush1.bf16.msra.mxu1 %v7427_v24  ;;  %v7415_v23 = vpack.c.bf16 %v1049_v15, %v1045_v14  ;;  %v7447_v24 = vpack.c.bf16 %v1051_v18, %v1047_v16  ;;  %v1320_v45 = vld [vmem:[#allocation10 + $0x18] sm:$0xff]  ;;  %v1319_v53 = vld [vmem:[#allocation10 + $0x10] sm:$0xff]  ;;  %v1330_v56 = vld [vmem:[#allocation10 + $0x68] sm:$0xff] }
 0x14a   : > { %7398 = vmatprep.subr.bf16.mxu0 %v7397_v25  ;;  %7430 = vmatprep.subr.bf16.mxu1 %v7429_v29  ;;  %v7417_v25 = vpack.c.bf16 %v1058_v20, %v1054_v19  ;;  %v7449_v29 = vpack.c.bf16 %v1060_v22, %v1056_v21  ;;  %v1324_v46 = vld [vmem:[#allocation10 + $0x38] sm:$0xff]  ;;  %v1323_v54 = vld [vmem:[#allocation10 + $0x30] sm:$0xff]  ;;  %v1338_v6 = vld [vmem:[#allocation10 + $0xa8] sm:$0xff] }
 0x14b   : > { %892 = vmatprep.mubr.f32.mxu0 %v9861_v0  ;;  %981 = vmatprep.mubr.f32.mxu1 %v9861_v0  ;;  %v1328_v58 = vld [vmem:[#allocation10 + $0x58] sm:$0xff]  ;;  %v1327_v2 = vld [vmem:[#allocation10 + $0x50] sm:$0xff]  ;;  %v1001_v7 = vld [vmem:[%s10222_s28 + $0xa] sm:$0xff] }
 0x14c   : > { %893 = vmatmul.mubr.f32.gmra.mrb[2].mxu0 %v508_v36  ;;  %982 = vmatmul.mubr.f32.gmra.mrb[2].mxu1 %v508_v36  ;;  %v7451_v36 = vpack.c.bf16 %v1059_v30, %v1055_v28  ;;  %v1332_v59 = vld [vmem:[#allocation10 + $0x78] sm:$0xff]  ;;  %v1331_v4 = vld [vmem:[#allocation10 + $0x70] sm:$0xff]  ;;  %v1337_v14 = vld [vmem:[#allocation10 + $0xa0] sm:$0xff] }
 0x14d   : > { %7400 = vmatpush1.bf16.msra.mxu0 %v7399_v35  ;;  %7432 = vmatpush1.bf16.msra.mxu1 %v7431_v37  ;;  %v7419_v35 = vpack.c.bf16 %v1057_v27, %v1053_v26  ;;  %v7421_v37 = vpack.c.bf16 %v1066_v32, %v1062_v31  ;;  %v7589_v3 = vpack.c.bf16 %v1332_v59, %v1328_v58  ;;  %v1336_v8 = vld [vmem:[#allocation10 + $0x98] sm:$0xff]  ;;  %v1335_v15 = vld [vmem:[#allocation10 + $0x90] sm:$0xff]  ;;  %v1342_v18 = vld [vmem:[#allocation10 + $0xc8] sm:$0xff] }
 0x14e   : > { %7402 = vmatprep.subr.bf16.mxu0 %v7401_v38  ;;  %7434 = vmatprep.subr.bf16.mxu1 %v7433_v42  ;;  %v1061_v38 = vld [vmem:[#allocation5 + $0x5c0] sm:$0xff]  ;;  %v1067_v42 = vld [vmem:[#allocation5 + $0x5f0] sm:$0xff] }
 0x14f   : > { %898 = vmatprep.mubr.f32.mxu0 %v9861_v0  ;;  %987 = vmatprep.mubr.f32.mxu1 %v9861_v0  ;;  %v7423_v47 = vpack.c.bf16 %v1065_v39, %v1061_v38  ;;  %v1340_v9 = vld [vmem:[#allocation10 + $0xb8] sm:$0xff]  ;;  %v1346_v19 = vld [vmem:[#allocation10 + $0xe8] sm:$0xff]  ;;  %v1341_v26 = vld [vmem:[#allocation10 + $0xc0] sm:$0xff] }
 0x150   : > { %899 = vmatmul.mubr.f32.gmra.mrb[4].mxu0 %v509_v49  ;;  %988 = vmatmul.mubr.f32.gmra.mrb[4].mxu1 %v509_v49  ;;  %v7457_v49 = vpack.c.bf16 %v1322_v44, %v1318_v43  ;;  %v7593_v16 = vpack.c.bf16 %v1340_v9, %v1336_v8  ;;  %v1002_v20 = vld [vmem:[%s10222_s28 + $0x12] sm:$0xff]  ;;  %v1344_v21 = vld [vmem:[#allocation10 + $0xd8] sm:$0xff]  ;;  %v1345_v27 = vld [vmem:[#allocation10 + $0xe0] sm:$0xff] }
 0x151   : > { %7404 = vmatpush1.bf16.msra.mxu0 %v7403_v48  ;;  %7436 = vmatpush1.bf16.msra.mxu1 %v7435_v50  ;;  %v7455_v48 = vpack.c.bf16 %v1067_v42, %v1063_v40  ;;  %v7585_v50 = vpack.c.bf16 %v1324_v46, %v1320_v45  ;;  %v1348_v22 = vld [vmem:[#allocation10 + $0xf8] sm:$0xff]  ;;  %v1343_v28 = vld [vmem:[#allocation10 + $0xd0] sm:$0xff]  ;;  %v1350_v31 = vld [vmem:[#allocation10 + $0x108] sm:$0xff] }
 0x152   : > { %7406 = vmatprep.subr.bf16.mxu0 %v7405_v51  ;;  %7438 = vmatprep.subr.bf16.mxu1 %v7437_v55  ;;  %v1317_v51 = vld [vmem:[#allocation10] sm:$0xff]  ;;  %v1326_v55 = vld [vmem:[#allocation10 + $0x48] sm:$0xff]  ;;  %v1347_v30 = vld [vmem:[#allocation10 + $0xf0] sm:$0xff] }
 0x153   : > { %904 = vmatprep.mubr.f32.mxu0 %v9861_v0  ;;  %993 = vmatprep.mubr.f32.mxu1 %v9861_v0  ;;  %v7459_v60 = vpack.c.bf16 %v1321_v52, %v1317_v51  ;;  %v1354_v32 = vld [vmem:[#allocation10 + $0x128] sm:$0xff]  ;;  %v1003_v33 = vld [vmem:[%s10222_s28 + $0x1a] sm:$0xff]  ;;  %v7599_v38 = vpack.c.bf16 %v1347_v30, %v1343_v28  ;;  %v1349_v40 = vld [vmem:[#allocation10 + $0x100] sm:$0xff]  ;;  %s6484_s28 = sshll.u32 %s501_s25, 4  ;;  %s10682_s28 = int_to_ptr.vmem [resolvable:$true] %s6484_s28 }
 0x154   : > { %905 = vmatmul.mubr.f32.gmra.mrb[6].mxu0 %v510_v62  ;;  %994 = vmatmul.mubr.f32.gmra.mrb[6].mxu1 %v510_v62  ;;  %v7461_v62 = vpack.c.bf16 %v1330_v56, %v1326_v55  ;;  %v1352_v34 = vld [vmem:[#allocation10 + $0x118] sm:$0xff]  ;;  %v7473_v39 = vpack.c.bf16 %v1354_v32, %v1350_v31  ;;  %v1351_v42 = vld [vmem:[#allocation10 + $0x110] sm:$0xff]  ;;  %v1358_v44 = vld [vmem:[#allocation10 + $0x148] sm:$0xff]  ;;  %s9764_s20 = scalar_lea.vmem %s10682_s28, 16  ;;  %p9771_p0 = scmp.lt.s32.totalorder %s10682_s28, %s9769_s16 }
 0x155   : > { %7408 = vmatpush1.bf16.msra.mxu0 %v7407_v61  ;;  %7440 = vmatpush1.bf16.msra.mxu1 %v7439_v63  ;;  %v7587_v61 = vpack.c.bf16 %v1323_v54, %v1319_v53  ;;  %v1325_v63 = vld [vmem:[#allocation10 + $0x40] sm:$0xff]  ;;  %v1355_v43 = vld [vmem:[#allocation10 + $0x130] sm:$0xff]  ;;  %v1362_v45 = vld [vmem:[#allocation10 + $0x168] sm:$0xff]  ;;  %p9765_p8 = scmp.ne.s32.totalorder %s10682_s28, %s9764_s20  ;;  %p9772_p6 = scmp.lt.s32.totalorder %s9770_s24, %s9764_s20 }
 0x156   : > { %7410 = vmatprep.subr.bf16.mxu0 %v7409_v1  ;;  %7442 = vmatprep.subr.bf16.mxu1 %v7441_v5  ;;  %v1329_v1 = vld [vmem:[#allocation10 + $0x60] sm:$0xff]  ;;  %v1334_v5 = vld [vmem:[#allocation10 + $0x88] sm:$0xff]  ;;  %v1360_v46 = vld [vmem:[#allocation10 + $0x158] sm:$0xff] }
 0x157   : > { %1133 = vmatprep.mubr.f32.mxu0 %v9861_v0  ;;  %1222 = vmatprep.mubr.f32.mxu1 %v9861_v0  ;;  %v7463_v10 = vpack.c.bf16 %v1329_v1, %v1325_v63  ;;  %v1357_v51 = vld [vmem:[#allocation10 + $0x140] sm:$0xff]  ;;  %v1359_v53 = vld [vmem:[#allocation10 + $0x150] sm:$0xff]  ;;  %v1366_v56 = vld [vmem:[#allocation10 + $0x188] sm:$0xff]  ;;  %p9766_p13 = pnand %p9765_p8, %p10771_p11  ;;  %p9773_p5 = por %p9772_p6, %p9771_p0 }
 0x158   : > { %v1361_v52 = vld [vmem:[#allocation10 + $0x160] sm:$0xff]  ;;  %v1363_v55 = vld [vmem:[#allocation10 + $0x170] sm:$0xff]  ;;  %v1368_v58 = vld [vmem:[#allocation10 + $0x198] sm:$0xff] }
 0x159   : > { %7412 = vmatpush1.bf16.msra.mxu0 %v7411_v11  ;;  %7444 = vmatpush1.bf16.msra.mxu1 %v7443_v12  ;;  %v7591_v11 = vpack.c.bf16 %v1331_v4, %v1327_v2  ;;  %v7465_v12 = vpack.c.bf16 %v1338_v6, %v1334_v5  ;;  %v1372_v59 = vld [vmem:[#allocation10 + $0x1b8] sm:$0xff]  ;;  %v1365_v63 = vld [vmem:[#allocation10 + $0x180] sm:$0xff]  ;;  %v1367_v2 = vld [vmem:[#allocation10 + $0x190] sm:$0xff]  ;;  %p9767_p1 = pneg %p9766_p13 }
 0x15a   : > { %7414 = vmatprep.subr.bf16.mxu0 %v7413_v13  ;;  %7446 = vmatprep.subr.bf16.mxu1 %v7445_v17  ;;  %v1333_v13 = vld [vmem:[#allocation10 + $0x80] sm:$0xff]  ;;  %v1339_v17 = vld [vmem:[#allocation10 + $0xb0] sm:$0xff]  ;;  %v1374_v5 = vld [vmem:[#allocation10 + $0x1c8] sm:$0xff] }
 0x15b   : > { %v1369_v1 = vld [vmem:[#allocation10 + $0x1a0] sm:$0xff]  ;;  %v1371_v4 = vld [vmem:[#allocation10 + $0x1b0] sm:$0xff]  ;;  %v1378_v6 = vld [vmem:[#allocation10 + $0x1e8] sm:$0xff]  ;;  %p9774_p9 = pnand %p9773_p5, %p9767_p1 }
 0x15c   : > { %v1380_v8 = vld [vmem:[#allocation10 + $0x1f8] sm:$0xff]  ;;  %v7483_v9 = vpack.c.bf16 %v1369_v1, %v1365_v63  ;;  %v1387_v28 = vld [vmem:[#allocation10 + $0x230] sm:$0xff]  ;;  %v1394_v30 = vld [vmem:[#allocation10 + $0x268] sm:$0xff] }
 0x15d   : > { %7416 = vmatpush1.bf16.msra.mxu0 %v7415_v23  ;;  %7448 = vmatpush1.bf16.msra.mxu1 %v7447_v24  ;;  %v7467_v23 = vpack.c.bf16 %v1337_v14, %v1333_v13  ;;  %v7595_v24 = vpack.c.bf16 %v1339_v17, %v1335_v15  ;;  %v1377_v13 = vld [vmem:[#allocation10 + $0x1e0] sm:$0xff]  ;;  %v1375_v14 = vld [vmem:[#allocation10 + $0x1d0] sm:$0xff]  ;;  %v1382_v17 = vld [vmem:[#allocation10 + $0x208] sm:$0xff] }
 0x15e   : > { %7418 = vmatprep.subr.bf16.mxu0 %v7417_v25  ;;  %7450 = vmatprep.subr.bf16.mxu1 %v7449_v29  ;;  %v7469_v25 = vpack.c.bf16 %v1346_v19, %v1342_v18  ;;  %v7597_v29 = vpack.c.bf16 %v1348_v22, %v1344_v21  ;;  %v1386_v18 = vld [vmem:[#allocation10 + $0x228] sm:$0xff]  ;;  %v1384_v19 = vld [vmem:[#allocation10 + $0x218] sm:$0xff]  ;;  %v1411_v1 = vld [vmem:[#allocation10 + $0x2f0] sm:$0xff] }
 0x15f   : > { %v1392_v31 = vld [vmem:[#allocation10 + $0x258] sm:$0xff] }
 0x160   : > { %v1396_v32 = vld [vmem:[#allocation10 + $0x278] sm:$0xff] }
 0x161   : > { %7420 = vmatpush1.bf16.msra.mxu0 %v7419_v35  ;;  %7452 = vmatpush1.bf16.msra.mxu1 %v7451_v36  ;;  %v1356_v35 = vld [vmem:[#allocation10 + $0x138] sm:$0xff] }
 0x162   : > { %7422 = vmatprep.subr.bf16.mxu0 %v7421_v37  ;;  %7454 = vmatprep.subr.bf16.mxu1 %v7453_v41  ;;  %v10257_v36 = vld [vmem:[#allocation3] sm:$0xff]  ;;  %v7471_v37 = vpack.c.bf16 %v1345_v27, %v1341_v26  ;;  %v1383_v26 = vld [vmem:[#allocation10 + $0x210] sm:$0xff] }
 0x163   : > { %v1353_v41 = vld [vmem:[#allocation10 + $0x120] sm:$0xff] }
 0x165   : > { %7424 = vmatpush1.bf16.msra.mxu0 %v7423_v47  ;;  %7456 = vmatpush1.bf16.msra.mxu1 %v7455_v48  ;;  %v1364_v47 = vld [vmem:[#allocation10 + $0x178] sm:$0xff]  ;;  %v7475_v48 = vpack.c.bf16 %v1353_v41, %v1349_v40  ;;  %v7621_v40 = vpack.c.bf16 %v1396_v32, %v1392_v31  ;;  %v1395_v41 = vld [vmem:[#allocation10 + $0x270] sm:$0xff] }
 0x166   : > { %7458 = vmatprep.subr.bf16.mxu0 %v7457_v49  ;;  %7586 = vmatprep.subr.bf16.mxu1 %v7585_v50  ;;  %v7603_v49 = vpack.c.bf16 %v1355_v43, %v1351_v42  ;;  %v7477_v50 = vpack.c.bf16 %v1362_v45, %v1358_v44  ;;  %v7605_v54 = vpack.c.bf16 %v1364_v47, %v1360_v46  ;;  %v1398_v42 = vld [vmem:[#allocation10 + $0x288] sm:$0xff]  ;;  %v1400_v43 = vld [vmem:[#allocation10 + $0x298] sm:$0xff] }
 0x167   : > { %v1404_v44 = vld [vmem:[#allocation10 + $0x2b8] sm:$0xff] }
 0x168   : > { %1134 = vmatmul.mubr.f32.vlgmr.msra.gmra.mrb[0].mxu0 %v1000_v57  ;;  %1223 = vmatmul.mubr.f32.vlgmr.msra.gmra.mrb[0].mxu1 %v1000_v57  ;;  %v1370_v57 = vld [vmem:[#allocation10 + $0x1a8] sm:$0xff] }
 0x169   : > { %1139 = vmatprep.mubr.f32.mxu0 %v9861_v0  ;;  %1228 = vmatprep.mubr.f32.mxu1 %v9861_v0 }
 0x16a   : > { %7460 = vmatpush1.bf16.msra.mxu0 %v7459_v60  ;;  %7588 = vmatpush1.bf16.msra.mxu1 %v7587_v61  ;;  %v7479_v60 = vpack.c.bf16 %v1361_v52, %v1357_v51  ;;  %v7607_v61 = vpack.c.bf16 %v1363_v55, %v1359_v53  ;;  %v7625_v51 = vpack.c.bf16 %v1404_v44, %v1400_v43  ;;  %v1403_v52 = vld [vmem:[#allocation10 + $0x2b0] sm:$0xff]  ;;  %v1406_v53 = vld [vmem:[#allocation10 + $0x2c8] sm:$0xff]  ;;  %v1408_v55 = vld [vmem:[#allocation10 + $0x2d8] sm:$0xff] }
 0x16b   : > { %7462 = vmatprep.subr.bf16.mxu0 %v7461_v62  ;;  %7590 = vmatprep.subr.bf16.mxu1 %v7589_v3  ;;  %v7481_v62 = vpack.c.bf16 %v1370_v57, %v1366_v56  ;;  %v7609_v3 = vpack.c.bf16 %v1372_v59, %v1368_v58  ;;  %v1412_v56 = vld [vmem:[#allocation10 + $0x2f8] sm:$0xff] }
 0x16c   : > { %1140 = vmatmul.mubr.f32.gmra.mrb[2].mxu0 %v1001_v7  ;;  %1229 = vmatmul.mubr.f32.gmra.mrb[2].mxu1 %v1001_v7  ;;  %v1376_v7 = vld [vmem:[#allocation10 + $0x1d8] sm:$0xff]  ;;  %v7629_v63 = vpack.c.bf16 %v1412_v56, %v1408_v55 }
 0x16d   : > { %1145 = vmatprep.mubr.f32.mxu0 %v9861_v0  ;;  %1234 = vmatprep.mubr.f32.mxu1 %v9861_v0  ;;  %v7613_v15 = vpack.c.bf16 %v1380_v8, %v1376_v7  ;;  %v1444_v44 = vld [vmem:[#allocation10 + $0x3f8] sm:$0xff] }
 0x16e   : > { %7464 = vmatpush1.bf16.msra.mxu0 %v7463_v10  ;;  %7592 = vmatpush1.bf16.msra.mxu1 %v7591_v11  ;;  %v7611_v10 = vpack.c.bf16 %v1371_v4, %v1367_v2  ;;  %v7485_v11 = vpack.c.bf16 %v1378_v6, %v1374_v5  ;;  %v1414_v2 = vld [vmem:[#allocation10 + $0x308] sm:$0xff]  ;;  %v1416_v4 = vld [vmem:[#allocation10 + $0x318] sm:$0xff] }
 0x16f   : > { %7466 = vmatprep.subr.bf16.mxu0 %v7465_v12  ;;  %7594 = vmatprep.subr.bf16.mxu1 %v7593_v16  ;;  %v1373_v12 = vld [vmem:[#allocation10 + $0x1c0] sm:$0xff]  ;;  %v1379_v16 = vld [vmem:[#allocation10 + $0x1f0] sm:$0xff]  ;;  %v1420_v5 = vld [vmem:[#allocation10 + $0x338] sm:$0xff] }
 0x170   : > { %1146 = vmatmul.mubr.f32.gmra.mrb[4].mxu0 %v1002_v20  ;;  %1235 = vmatmul.mubr.f32.gmra.mrb[4].mxu1 %v1002_v20  ;;  %v1388_v20 = vld [vmem:[#allocation10 + $0x238] sm:$0xff]  ;;  %v7487_v21 = vpack.c.bf16 %v1377_v13, %v1373_v12  ;;  %v7615_v22 = vpack.c.bf16 %v1379_v16, %v1375_v14  ;;  %v7633_v12 = vpack.c.bf16 %v1420_v5, %v1416_v4  ;;  %v1419_v13 = vld [vmem:[#allocation10 + $0x330] sm:$0xff]  ;;  %v1422_v14 = vld [vmem:[#allocation10 + $0x348] sm:$0xff] }
 0x171   : > { %1151 = vmatprep.mubr.f32.mxu0 %v9861_v0  ;;  %1240 = vmatprep.mubr.f32.mxu1 %v10257_v36  ;;  %v7601_v0 = vpack.c.bf16 %v1356_v35, %v1352_v34  ;;  %v7617_v27 = vpack.c.bf16 %v1388_v20, %v1384_v19  ;;  %v7619_v34 = vpack.c.bf16 %v1387_v28, %v1383_v26  ;;  %v1424_v16 = vld [vmem:[#allocation10 + $0x358] sm:$0xff]  ;;  %v1430_v26 = vld [vmem:[#allocation10 + $0x388] sm:$0xff]  ;;  %v1445_v5 = vld [vmem:[#allocation10 + $0x400] sm:$0xff] }
 0x172   : > { %7468 = vmatpush1.bf16.msra.mxu0 %v7467_v23  ;;  %7596 = vmatpush1.bf16.msra.mxu1 %v7595_v24  ;;  %v7489_v23 = vpack.c.bf16 %v1386_v18, %v1382_v17  ;;  %v1381_v24 = vld [vmem:[#allocation10 + $0x200] sm:$0xff]  ;;  %v1428_v17 = vld [vmem:[#allocation10 + $0x378] sm:$0xff] }
 0x173   : > { %7470 = vmatprep.subr.bf16.mxu0 %v7469_v25  ;;  %7598 = vmatprep.subr.bf16.mxu1 %v7597_v29  ;;  %v1385_v25 = vld [vmem:[#allocation10 + $0x220] sm:$0xff]  ;;  %v1390_v29 = vld [vmem:[#allocation10 + $0x248] sm:$0xff]  ;;  %v1432_v28 = vld [vmem:[#allocation10 + $0x398] sm:$0xff] }
 0x174   : > { %1152 = vmatmul.mubr.f32.gmra.mrb[6].mxu0 %v1003_v33  ;;  %1241 = vmatmul.mubr.f32.gmra.mrb[6].mxu1 %v1003_v33  ;;  %v7491_v33 = vpack.c.bf16 %v1385_v25, %v1381_v24  ;;  %v7493_v35 = vpack.c.bf16 %v1394_v30, %v1390_v29  ;;  %v7637_v24 = vpack.c.bf16 %v1428_v17, %v1424_v16  ;;  %v1427_v25 = vld [vmem:[#allocation10 + $0x370] sm:$0xff]  ;;  %v1436_v29 = vld [vmem:[#allocation10 + $0x3b8] sm:$0xff]  ;;  %v1458_v16 = vld [vmem:[#allocation10 + $0x468] sm:$0xff] }
 0x175   : > { %v1452_v56 = vld [vmem:[#allocation10 + $0x438] sm:$0xff] }
 0x176   : > { %7472 = vmatpush1.bf16.msra.mxu0 %v7471_v37  ;;  %7600 = vmatpush1.bf16.msra.mxu1 %v7599_v38  ;;  %v1389_v37 = vld [vmem:[#allocation10 + $0x240] sm:$0xff]  ;;  %v1456_v17 = vld [vmem:[#allocation10 + $0x458] sm:$0xff] }
 0x177   : > { %7474 = vmatprep.subr.bf16.mxu0 %v7473_v39  ;;  %7602 = vmatprep.subr.bf16.mxu1 %v7601_v0  ;;  %v1393_v38 = vld [vmem:[#allocation10 + $0x260] sm:$0xff]  ;;  %v1391_v39 = vld [vmem:[#allocation10 + $0x250] sm:$0xff]  ;;  %v1402_v0 = vld [vmem:[#allocation10 + $0x2a8] sm:$0xff] }
 0x178   : > { %v7495_v45 = vpack.c.bf16 %v1393_v38, %v1389_v37  ;;  %v7623_v46 = vpack.c.bf16 %v1395_v41, %v1391_v39  ;;  %v7497_v47 = vpack.c.bf16 %v1402_v0, %v1398_v42  ;;  %v1431_v37 = vld [vmem:[#allocation10 + $0x390] sm:$0xff]  ;;  %v1438_v41 = vld [vmem:[#allocation10 + $0x3c8] sm:$0xff]  ;;  %v1440_v0 = vld [vmem:[#allocation10 + $0x3d8] sm:$0xff] }
 0x179   : > { %v1435_v38 = vld [vmem:[#allocation10 + $0x3b0] sm:$0xff]  ;;  %v1442_v42 = vld [vmem:[#allocation10 + $0x3e8] sm:$0xff] }
 0x17a   : > { %7476 = vmatpush1.bf16.msra.mxu0 %v7475_v48  ;;  %7604 = vmatpush1.bf16.msra.mxu1 %v7603_v49  ;;  %v1397_v48 = vld [vmem:[#allocation10 + $0x280] sm:$0xff]  ;;  %v7517_v43 = vpack.c.bf16 %v1442_v42, %v1438_v41 }
 0x17b   : > { %7478 = vmatprep.subr.bf16.mxu0 %v7477_v50  ;;  %7606 = vmatprep.subr.bf16.mxu1 %v7605_v54  ;;  %v1401_v49 = vld [vmem:[#allocation10 + $0x2a0] sm:$0xff]  ;;  %v1399_v50 = vld [vmem:[#allocation10 + $0x290] sm:$0xff]  ;;  %v1410_v54 = vld [vmem:[#allocation10 + $0x2e8] sm:$0xff] }
 0x17c   : > { %v7499_v57 = vpack.c.bf16 %v1401_v49, %v1397_v48  ;;  %v7627_v58 = vpack.c.bf16 %v1403_v52, %v1399_v50  ;;  %v7501_v59 = vpack.c.bf16 %v1410_v54, %v1406_v53  ;;  %v1439_v49 = vld [vmem:[#allocation10 + $0x3d0] sm:$0xff]  ;;  %v1446_v52 = vld [vmem:[#allocation10 + $0x408] sm:$0xff]  ;;  %v1448_v54 = vld [vmem:[#allocation10 + $0x418] sm:$0xff] }
 0x17d   : > { %v1443_v50 = vld [vmem:[#allocation10 + $0x3f0] sm:$0xff]  ;;  %v1450_v53 = vld [vmem:[#allocation10 + $0x428] sm:$0xff] }
 0x17e   : > { %7480 = vmatpush1.bf16.msra.mxu0 %v7479_v60  ;;  %7608 = vmatpush1.bf16.msra.mxu1 %v7607_v61  ;;  %v1405_v60 = vld [vmem:[#allocation10 + $0x2c0] sm:$0xff]  ;;  %v7521_v55 = vpack.c.bf16 %v1450_v53, %v1446_v52  ;;  %v1463_v52 = vld [vmem:[#allocation10 + $0x490] sm:$0xff] }
 0x17f   : > { %7482 = vmatprep.subr.bf16.mxu0 %v7481_v62  ;;  %7610 = vmatprep.subr.bf16.mxu1 %v7609_v3  ;;  %v1409_v61 = vld [vmem:[#allocation10 + $0x2e0] sm:$0xff]  ;;  %v1407_v62 = vld [vmem:[#allocation10 + $0x2d0] sm:$0xff]  ;;  %v1418_v3 = vld [vmem:[#allocation10 + $0x328] sm:$0xff] }
 0x180   : > { %v7503_v6 = vpack.c.bf16 %v1409_v61, %v1405_v60  ;;  %v7631_v7 = vpack.c.bf16 %v1411_v1, %v1407_v62  ;;  %v7505_v8 = vpack.c.bf16 %v1418_v3, %v1414_v2  ;;  %v10263_v61 = vld [vmem:[#allocation8] sm:$0xf]  ;;  %v1467_v53 = vld [vmem:[#allocation10 + $0x4b0] sm:$0xff] }
 0x182   : > { %7484 = vmatpush1.bf16.msra.mxu0 %v7483_v9  ;;  %7612 = vmatpush1.bf16.msra.mxu1 %v7611_v10  ;;  %v1413_v9 = vld [vmem:[#allocation10 + $0x300] sm:$0xff] }
 0x183   : > { %7486 = vmatprep.subr.bf16.mxu0 %v7485_v11  ;;  %7614 = vmatprep.subr.bf16.mxu1 %v7613_v15  ;;  %v1417_v10 = vld [vmem:[#allocation10 + $0x320] sm:$0xff]  ;;  %v1415_v11 = vld [vmem:[#allocation10 + $0x310] sm:$0xff]  ;;  %v1426_v15 = vld [vmem:[#allocation10 + $0x368] sm:$0xff] }
 0x184   : > { %v7507_v18 = vpack.c.bf16 %v1417_v10, %v1413_v9  ;;  %v7635_v19 = vpack.c.bf16 %v1419_v13, %v1415_v11  ;;  %v7509_v20 = vpack.c.bf16 %v1426_v15, %v1422_v14  ;;  %v1447_v10 = vld [vmem:[#allocation10 + $0x410] sm:$0xff] }
 0x185   : > { %v1451_v11 = vld [vmem:[#allocation10 + $0x430] sm:$0xff] }
 0x186   : > { %7488 = vmatpush1.bf16.msra.mxu0 %v7487_v21  ;;  %7616 = vmatpush1.bf16.msra.mxu1 %v7615_v22  ;;  %v1421_v21 = vld [vmem:[#allocation10 + $0x340] sm:$0xff] }
 0x187   : > { %7490 = vmatprep.subr.bf16.mxu0 %v7489_v23  ;;  %7618 = vmatprep.subr.bf16.mxu1 %v7617_v27  ;;  %v1425_v22 = vld [vmem:[#allocation10 + $0x360] sm:$0xff]  ;;  %v1423_v23 = vld [vmem:[#allocation10 + $0x350] sm:$0xff]  ;;  %v1434_v27 = vld [vmem:[#allocation10 + $0x3a8] sm:$0xff] }
 0x188   : > { %v7511_v30 = vpack.c.bf16 %v1425_v22, %v1421_v21  ;;  %v7639_v31 = vpack.c.bf16 %v1427_v25, %v1423_v23  ;;  %v7513_v32 = vpack.c.bf16 %v1434_v27, %v1430_v26  ;;  %v7651_v22 = vpack.c.bf16 %v1451_v11, %v1447_v10  ;;  %v1453_v23 = vld [vmem:[#allocation10 + $0x440] sm:$0xff] }
 0x189   : > { %v7659_v11 = vpack.c.bf16 %v1467_v53, %v1463_v52  ;;  %v1489_v52 = vld [vmem:[#allocation10 + $0x560] sm:$0xff] }
 0x18a   : > { %7492 = vmatpush1.bf16.msra.mxu0 %v7491_v33  ;;  %7620 = vmatpush1.bf16.msra.mxu1 %v7619_v34  ;;  %v1429_v33 = vld [vmem:[#allocation10 + $0x380] sm:$0xff] }
 0x18b   : > { %7494 = vmatprep.subr.bf16.mxu0 %v7493_v35  ;;  %7622 = vmatprep.subr.bf16.mxu1 %v7621_v40  ;;  %v1433_v34 = vld [vmem:[#allocation10 + $0x3a0] sm:$0xff]  ;;  %v7641_v35 = vpack.c.bf16 %v1436_v29, %v1432_v28  ;;  %v7643_v40 = vpack.c.bf16 %v1435_v38, %v1431_v37  ;;  %v1464_v37 = vld [vmem:[#allocation10 + $0x498] sm:$0xff] }
 0x18c   : > { %v7515_v39 = vpack.c.bf16 %v1433_v34, %v1429_v33  ;;  %v1468_v38 = vld [vmem:[#allocation10 + $0x4b8] sm:$0xff] }
 0x18e   : > { %7496 = vmatpush1.bf16.msra.mxu0 %v7495_v45  ;;  %7624 = vmatpush1.bf16.msra.mxu1 %v7623_v46  ;;  %v1437_v45 = vld [vmem:[#allocation10 + $0x3c0] sm:$0xff] }
 0x18f   : > { %7498 = vmatprep.subr.bf16.mxu0 %v7497_v47  ;;  %7626 = vmatprep.subr.bf16.mxu1 %v7625_v51  ;;  %v1441_v46 = vld [vmem:[#allocation10 + $0x3e0] sm:$0xff]  ;;  %v7645_v47 = vpack.c.bf16 %v1444_v44, %v1440_v0  ;;  %v7647_v51 = vpack.c.bf16 %v1443_v50, %v1439_v49 }
 0x190   : > { %v7519_v48 = vpack.c.bf16 %v1441_v46, %v1437_v45  ;;  %v1461_v45 = vld [vmem:[#allocation10 + $0x480] sm:$0xff] }
 0x191   : > { %v1465_v46 = vld [vmem:[#allocation10 + $0x4a0] sm:$0xff] }
 0x192   : > { %7500 = vmatpush1.bf16.msra.mxu0 %v7499_v57  ;;  %7628 = vmatpush1.bf16.msra.mxu1 %v7627_v58  ;;  %v7649_v57 = vpack.c.bf16 %v1452_v56, %v1448_v54  ;;  %v1265_v58 = vlaneseq  ;;  %v1470_v54 = vld [vmem:[#allocation10 + $0x4c8] sm:$0xff]  ;;  %v7531_v10 = vpack.c.bf16 %v1465_v46, %v1461_v45  ;;  %v1488_v45 = vld [vmem:[#allocation10 + $0x558] sm:$0xff] }
 0x193   : > { %7502 = vmatprep.subr.bf16.mxu0 %v7501_v59  ;;  %7630 = vmatprep.subr.bf16.mxu1 %v7629_v63  ;;  %v1492_v46 = vld [vmem:[#allocation10 + $0x578] sm:$0xff] }
 0x194   : > { %v1266_v59 = vshrl.u32 %v1265_v58, 7  ;;  %vm10402_vm0 = vcmp.lt.s32.totalorder %v1265_v58, 512 }
 0x196   : > { %7504 = vmatpush1.bf16.msra.mxu0 %v7503_v6  ;;  %7632 = vmatpush1.bf16.msra.mxu1 %v7631_v7  ;;  %v10261_v60 = vsub.s32 0, %v1266_v59  ;;  %v10265_v62 = vsub.s32 2, %v1266_v59  ;;  %v10267_v63 = vsub.s32 1, %v1266_v59  ;;  %v1449_v6 = vld [vmem:[#allocation10 + $0x420] sm:$0xff]  ;;  %v10301_v41 = vsub.s32 3, %v1266_v59  ;;  %v1472_v59 = vld [vmem:[#allocation10 + $0x4d8] sm:$0xff] }
 0x197   : > { %7506 = vmatprep.subr.bf16.mxu0 %v7505_v8  ;;  %7634 = vmatprep.subr.bf16.mxu1 %v7633_v12  ;;  %v1454_v12 = vld [vmem:[#allocation10 + $0x448] sm:$0xff]  ;;  %v7523_v21 = vpack.c.bf16 %v1449_v6, %v1445_v5 }
 0x198   : > { %v10271_v1 = vrot.slane %v10263_v61, %v10261_v60  ;;  %v10275_v2 = vrot.slane %v10263_v61, %v10265_v62  ;;  %v10279_v3 = vrot.slane %v10263_v61, %v10267_v63  ;;  %v7525_v28 = vpack.c.bf16 %v1458_v16, %v1454_v12  ;;  %v1469_v12 = vld [vmem:[#allocation10 + $0x4c0] sm:$0xff] }
 0x19a   : > { %7508 = vmatpush1.bf16.msra.mxu0 %v7507_v18  ;;  %7636 = vmatpush1.bf16.msra.mxu1 %v7635_v19  ;;  %v1460_v18 = vld [vmem:[#allocation10 + $0x478] sm:$0xff] }
 0x19b   : > { %7510 = vmatprep.subr.bf16.mxu0 %v7509_v20  ;;  %7638 = vmatprep.subr.bf16.mxu1 %v7637_v24  ;;  %v1457_v24 = vld [vmem:[#allocation10 + $0x460] sm:$0xff]  ;;  %v7653_v29 = vpack.c.bf16 %v1460_v18, %v1456_v17 }
 0x19e   : > { %7512 = vmatpush1.bf16.msra.mxu0 %v7511_v30  ;;  %7640 = vmatpush1.bf16.msra.mxu1 %v7639_v31  ;;  %v1455_v30 = vld [vmem:[#allocation10 + $0x450] sm:$0xff] }
 0x19f   : > { %7514 = vmatprep.subr.bf16.mxu0 %v7513_v32  ;;  %7642 = vmatprep.subr.bf16.mxu1 %v7641_v35  ;;  %v1459_v31 = vld [vmem:[#allocation10 + $0x470] sm:$0xff]  ;;  %v1462_v32 = vld [vmem:[#allocation10 + $0x488] sm:$0xff] }
 0x1a0   : > { %v1466_v35 = vld [vmem:[#allocation10 + $0x4a8] sm:$0xff]  ;;  %v7655_v44 = vpack.c.bf16 %v1459_v31, %v1455_v30  ;;  %v1480_v30 = vld [vmem:[#allocation10 + $0x518] sm:$0xff] }
 0x1a1   : > { %v7529_v50 = vpack.c.bf16 %v1466_v35, %v1462_v32 }
 0x1a2   : > { %7516 = vmatpush1.bf16.msra.mxu0 %v7515_v39  ;;  %7644 = vmatpush1.bf16.msra.mxu1 %v7643_v40 }
 0x1a3   : > { %7518 = vmatprep.subr.bf16.mxu0 %v7517_v43  ;;  %7646 = vmatprep.subr.bf16.mxu1 %v7645_v47  ;;  %v7527_v43 = vpack.c.bf16 %v1457_v24, %v1453_v23 }
 0x1a6   : > { %7520 = vmatpush1.bf16.msra.mxu0 %v7519_v48  ;;  %7648 = vmatpush1.bf16.msra.mxu1 %v7647_v51  ;;  %v7657_v51 = vpack.c.bf16 %v1468_v38, %v1464_v37  ;;  %v1483_v37 = vld [vmem:[#allocation10 + $0x530] sm:$0xff]  ;;  %v1486_v38 = vld [vmem:[#allocation10 + $0x548] sm:$0xff] }
 0x1a7   : > { %7522 = vmatprep.subr.bf16.mxu0 %v7521_v55  ;;  %7650 = vmatprep.subr.bf16.mxu1 %v7649_v57  ;;  %v1474_v57 = vld [vmem:[#allocation10 + $0x4e8] sm:$0xff] }
 0x23b   : > { %v1135_v4 = vpop.f32.mrb[0].mxu0  ;;  %v1224_v8 = vpop.f32.mrb[0].mxu1 }
 0x23c   : > { %v1285_v7 = vadd.f32 %v10271_v1, %v1135_v4  ;;  %v1137_v9 = vpop.f32.mrb[1].mxu0  ;;  %v10283_v13 = vadd.f32 %v10275_v2, %v1224_v8  ;;  %v10286_v15 = vpop.f32.mrb[1].mxu1  ;;  %v1476_v4 = vld [vmem:[#allocation10 + $0x4f8] sm:$0xff] }
 0x23d   : > { %v1286_v14 = vadd.f32 %v10279_v3, %v1137_v9  ;;  %v7661_v18 = vpack.c.bf16 %v1476_v4, %v1472_v59  ;;  %v1498_v59 = vld [vmem:[#allocation10 + $0x5a8] sm:$0xff]  ;;  %v1496_v4 = vld [vmem:[#allocation10 + $0x598] sm:$0xff] }
 0x23e   : > { %v10290_v25 = vmax.f32 %v1285_v7, 0.0  ;;  %v10320_v7 = vrot.slane %v10263_v61, %v10301_v41  ;;  %v7533_v61 = vpack.c.bf16 %v1474_v57, %v1470_v54  ;;  %v7669_v54 = vpack.c.bf16 %v1492_v46, %v1488_v45  ;;  %v1494_v57 = vld [vmem:[#allocation10 + $0x588] sm:$0xff]  ;;  %v1513_v45 = vld [vmem:[#allocation10 + $0x620] sm:$0xff] }
 0x23f   : > { %v10288_v19 = vmax.f32 %v1286_v14, 0.0  ;;  %v1141_v20 = vpop.f32.mrb[2].mxu0  ;;  %v1230_v33 = vpop.f32.mrb[2].mxu1 }
 0x240   : > { %v1289_v26 = vadd.f32 %v10271_v1, %v1141_v20  ;;  %v1143_v27 = vpop.f32.mrb[3].mxu0  ;;  %v10297_v39 = vadd.f32 %v10275_v2, %v1230_v33  ;;  %v10299_v40 = vpop.f32.mrb[3].mxu1  ;;  %v1473_v20 = vld [vmem:[#allocation10 + $0x4e0] sm:$0xff] }
 0x241   : > { %v1290_v34 = vadd.f32 %v10279_v3, %v1143_v27  ;;  %1637 = vmatprep.mubr.f32.mxu0 %v10288_v19  ;;  %1815 = vmatprep.mubr.f32.mxu1 %v10288_v19  ;;  %v7535_v32 = vpack.c.bf16 %v1473_v20, %v1469_v12  ;;  %v1493_v12 = vld [vmem:[#allocation10 + $0x580] sm:$0xff]  ;;  %v1499_v20 = vld [vmem:[#allocation10 + $0x5b0] sm:$0xff] }
 0x242   : > { %1638 = vmatmul.mubr.f32.vlgmr.msra.gmra.mrb[8].mxu0 %v10290_v25  ;;  %1816 = vmatmul.mubr.f32.vlgmr.msra.gmra.mrb[8].mxu1 %v10290_v25  ;;  %v10307_v47 = vmax.f32 %v1289_v26, 0.0  ;;  %v1478_v26 = vld [vmem:[#allocation10 + $0x508] sm:$0xff] }
 0x243   : > { %v10305_v42 = vmax.f32 %v1290_v34, 0.0  ;;  %7524 = vmatpush1.bf16.msra.mxu0 %v7523_v21  ;;  %7652 = vmatpush1.bf16.msra.mxu1 %v7651_v22  ;;  %v1147_v0 = vpop.f32.mrb[4].mxu0  ;;  %v1236_v55 = vpop.f32.mrb[4].mxu1  ;;  %v1471_v21 = vld [vmem:[#allocation10 + $0x4d0] sm:$0xff]  ;;  %v1481_v34 = vld [vmem:[#allocation10 + $0x520] sm:$0xff] }
 0x244   : > { %v1293_v48 = vadd.f32 %v10271_v1, %v1147_v0  ;;  %v1149_v49 = vpop.f32.mrb[5].mxu0  ;;  %7526 = vmatprep.subr.bf16.mxu0 %v7525_v28  ;;  %7654 = vmatprep.subr.bf16.mxu1 %v7653_v29  ;;  %v10314_v5 = vadd.f32 %v10275_v2, %v1236_v55  ;;  %v10316_v6 = vpop.f32.mrb[5].mxu1  ;;  %v1475_v22 = vld [vmem:[#allocation10 + $0x4f0] sm:$0xff]  ;;  %v1288_v28 = vadd.f32 %v10320_v7, %v10286_v15  ;;  %v1482_v29 = vld [vmem:[#allocation10 + $0x528] sm:$0xff] }
 0x245   : > { %v1294_v56 = vadd.f32 %v10279_v3, %v1149_v49  ;;  %1643 = vmatprep.mubr.f32.mxu0 %v10305_v42  ;;  %1821 = vmatprep.mubr.f32.mxu1 %v10305_v42  ;;  %v7663_v33 = vpack.c.bf16 %v1475_v22, %v1471_v21  ;;  %v1479_v15 = vld [vmem:[#allocation10 + $0x510] sm:$0xff]  ;;  %v7537_v0 = vpack.c.bf16 %v1482_v29, %v1478_v26  ;;  %v1502_v21 = vld [vmem:[#allocation10 + $0x5c8] sm:$0xff]  ;;  %v1501_v29 = vld [vmem:[#allocation10 + $0x5c0] sm:$0xff] }
 0x246   : > { %1644 = vmatmul.mubr.f32.gmra.mrb[10].mxu0 %v10307_v47  ;;  %1822 = vmatmul.mubr.f32.gmra.mrb[10].mxu1 %v10307_v47  ;;  %v10326_v14 = vmax.f32 %v1293_v48, 0.0  ;;  %v10347_v48 = vmax.f32 %v1288_v28, 0.0  ;;  %v1487_v55 = vld [vmem:[#allocation10 + $0x550] sm:$0xff]  ;;  %v1506_v22 = vld [vmem:[#allocation10 + $0x5e8] sm:$0xff] }
 0x247   : > { %v10324_v8 = vmax.f32 %v1294_v56, 0.0  ;;  %7528 = vmatpush1.bf16.msra.mxu0 %v7527_v43  ;;  %7656 = vmatpush1.bf16.msra.mxu1 %v7655_v44  ;;  %v1153_v9 = vpop.f32.mrb[6].mxu0  ;;  %v1242_v23 = vpop.f32.mrb[6].mxu1  ;;  %v1490_v44 = vld [vmem:[#allocation10 + $0x568] sm:$0xff]  ;;  %v1491_v56 = vld [vmem:[#allocation10 + $0x570] sm:$0xff] }
 0x248   : > { %v1297_v16 = vadd.f32 %v10271_v1, %v1153_v9  ;;  %v1155_v17 = vpop.f32.mrb[7].mxu0  ;;  %7530 = vmatprep.subr.bf16.mxu0 %v7529_v50  ;;  %7658 = vmatprep.subr.bf16.mxu1 %v7657_v51  ;;  %v10333_v27 = vadd.f32 %v10275_v2, %v1242_v23  ;;  %v10335_v1 = vpop.f32.mrb[7].mxu1  ;;  %v1477_v2 = vld [vmem:[#allocation10 + $0x500] sm:$0xff]  ;;  %v7667_v50 = vpack.c.bf16 %v1483_v37, %v1479_v15  ;;  %v1500_v9 = vld [vmem:[#allocation10 + $0x5b8] sm:$0xff]  ;;  %v1514_v15 = vld [vmem:[#allocation10 + $0x628] sm:$0xff] }
 0x249   : > { %v1298_v24 = vadd.f32 %v10279_v3, %v1155_v17  ;;  %1649 = vmatprep.mubr.f32.mxu0 %v10324_v8  ;;  %1827 = vmatprep.mubr.f32.mxu1 %v10324_v8  ;;  %v1484_v3 = vld [vmem:[#allocation10 + $0x538] sm:$0xff]  ;;  %v7539_v49 = vpack.c.bf16 %v1481_v34, %v1477_v2  ;;  %v1485_v51 = vld [vmem:[#allocation10 + $0x540] sm:$0xff]  ;;  %v7541_v53 = vpack.c.bf16 %v1490_v44, %v1486_v38  ;;  %v1507_v2 = vld [vmem:[#allocation10 + $0x5f0] sm:$0xff] }
 0x24a   : > { %1650 = vmatmul.mubr.f32.gmra.mrb[12].mxu0 %v10326_v14  ;;  %1828 = vmatmul.mubr.f32.gmra.mrb[12].mxu1 %v10326_v14  ;;  %v10343_v35 = vmax.f32 %v1297_v16, 0.0  ;;  %v7665_v43 = vpack.c.bf16 %v1484_v3, %v1480_v30  ;;  %v1497_v16 = vld [vmem:[#allocation10 + $0x5a0] sm:$0xff]  ;;  %v7545_v17 = vpack.c.bf16 %v1498_v59, %v1494_v57  ;;  %v1504_v23 = vld [vmem:[#allocation10 + $0x5d8] sm:$0xff]  ;;  %v7549_v3 = vpack.c.bf16 %v1506_v22, %v1502_v21  ;;  %v1510_v34 = vld [vmem:[#allocation10 + $0x608] sm:$0xff] }
 0x24b   : > { %v10341_v31 = vmax.f32 %v1298_v24, 0.0  ;;  %7532 = vmatpush1.bf16.msra.mxu0 %v7531_v10  ;;  %7660 = vmatpush1.bf16.msra.mxu1 %v7659_v11  ;;  %v7543_v10 = vpack.c.bf16 %v1489_v52, %v1485_v51  ;;  %v7671_v11 = vpack.c.bf16 %v1491_v56, %v1487_v55  ;;  %v1508_v24 = vld [vmem:[#allocation10 + $0x5f8] sm:$0xff]  ;;  %v7547_v26 = vpack.c.bf16 %v1497_v16, %v1493_v12  ;;  %v1505_v30 = vld [vmem:[#allocation10 + $0x5e0] sm:$0xff]  ;;  %v1515_v51 = vld [vmem:[#allocation10 + $0x630] sm:$0xff] }
 0x24c   : > { %7534 = vmatprep.subr.bf16.mxu0 %v7533_v61  ;;  %7662 = vmatprep.subr.bf16.mxu1 %v7661_v18  ;;  %v7673_v61 = vpack.c.bf16 %v1500_v9, %v1496_v4  ;;  %v1495_v18 = vld [vmem:[#allocation10 + $0x590] sm:$0xff]  ;;  %v1512_v37 = vld [vmem:[#allocation10 + $0x618] sm:$0xff]  ;;  %v1509_v44 = vld [vmem:[#allocation10 + $0x600] sm:$0xff]  ;;  %v7553_v46 = vpack.c.bf16 %v1514_v15, %v1510_v34 }
 0x24d   : > { %1655 = vmatprep.mubr.f32.mxu0 %v10341_v31  ;;  %1833 = vmatprep.mubr.f32.mxu1 %v10341_v31  ;;  %v7675_v28 = vpack.c.bf16 %v1499_v20, %v1495_v18  ;;  %v1516_v38 = vld [vmem:[#allocation10 + $0x638] sm:$0xff]  ;;  %v1518_v52 = vld [vmem:[#allocation10 + $0x648] sm:$0xff]  ;;  %v7555_v56 = vpack.c.bf16 %v1513_v45, %v1509_v44  ;;  %v1517_v59 = vld [vmem:[#allocation10 + $0x640] sm:$0xff] }
 0x24e   : > { %1656 = vmatmul.mubr.f32.gmra.mrb[14].mxu0 %v10343_v35  ;;  %1834 = vmatmul.mubr.f32.gmra.mrb[14].mxu1 %v10343_v35  ;;  %v1524_v55 = vld [vmem:[#allocation10 + $0x678] sm:$0xff]  ;;  %v1521_v4 = vld [vmem:[#allocation10 + $0x660] sm:$0xff]  ;;  %v1523_v12 = vld [vmem:[#allocation10 + $0x670] sm:$0xff] }
 0x24f   : > { %7536 = vmatpush1.bf16.msra.mxu0 %v7535_v32  ;;  %7664 = vmatpush1.bf16.msra.mxu1 %v7663_v33  ;;  %v7677_v32 = vpack.c.bf16 %v1508_v24, %v1504_v23  ;;  %v1503_v33 = vld [vmem:[#allocation10 + $0x5d0] sm:$0xff]  ;;  %v1526_v16 = vld [vmem:[#allocation10 + $0x688] sm:$0xff]  ;;  %v1532_v18 = vld [vmem:[#allocation10 + $0x6b8] sm:$0xff]  ;;  %v7559_v20 = vpack.c.bf16 %v1521_v4, %v1517_v59 }
 0x250   : > { %1726 = vmatprep.mubr.f32.mxu0 %v10347_v48  ;;  %1904 = vmatprep.mubr.f32.mxu1 %v10347_v48  ;;  %v1525_v22 = vld [vmem:[#allocation10 + $0x680] sm:$0xff]  ;;  %v1539_v44 = vld [vmem:[#allocation10 + $0x6f0] sm:$0xff]  ;;  %v1542_v45 = vld [vmem:[#allocation10 + $0x708] sm:$0xff] }
 0x251   : > { %7538 = vmatprep.subr.bf16.mxu0 %v7537_v0  ;;  %7666 = vmatprep.subr.bf16.mxu1 %v7665_v43  ;;  %v7551_v0 = vpack.c.bf16 %v1505_v30, %v1501_v29  ;;  %v7679_v43 = vpack.c.bf16 %v1507_v2, %v1503_v33  ;;  %v1529_v23 = vld [vmem:[#allocation10 + $0x6a0] sm:$0xff]  ;;  %v1531_v29 = vld [vmem:[#allocation10 + $0x6b0] sm:$0xff]  ;;  %v1534_v30 = vld [vmem:[#allocation10 + $0x6c8] sm:$0xff] }
 0x252   : > { %v1540_v33 = vld [vmem:[#allocation10 + $0x6f8] sm:$0xff]  ;;  %v7563_v2 = vpack.c.bf16 %v1529_v23, %v1525_v22  ;;  %v1533_v15 = vld [vmem:[#allocation10 + $0x6c0] sm:$0xff]  ;;  %v1547_v59 = vld [vmem:[#allocation10 + $0x730] sm:$0xff] }
 0x253   : > { %7540 = vmatpush1.bf16.msra.mxu0 %v7539_v49  ;;  %7668 = vmatpush1.bf16.msra.mxu1 %v7667_v50  ;;  %v7681_v49 = vpack.c.bf16 %v1516_v38, %v1512_v37  ;;  %v1511_v50 = vld [vmem:[#allocation10 + $0x610] sm:$0xff]  ;;  %v1537_v37 = vld [vmem:[#allocation10 + $0x6e0] sm:$0xff]  ;;  %v1550_v4 = vld [vmem:[#allocation10 + $0x748] sm:$0xff] }
 0x254   : > { %7542 = vmatprep.subr.bf16.mxu0 %v7541_v53  ;;  %7670 = vmatprep.subr.bf16.mxu1 %v7669_v54  ;;  %v1522_v53 = vld [vmem:[#allocation10 + $0x668] sm:$0xff]  ;;  %v1520_v54 = vld [vmem:[#allocation10 + $0x658] sm:$0xff]  ;;  %v7683_v57 = vpack.c.bf16 %v1515_v51, %v1511_v50  ;;  %v7567_v51 = vpack.c.bf16 %v1537_v37, %v1533_v15  ;;  %v1555_v22 = vld [vmem:[#allocation10 + $0x770] sm:$0xff] }
 0x255   : > { %v7557_v9 = vpack.c.bf16 %v1522_v53, %v1518_v52  ;;  %v1548_v50 = vld [vmem:[#allocation10 + $0x738] sm:$0xff]  ;;  %v1541_v53 = vld [vmem:[#allocation10 + $0x700] sm:$0xff]  ;;  %v1558_v23 = vld [vmem:[#allocation10 + $0x788] sm:$0xff] }
 0x256   : > { %v1563_v15 = vld [vmem:[#allocation10 + $0x7b0] sm:$0xff]  ;;  %v1566_v37 = vld [vmem:[#allocation10 + $0x7c8] sm:$0xff] }
 0x257   : > { %7544 = vmatpush1.bf16.msra.mxu0 %v7543_v10  ;;  %7672 = vmatpush1.bf16.msra.mxu1 %v7671_v11  ;;  %v7685_v10 = vpack.c.bf16 %v1524_v55, %v1520_v54  ;;  %v1519_v11 = vld [vmem:[#allocation10 + $0x650] sm:$0xff]  ;;  %v1545_v54 = vld [vmem:[#allocation10 + $0x720] sm:$0xff] }
 0x258   : > { %7546 = vmatprep.subr.bf16.mxu0 %v7545_v17  ;;  %7674 = vmatprep.subr.bf16.mxu1 %v7673_v61  ;;  %v1530_v17 = vld [vmem:[#allocation10 + $0x6a8] sm:$0xff]  ;;  %v1528_v61 = vld [vmem:[#allocation10 + $0x698] sm:$0xff]  ;;  %v7687_v21 = vpack.c.bf16 %v1523_v12, %v1519_v11  ;;  %v7571_v12 = vpack.c.bf16 %v1545_v54, %v1541_v53  ;;  %v1571_v53 = vld [vmem:[#allocation10 + $0x7f0] sm:$0xff] }
 0x259   : > { %v7561_v24 = vpack.c.bf16 %v1530_v17, %v1526_v16  ;;  %v1556_v11 = vld [vmem:[#allocation10 + $0x778] sm:$0xff]  ;;  %v1549_v17 = vld [vmem:[#allocation10 + $0x740] sm:$0xff]  ;;  %v2378_v54 = vld [vmem:[#allocation11 + $0x808] sm:$0xff] }
 0x25b   : > { %7548 = vmatpush1.bf16.msra.mxu0 %v7547_v26  ;;  %7676 = vmatpush1.bf16.msra.mxu1 %v7675_v28  ;;  %v7689_v26 = vpack.c.bf16 %v1532_v18, %v1528_v61  ;;  %v1527_v28 = vld [vmem:[#allocation10 + $0x690] sm:$0xff]  ;;  %v1553_v61 = vld [vmem:[#allocation10 + $0x760] sm:$0xff] }
 0x25c   : > { %7550 = vmatprep.subr.bf16.mxu0 %v7549_v3  ;;  %7678 = vmatprep.subr.bf16.mxu1 %v7677_v32  ;;  %v1538_v3 = vld [vmem:[#allocation10 + $0x6e8] sm:$0xff]  ;;  %v1536_v32 = vld [vmem:[#allocation10 + $0x6d8] sm:$0xff]  ;;  %v7691_v34 = vpack.c.bf16 %v1531_v29, %v1527_v28  ;;  %v7575_v29 = vpack.c.bf16 %v1553_v61, %v1549_v17  ;;  %v2379_v17 = vld [vmem:[#allocation11 + $0x810] sm:$0xff] }
 0x25d   : > { %v7565_v38 = vpack.c.bf16 %v1538_v3, %v1534_v30  ;;  %v1564_v28 = vld [vmem:[#allocation10 + $0x7b8] sm:$0xff]  ;;  %v1557_v3 = vld [vmem:[#allocation10 + $0x780] sm:$0xff]  ;;  %v2383_v61 = vld [vmem:[#allocation11 + $0x830] sm:$0xff] }
 0x25f   : > { %7552 = vmatpush1.bf16.msra.mxu0 %v7551_v0  ;;  %7680 = vmatpush1.bf16.msra.mxu1 %v7679_v43  ;;  %v7693_v0 = vpack.c.bf16 %v1540_v33, %v1536_v32  ;;  %v1535_v43 = vld [vmem:[#allocation10 + $0x6d0] sm:$0xff]  ;;  %v1561_v32 = vld [vmem:[#allocation10 + $0x7a0] sm:$0xff] }
 0x260   : > { %7554 = vmatprep.subr.bf16.mxu0 %v7553_v46  ;;  %7682 = vmatprep.subr.bf16.mxu1 %v7681_v49  ;;  %v1546_v46 = vld [vmem:[#allocation10 + $0x728] sm:$0xff]  ;;  %v1544_v49 = vld [vmem:[#allocation10 + $0x718] sm:$0xff]  ;;  %v7695_v52 = vpack.c.bf16 %v1539_v44, %v1535_v43  ;;  %v7579_v44 = vpack.c.bf16 %v1561_v32, %v1557_v3 }
 0x261   : > { %v7569_v55 = vpack.c.bf16 %v1546_v46, %v1542_v45  ;;  %v1572_v43 = vld [vmem:[#allocation10 + $0x7f8] sm:$0xff]  ;;  %v1565_v46 = vld [vmem:[#allocation10 + $0x7c0] sm:$0xff] }
 0x263   : > { %7556 = vmatpush1.bf16.msra.mxu0 %v7555_v56  ;;  %7684 = vmatpush1.bf16.msra.mxu1 %v7683_v57  ;;  %v7697_v56 = vpack.c.bf16 %v1548_v50, %v1544_v49  ;;  %v1543_v57 = vld [vmem:[#allocation10 + $0x710] sm:$0xff]  ;;  %v1569_v49 = vld [vmem:[#allocation10 + $0x7e0] sm:$0xff] }
 0x264   : > { %7558 = vmatprep.subr.bf16.mxu0 %v7557_v9  ;;  %7686 = vmatprep.subr.bf16.mxu1 %v7685_v10  ;;  %v1554_v9 = vld [vmem:[#allocation10 + $0x768] sm:$0xff]  ;;  %v1552_v10 = vld [vmem:[#allocation10 + $0x758] sm:$0xff]  ;;  %v7699_v16 = vpack.c.bf16 %v1547_v59, %v1543_v57  ;;  %v7583_v59 = vpack.c.bf16 %v1569_v49, %v1565_v46  ;;  %v1300_v46 = vadd.f32 %v10320_v7, %v10335_v1 }
 0x265   : > { %v7573_v18 = vpack.c.bf16 %v1554_v9, %v1550_v4  ;;  %v2384_v57 = vld [vmem:[#allocation11 + $0x838] sm:$0xff] }
 0x267   : > { %7560 = vmatpush1.bf16.msra.mxu0 %v7559_v20  ;;  %7688 = vmatpush1.bf16.msra.mxu1 %v7687_v21  ;;  %v7701_v20 = vpack.c.bf16 %v1556_v11, %v1552_v10  ;;  %v1551_v21 = vld [vmem:[#allocation10 + $0x750] sm:$0xff]  ;;  %v2377_v11 = vld [vmem:[#allocation11 + $0x800] sm:$0xff] }
 0x268   : > { %7562 = vmatprep.subr.bf16.mxu0 %v7561_v24  ;;  %7690 = vmatprep.subr.bf16.mxu1 %v7689_v26  ;;  %v1562_v24 = vld [vmem:[#allocation10 + $0x7a8] sm:$0xff]  ;;  %v1560_v26 = vld [vmem:[#allocation10 + $0x798] sm:$0xff]  ;;  %v7703_v30 = vpack.c.bf16 %v1555_v22, %v1551_v21 }
 0x269   : > { %v7577_v33 = vpack.c.bf16 %v1562_v24, %v1558_v23  ;;  %v2388_v21 = vld [vmem:[#allocation11 + $0x858] sm:$0xff]  ;;  %v10356_v23 = vmax.f32 %v10283_v13, 0.0  ;;  %v2398_v13 = vld [vmem:[#allocation11 + $0x8a8] sm:$0xff] }
 0x26a   : > { %v2392_v22 = vld [vmem:[#allocation11 + $0x878] sm:$0xff] }
 0x26b   : > { %7564 = vmatpush1.bf16.msra.mxu0 %v7563_v2  ;;  %7692 = vmatpush1.bf16.msra.mxu1 %v7691_v34  ;;  %v7705_v2 = vpack.c.bf16 %v1564_v28, %v1560_v26  ;;  %v1559_v34 = vld [vmem:[#allocation10 + $0x790] sm:$0xff]  ;;  %v7843_v26 = vpack.c.bf16 %v2383_v61, %v2379_v17  ;;  %v2385_v28 = vld [vmem:[#allocation11 + $0x840] sm:$0xff]  ;;  %v7845_v32 = vpack.c.bf16 %v2392_v22, %v2388_v21  ;;  %v2412_v17 = vld [vmem:[#allocation11 + $0x918] sm:$0xff] }
 0x26c   : > { %7566 = vmatprep.subr.bf16.mxu0 %v7565_v38  ;;  %7694 = vmatprep.subr.bf16.mxu1 %v7693_v0  ;;  %v1570_v38 = vld [vmem:[#allocation10 + $0x7e8] sm:$0xff]  ;;  %v1568_v0 = vld [vmem:[#allocation10 + $0x7d8] sm:$0xff]  ;;  %v7707_v45 = vpack.c.bf16 %v1563_v15, %v1559_v34  ;;  %v2409_v22 = vld [vmem:[#allocation11 + $0x900] sm:$0xff] }
 0x26d   : > { %v7581_v50 = vpack.c.bf16 %v1570_v38, %v1566_v37  ;;  %v2394_v34 = vld [vmem:[#allocation11 + $0x888] sm:$0xff]  ;;  %v2396_v15 = vld [vmem:[#allocation11 + $0x898] sm:$0xff]  ;;  %v10367_v38 = vmax.f32 %v10297_v39, 0.0 }
 0x26e   : > { %v2400_v37 = vld [vmem:[#allocation11 + $0x8b8] sm:$0xff]  ;;  %v7721_v49 = vpack.c.bf16 %v2398_v13, %v2394_v34  ;;  %v2406_v39 = vld [vmem:[#allocation11 + $0x8e8] sm:$0xff]  ;;  %v2417_v13 = vld [vmem:[#allocation11 + $0x940] sm:$0xff] }
 0x26f   : > { %7568 = vmatpush1.bf16.msra.mxu0 %v7567_v51  ;;  %7696 = vmatpush1.bf16.msra.mxu1 %v7695_v52  ;;  %v7709_v51 = vpack.c.bf16 %v1572_v43, %v1568_v0  ;;  %v1567_v52 = vld [vmem:[#allocation10 + $0x7d0] sm:$0xff]  ;;  %v2393_v43 = vld [vmem:[#allocation11 + $0x880] sm:$0xff]  ;;  %v2416_v61 = vld [vmem:[#allocation11 + $0x938] sm:$0xff] }
 0x270   : > { %7570 = vmatprep.subr.bf16.mxu0 %v7569_v55  ;;  %7698 = vmatprep.subr.bf16.mxu1 %v7697_v56  ;;  %v2382_v55 = vld [vmem:[#allocation11 + $0x828] sm:$0xff]  ;;  %v2380_v56 = vld [vmem:[#allocation11 + $0x818] sm:$0xff]  ;;  %v7711_v4 = vpack.c.bf16 %v1571_v53, %v1567_v52  ;;  %v2399_v52 = vld [vmem:[#allocation11 + $0x8b0] sm:$0xff] }
 0x271   : > { %v7713_v9 = vpack.c.bf16 %v2382_v55, %v2378_v54  ;;  %v7841_v10 = vpack.c.bf16 %v2384_v57, %v2380_v56  ;;  %v2402_v53 = vld [vmem:[#allocation11 + $0x8c8] sm:$0xff]  ;;  %v2404_v54 = vld [vmem:[#allocation11 + $0x8d8] sm:$0xff]  ;;  %v2401_v57 = vld [vmem:[#allocation11 + $0x8c0] sm:$0xff] }
 0x272   : > { %v2408_v55 = vld [vmem:[#allocation11 + $0x8f8] sm:$0xff] }
 0x273   : > { %7572 = vmatpush1.bf16.msra.mxu0 %v7571_v12  ;;  %7700 = vmatpush1.bf16.msra.mxu1 %v7699_v16  ;;  %v2381_v12 = vld [vmem:[#allocation11 + $0x820] sm:$0xff]  ;;  %v1292_v16 = vadd.f32 %v10320_v7, %v10299_v40  ;;  %v1296_v40 = vadd.f32 %v10320_v7, %v10316_v6  ;;  %v10378_v7 = vmax.f32 %v10314_v5, 0.0  ;;  %v2414_v5 = vld [vmem:[#allocation11 + $0x928] sm:$0xff] }
 0x274   : > { %7574 = vmatprep.subr.bf16.mxu0 %v7573_v18  ;;  %7702 = vmatprep.subr.bf16.mxu1 %v7701_v20  ;;  %v2386_v18 = vld [vmem:[#allocation11 + $0x848] sm:$0xff]  ;;  %v7715_v24 = vpack.c.bf16 %v2381_v12, %v2377_v11  ;;  %v2403_v11 = vld [vmem:[#allocation11 + $0x8d0] sm:$0xff] }
 0x275   : > { %v2390_v20 = vld [vmem:[#allocation11 + $0x868] sm:$0xff]  ;;  %v2407_v12 = vld [vmem:[#allocation11 + $0x8f0] sm:$0xff] }
 0x276   : > { %v7717_v3 = vpack.c.bf16 %v2390_v20, %v2386_v18  ;;  %v10387_v18 = vmax.f32 %v10333_v27, 0.0  ;;  %v7855_v21 = vpack.c.bf16 %v2407_v12, %v2403_v11  ;;  %v2420_v27 = vld [vmem:[#allocation11 + $0x958] sm:$0xff] }
 0x277   : > { %7576 = vmatpush1.bf16.msra.mxu0 %v7575_v29  ;;  %7704 = vmatpush1.bf16.msra.mxu1 %v7703_v30  ;;  %v2389_v29 = vld [vmem:[#allocation11 + $0x860] sm:$0xff]  ;;  %v10358_v30 = vmax.f32 %v1292_v16, 0.0  ;;  %v2410_v16 = vld [vmem:[#allocation11 + $0x908] sm:$0xff]  ;;  %v2436_v11 = vld [vmem:[#allocation11 + $0x9d8] sm:$0xff] }
 0x278   : > { %7578 = vmatprep.subr.bf16.mxu0 %v7577_v33  ;;  %7706 = vmatprep.subr.bf16.mxu1 %v7705_v2  ;;  %v2387_v33 = vld [vmem:[#allocation11 + $0x850] sm:$0xff]  ;;  %v7719_v6 = vpack.c.bf16 %v2389_v29, %v2385_v28  ;;  %v7857_v28 = vpack.c.bf16 %v2416_v61, %v2412_v17  ;;  %v2437_v17 = vld [vmem:[#allocation11 + $0x9e0] sm:$0xff] }
 0x279   : > { %v2391_v2 = vld [vmem:[#allocation11 + $0x870] sm:$0xff] }
 0x27a   : > { %v7847_v0 = vpack.c.bf16 %v2391_v2, %v2387_v33  ;;  %v2411_v29 = vld [vmem:[#allocation11 + $0x910] sm:$0xff]  ;;  %v2424_v33 = vld [vmem:[#allocation11 + $0x978] sm:$0xff] }
 0x27b   : > { %7580 = vmatpush1.bf16.msra.mxu0 %v7579_v44  ;;  %7708 = vmatpush1.bf16.msra.mxu1 %v7707_v45  ;;  %v2397_v44 = vld [vmem:[#allocation11 + $0x8a0] sm:$0xff]  ;;  %v10369_v45 = vmax.f32 %v1296_v40, 0.0  ;;  %v2415_v40 = vld [vmem:[#allocation11 + $0x930] sm:$0xff] }
 0x27c   : > { %7582 = vmatprep.subr.bf16.mxu0 %v7581_v50  ;;  %7710 = vmatprep.subr.bf16.mxu1 %v7709_v51  ;;  %v7849_v50 = vpack.c.bf16 %v2400_v37, %v2396_v15  ;;  %v2395_v51 = vld [vmem:[#allocation11 + $0x890] sm:$0xff]  ;;  %v7723_v1 = vpack.c.bf16 %v2397_v44, %v2393_v43  ;;  %v7859_v34 = vpack.c.bf16 %v2415_v40, %v2411_v29  ;;  %v2421_v15 = vld [vmem:[#allocation11 + $0x960] sm:$0xff]  ;;  %v2426_v44 = vld [vmem:[#allocation11 + $0x988] sm:$0xff] }
 0x27d   : > { %v7851_v56 = vpack.c.bf16 %v2399_v52, %v2395_v51  ;;  %v2423_v43 = vld [vmem:[#allocation11 + $0x970] sm:$0xff]  ;;  %v7735_v51 = vpack.c.bf16 %v2421_v15, %v2417_v13  ;;  %v2444_v29 = vld [vmem:[#allocation11 + $0xa18] sm:$0xff] }
 0x27e   : > { %v2447_v13 = vld [vmem:[#allocation11 + $0xa30] sm:$0xff] }
 0x27f   : > { %7584 = vmatpush1.bf16.msra.mxu0 %v7583_v59  ;;  %7712 = vmatpush1.bf16.msra.mxu1 %v7711_v4  ;;  %v2405_v59 = vld [vmem:[#allocation11 + $0x8e0] sm:$0xff]  ;;  %v10380_v4 = vmax.f32 %v1300_v46, 0.0  ;;  %v2430_v46 = vld [vmem:[#allocation11 + $0x9a8] sm:$0xff] }
 0x280   : > { %7714 = vmatprep.subr.bf16.mxu0 %v7713_v9  ;;  %7842 = vmatprep.subr.bf16.mxu1 %v7841_v10  ;;  %v7725_v9 = vpack.c.bf16 %v2406_v39, %v2402_v53  ;;  %v7853_v10 = vpack.c.bf16 %v2408_v55, %v2404_v54  ;;  %v7727_v20 = vpack.c.bf16 %v2405_v59, %v2401_v57  ;;  %v2425_v53 = vld [vmem:[#allocation11 + $0x980] sm:$0xff] }
 0x281   : > { %v7737_v39 = vpack.c.bf16 %v2430_v46, %v2426_v44  ;;  %v2429_v55 = vld [vmem:[#allocation11 + $0x9a0] sm:$0xff]  ;;  %v2456_v44 = vld [vmem:[#allocation11 + $0xa78] sm:$0xff] }
 0x282   : > { %1727 = vmatmul.mubr.f32.vlgmr.msra.gmra.mrb[8].mxu0 %v10356_v23  ;;  %1905 = vmatmul.mubr.f32.vlgmr.msra.gmra.mrb[8].mxu1 %v10356_v23  ;;  %v7739_v57 = vpack.c.bf16 %v2429_v55, %v2425_v53  ;;  %v2449_v46 = vld [vmem:[#allocation11 + $0xa40] sm:$0xff]  ;;  %v2455_v53 = vld [vmem:[#allocation11 + $0xa70] sm:$0xff]  ;;  %v2462_v55 = vld [vmem:[#allocation11 + $0xaa8] sm:$0xff] }
 0x283   : > { %1732 = vmatprep.mubr.f32.mxu0 %v10358_v30  ;;  %1910 = vmatprep.mubr.f32.mxu1 %v10358_v30 }
 0x284   : > { %7716 = vmatpush1.bf16.msra.mxu0 %v7715_v24  ;;  %7844 = vmatpush1.bf16.msra.mxu1 %v7843_v26  ;;  %v2413_v24 = vld [vmem:[#allocation11 + $0x920] sm:$0xff]  ;;  %v7729_v26 = vpack.c.bf16 %v2414_v5, %v2410_v16  ;;  %v2440_v16 = vld [vmem:[#allocation11 + $0x9f8] sm:$0xff] }
 0x285   : > { %7718 = vmatprep.subr.bf16.mxu0 %v7717_v3  ;;  %7846 = vmatprep.subr.bf16.mxu1 %v7845_v32  ;;  %v2418_v3 = vld [vmem:[#allocation11 + $0x948] sm:$0xff]  ;;  %v7731_v2 = vpack.c.bf16 %v2413_v24, %v2409_v22  ;;  %v2433_v5 = vld [vmem:[#allocation11 + $0x9c0] sm:$0xff]  ;;  %v7869_v61 = vpack.c.bf16 %v2440_v16, %v2436_v11  ;;  %v2439_v22 = vld [vmem:[#allocation11 + $0x9f0] sm:$0xff] }
 0x286   : > { %1733 = vmatmul.mubr.f32.gmra.mrb[10].mxu0 %v10367_v38  ;;  %1911 = vmatmul.mubr.f32.gmra.mrb[10].mxu1 %v10367_v38  ;;  %v2422_v32 = vld [vmem:[#allocation11 + $0x968] sm:$0xff]  ;;  %v2463_v16 = vld [vmem:[#allocation11 + $0xab0] sm:$0xff] }
 0x287   : > { %1738 = vmatprep.mubr.f32.mxu0 %v10369_v45  ;;  %1916 = vmatprep.mubr.f32.mxu1 %v10369_v45  ;;  %v7733_v37 = vpack.c.bf16 %v2422_v32, %v2418_v3  ;;  %v2448_v3 = vld [vmem:[#allocation11 + $0xa38] sm:$0xff]  ;;  %v2441_v32 = vld [vmem:[#allocation11 + $0xa00] sm:$0xff] }
 0x288   : > { %7720 = vmatpush1.bf16.msra.mxu0 %v7719_v6  ;;  %7848 = vmatpush1.bf16.msra.mxu1 %v7847_v0  ;;  %v7861_v6 = vpack.c.bf16 %v2424_v33, %v2420_v27  ;;  %v2419_v0 = vld [vmem:[#allocation11 + $0x950] sm:$0xff]  ;;  %v2445_v27 = vld [vmem:[#allocation11 + $0xa20] sm:$0xff]  ;;  %v7873_v33 = vpack.c.bf16 %v2448_v3, %v2444_v29 }
 0x289   : > { %7722 = vmatprep.subr.bf16.mxu0 %v7721_v49  ;;  %7850 = vmatprep.subr.bf16.mxu1 %v7849_v50  ;;  %v2428_v49 = vld [vmem:[#allocation11 + $0x998] sm:$0xff]  ;;  %v7863_v52 = vpack.c.bf16 %v2423_v43, %v2419_v0  ;;  %v2471_v3 = vld [vmem:[#allocation11 + $0xaf0] sm:$0xff] }
 0x28a   : > { %1739 = vmatmul.mubr.f32.gmra.mrb[12].mxu0 %v10378_v7  ;;  %1917 = vmatmul.mubr.f32.gmra.mrb[12].mxu1 %v10378_v7  ;;  %v2432_v50 = vld [vmem:[#allocation11 + $0x9b8] sm:$0xff] }
 0x28b   : > { %1744 = vmatprep.mubr.f32.mxu0 %v10380_v4  ;;  %1922 = vmatprep.mubr.f32.mxu1 %v10380_v4  ;;  %v7865_v54 = vpack.c.bf16 %v2432_v50, %v2428_v49  ;;  %v2452_v0 = vld [vmem:[#allocation11 + $0xa58] sm:$0xff]  ;;  %v2453_v49 = vld [vmem:[#allocation11 + $0xa60] sm:$0xff] }
 0x28c   : > { %7724 = vmatpush1.bf16.msra.mxu0 %v7723_v1  ;;  %7852 = vmatpush1.bf16.msra.mxu1 %v7851_v56  ;;  %v2427_v1 = vld [vmem:[#allocation11 + $0x990] sm:$0xff]  ;;  %v7877_v50 = vpack.c.bf16 %v2456_v44, %v2452_v0 }
 0x28d   : > { %7726 = vmatprep.subr.bf16.mxu0 %v7725_v9  ;;  %7854 = vmatprep.subr.bf16.mxu1 %v7853_v10  ;;  %v2431_v56 = vld [vmem:[#allocation11 + $0x9b0] sm:$0xff]  ;;  %v2434_v9 = vld [vmem:[#allocation11 + $0x9c8] sm:$0xff] }
 0x28e   : > { %1745 = vmatmul.mubr.f32.gmra.mrb[14].mxu0 %v10387_v18  ;;  %1923 = vmatmul.mubr.f32.gmra.mrb[14].mxu1 %v10387_v18  ;;  %v7867_v59 = vpack.c.bf16 %v2431_v56, %v2427_v1  ;;  %v2438_v10 = vld [vmem:[#allocation11 + $0x9e8] sm:$0xff]  ;;  %v2460_v1 = vld [vmem:[#allocation11 + $0xa98] sm:$0xff]  ;;  %v2479_v44 = vld [vmem:[#allocation11 + $0xb30] sm:$0xff] }
 0x28f   : > { %v7741_v12 = vpack.c.bf16 %v2438_v10, %v2434_v9  ;;  %v2461_v9 = vld [vmem:[#allocation11 + $0xaa0] sm:$0xff] }
 0x290   : > { %7728 = vmatpush1.bf16.msra.mxu0 %v7727_v20  ;;  %7856 = vmatpush1.bf16.msra.mxu1 %v7855_v21  ;;  %v7743_v20 = vpack.c.bf16 %v2437_v17, %v2433_v5  ;;  %v2435_v21 = vld [vmem:[#allocation11 + $0x9d0] sm:$0xff]  ;;  %v2466_v17 = vld [vmem:[#allocation11 + $0xac8] sm:$0xff] }
 0x291   : > { %7730 = vmatprep.subr.bf16.mxu0 %v7729_v26  ;;  %7858 = vmatprep.subr.bf16.mxu1 %v7857_v28  ;;  %v7871_v24 = vpack.c.bf16 %v2439_v22, %v2435_v21  ;;  %v2442_v26 = vld [vmem:[#allocation11 + $0xa08] sm:$0xff]  ;;  %v2472_v22 = vld [vmem:[#allocation11 + $0xaf8] sm:$0xff] }
 0x292   : > { %v2446_v28 = vld [vmem:[#allocation11 + $0xa28] sm:$0xff] }
 0x293   : > { %v7745_v40 = vpack.c.bf16 %v2446_v28, %v2442_v26  ;;  %v2469_v26 = vld [vmem:[#allocation11 + $0xae0] sm:$0xff] }
 0x294   : > { %7732 = vmatpush1.bf16.msra.mxu0 %v7731_v2  ;;  %7860 = vmatpush1.bf16.msra.mxu1 %v7859_v34  ;;  %v7747_v2 = vpack.c.bf16 %v2445_v27, %v2441_v32  ;;  %v2443_v34 = vld [vmem:[#allocation11 + $0xa10] sm:$0xff]  ;;  %v2474_v27 = vld [vmem:[#allocation11 + $0xb08] sm:$0xff] }
 0x295   : > { %7734 = vmatprep.subr.bf16.mxu0 %v7733_v37  ;;  %7862 = vmatprep.subr.bf16.mxu1 %v7861_v6  ;;  %v7875_v15 = vpack.c.bf16 %v2447_v13, %v2443_v34  ;;  %v2450_v37 = vld [vmem:[#allocation11 + $0xa48] sm:$0xff]  ;;  %v2480_v13 = vld [vmem:[#allocation11 + $0xb38] sm:$0xff] }
 0x296   : > { %v2454_v6 = vld [vmem:[#allocation11 + $0xa68] sm:$0xff] }
 0x297   : > { %v7749_v43 = vpack.c.bf16 %v2454_v6, %v2450_v37  ;;  %v2477_v37 = vld [vmem:[#allocation11 + $0xb20] sm:$0xff] }
 0x298   : > { %7736 = vmatpush1.bf16.msra.mxu0 %v7735_v51  ;;  %7864 = vmatpush1.bf16.msra.mxu1 %v7863_v52  ;;  %v7751_v51 = vpack.c.bf16 %v2453_v49, %v2449_v46  ;;  %v2451_v52 = vld [vmem:[#allocation11 + $0xa50] sm:$0xff]  ;;  %v2482_v49 = vld [vmem:[#allocation11 + $0xb48] sm:$0xff] }
 0x299   : > { %7738 = vmatprep.subr.bf16.mxu0 %v7737_v39  ;;  %7866 = vmatprep.subr.bf16.mxu1 %v7865_v54  ;;  %v7879_v39 = vpack.c.bf16 %v2455_v53, %v2451_v52  ;;  %v2458_v54 = vld [vmem:[#allocation11 + $0xa88] sm:$0xff]  ;;  %v2488_v53 = vld [vmem:[#allocation11 + $0xb78] sm:$0xff] }
 0x29a   : > { %v7753_v56 = vpack.c.bf16 %v2462_v55, %v2458_v54  ;;  %v2485_v54 = vld [vmem:[#allocation11 + $0xb60] sm:$0xff] }
 0x29c   : > { %7740 = vmatpush1.bf16.msra.mxu0 %v7739_v57  ;;  %7868 = vmatpush1.bf16.msra.mxu1 %v7867_v59  ;;  %v2464_v57 = vld [vmem:[#allocation11 + $0xab8] sm:$0xff]  ;;  %v2457_v59 = vld [vmem:[#allocation11 + $0xa80] sm:$0xff] }
 0x29d   : > { %7742 = vmatprep.subr.bf16.mxu0 %v7741_v12  ;;  %7870 = vmatprep.subr.bf16.mxu1 %v7869_v61  ;;  %v7881_v10 = vpack.c.bf16 %v2464_v57, %v2460_v1  ;;  %v7755_v11 = vpack.c.bf16 %v2461_v9, %v2457_v59  ;;  %v2459_v12 = vld [vmem:[#allocation11 + $0xa90] sm:$0xff]  ;;  %v2470_v61 = vld [vmem:[#allocation11 + $0xae8] sm:$0xff] }
 0x29e   : > { %v7883_v5 = vpack.c.bf16 %v2463_v16, %v2459_v12  ;;  %v7757_v21 = vpack.c.bf16 %v2470_v61, %v2466_v17  ;;  %v2487_v57 = vld [vmem:[#allocation11 + $0xb70] sm:$0xff]  ;;  %v2490_v9 = vld [vmem:[#allocation11 + $0xb88] sm:$0xff]  ;;  %v2496_v16 = vld [vmem:[#allocation11 + $0xbb8] sm:$0xff] }
 0x29f   : > { %v2493_v17 = vld [vmem:[#allocation11 + $0xba0] sm:$0xff] }
 0x2a0   : > { %7744 = vmatpush1.bf16.msra.mxu0 %v7743_v20  ;;  %7872 = vmatpush1.bf16.msra.mxu1 %v7871_v24  ;;  %v2468_v20 = vld [vmem:[#allocation11 + $0xad8] sm:$0xff]  ;;  %v2465_v24 = vld [vmem:[#allocation11 + $0xac0] sm:$0xff] }
 0x2a1   : > { %7746 = vmatprep.subr.bf16.mxu0 %v7745_v40  ;;  %7874 = vmatprep.subr.bf16.mxu1 %v7873_v33  ;;  %v7885_v28 = vpack.c.bf16 %v2472_v22, %v2468_v20  ;;  %v7759_v29 = vpack.c.bf16 %v2469_v26, %v2465_v24  ;;  %v2467_v40 = vld [vmem:[#allocation11 + $0xad0] sm:$0xff]  ;;  %v2478_v33 = vld [vmem:[#allocation11 + $0xb28] sm:$0xff] }
 0x2a2   : > { %v7887_v32 = vpack.c.bf16 %v2471_v3, %v2467_v40  ;;  %v7761_v34 = vpack.c.bf16 %v2478_v33, %v2474_v27  ;;  %v2495_v22 = vld [vmem:[#allocation11 + $0xbb0] sm:$0xff]  ;;  %v2498_v24 = vld [vmem:[#allocation11 + $0xbc8] sm:$0xff]  ;;  %v2504_v40 = vld [vmem:[#allocation11 + $0xbf8] sm:$0xff] }
 0x2a3   : > { %v2497_v27 = vld [vmem:[#allocation11 + $0xbc0] sm:$0xff] }
 0x2a4   : > { %7748 = vmatpush1.bf16.msra.mxu0 %v7747_v2  ;;  %7876 = vmatpush1.bf16.msra.mxu1 %v7875_v15  ;;  %v2476_v2 = vld [vmem:[#allocation11 + $0xb18] sm:$0xff]  ;;  %v2473_v15 = vld [vmem:[#allocation11 + $0xb00] sm:$0xff] }
 0x2a5   : > { %7750 = vmatprep.subr.bf16.mxu0 %v7749_v43  ;;  %7878 = vmatprep.subr.bf16.mxu1 %v7877_v50  ;;  %v7889_v6 = vpack.c.bf16 %v2480_v13, %v2476_v2  ;;  %v7763_v0 = vpack.c.bf16 %v2477_v37, %v2473_v15  ;;  %v2475_v43 = vld [vmem:[#allocation11 + $0xb10] sm:$0xff]  ;;  %v2486_v50 = vld [vmem:[#allocation11 + $0xb68] sm:$0xff]  ;;  %v2501_v33 = vld [vmem:[#allocation11 + $0xbe0] sm:$0xff] }
 0x2a6   : > { %v7891_v46 = vpack.c.bf16 %v2479_v44, %v2475_v43  ;;  %v7765_v52 = vpack.c.bf16 %v2486_v50, %v2482_v49  ;;  %v2499_v2 = vld [vmem:[#allocation11 + $0xbd0] sm:$0xff]  ;;  %v2506_v37 = vld [vmem:[#allocation11 + $0xc08] sm:$0xff]  ;;  %v2512_v44 = vld [vmem:[#allocation11 + $0xc38] sm:$0xff] }
 0x2a7   : > { %v2503_v13 = vld [vmem:[#allocation11 + $0xbf0] sm:$0xff] }
 0x2a8   : > { %7752 = vmatpush1.bf16.msra.mxu0 %v7751_v51  ;;  %7880 = vmatpush1.bf16.msra.mxu1 %v7879_v39  ;;  %v2484_v51 = vld [vmem:[#allocation11 + $0xb58] sm:$0xff]  ;;  %v2481_v39 = vld [vmem:[#allocation11 + $0xb40] sm:$0xff]  ;;  %v7903_v15 = vpack.c.bf16 %v2503_v13, %v2499_v2 }
 0x2a9   : > { %7754 = vmatprep.subr.bf16.mxu0 %v7753_v56  ;;  %7882 = vmatprep.subr.bf16.mxu1 %v7881_v10  ;;  %v7893_v55 = vpack.c.bf16 %v2488_v53, %v2484_v51  ;;  %v7767_v1 = vpack.c.bf16 %v2485_v54, %v2481_v39  ;;  %v2483_v56 = vld [vmem:[#allocation11 + $0xb50] sm:$0xff]  ;;  %v2494_v10 = vld [vmem:[#allocation11 + $0xba8] sm:$0xff] }
 0x2aa   : > { %v7895_v59 = vpack.c.bf16 %v2487_v57, %v2483_v56  ;;  %v7769_v12 = vpack.c.bf16 %v2494_v10, %v2490_v9 }
 0x2ac   : > { %7756 = vmatpush1.bf16.msra.mxu0 %v7755_v11  ;;  %7884 = vmatpush1.bf16.msra.mxu1 %v7883_v5  ;;  %v2492_v11 = vld [vmem:[#allocation11 + $0xb98] sm:$0xff]  ;;  %v2489_v5 = vld [vmem:[#allocation11 + $0xb80] sm:$0xff] }
 0x2ad   : > { %7758 = vmatprep.subr.bf16.mxu0 %v7757_v21  ;;  %7886 = vmatprep.subr.bf16.mxu1 %v7885_v28  ;;  %v7897_v61 = vpack.c.bf16 %v2496_v16, %v2492_v11  ;;  %v7771_v20 = vpack.c.bf16 %v2493_v17, %v2489_v5  ;;  %v2491_v21 = vld [vmem:[#allocation11 + $0xb90] sm:$0xff]  ;;  %v2502_v28 = vld [vmem:[#allocation11 + $0xbe8] sm:$0xff] }
 0x2ae   : > { %v7899_v26 = vpack.c.bf16 %v2495_v22, %v2491_v21  ;;  %v7773_v3 = vpack.c.bf16 %v2502_v28, %v2498_v24 }
 0x2b0   : > { %7760 = vmatpush1.bf16.msra.mxu0 %v7759_v29  ;;  %7888 = vmatpush1.bf16.msra.mxu1 %v7887_v32  ;;  %v2500_v29 = vld [vmem:[#allocation11 + $0xbd8] sm:$0xff] }
 0x2b1   : > { %7762 = vmatprep.subr.bf16.mxu0 %v7761_v34  ;;  %7890 = vmatprep.subr.bf16.mxu1 %v7889_v6  ;;  %v7901_v32 = vpack.c.bf16 %v2504_v40, %v2500_v29  ;;  %v7775_v34 = vpack.c.bf16 %v2501_v33, %v2497_v27  ;;  %v2510_v6 = vld [vmem:[#allocation11 + $0xc28] sm:$0xff] }
 0x2b2   : > { %v7777_v43 = vpack.c.bf16 %v2510_v6, %v2506_v37 }
 0x2b4   : > { %7764 = vmatpush1.bf16.msra.mxu0 %v7763_v0  ;;  %7892 = vmatpush1.bf16.msra.mxu1 %v7891_v46  ;;  %v2508_v0 = vld [vmem:[#allocation11 + $0xc18] sm:$0xff] }
 0x2b5   : > { %7766 = vmatprep.subr.bf16.mxu0 %v7765_v52  ;;  %7894 = vmatprep.subr.bf16.mxu1 %v7893_v55  ;;  %v7905_v46 = vpack.c.bf16 %v2512_v44, %v2508_v0 }
 0x2b8   : > { %7768 = vmatpush1.bf16.msra.mxu0 %v7767_v1  ;;  %7896 = vmatpush1.bf16.msra.mxu1 %v7895_v59 }
 0x2b9   : > { %7770 = vmatprep.subr.bf16.mxu0 %v7769_v12  ;;  %7898 = vmatprep.subr.bf16.mxu1 %v7897_v61 }
 0x2bc   : > { %7772 = vmatpush1.bf16.msra.mxu0 %v7771_v20  ;;  %7900 = vmatpush1.bf16.msra.mxu1 %v7899_v26 }
 0x2bd   : > { %7774 = vmatprep.subr.bf16.mxu0 %v7773_v3  ;;  %7902 = vmatprep.subr.bf16.mxu1 %v7901_v32 }
 0x2c0   : > { %7776 = vmatpush1.bf16.msra.mxu0 %v7775_v34  ;;  %7904 = vmatpush1.bf16.msra.mxu1 %v7903_v15 }
 0x2c1   : > { %7778 = vmatprep.subr.bf16.mxu0 %v7777_v43  ;;  %7906 = vmatprep.subr.bf16.mxu1 %v7905_v46 }
 0x355   : > { %v1728_v49 = vpop.f32.mrb[8].mxu0  ;;  %v1906_v50 = vpop.f32.mrb[8].mxu1 }
 0x356   : > { %v1929_v51 = vmax.f32 %v10290_v25, %v1728_v49  ;;  %v1931_v52 = vmax.f32 %v10356_v23, %v1906_v50  ;;  %v1730_v53 = vpop.f32.mrb[9].mxu0  ;;  %v1908_v39 = vpop.f32.mrb[9].mxu1 }
 0x357   : > { %v1930_v54 = vmax.f32 %v10288_v19, %v1730_v53  ;;  %v1932_v55 = vmax.f32 %v10347_v48, %v1908_v39 }
 0x358   : > { %1945 = vst [vmem:[#allocation2] sm:$0xff] %v1929_v51  ;;  %1947 = vst [vmem:[#allocation2 + $0x10] sm:$0xff] %v1931_v52 }
 0x359   : > { %1946 = vst [vmem:[#allocation2 + $0x8] sm:$0xff] %v1930_v54  ;;  %1948 = vst [vmem:[#allocation2 + $0x18] sm:$0xff] %v1932_v55  ;;  %v1734_v1 = vpop.f32.mrb[10].mxu0  ;;  %v1912_v56 = vpop.f32.mrb[10].mxu1 }
 0x35a   : > { %v1933_v57 = vmax.f32 %v10307_v47, %v1734_v1  ;;  %v1935_v59 = vmax.f32 %v10367_v38, %v1912_v56  ;;  %v1736_v9 = vpop.f32.mrb[11].mxu0  ;;  %v1914_v25 = vpop.f32.mrb[11].mxu1 }
 0x35b   : > { %v1934_v23 = vmax.f32 %v10305_v42, %v1736_v9  ;;  %v1936_v10 = vmax.f32 %v10358_v30, %v1914_v25 }
 0x35c   : > { %1949 = vst [vmem:[#allocation2 + $0x20] sm:$0xff] %v1933_v57  ;;  %1951 = vst [vmem:[#allocation2 + $0x30] sm:$0xff] %v1935_v59 }
 0x35d   : > { %1950 = vst [vmem:[#allocation2 + $0x28] sm:$0xff] %v1934_v23  ;;  %1952 = vst [vmem:[#allocation2 + $0x38] sm:$0xff] %v1936_v10  ;;  %v1740_v19 = vpop.f32.mrb[12].mxu0  ;;  %v1918_v48 = vpop.f32.mrb[12].mxu1 }
 0x35e   : > { %v1937_v11 = vmax.f32 %v10326_v14, %v1740_v19  ;;  %v1939_v12 = vmax.f32 %v10378_v7, %v1918_v48  ;;  %v1742_v16 = vpop.f32.mrb[13].mxu0  ;;  %v1920_v47 = vpop.f32.mrb[13].mxu1 }
 0x35f   : > { %v1938_v42 = vmax.f32 %v10324_v8, %v1742_v16  ;;  %v1940_v30 = vmax.f32 %v10369_v45, %v1920_v47 }
 0x360   : > { %v1973_v5 = vld [vmem:[#allocation2] ss:$8 sm:$0xf]  ;;  %v1975_v17 = vld [vmem:[#allocation2 + $0x1] ss:$8 sm:$0xf] }
 0x361   : > { %1953 = vst [vmem:[#allocation2 + $0x40] sm:$0xff] %v1937_v11  ;;  %1955 = vst [vmem:[#allocation2 + $0x50] sm:$0xff] %v1939_v12  ;;  %v1976_v61 = vmax.f32 %v1973_v5, %v1975_v17  ;;  %v1985_v20 = vld [vmem:[#allocation2 + $0x2] ss:$8 sm:$0xf]  ;;  %v1746_v54 = vpop.f32.mrb[14].mxu0 }
 0x362   : > { %v1987_v14 = vld [vmem:[#allocation2 + $0x3] ss:$8 sm:$0xf]  ;;  %1954 = vst [vmem:[#allocation2 + $0x48] sm:$0xff] %v1938_v42  ;;  %1956 = vst [vmem:[#allocation2 + $0x58] sm:$0xff] %v1940_v30  ;;  %v1924_v55 = vpop.f32.mrb[14].mxu1  ;;  %v1941_v1 = vmax.f32 %v10343_v35, %v1746_v54 }
 0x363   : > { %v1988_v7 = vmax.f32 %v1985_v20, %v1987_v14  ;;  %v1993_v21 = vld [vmem:[#allocation2 + $0x4] ss:$8 sm:$0xf]  ;;  %v1995_v22 = vld [vmem:[#allocation2 + $0x5] ss:$8 sm:$0xf]  ;;  %v1943_v56 = vmax.f32 %v10387_v18, %v1924_v55 }
 0x364   : > { %v1996_v58 = vmax.f32 %v1993_v21, %v1995_v22  ;;  %v2001_v24 = vld [vmem:[#allocation2 + $0x6] ss:$8 sm:$0xf]  ;;  %v2003_v26 = vld [vmem:[#allocation2 + $0x7] ss:$8 sm:$0xf] }
 0x365   : > { %1982 = vst.msk [vmem:[#allocation3 + $0x1] ss:$8 sm:$0xf] %vm10402_vm0, %v1976_v61  ;;  %v2004_v8 = vmax.f32 %v2001_v24, %v2003_v26  ;;  %1990 = vst.msk [vmem:[#allocation3 + $0x2] ss:$8 sm:$0xf] %vm10402_vm0, %v1988_v7 }
 0x366   : > { %v2009_v45 = vld [vmem:[#allocation2 + $0x20] ss:$8 sm:$0xf]  ;;  %v2011_v28 = vld [vmem:[#allocation2 + $0x21] ss:$8 sm:$0xf] }
 0x367   : > { %1998 = vst.msk [vmem:[#allocation3 + $0x3] ss:$8 sm:$0xf] %vm10402_vm0, %v1996_v58  ;;  %v2012_v29 = vmax.f32 %v2009_v45, %v2011_v28  ;;  %v2017_v40 = vld [vmem:[#allocation2 + $0x22] ss:$8 sm:$0xf] }
 0x368   : > { %v2019_v3 = vld [vmem:[#allocation2 + $0x23] ss:$8 sm:$0xf]  ;;  %2006 = vst.msk [vmem:[#allocation3 + $0x4] ss:$8 sm:$0xf] %vm10402_vm0, %v2004_v8 }
 0x369   : > { %v2020_v32 = vmax.f32 %v2017_v40, %v2019_v3  ;;  %v2025_v27 = vld [vmem:[#allocation2 + $0x24] ss:$8 sm:$0xf]  ;;  %v2027_v33 = vld [vmem:[#allocation2 + $0x25] ss:$8 sm:$0xf] }
 0x36a   : > { %v2028_v2 = vmax.f32 %v2025_v27, %v2027_v33  ;;  %v2033_v34 = vld [vmem:[#allocation2 + $0x26] ss:$8 sm:$0xf]  ;;  %v2035_v13 = vld [vmem:[#allocation2 + $0x27] ss:$8 sm:$0xf] }
 0x36b   : > { %2014 = vst.msk [vmem:[#allocation3 + $0x5] ss:$8 sm:$0xf] %vm10402_vm0, %v2012_v29  ;;  %v2036_v15 = vmax.f32 %v2033_v34, %v2035_v13  ;;  %2022 = vst.msk [vmem:[#allocation3 + $0x6] ss:$8 sm:$0xf] %vm10402_vm0, %v2020_v32 }
 0x36c   : > { %v2041_v37 = vld [vmem:[#allocation2 + $0x40] ss:$8 sm:$0xf]  ;;  %v2043_v6 = vld [vmem:[#allocation2 + $0x41] ss:$8 sm:$0xf] }
 0x36d   : > { %2030 = vst.msk [vmem:[#allocation3 + $0x7] ss:$8 sm:$0xf] %vm10402_vm0, %v2028_v2  ;;  %v2044_v0 = vmax.f32 %v2041_v37, %v2043_v6  ;;  %v2049_v43 = vld [vmem:[#allocation2 + $0x42] ss:$8 sm:$0xf] }
 0x36e   : > { %v2051_v44 = vld [vmem:[#allocation2 + $0x43] ss:$8 sm:$0xf]  ;;  %2038 = vst.msk [vmem:[#allocation3 + $0x20] ss:$8 sm:$0xf] %vm10402_vm0, %v2036_v15 }
 0x36f   : > { %v2052_v46 = vmax.f32 %v2049_v43, %v2051_v44  ;;  %v2057_v49 = vld [vmem:[#allocation2 + $0x44] ss:$8 sm:$0xf]  ;;  %v2059_v50 = vld [vmem:[#allocation2 + $0x45] ss:$8 sm:$0xf] }
 0x370   : > { %v2060_v51 = vmax.f32 %v2057_v49, %v2059_v50  ;;  %v2065_v52 = vld [vmem:[#allocation2 + $0x46] ss:$8 sm:$0xf]  ;;  %v2067_v53 = vld [vmem:[#allocation2 + $0x47] ss:$8 sm:$0xf] }
 0x371   : > { %2046 = vst.msk [vmem:[#allocation3 + $0x21] ss:$8 sm:$0xf] %vm10402_vm0, %v2044_v0  ;;  %v2068_v39 = vmax.f32 %v2065_v52, %v2067_v53  ;;  %2054 = vst.msk [vmem:[#allocation3 + $0x22] ss:$8 sm:$0xf] %vm10402_vm0, %v2052_v46 }
 0x372   : > { %2062 = vst.msk [vmem:[#allocation3 + $0x23] ss:$8 sm:$0xf] %vm10402_vm0, %v2060_v51  ;;  %v1748_v57 = vpop.f32.mrb[15].mxu0  ;;  %v1926_v59 = vpop.f32.mrb[15].mxu1  ;;  %1957 = vst [vmem:[#allocation2 + $0x60] sm:$0xff] %v1941_v1 }
 0x373   : > { %2070 = vst.msk [vmem:[#allocation3 + $0x24] ss:$8 sm:$0xf] %vm10402_vm0, %v2068_v39  ;;  %v1942_v9 = vmax.f32 %v10341_v31, %v1748_v57  ;;  %v1944_v25 = vmax.f32 %v10380_v4, %v1926_v59  ;;  %1959 = vst [vmem:[#allocation2 + $0x70] sm:$0xff] %v1943_v56  ;;  %v2505_v5 = vld [vmem:[#allocation11 + $0xc00] sm:$0xff]  ;;  %v2507_v61 = vld [vmem:[#allocation11 + $0xc10] sm:$0xff] }
 0x374   : > { %v2369_v4 = vld [vmem:[#allocation3 + $0x8] sm:$0xfe]  ;;  %v2368_v30 = vld [vmem:[#allocation3] sm:$0xfe]  ;;  %v2511_v20 = vld [vmem:[#allocation11 + $0xc30] sm:$0xff] }
 0x375   : > { %1958 = vst [vmem:[#allocation2 + $0x68] sm:$0xff] %v1942_v9  ;;  %1960 = vst [vmem:[#allocation2 + $0x78] sm:$0xff] %v1944_v25  ;;  %v2509_v17 = vld [vmem:[#allocation11 + $0xc20] sm:$0xff]  ;;  %v2514_v14 = vld [vmem:[#allocation11 + $0xc48] sm:$0xff]  ;;  %v2649_v58 = vrot.slane %v2369_v4, 1  ;;  %v2646_v26 = vrot.slane %v2368_v30, 1  ;;  %v7907_v3 = vpack.c.bf16 %v2511_v20, %v2507_v61 }
 0x376   : > { %v2518_v7 = vld [vmem:[#allocation11 + $0xc68] sm:$0xff]  ;;  %v2516_v21 = vld [vmem:[#allocation11 + $0xc58] sm:$0xff]  ;;  %v7779_v40 = vpack.c.bf16 %v2509_v17, %v2505_v5  ;;  %v2513_v27 = vld [vmem:[#allocation11 + $0xc40] sm:$0xff] }
 0x377   : > { %v2520_v8 = vld [vmem:[#allocation11 + $0xc78] sm:$0xff]  ;;  %v2517_v33 = vld [vmem:[#allocation11 + $0xc60] sm:$0xff]  ;;  %v2515_v13 = vld [vmem:[#allocation11 + $0xc50] sm:$0xff]  ;;  %v7781_v6 = vpack.c.bf16 %v2518_v7, %v2514_v14 }
 0x378   : > { %v2519_v15 = vld [vmem:[#allocation11 + $0xc70] sm:$0xff]  ;;  %v7909_v0 = vpack.c.bf16 %v2520_v8, %v2516_v21  ;;  %v2522_v44 = vld [vmem:[#allocation11 + $0xc88] sm:$0xff]  ;;  %v2524_v50 = vld [vmem:[#allocation11 + $0xc98] sm:$0xff]  ;;  %v7783_v53 = vpack.c.bf16 %v2517_v33, %v2513_v27 }
 0x379   : > { %v2526_v46 = vld [vmem:[#allocation11 + $0xca8] sm:$0xff]  ;;  %v2371_v49 = vld [vmem:[#allocation3 + $0x18] sm:$0xfe]  ;;  %v7911_v39 = vpack.c.bf16 %v2519_v15, %v2515_v13  ;;  %v2521_v55 = vld [vmem:[#allocation11 + $0xc80] sm:$0xff] }
 0x37a   : > { %v2528_v51 = vld [vmem:[#allocation11 + $0xcb8] sm:$0xff]  ;;  %v2525_v1 = vld [vmem:[#allocation11 + $0xca0] sm:$0xff]  ;;  %v2523_v56 = vld [vmem:[#allocation11 + $0xc90] sm:$0xff]  ;;  %v2655_v25 = vrot.slane %v2371_v49, 1 }
 0x37b   : > { %v2527_v57 = vld [vmem:[#allocation11 + $0xcb0] sm:$0xff]  ;;  %v2530_v59 = vld [vmem:[#allocation11 + $0xcc8] sm:$0xff]  ;;  %v2540_v61 = vld [vmem:[#allocation11 + $0xd18] sm:$0xff] }
 0x37c   : > { %v2073_v23 = vld [vmem:[#allocation2 + $0x60] ss:$8 sm:$0xf]  ;;  %v2075_v10 = vld [vmem:[#allocation2 + $0x61] ss:$8 sm:$0xf] }
 0x37d   : > { %v2076_v19 = vmax.f32 %v2073_v23, %v2075_v10  ;;  %v2081_v48 = vld [vmem:[#allocation2 + $0x62] ss:$8 sm:$0xf]  ;;  %v2083_v35 = vld [vmem:[#allocation2 + $0x63] ss:$8 sm:$0xf]  ;;  %v7785_v23 = vpack.c.bf16 %v2526_v46, %v2522_v44  ;;  %v7913_v10 = vpack.c.bf16 %v2528_v51, %v2524_v50 }
 0x37e   : > { %v2084_v11 = vmax.f32 %v2081_v48, %v2083_v35  ;;  %v2089_v18 = vld [vmem:[#allocation2 + $0x64] ss:$8 sm:$0xf]  ;;  %v2091_v12 = vld [vmem:[#allocation2 + $0x65] ss:$8 sm:$0xf] }
 0x37f   : > { %v2092_v16 = vmax.f32 %v2089_v18, %v2091_v12  ;;  %v2097_v47 = vld [vmem:[#allocation2 + $0x66] ss:$8 sm:$0xf]  ;;  %v2099_v42 = vld [vmem:[#allocation2 + $0x67] ss:$8 sm:$0xf]  ;;  %v7787_v18 = vpack.c.bf16 %v2525_v1, %v2521_v55  ;;  %v7915_v12 = vpack.c.bf16 %v2527_v57, %v2523_v56 }
 0x380   : > { %2078 = vst.msk [vmem:[#allocation3 + $0x25] ss:$8 sm:$0xf] %vm10402_vm0, %v2076_v19  ;;  %v2100_v31 = vmax.f32 %v2097_v47, %v2099_v42  ;;  %2086 = vst.msk [vmem:[#allocation3 + $0x26] ss:$8 sm:$0xf] %vm10402_vm0, %v2084_v11 }
 0x381   : > { %2094 = vst.msk [vmem:[#allocation3 + $0x27] ss:$8 sm:$0xf] %vm10402_vm0, %v2092_v16  ;;  %v2534_v19 = vld [vmem:[#allocation11 + $0xce8] sm:$0xff]  ;;  %v2532_v48 = vld [vmem:[#allocation11 + $0xcd8] sm:$0xff]  ;;  %v2529_v16 = vld [vmem:[#allocation11 + $0xcc0] sm:$0xff] }
 0x382   : > { %2102 = vst.msk [vmem:[#allocation3 + $0x40] ss:$8 sm:$0xf] %vm10402_vm0, %v2100_v31  ;;  %v2536_v35 = vld [vmem:[#allocation11 + $0xcf8] sm:$0xff]  ;;  %v2533_v47 = vld [vmem:[#allocation11 + $0xce0] sm:$0xff]  ;;  %v7789_v42 = vpack.c.bf16 %v2534_v19, %v2530_v59  ;;  %v2531_v4 = vld [vmem:[#allocation11 + $0xcd0] sm:$0xff] }
 0x383   : > { %v7917_v31 = vpack.c.bf16 %v2536_v35, %v2532_v48  ;;  %v2535_v30 = vld [vmem:[#allocation11 + $0xcf0] sm:$0xff]  ;;  %v2538_v5 = vld [vmem:[#allocation11 + $0xd08] sm:$0xff]  ;;  %v2544_v20 = vld [vmem:[#allocation11 + $0xd38] sm:$0xff]  ;;  %v7791_v14 = vpack.c.bf16 %v2533_v47, %v2529_v16 }
 0x384   : > { %v2542_v17 = vld [vmem:[#allocation11 + $0xd28] sm:$0xff]  ;;  %v7919_v7 = vpack.c.bf16 %v2535_v30, %v2531_v4  ;;  %v2537_v21 = vld [vmem:[#allocation11 + $0xd00] sm:$0xff]  ;;  %v2543_v8 = vld [vmem:[#allocation11 + $0xd30] sm:$0xff] }
 0x385   : > { %v2549_v27 = vld [vmem:[#allocation11 + $0xd60] sm:$0xff]  ;;  %v2551_v13 = vld [vmem:[#allocation11 + $0xd70] sm:$0xff]  ;;  %v2554_v15 = vld [vmem:[#allocation11 + $0xd88] sm:$0xff] }
 0x386   : > { %v2553_v49 = vld [vmem:[#allocation11 + $0xd80] sm:$0xff]  ;;  %v2562_v55 = vld [vmem:[#allocation11 + $0xdc8] sm:$0xff]  ;;  %v2564_v56 = vld [vmem:[#allocation11 + $0xdd8] sm:$0xff] }
 0x387   : > { %v2557_v50 = vld [vmem:[#allocation11 + $0xda0] sm:$0xff]  ;;  %v2566_v1 = vld [vmem:[#allocation11 + $0xde8] sm:$0xff]  ;;  %v2568_v57 = vld [vmem:[#allocation11 + $0xdf8] sm:$0xff] }
 0x388   : > { %v2109_v22 = vld [vmem:[#allocation3 + $0x28] sm:$0xff]  ;;  %v2108_v24 = vld [vmem:[#allocation3 + $0x20] sm:$0xff]  ;;  %v10446_v37 = vld [vmem:[#allocation3 + $0x38] sm:$0xff]  ;;  %v7803_v59 = vpack.c.bf16 %v2557_v50, %v2553_v49  ;;  %v7933_v19 = vpack.c.bf16 %v2568_v57, %v2564_v56 }
 0x389   : > { %v2650_v45 = vrot.slane %v2109_v22, 1  ;;  %v2647_v28 = vrot.slane %v2108_v24, 1  ;;  %v2373_v29 = vld [vmem:[#allocation3 + $0x48] sm:$0x1]  ;;  %v2372_v38 = vld [vmem:[#allocation3 + $0x40] sm:$0x1]  ;;  %v7921_v24 = vpack.c.bf16 %v2544_v20, %v2540_v61 }
 0x38a   : > { %v2660_v32 = vrot.slane %v2373_v29, 1  ;;  %v2658_v43 = vrot.slane %v2372_v38, 1  ;;  %v2656_v54 = vrot.slane %v10446_v37, 1  ;;  %v2541_v22 = vld [vmem:[#allocation11 + $0xd20] sm:$0xff]  ;;  %v2548_v29 = vld [vmem:[#allocation11 + $0xd58] sm:$0xff]  ;;  %v2563_v48 = vld [vmem:[#allocation11 + $0xdd0] sm:$0xff] }
 0x38b   : > { %v2651_v2 = vsel %vm2645_vm1, %v2649_v58, %v2650_v45  ;;  %v2648_v34 = vsel %vm2645_vm1, %v2646_v26, %v2647_v28  ;;  %v7793_v58 = vpack.c.bf16 %v2542_v17, %v2538_v5  ;;  %v2539_v26 = vld [vmem:[#allocation11 + $0xd10] sm:$0xff]  ;;  %v2552_v38 = vld [vmem:[#allocation11 + $0xd78] sm:$0xff]  ;;  %v2573_v4 = vld [vmem:[#allocation11 + $0xe20] sm:$0xff] }
 0x38c   : > { %2738 = vmatprep.mubr.f32.mxu0 %v2651_v2  ;;  %2892 = vmatprep.mubr.f32.mxu1 %v2651_v2  ;;  %v2661_v52 = vsel %vm2645_vm1, %v2650_v45, %v2660_v32  ;;  %v2659_v9 = vsel %vm2645_vm1, %v2647_v28, %v2658_v43  ;;  %v2657_v11 = vsel %vm2645_vm1, %v2655_v25, %v2656_v54  ;;  %v2546_v45 = vld [vmem:[#allocation11 + $0xd48] sm:$0xff]  ;;  %v2545_v32 = vld [vmem:[#allocation11 + $0xd40] sm:$0xff]  ;;  %v2560_v43 = vld [vmem:[#allocation11 + $0xdb8] sm:$0xff] }
 0x38d   : > { %2739 = vmatmul.mubr.f32.vlgmr.msra.gmra.mrb[16].mxu0 %v2648_v34  ;;  %2893 = vmatmul.mubr.f32.vlgmr.msra.gmra.mrb[16].mxu1 %v2648_v34  ;;  %v2550_v28 = vld [vmem:[#allocation11 + $0xd68] sm:$0xff]  ;;  %v7925_v2 = vpack.c.bf16 %v2552_v38, %v2548_v29  ;;  %v2547_v34 = vld [vmem:[#allocation11 + $0xd50] sm:$0xff]  ;;  %v7799_v44 = vpack.c.bf16 %v2549_v27, %v2545_v32  ;;  %v2561_v25 = vld [vmem:[#allocation11 + $0xdc0] sm:$0xff] }
 0x38e   : > { %7780 = vmatpush1.bf16.msra.mxu0 %v7779_v40  ;;  %7908 = vmatpush1.bf16.msra.mxu1 %v7907_v3  ;;  %v7795_v40 = vpack.c.bf16 %v2541_v22, %v2537_v21  ;;  %v7923_v3 = vpack.c.bf16 %v2543_v8, %v2539_v26  ;;  %v7797_v33 = vpack.c.bf16 %v2550_v28, %v2546_v45  ;;  %v2567_v35 = vld [vmem:[#allocation11 + $0xdf0] sm:$0xff]  ;;  %v2576_v16 = vld [vmem:[#allocation11 + $0xe38] sm:$0xff]  ;;  %v2578_v20 = vld [vmem:[#allocation11 + $0xe48] sm:$0xff] }
 0x38f   : > { %2744 = vmatprep.mubr.f32.mxu0 %v2661_v52  ;;  %2898 = vmatprep.mubr.f32.mxu1 %v2661_v52  ;;  %v7927_v46 = vpack.c.bf16 %v2551_v13, %v2547_v34  ;;  %v2571_v17 = vld [vmem:[#allocation11 + $0xe10] sm:$0xff]  ;;  %v2584_v21 = vld [vmem:[#allocation11 + $0xe78] sm:$0xff]  ;;  %v2581_v26 = vld [vmem:[#allocation11 + $0xe60] sm:$0xff] }
 0x390   : > { %7782 = vmatprep.subr.bf16.mxu0 %v7781_v6  ;;  %7910 = vmatprep.subr.bf16.mxu1 %v7909_v0  ;;  %v2558_v6 = vld [vmem:[#allocation11 + $0xda8] sm:$0xff]  ;;  %v2556_v0 = vld [vmem:[#allocation11 + $0xd98] sm:$0xff]  ;;  %v2575_v61 = vld [vmem:[#allocation11 + $0xe30] sm:$0xff] }
 0x391   : > { %2745 = vmatmul.mubr.f32.gmra.mrb[18].mxu0 %v2659_v9  ;;  %2899 = vmatmul.mubr.f32.gmra.mrb[18].mxu1 %v2659_v9  ;;  %v7801_v51 = vpack.c.bf16 %v2558_v6, %v2554_v15  ;;  %v7929_v52 = vpack.c.bf16 %v2560_v43, %v2556_v0  ;;  %v2579_v28 = vld [vmem:[#allocation11 + $0xe50] sm:$0xff]  ;;  %v2586_v38 = vld [vmem:[#allocation11 + $0xe88] sm:$0xff]  ;;  %v2592_v32 = vld [vmem:[#allocation11 + $0xeb8] sm:$0xff] }
 0x392   : > { %7784 = vmatpush1.bf16.msra.mxu0 %v7783_v53  ;;  %7912 = vmatpush1.bf16.msra.mxu1 %v7911_v39  ;;  %v2555_v53 = vld [vmem:[#allocation11 + $0xd90] sm:$0xff]  ;;  %v2589_v34 = vld [vmem:[#allocation11 + $0xea0] sm:$0xff]  ;;  %v2594_v43 = vld [vmem:[#allocation11 + $0xec8] sm:$0xff] }
 0x393   : > { %2815 = vmatprep.mubr.f32.mxu0 %v2657_v11  ;;  %2969 = vmatprep.mubr.f32.mxu1 %v2657_v11  ;;  %v2559_v39 = vld [vmem:[#allocation11 + $0xdb0] sm:$0xff]  ;;  %v2570_v11 = vld [vmem:[#allocation11 + $0xe08] sm:$0xff]  ;;  %v2600_v49 = vld [vmem:[#allocation11 + $0xef8] sm:$0xff] }
 0x394   : > { %7786 = vmatprep.subr.bf16.mxu0 %v7785_v23  ;;  %7914 = vmatprep.subr.bf16.mxu1 %v7913_v10  ;;  %v7931_v9 = vpack.c.bf16 %v2559_v39, %v2555_v53  ;;  %v2565_v23 = vld [vmem:[#allocation11 + $0xde0] sm:$0xff]  ;;  %v7805_v10 = vpack.c.bf16 %v2566_v1, %v2562_v55  ;;  %v2583_v29 = vld [vmem:[#allocation11 + $0xe70] sm:$0xff]  ;;  %v2602_v57 = vld [vmem:[#allocation11 + $0xf08] sm:$0xff] }
 0x395   : > { %v7807_v47 = vpack.c.bf16 %v2565_v23, %v2561_v25  ;;  %v2587_v6 = vld [vmem:[#allocation11 + $0xe90] sm:$0xff]  ;;  %v2597_v53 = vld [vmem:[#allocation11 + $0xee0] sm:$0xff]  ;;  %v2608_v25 = vld [vmem:[#allocation11 + $0xf38] sm:$0xff] }
 0x396   : > { %7788 = vmatpush1.bf16.msra.mxu0 %v7787_v18  ;;  %7916 = vmatpush1.bf16.msra.mxu1 %v7915_v12  ;;  %v2574_v18 = vld [vmem:[#allocation11 + $0xe28] sm:$0xff]  ;;  %v2572_v12 = vld [vmem:[#allocation11 + $0xe18] sm:$0xff]  ;;  %v2591_v0 = vld [vmem:[#allocation11 + $0xeb0] sm:$0xff] }
 0x397   : > { %7790 = vmatprep.subr.bf16.mxu0 %v7789_v42  ;;  %7918 = vmatprep.subr.bf16.mxu1 %v7917_v31  ;;  %v7935_v42 = vpack.c.bf16 %v2567_v35, %v2563_v48  ;;  %v2569_v31 = vld [vmem:[#allocation11 + $0xe00] sm:$0xff]  ;;  %v7809_v30 = vpack.c.bf16 %v2574_v18, %v2570_v11  ;;  %v7937_v5 = vpack.c.bf16 %v2576_v16, %v2572_v12  ;;  %v2595_v1 = vld [vmem:[#allocation11 + $0xed0] sm:$0xff]  ;;  %v2610_v16 = vld [vmem:[#allocation11 + $0xf48] sm:$0xff] }
 0x398   : > { %v7811_v22 = vpack.c.bf16 %v2573_v4, %v2569_v31  ;;  %v2599_v56 = vld [vmem:[#allocation11 + $0xef0] sm:$0xff]  ;;  %v2605_v48 = vld [vmem:[#allocation11 + $0xf20] sm:$0xff]  ;;  %v2616_v31 = vld [vmem:[#allocation11 + $0xf78] sm:$0xff] }
 0x399   : > { %v2603_v18 = vld [vmem:[#allocation11 + $0xf10] sm:$0xff] }
 0x39a   : > { %7792 = vmatpush1.bf16.msra.mxu0 %v7791_v14  ;;  %7920 = vmatpush1.bf16.msra.mxu1 %v7919_v7  ;;  %v2582_v14 = vld [vmem:[#allocation11 + $0xe68] sm:$0xff]  ;;  %v2580_v7 = vld [vmem:[#allocation11 + $0xe58] sm:$0xff]  ;;  %v2607_v12 = vld [vmem:[#allocation11 + $0xf30] sm:$0xff] }
 0x39b   : > { %7794 = vmatprep.subr.bf16.mxu0 %v7793_v58  ;;  %7922 = vmatprep.subr.bf16.mxu1 %v7921_v24  ;;  %v7939_v58 = vpack.c.bf16 %v2575_v61, %v2571_v17  ;;  %v2577_v24 = vld [vmem:[#allocation11 + $0xe40] sm:$0xff]  ;;  %v7813_v8 = vpack.c.bf16 %v2582_v14, %v2578_v20  ;;  %v7941_v45 = vpack.c.bf16 %v2584_v21, %v2580_v7  ;;  %v2611_v14 = vld [vmem:[#allocation11 + $0xf50] sm:$0xff]  ;;  %v2618_v21 = vld [vmem:[#allocation11 + $0xf88] sm:$0xff] }
 0x39c   : > { %v7815_v27 = vpack.c.bf16 %v2581_v26, %v2577_v24  ;;  %v2613_v17 = vld [vmem:[#allocation11 + $0xf60] sm:$0xff]  ;;  %v2615_v7 = vld [vmem:[#allocation11 + $0xf70] sm:$0xff]  ;;  %v2624_v24 = vld [vmem:[#allocation11 + $0xfb8] sm:$0xff] }
 0x39e   : > { %7796 = vmatpush1.bf16.msra.mxu0 %v7795_v40  ;;  %7924 = vmatpush1.bf16.msra.mxu1 %v7923_v3  ;;  %v2590_v40 = vld [vmem:[#allocation11 + $0xea8] sm:$0xff]  ;;  %v2588_v3 = vld [vmem:[#allocation11 + $0xe98] sm:$0xff] }
 0x39f   : > { %7798 = vmatprep.subr.bf16.mxu0 %v7797_v33  ;;  %7926 = vmatprep.subr.bf16.mxu1 %v7925_v2  ;;  %v7943_v33 = vpack.c.bf16 %v2583_v29, %v2579_v28  ;;  %v2585_v2 = vld [vmem:[#allocation11 + $0xe80] sm:$0xff]  ;;  %v7817_v13 = vpack.c.bf16 %v2590_v40, %v2586_v38  ;;  %v7945_v15 = vpack.c.bf16 %v2592_v32, %v2588_v3  ;;  %v2619_v40 = vld [vmem:[#allocation11 + $0xf90] sm:$0xff]  ;;  %v2626_v32 = vld [vmem:[#allocation11 + $0xfc8] sm:$0xff] }
 0x3a0   : > { %v7819_v50 = vpack.c.bf16 %v2589_v34, %v2585_v2  ;;  %v2621_v28 = vld [vmem:[#allocation11 + $0xfa0] sm:$0xff]  ;;  %v2623_v3 = vld [vmem:[#allocation11 + $0xfb0] sm:$0xff]  ;;  %v2632_v2 = vld [vmem:[#allocation11 + $0xff8] sm:$0xff] }
 0x3a2   : > { %7800 = vmatpush1.bf16.msra.mxu0 %v7799_v44  ;;  %7928 = vmatpush1.bf16.msra.mxu1 %v7927_v46  ;;  %v2598_v44 = vld [vmem:[#allocation11 + $0xee8] sm:$0xff]  ;;  %v2596_v46 = vld [vmem:[#allocation11 + $0xed8] sm:$0xff] }
 0x3a3   : > { %7802 = vmatprep.subr.bf16.mxu0 %v7801_v51  ;;  %7930 = vmatprep.subr.bf16.mxu1 %v7929_v52  ;;  %v7947_v51 = vpack.c.bf16 %v2591_v0, %v2587_v6  ;;  %v2593_v52 = vld [vmem:[#allocation11 + $0xec0] sm:$0xff]  ;;  %v7821_v39 = vpack.c.bf16 %v2598_v44, %v2594_v43  ;;  %v7949_v55 = vpack.c.bf16 %v2600_v49, %v2596_v46  ;;  %v2627_v44 = vld [vmem:[#allocation11 + $0xfd0] sm:$0xff]  ;;  %v2113_v49 = vld [vmem:[#allocation11 + $0x8] sm:$0xff] }
 0x3a4   : > { %v7823_v23 = vpack.c.bf16 %v2597_v53, %v2593_v52  ;;  %v2629_v6 = vld [vmem:[#allocation11 + $0xfe0] sm:$0xff]  ;;  %v2631_v46 = vld [vmem:[#allocation11 + $0xff0] sm:$0xff]  ;;  %v2119_v52 = vld [vmem:[#allocation11 + $0x38] sm:$0xff] }
 0x3a5   : > { %v2110_v53 = vld [vmem:[#allocation3 + $0x30] sm:$0xff] }
 0x3a6   : > { %7804 = vmatpush1.bf16.msra.mxu0 %v7803_v59  ;;  %7932 = vmatpush1.bf16.msra.mxu1 %v7931_v9  ;;  %v2606_v59 = vld [vmem:[#allocation11 + $0xf28] sm:$0xff]  ;;  %v2604_v9 = vld [vmem:[#allocation11 + $0xf18] sm:$0xff] }
 0x3a7   : > { %7806 = vmatprep.subr.bf16.mxu0 %v7805_v10  ;;  %7934 = vmatprep.subr.bf16.mxu1 %v7933_v19  ;;  %v7951_v10 = vpack.c.bf16 %v2599_v56, %v2595_v1  ;;  %v2601_v19 = vld [vmem:[#allocation11 + $0xf00] sm:$0xff]  ;;  %v7825_v35 = vpack.c.bf16 %v2606_v59, %v2602_v57  ;;  %v7953_v11 = vpack.c.bf16 %v2608_v25, %v2604_v9  ;;  %v2375_v1 = vld [vmem:[#allocation3 + $0x58] sm:$0x1]  ;;  %v2370_v57 = vld [vmem:[#allocation3 + $0x10] sm:$0xfe] }
 0x3a8   : > { %v7827_v4 = vpack.c.bf16 %v2605_v48, %v2601_v19  ;;  %v2112_v56 = vld [vmem:[#allocation11] sm:$0xff]  ;;  %v2118_v19 = vld [vmem:[#allocation11 + $0x30] sm:$0xff]  ;;  %v2121_v48 = vld [vmem:[#allocation11 + $0x48] sm:$0xff] }
 0x3a9   : > { %v2116_v25 = vld [vmem:[#allocation11 + $0x20] sm:$0xff] }
 0x3aa   : > { %7808 = vmatpush1.bf16.msra.mxu0 %v7807_v47  ;;  %7936 = vmatpush1.bf16.msra.mxu1 %v7935_v42  ;;  %v2614_v47 = vld [vmem:[#allocation11 + $0xf68] sm:$0xff]  ;;  %v2612_v42 = vld [vmem:[#allocation11 + $0xf58] sm:$0xff] }
 0x3ab   : > { %7810 = vmatprep.subr.bf16.mxu0 %v7809_v30  ;;  %7938 = vmatprep.subr.bf16.mxu1 %v7937_v5  ;;  %v7955_v30 = vpack.c.bf16 %v2607_v12, %v2603_v18  ;;  %v2609_v5 = vld [vmem:[#allocation11 + $0xf40] sm:$0xff]  ;;  %v7829_v61 = vpack.c.bf16 %v2614_v47, %v2610_v16  ;;  %v7957_v20 = vpack.c.bf16 %v2616_v31, %v2612_v42  ;;  %v2374_v18 = vld [vmem:[#allocation3 + $0x50] sm:$0x1]  ;;  %v2123_v12 = vld [vmem:[#allocation11 + $0x58] sm:$0xff]  ;;  %v2652_v47 = vrot.slane %v2370_v57, 1 }
 0x3ac   : > { %v7831_v26 = vpack.c.bf16 %v2613_v17, %v2609_v5  ;;  %v2127_v16 = vld [vmem:[#allocation11 + $0x78] sm:$0xff]  ;;  %v7971_v42 = vpack.c.bf16 %v2116_v25, %v2112_v56  ;;  %v2662_v17 = vrot.slane %v2374_v18, 1  ;;  %v2148_v56 = vld [vmem:[#allocation11 + $0x120] sm:$0xff]  ;;  %v2150_v25 = vld [vmem:[#allocation11 + $0x130] sm:$0xff] }
 0x3ad   : > { %v2152_v18 = vld [vmem:[#allocation11 + $0x140] sm:$0xff] }
 0x3ae   : > { %7812 = vmatpush1.bf16.msra.mxu0 %v7811_v22  ;;  %7940 = vmatpush1.bf16.msra.mxu1 %v7939_v58  ;;  %v2622_v22 = vld [vmem:[#allocation11 + $0xfa8] sm:$0xff]  ;;  %v2620_v58 = vld [vmem:[#allocation11 + $0xf98] sm:$0xff] }
 0x3af   : > { %7814 = vmatprep.subr.bf16.mxu0 %v7813_v8  ;;  %7942 = vmatprep.subr.bf16.mxu1 %v7941_v45  ;;  %v7959_v8 = vpack.c.bf16 %v2615_v7, %v2611_v14  ;;  %v2617_v45 = vld [vmem:[#allocation11 + $0xf80] sm:$0xff]  ;;  %v7833_v29 = vpack.c.bf16 %v2622_v22, %v2618_v21  ;;  %v7961_v38 = vpack.c.bf16 %v2624_v24, %v2620_v58  ;;  %v2122_v14 = vld [vmem:[#allocation11 + $0x50] sm:$0xff]  ;;  %v2129_v21 = vld [vmem:[#allocation11 + $0x88] sm:$0xff] }
 0x3b0   : > { %v7835_v34 = vpack.c.bf16 %v2621_v28, %v2617_v45  ;;  %v2126_v7 = vld [vmem:[#allocation11 + $0x70] sm:$0xff]  ;;  %v2133_v58 = vld [vmem:[#allocation11 + $0xa8] sm:$0xff]  ;;  %v2131_v24 = vld [vmem:[#allocation11 + $0x98] sm:$0xff] }
 0x3b1   : > { %v8103_v45 = vpack.c.bf16 %v2126_v7, %v2122_v14  ;;  %v2128_v28 = vld [vmem:[#allocation11 + $0x80] sm:$0xff] }
 0x3b2   : > { %7816 = vmatpush1.bf16.msra.mxu0 %v7815_v27  ;;  %7944 = vmatpush1.bf16.msra.mxu1 %v7943_v33  ;;  %v2630_v27 = vld [vmem:[#allocation11 + $0xfe8] sm:$0xff]  ;;  %v2628_v33 = vld [vmem:[#allocation11 + $0xfd8] sm:$0xff]  ;;  %v2160_v14 = vld [vmem:[#allocation11 + $0x180] sm:$0xff] }
 0x3b3   : > { %7818 = vmatprep.subr.bf16.mxu0 %v7817_v13  ;;  %7946 = vmatprep.subr.bf16.mxu1 %v7945_v15  ;;  %v7963_v13 = vpack.c.bf16 %v2623_v3, %v2619_v40  ;;  %v2625_v15 = vld [vmem:[#allocation11 + $0xfc0] sm:$0xff]  ;;  %v7837_v0 = vpack.c.bf16 %v2630_v27, %v2626_v32  ;;  %v7965_v43 = vpack.c.bf16 %v2632_v2, %v2628_v33  ;;  %v2134_v32 = vld [vmem:[#allocation11 + $0xb0] sm:$0xff]  ;;  %v2141_v27 = vld [vmem:[#allocation11 + $0xe8] sm:$0xff] }
 0x3b4   : > { %v7977_v3 = vpack.c.bf16 %v2133_v58, %v2129_v21  ;;  %v2105_v33 = vld [vmem:[#allocation3 + $0x8] sm:$0xff]  ;;  %v2139_v2 = vld [vmem:[#allocation11 + $0xd8] sm:$0xff]  ;;  %v2162_v58 = vld [vmem:[#allocation11 + $0x190] sm:$0xff] }
 0x3b5   : > { %v2164_v7 = vld [vmem:[#allocation11 + $0x1a0] sm:$0xff] }
 0x3b6   : > { %7820 = vmatpush1.bf16.msra.mxu0 %v7819_v50  ;;  %7948 = vmatpush1.bf16.msra.mxu1 %v7947_v51  ;;  %v2117_v50 = vld [vmem:[#allocation11 + $0x28] sm:$0xff]  ;;  %v2115_v51 = vld [vmem:[#allocation11 + $0x18] sm:$0xff] }
 0x3b7   : > { %7822 = vmatprep.subr.bf16.mxu0 %v7821_v39  ;;  %7950 = vmatprep.subr.bf16.mxu1 %v7949_v55  ;;  %v7839_v39 = vpack.c.bf16 %v2629_v6, %v2625_v15  ;;  %v7967_v55 = vpack.c.bf16 %v2631_v46, %v2627_v44  ;;  %v7969_v59 = vpack.c.bf16 %v2117_v50, %v2113_v49  ;;  %v2136_v6 = vld [vmem:[#allocation11 + $0xc0] sm:$0xff]  ;;  %v2138_v46 = vld [vmem:[#allocation11 + $0xd0] sm:$0xff]  ;;  %v2145_v50 = vld [vmem:[#allocation11 + $0x108] sm:$0xff] }
 0x3b8   : > { %v8097_v9 = vpack.c.bf16 %v2119_v52, %v2115_v51  ;;  %v2142_v49 = vld [vmem:[#allocation11 + $0xf0] sm:$0xff]  ;;  %v2149_v51 = vld [vmem:[#allocation11 + $0x128] sm:$0xff]  ;;  %v2147_v52 = vld [vmem:[#allocation11 + $0x118] sm:$0xff] }
 0x3b9   : > { %v7985_v57 = vpack.c.bf16 %v2149_v51, %v2145_v50  ;;  %v2182_v50 = vld [vmem:[#allocation11 + $0x230] sm:$0xff]  ;;  %v2185_v51 = vld [vmem:[#allocation11 + $0x248] sm:$0xff] }
 0x3ba   : > { %7824 = vmatpush1.bf16.msra.mxu0 %v7823_v23  ;;  %7952 = vmatpush1.bf16.msra.mxu1 %v7951_v10  ;;  %v2114_v23 = vld [vmem:[#allocation11 + $0x10] sm:$0xff]  ;;  %v2653_v10 = vrot.slane %v2110_v53, 1  ;;  %v2151_v53 = vld [vmem:[#allocation11 + $0x138] sm:$0xff] }
 0x3bb   : > { %7826 = vmatprep.subr.bf16.mxu0 %v7825_v35  ;;  %7954 = vmatprep.subr.bf16.mxu1 %v7953_v11  ;;  %v2125_v35 = vld [vmem:[#allocation11 + $0x68] sm:$0xff]  ;;  %v2664_v11 = vrot.slane %v2375_v1, 1  ;;  %v8099_v31 = vpack.c.bf16 %v2118_v19, %v2114_v23  ;;  %v2144_v1 = vld [vmem:[#allocation11 + $0x100] sm:$0xff]  ;;  %v2155_v19 = vld [vmem:[#allocation11 + $0x158] sm:$0xff] }
 0x3bc   : > { %v2654_v5 = vsel %vm2645_vm1, %v2652_v47, %v2653_v10  ;;  %v2663_v40 = vsel %vm2645_vm1, %v2653_v10, %v2662_v17  ;;  %v2153_v23 = vld [vmem:[#allocation11 + $0x148] sm:$0xff]  ;;  %v2167_v17 = vld [vmem:[#allocation11 + $0x1b8] sm:$0xff] }
 0x3bd   : > { %v2665_v22 = vsel %vm2645_vm1, %v2656_v54, %v2664_v11  ;;  %v2137_v54 = vld [vmem:[#allocation11 + $0xc8] sm:$0xff] }
 0x3be   : > { %7828 = vmatpush1.bf16.msra.mxu0 %v7827_v4  ;;  %7956 = vmatpush1.bf16.msra.mxu1 %v7955_v30  ;;  %v2120_v4 = vld [vmem:[#allocation11 + $0x40] sm:$0xff]  ;;  %v2157_v10 = vld [vmem:[#allocation11 + $0x168] sm:$0xff] }
 0x3bf   : > { %7830 = vmatprep.subr.bf16.mxu0 %v7829_v61  ;;  %7958 = vmatprep.subr.bf16.mxu1 %v7957_v20  ;;  %v2124_v30 = vld [vmem:[#allocation11 + $0x60] sm:$0xff]  ;;  %v7973_v61 = vpack.c.bf16 %v2125_v35, %v2121_v48  ;;  %v8101_v20 = vpack.c.bf16 %v2127_v16, %v2123_v12  ;;  %v2159_v48 = vld [vmem:[#allocation11 + $0x178] sm:$0xff]  ;;  %v7987_v35 = vpack.c.bf16 %v2148_v56, %v2144_v1 }
 0x3c0   : > { %v2156_v12 = vld [vmem:[#allocation11 + $0x160] sm:$0xff]  ;;  %v7989_v16 = vpack.c.bf16 %v2157_v10, %v2153_v23  ;;  %v8117_v47 = vpack.c.bf16 %v2159_v48, %v2155_v19  ;;  %v2190_v23 = vld [vmem:[#allocation11 + $0x270] sm:$0xff]  ;;  %v2193_v10 = vld [vmem:[#allocation11 + $0x288] sm:$0xff] }
 0x3c1   : > { %v2184_v56 = vld [vmem:[#allocation11 + $0x240] sm:$0xff]  ;;  %v2197_v19 = vld [vmem:[#allocation11 + $0x2a8] sm:$0xff]  ;;  %v2195_v48 = vld [vmem:[#allocation11 + $0x298] sm:$0xff] }
 0x3c2   : > { %7832 = vmatpush1.bf16.msra.mxu0 %v7831_v26  ;;  %7960 = vmatpush1.bf16.msra.mxu1 %v7959_v8  ;;  %v2135_v26 = vld [vmem:[#allocation11 + $0xb8] sm:$0xff]  ;;  %v7975_v8 = vpack.c.bf16 %v2124_v30, %v2120_v4  ;;  %v2161_v4 = vld [vmem:[#allocation11 + $0x188] sm:$0xff] }
 0x3c3   : > { %7834 = vmatprep.subr.bf16.mxu0 %v7833_v29  ;;  %7962 = vmatprep.subr.bf16.mxu1 %v7961_v38  ;;  %v2132_v29 = vld [vmem:[#allocation11 + $0xa0] sm:$0xff]  ;;  %v2130_v38 = vld [vmem:[#allocation11 + $0x90] sm:$0xff]  ;;  %v8105_v37 = vpack.c.bf16 %v2135_v26, %v2131_v24  ;;  %v2165_v30 = vld [vmem:[#allocation11 + $0x1a8] sm:$0xff] }
 0x3c4   : > { %v8107_v15 = vpack.c.bf16 %v2134_v32, %v2130_v38  ;;  %v7993_v21 = vpack.c.bf16 %v2165_v30, %v2161_v4  ;;  %v2166_v24 = vld [vmem:[#allocation11 + $0x1b0] sm:$0xff]  ;;  %v2169_v26 = vld [vmem:[#allocation11 + $0x1c8] sm:$0xff] }
 0x3c5   : > { %v8123_v38 = vpack.c.bf16 %v2166_v24, %v2162_v58  ;;  %v2198_v4 = vld [vmem:[#allocation11 + $0x2b0] sm:$0xff]  ;;  %v2201_v30 = vld [vmem:[#allocation11 + $0x2c8] sm:$0xff] }
 0x3c6   : > { %7836 = vmatpush1.bf16.msra.mxu0 %v7835_v34  ;;  %7964 = vmatpush1.bf16.msra.mxu1 %v7963_v13  ;;  %v2143_v34 = vld [vmem:[#allocation11 + $0xf8] sm:$0xff]  ;;  %v7979_v13 = vpack.c.bf16 %v2132_v29, %v2128_v28  ;;  %v7995_v29 = vpack.c.bf16 %v2164_v7, %v2160_v14  ;;  %v2200_v7 = vld [vmem:[#allocation11 + $0x2c0] sm:$0xff]  ;;  %v2202_v24 = vld [vmem:[#allocation11 + $0x2d0] sm:$0xff] }
 0x3c7   : > { %7838 = vmatprep.subr.bf16.mxu0 %v7837_v0  ;;  %7966 = vmatprep.subr.bf16.mxu1 %v7965_v43  ;;  %v2140_v0 = vld [vmem:[#allocation11 + $0xe0] sm:$0xff]  ;;  %v7981_v43 = vpack.c.bf16 %v2141_v27, %v2137_v54  ;;  %v8109_v44 = vpack.c.bf16 %v2143_v34, %v2139_v2  ;;  %v2175_v28 = vld [vmem:[#allocation11 + $0x1f8] sm:$0xff]  ;;  %v2170_v54 = vld [vmem:[#allocation11 + $0x1d0] sm:$0xff] }
 0x3c8   : > { %v2174_v27 = vld [vmem:[#allocation11 + $0x1f0] sm:$0xff]  ;;  %v2181_v2 = vld [vmem:[#allocation11 + $0x228] sm:$0xff]  ;;  %v2179_v34 = vld [vmem:[#allocation11 + $0x218] sm:$0xff] }
 0x3ca   : > { %7840 = vmatpush1.bf16.msra.mxu0 %v7839_v39  ;;  %7968 = vmatpush1.bf16.msra.mxu1 %v7967_v55  ;;  %v7983_v39 = vpack.c.bf16 %v2140_v0, %v2136_v6  ;;  %v8111_v55 = vpack.c.bf16 %v2142_v49, %v2138_v46  ;;  %v8127_v6 = vpack.c.bf16 %v2174_v27, %v2170_v54  ;;  %v2176_v0 = vld [vmem:[#allocation11 + $0x200] sm:$0xff]  ;;  %v2178_v49 = vld [vmem:[#allocation11 + $0x210] sm:$0xff] }
 0x3cb   : > { %7970 = vmatprep.subr.bf16.mxu0 %v7969_v59  ;;  %8098 = vmatprep.subr.bf16.mxu1 %v8097_v9  ;;  %v8113_v59 = vpack.c.bf16 %v2151_v53, %v2147_v52  ;;  %v2146_v9 = vld [vmem:[#allocation11 + $0x110] sm:$0xff]  ;;  %v2189_v52 = vld [vmem:[#allocation11 + $0x268] sm:$0xff]  ;;  %v2187_v53 = vld [vmem:[#allocation11 + $0x258] sm:$0xff]  ;;  %v8131_v1 = vpack.c.bf16 %v2182_v50, %v2178_v49 }
 0x3cc   : > { %v8115_v11 = vpack.c.bf16 %v2150_v25, %v2146_v9  ;;  %v2186_v25 = vld [vmem:[#allocation11 + $0x250] sm:$0xff] }
 0x3cd   : > { %2816 = vmatmul.mubr.f32.vlgmr.msra.gmra.mrb[16].mxu0 %v2654_v5  ;;  %2970 = vmatmul.mubr.f32.vlgmr.msra.gmra.mrb[16].mxu1 %v2654_v5  ;;  %v2163_v5 = vld [vmem:[#allocation11 + $0x198] sm:$0xff]  ;;  %v2210_v27 = vld [vmem:[#allocation11 + $0x310] sm:$0xff] }
 0x3ce   : > { %2821 = vmatprep.mubr.f32.mxu0 %v2665_v22  ;;  %2975 = vmatprep.mubr.f32.mxu1 %v2665_v22  ;;  %v8121_v22 = vpack.c.bf16 %v2167_v17, %v2163_v5  ;;  %v2205_v5 = vld [vmem:[#allocation11 + $0x2e8] sm:$0xff]  ;;  %v2203_v17 = vld [vmem:[#allocation11 + $0x2d8] sm:$0xff]  ;;  %v2218_v50 = vld [vmem:[#allocation11 + $0x350] sm:$0xff] }
 0x3cf   : > { %7972 = vmatpush1.bf16.msra.mxu0 %v7971_v42  ;;  %8100 = vmatpush1.bf16.msra.mxu1 %v8099_v31  ;;  %v2154_v42 = vld [vmem:[#allocation11 + $0x150] sm:$0xff] }
 0x3d0   : > { %7974 = vmatprep.subr.bf16.mxu0 %v7973_v61  ;;  %8102 = vmatprep.subr.bf16.mxu1 %v8101_v20  ;;  %v2158_v31 = vld [vmem:[#allocation11 + $0x170] sm:$0xff]  ;;  %v7991_v61 = vpack.c.bf16 %v2156_v12, %v2152_v18  ;;  %v8135_v18 = vpack.c.bf16 %v2190_v23, %v2186_v25  ;;  %v2192_v12 = vld [vmem:[#allocation11 + $0x280] sm:$0xff] }
 0x3d1   : > { %2822 = vmatmul.mubr.f32.gmra.mrb[18].mxu0 %v2663_v40  ;;  %2976 = vmatmul.mubr.f32.gmra.mrb[18].mxu1 %v2663_v40  ;;  %v8119_v20 = vpack.c.bf16 %v2158_v31, %v2154_v42  ;;  %v2168_v40 = vld [vmem:[#allocation11 + $0x1c0] sm:$0xff]  ;;  %v2194_v31 = vld [vmem:[#allocation11 + $0x290] sm:$0xff] }
 0x3d2   : > { %3046 = vmatprep.mubr.f32.mxu0 %v2105_v33  ;;  %3200 = vmatprep.mubr.f32.mxu1 %v2105_v33  ;;  %v2177_v33 = vld [vmem:[#allocation11 + $0x208] sm:$0xff]  ;;  %v8139_v14 = vpack.c.bf16 %v2198_v4, %v2194_v31  ;;  %v2226_v23 = vld [vmem:[#allocation11 + $0x390] sm:$0xff] }
 0x3d3   : > { %7976 = vmatpush1.bf16.msra.mxu0 %v7975_v8  ;;  %8104 = vmatpush1.bf16.msra.mxu1 %v8103_v45  ;;  %v2173_v8 = vld [vmem:[#allocation11 + $0x1e8] sm:$0xff]  ;;  %v2171_v45 = vld [vmem:[#allocation11 + $0x1d8] sm:$0xff]  ;;  %v2234_v4 = vld [vmem:[#allocation11 + $0x3d0] sm:$0xff] }
 0x3d4   : > { %7978 = vmatprep.subr.bf16.mxu0 %v7977_v3  ;;  %8106 = vmatprep.subr.bf16.mxu1 %v8105_v37  ;;  %v2172_v3 = vld [vmem:[#allocation11 + $0x1e0] sm:$0xff]  ;;  %v7997_v37 = vpack.c.bf16 %v2173_v8, %v2169_v26  ;;  %v8125_v32 = vpack.c.bf16 %v2175_v28, %v2171_v45  ;;  %v2206_v26 = vld [vmem:[#allocation11 + $0x2f0] sm:$0xff]  ;;  %v2209_v8 = vld [vmem:[#allocation11 + $0x308] sm:$0xff] }
 0x3d5   : > { %v2213_v45 = vld [vmem:[#allocation11 + $0x328] sm:$0xff]  ;;  %v2211_v28 = vld [vmem:[#allocation11 + $0x318] sm:$0xff] }
 0x3d7   : > { %7980 = vmatpush1.bf16.msra.mxu0 %v7979_v13  ;;  %8108 = vmatpush1.bf16.msra.mxu1 %v8107_v15  ;;  %v2183_v13 = vld [vmem:[#allocation11 + $0x238] sm:$0xff]  ;;  %v7999_v15 = vpack.c.bf16 %v2172_v3, %v2168_v40  ;;  %v8143_v40 = vpack.c.bf16 %v2206_v26, %v2202_v24  ;;  %v2208_v3 = vld [vmem:[#allocation11 + $0x300] sm:$0xff]  ;;  %v2242_v26 = vld [vmem:[#allocation11 + $0x410] sm:$0xff] }
 0x3d8   : > { %7982 = vmatprep.subr.bf16.mxu0 %v7981_v43  ;;  %8110 = vmatprep.subr.bf16.mxu1 %v8109_v44  ;;  %v2180_v43 = vld [vmem:[#allocation11 + $0x220] sm:$0xff]  ;;  %v8001_v44 = vpack.c.bf16 %v2181_v2, %v2177_v33  ;;  %v8129_v46 = vpack.c.bf16 %v2183_v13, %v2179_v34  ;;  %v2214_v33 = vld [vmem:[#allocation11 + $0x330] sm:$0xff]  ;;  %v2217_v2 = vld [vmem:[#allocation11 + $0x348] sm:$0xff] }
 0x3d9   : > { %v2221_v34 = vld [vmem:[#allocation11 + $0x368] sm:$0xff]  ;;  %v2219_v13 = vld [vmem:[#allocation11 + $0x358] sm:$0xff]  ;;  %v2244_v24 = vld [vmem:[#allocation11 + $0x420] sm:$0xff] }
 0x3db   : > { %7984 = vmatpush1.bf16.msra.mxu0 %v7983_v39  ;;  %8112 = vmatpush1.bf16.msra.mxu1 %v8111_v55  ;;  %v2191_v39 = vld [vmem:[#allocation11 + $0x278] sm:$0xff]  ;;  %v8003_v55 = vpack.c.bf16 %v2180_v43, %v2176_v0  ;;  %v8147_v0 = vpack.c.bf16 %v2214_v33, %v2210_v27  ;;  %v2216_v43 = vld [vmem:[#allocation11 + $0x340] sm:$0xff] }
 0x3dc   : > { %7986 = vmatprep.subr.bf16.mxu0 %v7985_v57  ;;  %8114 = vmatprep.subr.bf16.mxu1 %v8113_v59  ;;  %v2188_v57 = vld [vmem:[#allocation11 + $0x260] sm:$0xff]  ;;  %v8005_v59 = vpack.c.bf16 %v2189_v52, %v2185_v51  ;;  %v8133_v9 = vpack.c.bf16 %v2191_v39, %v2187_v53  ;;  %v2222_v51 = vld [vmem:[#allocation11 + $0x370] sm:$0xff]  ;;  %v2225_v52 = vld [vmem:[#allocation11 + $0x388] sm:$0xff] }
 0x3dd   : > { %v2229_v53 = vld [vmem:[#allocation11 + $0x3a8] sm:$0xff]  ;;  %v2227_v39 = vld [vmem:[#allocation11 + $0x398] sm:$0xff] }
 0x3df   : > { %7988 = vmatpush1.bf16.msra.mxu0 %v7987_v35  ;;  %8116 = vmatpush1.bf16.msra.mxu1 %v8115_v11  ;;  %v2199_v35 = vld [vmem:[#allocation11 + $0x2b8] sm:$0xff]  ;;  %v8007_v11 = vpack.c.bf16 %v2188_v57, %v2184_v56  ;;  %v8151_v56 = vpack.c.bf16 %v2222_v51, %v2218_v50  ;;  %v2224_v57 = vld [vmem:[#allocation11 + $0x380] sm:$0xff]  ;;  %v2258_v51 = vld [vmem:[#allocation11 + $0x490] sm:$0xff] }
 0x3e0   : > { %7990 = vmatprep.subr.bf16.mxu0 %v7989_v16  ;;  %8118 = vmatprep.subr.bf16.mxu1 %v8117_v47  ;;  %v2196_v16 = vld [vmem:[#allocation11 + $0x2a0] sm:$0xff]  ;;  %v8009_v47 = vpack.c.bf16 %v2197_v19, %v2193_v10  ;;  %v8137_v42 = vpack.c.bf16 %v2199_v35, %v2195_v48  ;;  %v2230_v10 = vld [vmem:[#allocation11 + $0x3b0] sm:$0xff]  ;;  %v2233_v19 = vld [vmem:[#allocation11 + $0x3c8] sm:$0xff] }
 0x3e1   : > { %v2237_v48 = vld [vmem:[#allocation11 + $0x3e8] sm:$0xff]  ;;  %v2235_v35 = vld [vmem:[#allocation11 + $0x3d8] sm:$0xff]  ;;  %v2260_v50 = vld [vmem:[#allocation11 + $0x4a0] sm:$0xff] }
 0x3e3   : > { %7992 = vmatpush1.bf16.msra.mxu0 %v7991_v61  ;;  %8120 = vmatpush1.bf16.msra.mxu1 %v8119_v20  ;;  %v2207_v61 = vld [vmem:[#allocation11 + $0x2f8] sm:$0xff]  ;;  %v8011_v20 = vpack.c.bf16 %v2196_v16, %v2192_v12  ;;  %v8155_v12 = vpack.c.bf16 %v2230_v10, %v2226_v23  ;;  %v2232_v16 = vld [vmem:[#allocation11 + $0x3c0] sm:$0xff] }
 0x3e4   : > { %7994 = vmatprep.subr.bf16.mxu0 %v7993_v21  ;;  %8122 = vmatprep.subr.bf16.mxu1 %v8121_v22  ;;  %v2204_v21 = vld [vmem:[#allocation11 + $0x2e0] sm:$0xff]  ;;  %v8013_v22 = vpack.c.bf16 %v2205_v5, %v2201_v30  ;;  %v8141_v58 = vpack.c.bf16 %v2207_v61, %v2203_v17  ;;  %v2238_v30 = vld [vmem:[#allocation11 + $0x3f0] sm:$0xff]  ;;  %v2241_v5 = vld [vmem:[#allocation11 + $0x408] sm:$0xff] }
 0x3e5   : > { %v2245_v17 = vld [vmem:[#allocation11 + $0x428] sm:$0xff]  ;;  %v2243_v61 = vld [vmem:[#allocation11 + $0x418] sm:$0xff] }
 0x3e7   : > { %7996 = vmatpush1.bf16.msra.mxu0 %v7995_v29  ;;  %8124 = vmatpush1.bf16.msra.mxu1 %v8123_v38  ;;  %v2215_v29 = vld [vmem:[#allocation11 + $0x338] sm:$0xff]  ;;  %v8015_v38 = vpack.c.bf16 %v2204_v21, %v2200_v7  ;;  %v8159_v7 = vpack.c.bf16 %v2238_v30, %v2234_v4  ;;  %v8033_v21 = vpack.c.bf16 %v2245_v17, %v2241_v5  ;;  %v2272_v5 = vld [vmem:[#allocation11 + $0x500] sm:$0xff] }
 0x3e8   : > { %7998 = vmatprep.subr.bf16.mxu0 %v7997_v37  ;;  %8126 = vmatprep.subr.bf16.mxu1 %v8125_v32  ;;  %v2212_v37 = vld [vmem:[#allocation11 + $0x320] sm:$0xff]  ;;  %v8017_v32 = vpack.c.bf16 %v2213_v45, %v2209_v8  ;;  %v8145_v54 = vpack.c.bf16 %v2215_v29, %v2211_v28  ;;  %v2246_v8 = vld [vmem:[#allocation11 + $0x430] sm:$0xff]  ;;  %v2249_v45 = vld [vmem:[#allocation11 + $0x448] sm:$0xff] }
 0x3e9   : > { %v2253_v28 = vld [vmem:[#allocation11 + $0x468] sm:$0xff]  ;;  %v2251_v29 = vld [vmem:[#allocation11 + $0x458] sm:$0xff]  ;;  %v2276_v17 = vld [vmem:[#allocation11 + $0x520] sm:$0xff] }
 0x3ea   : > { %v8037_v27 = vpack.c.bf16 %v2253_v28, %v2249_v45  ;;  %v2280_v45 = vld [vmem:[#allocation11 + $0x540] sm:$0xff] }
 0x3eb   : > { %8000 = vmatpush1.bf16.msra.mxu0 %v7999_v15  ;;  %8128 = vmatpush1.bf16.msra.mxu1 %v8127_v6  ;;  %v2223_v15 = vld [vmem:[#allocation11 + $0x378] sm:$0xff]  ;;  %v8019_v6 = vpack.c.bf16 %v2212_v37, %v2208_v3  ;;  %v8163_v37 = vpack.c.bf16 %v2246_v8, %v2242_v26  ;;  %v2284_v28 = vld [vmem:[#allocation11 + $0x560] sm:$0xff] }
 0x3ec   : > { %8002 = vmatprep.subr.bf16.mxu0 %v8001_v44  ;;  %8130 = vmatprep.subr.bf16.mxu1 %v8129_v46  ;;  %v2220_v44 = vld [vmem:[#allocation11 + $0x360] sm:$0xff]  ;;  %v8021_v46 = vpack.c.bf16 %v2221_v34, %v2217_v2  ;;  %v8149_v49 = vpack.c.bf16 %v2223_v15, %v2219_v13  ;;  %v2250_v2 = vld [vmem:[#allocation11 + $0x450] sm:$0xff]  ;;  %v2257_v13 = vld [vmem:[#allocation11 + $0x488] sm:$0xff] }
 0x3ed   : > { %v2104_v3 = vld [vmem:[#allocation3] sm:$0xff]  ;;  %v2254_v34 = vld [vmem:[#allocation11 + $0x470] sm:$0xff]  ;;  %v2261_v15 = vld [vmem:[#allocation11 + $0x4a8] sm:$0xff] }
 0x3ef   : > { %8004 = vmatpush1.bf16.msra.mxu0 %v8003_v55  ;;  %8132 = vmatpush1.bf16.msra.mxu1 %v8131_v1  ;;  %v2231_v55 = vld [vmem:[#allocation11 + $0x3b8] sm:$0xff]  ;;  %v8023_v1 = vpack.c.bf16 %v2220_v44, %v2216_v43  ;;  %v10459_v43 = vld [vmem:[#allocation3 + $0x28] sm:$0xff] }
 0x3f0   : > { %8006 = vmatprep.subr.bf16.mxu0 %v8005_v59  ;;  %8134 = vmatprep.subr.bf16.mxu1 %v8133_v9  ;;  %v2228_v59 = vld [vmem:[#allocation11 + $0x3a0] sm:$0xff]  ;;  %v8025_v9 = vpack.c.bf16 %v2229_v53, %v2225_v52  ;;  %v8153_v25 = vpack.c.bf16 %v2231_v55, %v2227_v39  ;;  %v8041_v52 = vpack.c.bf16 %v2261_v15, %v2257_v13  ;;  %v2262_v39 = vld [vmem:[#allocation11 + $0x4b0] sm:$0xff]  ;;  %v2265_v55 = vld [vmem:[#allocation11 + $0x4c8] sm:$0xff] }
 0x3f1   : > { %v8171_v23 = vpack.c.bf16 %v2262_v39, %v2258_v51  ;;  %v2292_v13 = vld [vmem:[#allocation11 + $0x5a0] sm:$0xff]  ;;  %v2290_v15 = vld [vmem:[#allocation11 + $0x590] sm:$0xff] }
 0x3f2   : > { %v2296_v39 = vld [vmem:[#allocation11 + $0x5c0] sm:$0xff] }
 0x3f3   : > { %8008 = vmatpush1.bf16.msra.mxu0 %v8007_v11  ;;  %8136 = vmatpush1.bf16.msra.mxu1 %v8135_v18  ;;  %v2239_v11 = vld [vmem:[#allocation11 + $0x3f8] sm:$0xff]  ;;  %v8027_v18 = vpack.c.bf16 %v2228_v59, %v2224_v57 }
 0x3f4   : > { %8010 = vmatprep.subr.bf16.mxu0 %v8009_v47  ;;  %8138 = vmatprep.subr.bf16.mxu1 %v8137_v42  ;;  %v2236_v47 = vld [vmem:[#allocation11 + $0x3e0] sm:$0xff]  ;;  %v8029_v42 = vpack.c.bf16 %v2237_v48, %v2233_v19  ;;  %v8157_v31 = vpack.c.bf16 %v2239_v11, %v2235_v35  ;;  %v2107_v57 = vld [vmem:[#allocation3 + $0x18] sm:$0xff] }
 0x3f5   : > { %v2267_v59 = vld [vmem:[#allocation11 + $0x4d8] sm:$0xff]  ;;  %v2264_v19 = vld [vmem:[#allocation11 + $0x4c0] sm:$0xff]  ;;  %v2266_v35 = vld [vmem:[#allocation11 + $0x4d0] sm:$0xff] }
 0x3f6   : > { %v2268_v48 = vld [vmem:[#allocation11 + $0x4e0] sm:$0xff] }
 0x3f7   : > { %8012 = vmatpush1.bf16.msra.mxu0 %v8011_v20  ;;  %8140 = vmatpush1.bf16.msra.mxu1 %v8139_v14  ;;  %v2247_v20 = vld [vmem:[#allocation11 + $0x438] sm:$0xff]  ;;  %v8031_v14 = vpack.c.bf16 %v2236_v47, %v2232_v16  ;;  %v2277_v16 = vld [vmem:[#allocation11 + $0x528] sm:$0xff] }
 0x3f8   : > { %8014 = vmatprep.subr.bf16.mxu0 %v8013_v22  ;;  %8142 = vmatprep.subr.bf16.mxu1 %v8141_v58  ;;  %v8161_v22 = vpack.c.bf16 %v2247_v20, %v2243_v61  ;;  %v2240_v58 = vld [vmem:[#allocation11 + $0x400] sm:$0xff]  ;;  %v2275_v47 = vld [vmem:[#allocation11 + $0x518] sm:$0xff]  ;;  %v2274_v61 = vld [vmem:[#allocation11 + $0x510] sm:$0xff] }
 0x3fb   : > { %8016 = vmatpush1.bf16.msra.mxu0 %v8015_v38  ;;  %8144 = vmatpush1.bf16.msra.mxu1 %v8143_v40  ;;  %v2255_v38 = vld [vmem:[#allocation11 + $0x478] sm:$0xff]  ;;  %v8035_v40 = vpack.c.bf16 %v2244_v24, %v2240_v58  ;;  %v8051_v24 = vpack.c.bf16 %v2276_v17, %v2272_v5 }
 0x3fc   : > { %8018 = vmatprep.subr.bf16.mxu0 %v8017_v32  ;;  %8146 = vmatprep.subr.bf16.mxu1 %v8145_v54  ;;  %v2248_v32 = vld [vmem:[#allocation11 + $0x440] sm:$0xff]  ;;  %v8165_v33 = vpack.c.bf16 %v2255_v38, %v2251_v29  ;;  %v2287_v58 = vld [vmem:[#allocation11 + $0x578] sm:$0xff]  ;;  %v2282_v29 = vld [vmem:[#allocation11 + $0x550] sm:$0xff] }
 0x3fd   : > { %v2252_v54 = vld [vmem:[#allocation11 + $0x460] sm:$0xff] }
 0x3fe   : > { %v8039_v44 = vpack.c.bf16 %v2252_v54, %v2248_v32  ;;  %v2291_v32 = vld [vmem:[#allocation11 + $0x598] sm:$0xff] }
 0x3ff   : > { %8020 = vmatpush1.bf16.msra.mxu0 %v8019_v6  ;;  %8148 = vmatpush1.bf16.msra.mxu1 %v8147_v0  ;;  %v2259_v6 = vld [vmem:[#allocation11 + $0x498] sm:$0xff] }
 0x400   : > { %8022 = vmatprep.subr.bf16.mxu0 %v8021_v46  ;;  %8150 = vmatprep.subr.bf16.mxu1 %v8149_v49  ;;  %v2263_v0 = vld [vmem:[#allocation11 + $0x4b8] sm:$0xff]  ;;  %v8167_v46 = vpack.c.bf16 %v2254_v34, %v2250_v2  ;;  %v2256_v49 = vld [vmem:[#allocation11 + $0x480] sm:$0xff] }
 0x401   : > { %v8169_v53 = vpack.c.bf16 %v2263_v0, %v2259_v6  ;;  %v2295_v54 = vld [vmem:[#allocation11 + $0x5b8] sm:$0xff]  ;;  %v2288_v34 = vld [vmem:[#allocation11 + $0x580] sm:$0xff]  ;;  %v2294_v0 = vld [vmem:[#allocation11 + $0x5b0] sm:$0xff] }
 0x402   : > { %v8185_v6 = vpack.c.bf16 %v2295_v54, %v2291_v32  ;;  %v8059_v51 = vpack.c.bf16 %v2292_v13, %v2288_v34  ;;  %v2326_v32 = vld [vmem:[#allocation11 + $0x6b0] sm:$0xff]  ;;  %v2329_v54 = vld [vmem:[#allocation11 + $0x6c8] sm:$0xff] }
 0x403   : > { %8024 = vmatpush1.bf16.msra.mxu0 %v8023_v1  ;;  %8152 = vmatpush1.bf16.msra.mxu1 %v8151_v56  ;;  %v2269_v1 = vld [vmem:[#allocation11 + $0x4e8] sm:$0xff]  ;;  %v10463_v56 = vld [vmem:[#allocation3 + $0x20] sm:$0xff] }
 0x404   : > { %8026 = vmatprep.subr.bf16.mxu0 %v8025_v9  ;;  %8154 = vmatprep.subr.bf16.mxu1 %v8153_v25  ;;  %v2271_v9 = vld [vmem:[#allocation11 + $0x4f8] sm:$0xff]  ;;  %v8043_v25 = vpack.c.bf16 %v2260_v50, %v2256_v49  ;;  %v8045_v10 = vpack.c.bf16 %v2269_v1, %v2265_v55  ;;  %v2300_v55 = vld [vmem:[#allocation11 + $0x5e0] sm:$0xff]  ;;  %v2298_v1 = vld [vmem:[#allocation11 + $0x5d0] sm:$0xff] }
 0x405   : > { %v8173_v11 = vpack.c.bf16 %v2271_v9, %v2267_v59  ;;  %v2299_v49 = vld [vmem:[#allocation11 + $0x5d8] sm:$0xff]  ;;  %v2302_v59 = vld [vmem:[#allocation11 + $0x5f0] sm:$0xff]  ;;  %v2305_v9 = vld [vmem:[#allocation11 + $0x608] sm:$0xff] }
 0x406   : > { %v2303_v50 = vld [vmem:[#allocation11 + $0x5f8] sm:$0xff] }
 0x407   : > { %8028 = vmatpush1.bf16.msra.mxu0 %v8027_v18  ;;  %8156 = vmatpush1.bf16.msra.mxu1 %v8155_v12  ;;  %v2270_v18 = vld [vmem:[#allocation11 + $0x4f0] sm:$0xff]  ;;  %v2273_v12 = vld [vmem:[#allocation11 + $0x508] sm:$0xff] }
 0x408   : > { %8030 = vmatprep.subr.bf16.mxu0 %v8029_v42  ;;  %8158 = vmatprep.subr.bf16.mxu1 %v8157_v31  ;;  %v2279_v42 = vld [vmem:[#allocation11 + $0x538] sm:$0xff]  ;;  %v8047_v31 = vpack.c.bf16 %v2268_v48, %v2264_v19  ;;  %v8175_v4 = vpack.c.bf16 %v2270_v18, %v2266_v35  ;;  %v8049_v30 = vpack.c.bf16 %v2277_v16, %v2273_v12  ;;  %v2308_v18 = vld [vmem:[#allocation11 + $0x620] sm:$0xff]  ;;  %v2306_v12 = vld [vmem:[#allocation11 + $0x610] sm:$0xff] }
 0x409   : > { %v8177_v20 = vpack.c.bf16 %v2279_v42, %v2275_v47  ;;  %v8063_v19 = vpack.c.bf16 %v2300_v55, %v2296_v39  ;;  %v8191_v48 = vpack.c.bf16 %v2302_v59, %v2298_v1  ;;  %v2310_v47 = vld [vmem:[#allocation11 + $0x630] sm:$0xff]  ;;  %v2313_v42 = vld [vmem:[#allocation11 + $0x648] sm:$0xff]  ;;  %v2340_v59 = vld [vmem:[#allocation11 + $0x720] sm:$0xff] }
 0x40a   : > { %v8195_v17 = vpack.c.bf16 %v2310_v47, %v2306_v12  ;;  %v2348_v47 = vld [vmem:[#allocation11 + $0x760] sm:$0xff] }
 0x40b   : > { %8032 = vmatpush1.bf16.msra.mxu0 %v8031_v14  ;;  %8160 = vmatpush1.bf16.msra.mxu1 %v8159_v7  ;;  %v2278_v14 = vld [vmem:[#allocation11 + $0x530] sm:$0xff]  ;;  %v2281_v7 = vld [vmem:[#allocation11 + $0x548] sm:$0xff] }
 0x40c   : > { %8034 = vmatprep.subr.bf16.mxu0 %v8033_v21  ;;  %8162 = vmatprep.subr.bf16.mxu1 %v8161_v22  ;;  %v2285_v21 = vld [vmem:[#allocation11 + $0x568] sm:$0xff]  ;;  %v2283_v22 = vld [vmem:[#allocation11 + $0x558] sm:$0xff]  ;;  %v8179_v26 = vpack.c.bf16 %v2278_v14, %v2274_v61  ;;  %v2316_v14 = vld [vmem:[#allocation11 + $0x660] sm:$0xff] }
 0x40d   : > { %v8053_v8 = vpack.c.bf16 %v2285_v21, %v2281_v7  ;;  %v8181_v38 = vpack.c.bf16 %v2287_v58, %v2283_v22  ;;  %v2314_v7 = vld [vmem:[#allocation11 + $0x650] sm:$0xff]  ;;  %v2321_v58 = vld [vmem:[#allocation11 + $0x688] sm:$0xff] }
 0x40e   : > { %3047 = vmatmul.mubr.f32.vlgmr.msra.gmra.mrb[16].mxu0 %v2104_v3  ;;  %3201 = vmatmul.mubr.f32.vlgmr.msra.gmra.mrb[16].mxu1 %v2104_v3  ;;  %v2289_v3 = vld [vmem:[#allocation11 + $0x588] sm:$0xff]  ;;  %v2318_v22 = vld [vmem:[#allocation11 + $0x670] sm:$0xff] }
 0x40f   : > { %3052 = vmatprep.mubr.f32.mxu0 %v10459_v43  ;;  %8036 = vmatpush1.bf16.msra.mxu0 %v8035_v40  ;;  %v2286_v40 = vld [vmem:[#allocation11 + $0x570] sm:$0xff] }
 0x410   : > { %3206 = vmatprep.mubr.f32.mxu1 %v10459_v43  ;;  %8164 = vmatpush1.bf16.msra.mxu1 %v8163_v37  ;;  %v2293_v37 = vld [vmem:[#allocation11 + $0x5a8] sm:$0xff] }
 0x411   : > { %8038 = vmatprep.subr.bf16.mxu0 %v8037_v27  ;;  %8166 = vmatprep.subr.bf16.mxu1 %v8165_v33  ;;  %v8055_v27 = vpack.c.bf16 %v2284_v28, %v2280_v45  ;;  %v8183_v33 = vpack.c.bf16 %v2286_v40, %v2282_v29  ;;  %v8057_v2 = vpack.c.bf16 %v2293_v37, %v2289_v3  ;;  %v2324_v40 = vld [vmem:[#allocation11 + $0x6a0] sm:$0xff]  ;;  %v2322_v3 = vld [vmem:[#allocation11 + $0x690] sm:$0xff] }
 0x412   : > { %3053 = vmatmul.mubr.f32.gmra.mrb[18].mxu0 %v10463_v56  ;;  %3207 = vmatmul.mubr.f32.gmra.mrb[18].mxu1 %v10463_v56  ;;  %v8199_v28 = vpack.c.bf16 %v2318_v22, %v2314_v7  ;;  %v8203_v13 = vpack.c.bf16 %v2326_v32, %v2322_v3  ;;  %v2356_v22 = vld [vmem:[#allocation11 + $0x7a0] sm:$0xff] }
 0x413   : > { %8040 = vmatpush1.bf16.msra.mxu0 %v8039_v44  ;;  %3123 = vmatprep.mubr.f32.mxu0 %v2107_v57  ;;  %v2297_v44 = vld [vmem:[#allocation11 + $0x5c8] sm:$0xff]  ;;  %v2364_v32 = vld [vmem:[#allocation11 + $0x7e0] sm:$0xff] }
 0x414   : > { %8168 = vmatpush1.bf16.msra.mxu1 %v8167_v46  ;;  %3277 = vmatprep.mubr.f32.mxu1 %v2107_v57  ;;  %v2301_v46 = vld [vmem:[#allocation11 + $0x5e8] sm:$0xff]  ;;  %v8189_v57 = vpack.c.bf16 %v2303_v50, %v2299_v49  ;;  %v2334_v49 = vld [vmem:[#allocation11 + $0x6f0] sm:$0xff] }
 0x415   : > { %8042 = vmatprep.subr.bf16.mxu0 %v8041_v52  ;;  %8170 = vmatprep.subr.bf16.mxu1 %v8169_v53  ;;  %v8187_v52 = vpack.c.bf16 %v2294_v0, %v2290_v15  ;;  %v8061_v53 = vpack.c.bf16 %v2301_v46, %v2297_v44  ;;  %v2332_v0 = vld [vmem:[#allocation11 + $0x6e0] sm:$0xff]  ;;  %v2330_v44 = vld [vmem:[#allocation11 + $0x6d0] sm:$0xff]  ;;  %v2337_v50 = vld [vmem:[#allocation11 + $0x708] sm:$0xff] }
 0x416   : > { %v8207_v55 = vpack.c.bf16 %v2334_v49, %v2330_v44  ;;  %v3299_v49 = vld [vmem:[#allocation11 + $0x1000] sm:$0xff] }
 0x417   : > { %8044 = vmatpush1.bf16.msra.mxu0 %v8043_v25  ;;  %v2309_v25 = vld [vmem:[#allocation11 + $0x628] sm:$0xff] }
 0x418   : > { %8172 = vmatpush1.bf16.msra.mxu1 %v8171_v23  ;;  %8046 = vmatprep.subr.bf16.mxu0 %v8045_v10  ;;  %v2307_v23 = vld [vmem:[#allocation11 + $0x618] sm:$0xff]  ;;  %v8065_v35 = vpack.c.bf16 %v2309_v25, %v2305_v9  ;;  %v2338_v9 = vld [vmem:[#allocation11 + $0x710] sm:$0xff] }
 0x419   : > { %8174 = vmatprep.subr.bf16.mxu1 %v8173_v11  ;;  %v2311_v10 = vld [vmem:[#allocation11 + $0x638] sm:$0xff]  ;;  %v2304_v11 = vld [vmem:[#allocation11 + $0x600] sm:$0xff] }
 0x41a   : > { %v8193_v16 = vpack.c.bf16 %v2311_v10, %v2307_v23  ;;  %v8067_v5 = vpack.c.bf16 %v2308_v18, %v2304_v11  ;;  %v2342_v23 = vld [vmem:[#allocation11 + $0x730] sm:$0xff]  ;;  %v2345_v10 = vld [vmem:[#allocation11 + $0x748] sm:$0xff] }
 0x41b   : > { %8048 = vmatpush1.bf16.msra.mxu0 %v8047_v31  ;;  %v2317_v31 = vld [vmem:[#allocation11 + $0x668] sm:$0xff]  ;;  %v8211_v18 = vpack.c.bf16 %v2342_v23, %v2338_v9 }
 0x41c   : > { %8176 = vmatpush1.bf16.msra.mxu1 %v8175_v4  ;;  %8050 = vmatprep.subr.bf16.mxu0 %v8049_v30  ;;  %v2315_v4 = vld [vmem:[#allocation11 + $0x658] sm:$0xff]  ;;  %v8069_v61 = vpack.c.bf16 %v2317_v31, %v2313_v42  ;;  %v2346_v42 = vld [vmem:[#allocation11 + $0x750] sm:$0xff]  ;;  %v3291_v9 = vld [vmem:[#allocation3 + $0x8] sm:$0xfc] }
 0x41d   : > { %8178 = vmatprep.subr.bf16.mxu1 %v8177_v20  ;;  %v2319_v30 = vld [vmem:[#allocation11 + $0x678] sm:$0xff]  ;;  %v2312_v20 = vld [vmem:[#allocation11 + $0x640] sm:$0xff] }
 0x41e   : > { %v8197_v21 = vpack.c.bf16 %v2319_v30, %v2315_v4  ;;  %v8071_v45 = vpack.c.bf16 %v2316_v14, %v2312_v20  ;;  %v2350_v4 = vld [vmem:[#allocation11 + $0x770] sm:$0xff]  ;;  %v2353_v30 = vld [vmem:[#allocation11 + $0x788] sm:$0xff] }
 0x41f   : > { %8052 = vmatpush1.bf16.msra.mxu0 %v8051_v24  ;;  %v2325_v24 = vld [vmem:[#allocation11 + $0x6a8] sm:$0xff]  ;;  %v8215_v14 = vpack.c.bf16 %v2350_v4, %v2346_v42  ;;  %v3318_v42 = vld [vmem:[#allocation11 + $0x1098] sm:$0xff] }
 0x420   : > { %8180 = vmatpush1.bf16.msra.mxu1 %v8179_v26  ;;  %8054 = vmatprep.subr.bf16.mxu0 %v8053_v8  ;;  %v2323_v26 = vld [vmem:[#allocation11 + $0x698] sm:$0xff]  ;;  %v8073_v29 = vpack.c.bf16 %v2325_v24, %v2321_v58  ;;  %v2354_v58 = vld [vmem:[#allocation11 + $0x790] sm:$0xff] }
 0x421   : > { %8182 = vmatprep.subr.bf16.mxu1 %v8181_v38  ;;  %v2327_v8 = vld [vmem:[#allocation11 + $0x6b8] sm:$0xff]  ;;  %v2320_v38 = vld [vmem:[#allocation11 + $0x680] sm:$0xff] }
 0x422   : > { %v8201_v37 = vpack.c.bf16 %v2327_v8, %v2323_v26  ;;  %v8075_v34 = vpack.c.bf16 %v2324_v40, %v2320_v38  ;;  %v2358_v26 = vld [vmem:[#allocation11 + $0x7b0] sm:$0xff]  ;;  %v2361_v8 = vld [vmem:[#allocation11 + $0x7c8] sm:$0xff] }
 0x423   : > { %8056 = vmatpush1.bf16.msra.mxu0 %v8055_v27  ;;  %v2333_v27 = vld [vmem:[#allocation11 + $0x6e8] sm:$0xff]  ;;  %v8219_v40 = vpack.c.bf16 %v2358_v26, %v2354_v58  ;;  %v3321_v58 = vld [vmem:[#allocation11 + $0x10b0] sm:$0xff] }
 0x424   : > { %8184 = vmatpush1.bf16.msra.mxu1 %v8183_v33  ;;  %8058 = vmatprep.subr.bf16.mxu0 %v8057_v2  ;;  %v2331_v33 = vld [vmem:[#allocation11 + $0x6d8] sm:$0xff]  ;;  %v8077_v15 = vpack.c.bf16 %v2333_v27, %v2329_v54  ;;  %v2362_v54 = vld [vmem:[#allocation11 + $0x7d0] sm:$0xff]  ;;  %v3328_v26 = vld [vmem:[#allocation11 + $0x10e8] sm:$0xff] }
 0x425   : > { %8186 = vmatprep.subr.bf16.mxu1 %v8185_v6  ;;  %v2335_v2 = vld [vmem:[#allocation11 + $0x6f8] sm:$0xff]  ;;  %v2328_v6 = vld [vmem:[#allocation11 + $0x6c0] sm:$0xff] }
 0x426   : > { %v8205_v46 = vpack.c.bf16 %v2335_v2, %v2331_v33  ;;  %v8079_v39 = vpack.c.bf16 %v2332_v0, %v2328_v6  ;;  %v2366_v33 = vld [vmem:[#allocation11 + $0x7f0] sm:$0xff]  ;;  %v3300_v2 = vld [vmem:[#allocation11 + $0x1008] sm:$0xff] }
 0x427   : > { %8060 = vmatpush1.bf16.msra.mxu0 %v8059_v51  ;;  %v2341_v51 = vld [vmem:[#allocation11 + $0x728] sm:$0xff]  ;;  %v8223_v0 = vpack.c.bf16 %v2366_v33, %v2362_v54  ;;  %v3329_v54 = vld [vmem:[#allocation11 + $0x10f0] sm:$0xff] }
 0x428   : > { %8188 = vmatpush1.bf16.msra.mxu1 %v8187_v52  ;;  %8062 = vmatprep.subr.bf16.mxu0 %v8061_v53  ;;  %v2339_v52 = vld [vmem:[#allocation11 + $0x718] sm:$0xff]  ;;  %v8081_v1 = vpack.c.bf16 %v2341_v51, %v2337_v50  ;;  %v3303_v50 = vld [vmem:[#allocation11 + $0x1020] sm:$0xff]  ;;  %v3301_v51 = vld [vmem:[#allocation11 + $0x1010] sm:$0xff] }
 0x429   : > { %8190 = vmatprep.subr.bf16.mxu1 %v8189_v57  ;;  %v2343_v53 = vld [vmem:[#allocation11 + $0x738] sm:$0xff]  ;;  %v2336_v57 = vld [vmem:[#allocation11 + $0x700] sm:$0xff]  ;;  %v3336_v33 = vld [vmem:[#allocation11 + $0x1128] sm:$0xff] }
 0x42a   : > { %v8209_v25 = vpack.c.bf16 %v2343_v53, %v2339_v52  ;;  %v8083_v11 = vpack.c.bf16 %v2340_v59, %v2336_v57  ;;  %v3305_v52 = vld [vmem:[#allocation11 + $0x1030] sm:$0xff]  ;;  %v3308_v53 = vld [vmem:[#allocation11 + $0x1048] sm:$0xff]  ;;  %v8227_v59 = vpack.c.bf16 %v3303_v50, %v3299_v49 }
 0x42b   : > { %8064 = vmatpush1.bf16.msra.mxu0 %v8063_v19  ;;  %v2349_v19 = vld [vmem:[#allocation11 + $0x768] sm:$0xff]  ;;  %v3337_v50 = vld [vmem:[#allocation11 + $0x1130] sm:$0xff] }
 0x42c   : > { %8192 = vmatpush1.bf16.msra.mxu1 %v8191_v48  ;;  %8066 = vmatprep.subr.bf16.mxu0 %v8065_v35  ;;  %v2347_v48 = vld [vmem:[#allocation11 + $0x758] sm:$0xff]  ;;  %v8085_v12 = vpack.c.bf16 %v2349_v19, %v2345_v10  ;;  %v2106_v57 = vld [vmem:[#allocation3 + $0x10] sm:$0xff]  ;;  %v3307_v10 = vld [vmem:[#allocation11 + $0x1040] sm:$0xff] }
 0x42d   : > { %8194 = vmatprep.subr.bf16.mxu1 %v8193_v16  ;;  %v2351_v35 = vld [vmem:[#allocation11 + $0x778] sm:$0xff]  ;;  %v2344_v16 = vld [vmem:[#allocation11 + $0x740] sm:$0xff] }
 0x42e   : > { %v8213_v31 = vpack.c.bf16 %v2351_v35, %v2347_v48  ;;  %v8087_v20 = vpack.c.bf16 %v2348_v47, %v2344_v16  ;;  %v3311_v19 = vld [vmem:[#allocation11 + $0x1060] sm:$0xff]  ;;  %v3309_v48 = vld [vmem:[#allocation11 + $0x1050] sm:$0xff]  ;;  %v3320_v16 = vld [vmem:[#allocation11 + $0x10a8] sm:$0xff] }
 0x42f   : > { %8068 = vmatpush1.bf16.msra.mxu0 %v8067_v5  ;;  %v2357_v5 = vld [vmem:[#allocation11 + $0x7a8] sm:$0xff]  ;;  %v10468_v47 = vld [vmem:[#allocation3 + $0x38] sm:$0xff]  ;;  %v8231_v4 = vpack.c.bf16 %v3311_v19, %v3307_v10 }
 0x430   : > { %8196 = vmatpush1.bf16.msra.mxu1 %v8195_v17  ;;  %8070 = vmatprep.subr.bf16.mxu0 %v8069_v61  ;;  %v2355_v17 = vld [vmem:[#allocation11 + $0x798] sm:$0xff]  ;;  %v8089_v7 = vpack.c.bf16 %v2357_v5, %v2353_v30  ;;  %v3567_v30 = vrot.slane %v3291_v9, 2  ;;  %v3343_v9 = vld [vmem:[#allocation11 + $0x1160] sm:$0xff]  ;;  %v3345_v10 = vld [vmem:[#allocation11 + $0x1170] sm:$0xff] }
 0x431   : > { %8198 = vmatprep.subr.bf16.mxu1 %v8197_v21  ;;  %v2359_v61 = vld [vmem:[#allocation11 + $0x7b8] sm:$0xff]  ;;  %v2352_v21 = vld [vmem:[#allocation11 + $0x780] sm:$0xff]  ;;  %v3348_v19 = vld [vmem:[#allocation11 + $0x1188] sm:$0xff] }
 0x432   : > { %v8217_v24 = vpack.c.bf16 %v2359_v61, %v2355_v17  ;;  %v8091_v38 = vpack.c.bf16 %v2356_v22, %v2352_v21  ;;  %v3315_v61 = vld [vmem:[#allocation11 + $0x1080] sm:$0xff] }
 0x433   : > { %8072 = vmatpush1.bf16.msra.mxu0 %v8071_v45  ;;  %v2365_v45 = vld [vmem:[#allocation11 + $0x7e8] sm:$0xff] }
 0x434   : > { %8200 = vmatpush1.bf16.msra.mxu1 %v8199_v28  ;;  %8074 = vmatprep.subr.bf16.mxu0 %v8073_v29  ;;  %v2363_v28 = vld [vmem:[#allocation11 + $0x7d8] sm:$0xff]  ;;  %v8093_v3 = vpack.c.bf16 %v2365_v45, %v2361_v8 }
 0x435   : > { %8202 = vmatprep.subr.bf16.mxu1 %v8201_v37  ;;  %v2367_v29 = vld [vmem:[#allocation11 + $0x7f8] sm:$0xff]  ;;  %v2360_v37 = vld [vmem:[#allocation11 + $0x7c0] sm:$0xff] }
 0x436   : > { %v8221_v27 = vpack.c.bf16 %v2367_v29, %v2363_v28  ;;  %v8095_v6 = vpack.c.bf16 %v2364_v32, %v2360_v37  ;;  %v3326_v8 = vld [vmem:[#allocation11 + $0x10d8] sm:$0xff]  ;;  %v3325_v37 = vld [vmem:[#allocation11 + $0x10d0] sm:$0xff] }
 0x437   : > { %8076 = vmatpush1.bf16.msra.mxu0 %v8075_v34  ;;  %v3304_v34 = vld [vmem:[#allocation11 + $0x1028] sm:$0xff]  ;;  %v3330_v45 = vld [vmem:[#allocation11 + $0x10f8] sm:$0xff] }
 0x438   : > { %8204 = vmatpush1.bf16.msra.mxu1 %v8203_v13  ;;  %8078 = vmatprep.subr.bf16.mxu0 %v8077_v15  ;;  %v3302_v13 = vld [vmem:[#allocation11 + $0x1018] sm:$0xff]  ;;  %v8225_v44 = vpack.c.bf16 %v3304_v34, %v3300_v2  ;;  %v8365_v32 = vpack.c.bf16 %v3330_v45, %v3326_v8  ;;  %v3359_v8 = vld [vmem:[#allocation11 + $0x11e0] sm:$0xff]  ;;  %v3357_v45 = vld [vmem:[#allocation11 + $0x11d0] sm:$0xff] }
 0x439   : > { %8206 = vmatprep.subr.bf16.mxu1 %v8205_v46  ;;  %v3306_v15 = vld [vmem:[#allocation11 + $0x1038] sm:$0xff] }
 0x43a   : > { %v8353_v46 = vpack.c.bf16 %v3306_v15, %v3302_v13  ;;  %v3334_v2 = vld [vmem:[#allocation11 + $0x1118] sm:$0xff]  ;;  %v8367_v15 = vpack.c.bf16 %v3329_v54, %v3325_v37 }
 0x43b   : > { %8080 = vmatpush1.bf16.msra.mxu0 %v8079_v39  ;;  %v3312_v39 = vld [vmem:[#allocation11 + $0x1068] sm:$0xff]  ;;  %v3338_v34 = vld [vmem:[#allocation11 + $0x1138] sm:$0xff] }
 0x43c   : > { %8208 = vmatpush1.bf16.msra.mxu1 %v8207_v55  ;;  %8082 = vmatprep.subr.bf16.mxu0 %v8081_v1  ;;  %v3310_v55 = vld [vmem:[#allocation11 + $0x1058] sm:$0xff]  ;;  %v8229_v23 = vpack.c.bf16 %v3312_v39, %v3308_v53  ;;  %v8369_v49 = vpack.c.bf16 %v3338_v34, %v3334_v2  ;;  %v3367_v2 = vld [vmem:[#allocation11 + $0x1220] sm:$0xff]  ;;  %v3365_v34 = vld [vmem:[#allocation11 + $0x1210] sm:$0xff] }
 0x43d   : > { %8210 = vmatprep.subr.bf16.mxu1 %v8209_v25  ;;  %v3314_v1 = vld [vmem:[#allocation11 + $0x1078] sm:$0xff]  ;;  %v8355_v25 = vpack.c.bf16 %v3305_v52, %v3301_v51  ;;  %v3340_v51 = vld [vmem:[#allocation11 + $0x1148] sm:$0xff] }
 0x43e   : > { %v8357_v35 = vpack.c.bf16 %v3314_v1, %v3310_v55  ;;  %v3344_v52 = vld [vmem:[#allocation11 + $0x1168] sm:$0xff]  ;;  %v3342_v53 = vld [vmem:[#allocation11 + $0x1158] sm:$0xff] }
 0x43f   : > { %8084 = vmatpush1.bf16.msra.mxu0 %v8083_v11  ;;  %v3568_v11 = vrot.slane %v10459_v43, 2  ;;  %v3346_v39 = vld [vmem:[#allocation11 + $0x1178] sm:$0xff] }
 0x440   : > { %8212 = vmatpush1.bf16.msra.mxu1 %v8211_v18  ;;  %8086 = vmatprep.subr.bf16.mxu0 %v8085_v12  ;;  %v3313_v18 = vld [vmem:[#allocation11 + $0x1070] sm:$0xff]  ;;  %v3316_v12 = vld [vmem:[#allocation11 + $0x1088] sm:$0xff]  ;;  %v3370_v37 = vld [vmem:[#allocation11 + $0x1238] sm:$0xff] }
 0x441   : > { %8214 = vmatprep.subr.bf16.mxu1 %v8213_v31  ;;  %v3322_v31 = vld [vmem:[#allocation11 + $0x10b8] sm:$0xff]  ;;  %v8359_v5 = vpack.c.bf16 %v3313_v18, %v3309_v48  ;;  %v8233_v17 = vpack.c.bf16 %v3320_v16, %v3316_v12  ;;  %v3569_v21 = vsel %vm3563_vm2, %v3567_v30, %v3568_v11  ;;  %v3352_v48 = vld [vmem:[#allocation11 + $0x11a8] sm:$0xff]  ;;  %v3349_v30 = vld [vmem:[#allocation11 + $0x1190] sm:$0xff] }
 0x442   : > { %v8361_v22 = vpack.c.bf16 %v3322_v31, %v3318_v42  ;;  %v3354_v18 = vld [vmem:[#allocation11 + $0x11b8] sm:$0xff]  ;;  %v8249_v42 = vpack.c.bf16 %v3352_v48, %v3348_v19  ;;  %v3347_v31 = vld [vmem:[#allocation11 + $0x1180] sm:$0xff] }
 0x443   : > { %8088 = vmatpush1.bf16.msra.mxu0 %v8087_v20  ;;  %v3319_v20 = vld [vmem:[#allocation11 + $0x10a0] sm:$0xff] }
 0x444   : > { %8216 = vmatpush1.bf16.msra.mxu1 %v8215_v14  ;;  %8090 = vmatprep.subr.bf16.mxu0 %v8089_v7  ;;  %v3317_v14 = vld [vmem:[#allocation11 + $0x1090] sm:$0xff]  ;;  %v8235_v28 = vpack.c.bf16 %v3319_v20, %v3315_v61  ;;  %v3356_v61 = vld [vmem:[#allocation11 + $0x11c8] sm:$0xff]  ;;  %v3379_v48 = vld [vmem:[#allocation11 + $0x1280] sm:$0xff] }
 0x445   : > { %8218 = vmatprep.subr.bf16.mxu1 %v8217_v24  ;;  %v10472_v7 = vld [vmem:[#allocation3 + $0x30] sm:$0xff]  ;;  %v8363_v29 = vpack.c.bf16 %v3321_v58, %v3317_v14  ;;  %v3358_v14 = vld [vmem:[#allocation11 + $0x11d8] sm:$0xff] }
 0x446   : > { %v3324_v24 = vld [vmem:[#allocation11 + $0x10c8] sm:$0xff] }
 0x447   : > { %8092 = vmatpush1.bf16.msra.mxu0 %v8091_v38  ;;  %v8237_v38 = vpack.c.bf16 %v3328_v26, %v3324_v24  ;;  %v3360_v20 = vld [vmem:[#allocation11 + $0x11e8] sm:$0xff]  ;;  %v3355_v26 = vld [vmem:[#allocation11 + $0x11c0] sm:$0xff] }
 0x448   : > { %8220 = vmatpush1.bf16.msra.mxu1 %v8219_v40  ;;  %8094 = vmatprep.subr.bf16.mxu0 %v8093_v3  ;;  %v3323_v40 = vld [vmem:[#allocation11 + $0x10c0] sm:$0xff]  ;;  %v8253_v24 = vpack.c.bf16 %v3360_v20, %v3356_v61 }
 0x449   : > { %8222 = vmatprep.subr.bf16.mxu1 %v8221_v27  ;;  %v3327_v3 = vld [vmem:[#allocation11 + $0x10e0] sm:$0xff]  ;;  %v3332_v27 = vld [vmem:[#allocation11 + $0x1108] sm:$0xff] }
 0x44a   : > { %v8239_v13 = vpack.c.bf16 %v3327_v3, %v3323_v40  ;;  %v3368_v40 = vld [vmem:[#allocation11 + $0x1228] sm:$0xff]  ;;  %v3366_v3 = vld [vmem:[#allocation11 + $0x1218] sm:$0xff]  ;;  %v3387_v20 = vld [vmem:[#allocation11 + $0x12c0] sm:$0xff] }
 0x44b   : > { %8096 = vmatpush1.bf16.msra.mxu0 %v8095_v6  ;;  %v8241_v6 = vpack.c.bf16 %v3336_v33, %v3332_v27  ;;  %v3363_v33 = vld [vmem:[#allocation11 + $0x1200] sm:$0xff] }
 0x44c   : > { %8224 = vmatpush1.bf16.msra.mxu1 %v8223_v0  ;;  %8226 = vmatprep.subr.bf16.mxu0 %v8225_v44  ;;  %v3331_v0 = vld [vmem:[#allocation11 + $0x1100] sm:$0xff] }
 0x44d   : > { %8354 = vmatprep.subr.bf16.mxu1 %v8353_v46  ;;  %v3335_v44 = vld [vmem:[#allocation11 + $0x1120] sm:$0xff]  ;;  %v3333_v46 = vld [vmem:[#allocation11 + $0x1110] sm:$0xff] }
 0x44e   : > { %3124 = vmatmul.mubr.f32.vlgmr.msra.gmra.mrb[16].mxu0 %v2106_v57  ;;  %v8243_v55 = vpack.c.bf16 %v3335_v44, %v3331_v0  ;;  %v8371_v1 = vpack.c.bf16 %v3337_v50, %v3333_v46  ;;  %v3376_v0 = vld [vmem:[#allocation11 + $0x1268] sm:$0xff]  ;;  %v3374_v44 = vld [vmem:[#allocation11 + $0x1258] sm:$0xff] }
 0x44f   : > { %3278 = vmatmul.mubr.f32.vlgmr.msra.gmra.mrb[16].mxu1 %v2106_v57  ;;  %3129 = vmatprep.mubr.f32.mxu0 %v10468_v47  ;;  %v8245_v57 = vpack.c.bf16 %v3344_v52, %v3340_v51  ;;  %v3378_v46 = vld [vmem:[#allocation11 + $0x1278] sm:$0xff]  ;;  %v3371_v52 = vld [vmem:[#allocation11 + $0x1240] sm:$0xff] }
 0x450   : > { %3283 = vmatprep.mubr.f32.mxu1 %v10468_v47  ;;  %8228 = vmatpush1.bf16.msra.mxu0 %v8227_v59  ;;  %v3339_v59 = vld [vmem:[#allocation11 + $0x1140] sm:$0xff] }
 0x451   : > { %8356 = vmatpush1.bf16.msra.mxu1 %v8355_v25  ;;  %8230 = vmatprep.subr.bf16.mxu0 %v8229_v23  ;;  %v3341_v25 = vld [vmem:[#allocation11 + $0x1150] sm:$0xff]  ;;  %v8373_v23 = vpack.c.bf16 %v3346_v39, %v3342_v53  ;;  %v8247_v12 = vpack.c.bf16 %v3343_v9, %v3339_v59  ;;  %v3375_v53 = vld [vmem:[#allocation11 + $0x1260] sm:$0xff]  ;;  %v3384_v59 = vld [vmem:[#allocation11 + $0x12a8] sm:$0xff] }
 0x452   : > { %3130 = vmatmul.mubr.f32.gmra.mrb[18].mxu0 %v10472_v7  ;;  %8358 = vmatprep.subr.bf16.mxu1 %v8357_v35  ;;  %v3350_v35 = vld [vmem:[#allocation11 + $0x1198] sm:$0xff]  ;;  %v8375_v16 = vpack.c.bf16 %v3345_v10, %v3341_v25  ;;  %v3373_v39 = vld [vmem:[#allocation11 + $0x1250] sm:$0xff] }
 0x453   : > { %3284 = vmatmul.mubr.f32.gmra.mrb[18].mxu1 %v10472_v7  ;;  %3656 = vmatprep.mubr.f32.mxu0 %v3569_v21  ;;  %v3382_v9 = vld [vmem:[#allocation11 + $0x1298] sm:$0xff] }
 0x454   : > { %8232 = vmatpush1.bf16.msra.mxu0 %v8231_v4  ;;  %3810 = vmatprep.mubr.f32.mxu1 %v3569_v21  ;;  %v3351_v4 = vld [vmem:[#allocation11 + $0x11a0] sm:$0xff]  ;;  %v3362_v21 = vld [vmem:[#allocation11 + $0x11f8] sm:$0xff] }
 0x455   : > { %8360 = vmatpush1.bf16.msra.mxu1 %v8359_v5  ;;  %8234 = vmatprep.subr.bf16.mxu0 %v8233_v17  ;;  %v8377_v5 = vpack.c.bf16 %v3354_v18, %v3350_v35  ;;  %v3353_v17 = vld [vmem:[#allocation11 + $0x11b0] sm:$0xff]  ;;  %v3386_v25 = vld [vmem:[#allocation11 + $0x12b8] sm:$0xff]  ;;  %v3383_v35 = vld [vmem:[#allocation11 + $0x12a0] sm:$0xff] }
 0x456   : > { %8362 = vmatprep.subr.bf16.mxu1 %v8361_v22  ;;  %v8251_v22 = vpack.c.bf16 %v3351_v4, %v3347_v31  ;;  %v8379_v58 = vpack.c.bf16 %v3353_v17, %v3349_v30  ;;  %v3381_v18 = vld [vmem:[#allocation11 + $0x1290] sm:$0xff]  ;;  %v3392_v31 = vld [vmem:[#allocation11 + $0x12e8] sm:$0xff]  ;;  %v3390_v4 = vld [vmem:[#allocation11 + $0x12d8] sm:$0xff] }
 0x457   : > { %v3394_v30 = vld [vmem:[#allocation11 + $0x12f8] sm:$0xff] }
 0x458   : > { %8236 = vmatpush1.bf16.msra.mxu0 %v8235_v28  ;;  %v8381_v28 = vpack.c.bf16 %v3362_v21, %v3358_v14  ;;  %v3391_v14 = vld [vmem:[#allocation11 + $0x12e0] sm:$0xff]  ;;  %v3389_v21 = vld [vmem:[#allocation11 + $0x12d0] sm:$0xff] }
 0x459   : > { %8364 = vmatpush1.bf16.msra.mxu1 %v8363_v29  ;;  %8238 = vmatprep.subr.bf16.mxu0 %v8237_v38  ;;  %v3361_v29 = vld [vmem:[#allocation11 + $0x11f0] sm:$0xff]  ;;  %v3364_v38 = vld [vmem:[#allocation11 + $0x1208] sm:$0xff] }
 0x45a   : > { %8366 = vmatprep.subr.bf16.mxu1 %v8365_v32  ;;  %v8255_v32 = vpack.c.bf16 %v3359_v8, %v3355_v26  ;;  %v8383_v54 = vpack.c.bf16 %v3361_v29, %v3357_v45  ;;  %v8257_v27 = vpack.c.bf16 %v3368_v40, %v3364_v38  ;;  %v3400_v26 = vld [vmem:[#allocation11 + $0x1328] sm:$0xff]  ;;  %v3398_v8 = vld [vmem:[#allocation11 + $0x1318] sm:$0xff]  ;;  %v3395_v40 = vld [vmem:[#allocation11 + $0x1300] sm:$0xff] }
 0x45b   : > { %v3402_v45 = vld [vmem:[#allocation11 + $0x1338] sm:$0xff] }
 0x45c   : > { %8240 = vmatpush1.bf16.msra.mxu0 %v8239_v13  ;;  %v8385_v13 = vpack.c.bf16 %v3370_v37, %v3366_v3  ;;  %v3399_v3 = vld [vmem:[#allocation11 + $0x1320] sm:$0xff]  ;;  %v3397_v37 = vld [vmem:[#allocation11 + $0x1310] sm:$0xff] }
 0x45d   : > { %8368 = vmatpush1.bf16.msra.mxu1 %v8367_v15  ;;  %8242 = vmatprep.subr.bf16.mxu0 %v8241_v6  ;;  %v3369_v15 = vld [vmem:[#allocation11 + $0x1230] sm:$0xff]  ;;  %v3372_v6 = vld [vmem:[#allocation11 + $0x1248] sm:$0xff] }
 0x45e   : > { %8370 = vmatprep.subr.bf16.mxu1 %v8369_v49  ;;  %v8259_v49 = vpack.c.bf16 %v3367_v2, %v3363_v33  ;;  %v8387_v50 = vpack.c.bf16 %v3369_v15, %v3365_v34  ;;  %v8261_v51 = vpack.c.bf16 %v3376_v0, %v3372_v6  ;;  %v3408_v33 = vld [vmem:[#allocation11 + $0x1368] sm:$0xff]  ;;  %v3406_v2 = vld [vmem:[#allocation11 + $0x1358] sm:$0xff]  ;;  %v3403_v0 = vld [vmem:[#allocation11 + $0x1340] sm:$0xff] }
 0x45f   : > { %v3410_v34 = vld [vmem:[#allocation11 + $0x1378] sm:$0xff] }
 0x460   : > { %8244 = vmatpush1.bf16.msra.mxu0 %v8243_v55  ;;  %v8389_v55 = vpack.c.bf16 %v3378_v46, %v3374_v44  ;;  %v3407_v44 = vld [vmem:[#allocation11 + $0x1360] sm:$0xff]  ;;  %v3405_v46 = vld [vmem:[#allocation11 + $0x1350] sm:$0xff] }
 0x461   : > { %8372 = vmatpush1.bf16.msra.mxu1 %v8371_v1  ;;  %8246 = vmatprep.subr.bf16.mxu0 %v8245_v57  ;;  %v3377_v1 = vld [vmem:[#allocation11 + $0x1270] sm:$0xff]  ;;  %v3380_v57 = vld [vmem:[#allocation11 + $0x1288] sm:$0xff] }
 0x462   : > { %8374 = vmatprep.subr.bf16.mxu1 %v8373_v23  ;;  %v8263_v23 = vpack.c.bf16 %v3375_v53, %v3371_v52  ;;  %v8391_v10 = vpack.c.bf16 %v3377_v1, %v3373_v39  ;;  %v8265_v19 = vpack.c.bf16 %v3384_v59, %v3380_v57  ;;  %v3416_v52 = vld [vmem:[#allocation11 + $0x13a8] sm:$0xff]  ;;  %v3414_v53 = vld [vmem:[#allocation11 + $0x1398] sm:$0xff]  ;;  %v3411_v59 = vld [vmem:[#allocation11 + $0x1380] sm:$0xff] }
 0x463   : > { %v3418_v39 = vld [vmem:[#allocation11 + $0x13b8] sm:$0xff] }
 0x464   : > { %8248 = vmatpush1.bf16.msra.mxu0 %v8247_v12  ;;  %v8393_v12 = vpack.c.bf16 %v3386_v25, %v3382_v9  ;;  %v3415_v9 = vld [vmem:[#allocation11 + $0x13a0] sm:$0xff]  ;;  %v3413_v25 = vld [vmem:[#allocation11 + $0x1390] sm:$0xff] }
 0x465   : > { %8376 = vmatpush1.bf16.msra.mxu1 %v8375_v16  ;;  %8250 = vmatprep.subr.bf16.mxu0 %v8249_v42  ;;  %v3385_v16 = vld [vmem:[#allocation11 + $0x12b0] sm:$0xff]  ;;  %v3388_v42 = vld [vmem:[#allocation11 + $0x12c8] sm:$0xff] }
 0x466   : > { %8378 = vmatprep.subr.bf16.mxu1 %v8377_v5  ;;  %v8267_v5 = vpack.c.bf16 %v3383_v35, %v3379_v48  ;;  %v8395_v17 = vpack.c.bf16 %v3385_v16, %v3381_v18  ;;  %v8269_v61 = vpack.c.bf16 %v3392_v31, %v3388_v42  ;;  %v3424_v48 = vld [vmem:[#allocation11 + $0x13e8] sm:$0xff]  ;;  %v3422_v35 = vld [vmem:[#allocation11 + $0x13d8] sm:$0xff]  ;;  %v3419_v31 = vld [vmem:[#allocation11 + $0x13c0] sm:$0xff] }
 0x467   : > { %v3426_v18 = vld [vmem:[#allocation11 + $0x13f8] sm:$0xff] }
 0x468   : > { %8252 = vmatpush1.bf16.msra.mxu0 %v8251_v22  ;;  %v8397_v22 = vpack.c.bf16 %v3394_v30, %v3390_v4  ;;  %v3423_v4 = vld [vmem:[#allocation11 + $0x13e0] sm:$0xff]  ;;  %v3421_v30 = vld [vmem:[#allocation11 + $0x13d0] sm:$0xff] }
 0x469   : > { %8380 = vmatpush1.bf16.msra.mxu1 %v8379_v58  ;;  %8254 = vmatprep.subr.bf16.mxu0 %v8253_v24  ;;  %v3393_v58 = vld [vmem:[#allocation11 + $0x12f0] sm:$0xff]  ;;  %v3396_v24 = vld [vmem:[#allocation11 + $0x1308] sm:$0xff] }
 0x46a   : > { %8382 = vmatprep.subr.bf16.mxu1 %v8381_v28  ;;  %v8271_v28 = vpack.c.bf16 %v3391_v14, %v3387_v20  ;;  %v8399_v29 = vpack.c.bf16 %v3393_v58, %v3389_v21  ;;  %v8273_v38 = vpack.c.bf16 %v3400_v26, %v3396_v24  ;;  %v3432_v20 = vld [vmem:[#allocation11 + $0x1428] sm:$0xff]  ;;  %v3430_v14 = vld [vmem:[#allocation11 + $0x1418] sm:$0xff]  ;;  %v3295_v58 = vld [vmem:[#allocation3 + $0x48] sm:$0x3] }
 0x46b   : > { %v3434_v21 = vld [vmem:[#allocation11 + $0x1438] sm:$0xff] }
 0x46c   : > { %8256 = vmatpush1.bf16.msra.mxu0 %v8255_v32  ;;  %v8401_v32 = vpack.c.bf16 %v3402_v45, %v3398_v8  ;;  %v3290_v26 = vld [vmem:[#allocation3] sm:$0xfc]  ;;  %v3294_v45 = vld [vmem:[#allocation3 + $0x40] sm:$0x3] }
 0x46d   : > { %8384 = vmatpush1.bf16.msra.mxu1 %v8383_v54  ;;  %8258 = vmatprep.subr.bf16.mxu0 %v8257_v27  ;;  %v3401_v54 = vld [vmem:[#allocation11 + $0x1330] sm:$0xff]  ;;  %v3404_v27 = vld [vmem:[#allocation11 + $0x1348] sm:$0xff] }
 0x46e   : > { %8386 = vmatprep.subr.bf16.mxu1 %v8385_v13  ;;  %v8275_v13 = vpack.c.bf16 %v3399_v3, %v3395_v40  ;;  %v8403_v15 = vpack.c.bf16 %v3401_v54, %v3397_v37  ;;  %v8277_v6 = vpack.c.bf16 %v3408_v33, %v3404_v27  ;;  %v3431_v40 = vld [vmem:[#allocation11 + $0x1420] sm:$0xff]  ;;  %v3429_v3 = vld [vmem:[#allocation11 + $0x1410] sm:$0xff]  ;;  %v3578_v37 = vrot.slane %v3295_v58, 2  ;;  %v3436_v54 = vld [vmem:[#allocation11 + $0x1448] sm:$0xff] }
 0x46f   : > { %v3440_v27 = vld [vmem:[#allocation11 + $0x1468] sm:$0xff]  ;;  %v3564_v33 = vrot.slane %v3290_v26, 2  ;;  %v3462_v26 = vld [vmem:[#allocation11 + $0x1518] sm:$0xff] }
 0x470   : > { %8260 = vmatpush1.bf16.msra.mxu0 %v8259_v49  ;;  %v8405_v49 = vpack.c.bf16 %v3410_v34, %v3406_v2  ;;  %v3438_v2 = vld [vmem:[#allocation11 + $0x1458] sm:$0xff]  ;;  %v3460_v58 = vld [vmem:[#allocation11 + $0x1508] sm:$0xff] }
 0x471   : > { %8388 = vmatpush1.bf16.msra.mxu1 %v8387_v50  ;;  %8262 = vmatprep.subr.bf16.mxu0 %v8261_v51  ;;  %v3409_v50 = vld [vmem:[#allocation11 + $0x1370] sm:$0xff]  ;;  %v3412_v51 = vld [vmem:[#allocation11 + $0x1388] sm:$0xff]  ;;  %v3442_v34 = vld [vmem:[#allocation11 + $0x1478] sm:$0xff] }
 0x472   : > { %8390 = vmatprep.subr.bf16.mxu1 %v8389_v55  ;;  %v8279_v55 = vpack.c.bf16 %v3407_v44, %v3403_v0  ;;  %v8407_v1 = vpack.c.bf16 %v3409_v50, %v3405_v46  ;;  %v8281_v57 = vpack.c.bf16 %v3416_v52, %v3412_v51  ;;  %v3576_v0 = vrot.slane %v3294_v45, 2  ;;  %v3435_v46 = vld [vmem:[#allocation11 + $0x1440] sm:$0xff]  ;;  %v3437_v50 = vld [vmem:[#allocation11 + $0x1450] sm:$0xff] }
 0x473   : > { %v8293_v44 = vpack.c.bf16 %v3440_v27, %v3436_v54  ;;  %v3579_v51 = vsel %vm3563_vm2, %v3568_v11, %v3578_v37  ;;  %v8421_v52 = vpack.c.bf16 %v3442_v34, %v3438_v2  ;;  %v3468_v54 = vld [vmem:[#allocation11 + $0x1548] sm:$0xff]  ;;  %v3474_v2 = vld [vmem:[#allocation11 + $0x1578] sm:$0xff] }
 0x474   : > { %8264 = vmatpush1.bf16.msra.mxu0 %v8263_v23  ;;  %v8409_v23 = vpack.c.bf16 %v3418_v39, %v3414_v53  ;;  %v3574_v53 = vrot.slane %v10468_v47, 2  ;;  %v3441_v39 = vld [vmem:[#allocation11 + $0x1470] sm:$0xff]  ;;  %v3472_v27 = vld [vmem:[#allocation11 + $0x1568] sm:$0xff] }
 0x475   : > { %8392 = vmatpush1.bf16.msra.mxu1 %v8391_v10  ;;  %8266 = vmatprep.subr.bf16.mxu0 %v8265_v19  ;;  %v3417_v10 = vld [vmem:[#allocation11 + $0x13b0] sm:$0xff]  ;;  %v3420_v19 = vld [vmem:[#allocation11 + $0x13c8] sm:$0xff]  ;;  %v8423_v43 = vpack.c.bf16 %v3441_v39, %v3437_v50 }
 0x476   : > { %8394 = vmatprep.subr.bf16.mxu1 %v8393_v12  ;;  %v8283_v12 = vpack.c.bf16 %v3415_v9, %v3411_v59  ;;  %v8411_v16 = vpack.c.bf16 %v3417_v10, %v3413_v25  ;;  %v8285_v42 = vpack.c.bf16 %v3424_v48, %v3420_v19  ;;  %v3450_v59 = vld [vmem:[#allocation11 + $0x14b8] sm:$0xff]  ;;  %v3443_v10 = vld [vmem:[#allocation11 + $0x1480] sm:$0xff]  ;;  %v3445_v48 = vld [vmem:[#allocation11 + $0x1490] sm:$0xff] }
 0x477   : > { %v3447_v19 = vld [vmem:[#allocation11 + $0x14a0] sm:$0xff]  ;;  %v3480_v50 = vld [vmem:[#allocation11 + $0x15a8] sm:$0xff] }
 0x478   : > { %8268 = vmatpush1.bf16.msra.mxu0 %v8267_v5  ;;  %v8413_v5 = vpack.c.bf16 %v3426_v18, %v3422_v35  ;;  %v3962_v47 = vld [vmem:[#allocation14 + $0x80] sm:$0xff] }
 0x479   : > { %8396 = vmatpush1.bf16.msra.mxu1 %v8395_v17  ;;  %8270 = vmatprep.subr.bf16.mxu0 %v8269_v61  ;;  %v3425_v17 = vld [vmem:[#allocation11 + $0x13f0] sm:$0xff]  ;;  %v3428_v61 = vld [vmem:[#allocation11 + $0x1408] sm:$0xff] }
 0x47a   : > { %8398 = vmatprep.subr.bf16.mxu1 %v8397_v22  ;;  %v8287_v22 = vpack.c.bf16 %v3423_v4, %v3419_v31  ;;  %v8415_v24 = vpack.c.bf16 %v3425_v17, %v3421_v30  ;;  %v8289_v8 = vpack.c.bf16 %v3432_v20, %v3428_v61  ;;  %v3454_v31 = vld [vmem:[#allocation11 + $0x14d8] sm:$0xff]  ;;  %v8299_v30 = vpack.c.bf16 %v3447_v19, %v3443_v10  ;;  %v3451_v61 = vld [vmem:[#allocation11 + $0x14c0] sm:$0xff] }
 0x47b   : > { %v3458_v4 = vld [vmem:[#allocation11 + $0x14f8] sm:$0xff]  ;;  %v3455_v20 = vld [vmem:[#allocation11 + $0x14e0] sm:$0xff] }
 0x47c   : > { %8272 = vmatpush1.bf16.msra.mxu0 %v8271_v28  ;;  %v3565_v28 = vrot.slane %v10463_v56, 2  ;;  %v8303_v45 = vpack.c.bf16 %v3455_v20, %v3451_v61  ;;  %v3486_v10 = vld [vmem:[#allocation11 + $0x15d8] sm:$0xff] }
 0x47d   : > { %8400 = vmatpush1.bf16.msra.mxu1 %v8399_v29  ;;  %8274 = vmatprep.subr.bf16.mxu0 %v8273_v38  ;;  %v8417_v29 = vpack.c.bf16 %v3434_v21, %v3430_v14  ;;  %v3427_v38 = vld [vmem:[#allocation11 + $0x1400] sm:$0xff]  ;;  %v3453_v14 = vld [vmem:[#allocation11 + $0x14d0] sm:$0xff]  ;;  %v8429_v21 = vpack.c.bf16 %v3458_v4, %v3454_v31  ;;  %v3490_v19 = vld [vmem:[#allocation11 + $0x15f8] sm:$0xff] }
 0x47e   : > { %8402 = vmatprep.subr.bf16.mxu1 %v8401_v32  ;;  %v3433_v32 = vld [vmem:[#allocation11 + $0x1430] sm:$0xff]  ;;  %v8445_v31 = vpack.c.bf16 %v3490_v19, %v3486_v10  ;;  %v3498_v61 = vld [vmem:[#allocation11 + $0x1638] sm:$0xff] }
 0x47f   : > { %v8419_v56 = vpack.c.bf16 %v3433_v32, %v3429_v3  ;;  %v3461_v3 = vld [vmem:[#allocation11 + $0x1510] sm:$0xff] }
 0x480   : > { %8276 = vmatpush1.bf16.msra.mxu0 %v8275_v13  ;;  %v8291_v13 = vpack.c.bf16 %v3431_v40, %v3427_v38  ;;  %v3459_v38 = vld [vmem:[#allocation11 + $0x1500] sm:$0xff]  ;;  %v3465_v32 = vld [vmem:[#allocation11 + $0x1530] sm:$0xff] }
 0x481   : > { %8404 = vmatpush1.bf16.msra.mxu1 %v8403_v15  ;;  %8278 = vmatprep.subr.bf16.mxu0 %v8277_v6  ;;  %v3293_v15 = vld [vmem:[#allocation3 + $0x18] sm:$0xfc]  ;;  %v3566_v6 = vsel %vm3563_vm2, %v3564_v33, %v3565_v28  ;;  %v3463_v40 = vld [vmem:[#allocation11 + $0x1520] sm:$0xff] }
 0x482   : > { %8406 = vmatprep.subr.bf16.mxu1 %v8405_v49  ;;  %v3439_v49 = vld [vmem:[#allocation11 + $0x1460] sm:$0xff]  ;;  %v3573_v25 = vrot.slane %v3293_v15, 2  ;;  %v3470_v33 = vld [vmem:[#allocation11 + $0x1558] sm:$0xff]  ;;  %v8307_v34 = vpack.c.bf16 %v3463_v40, %v3459_v38  ;;  %v8309_v15 = vpack.c.bf16 %v3472_v27, %v3468_v54  ;;  %v3489_v4 = vld [vmem:[#allocation11 + $0x15f0] sm:$0xff] }
 0x483   : > { %v8295_v9 = vpack.c.bf16 %v3439_v49, %v3435_v46  ;;  %v3473_v46 = vld [vmem:[#allocation11 + $0x1570] sm:$0xff]  ;;  %v3476_v49 = vld [vmem:[#allocation11 + $0x1588] sm:$0xff]  ;;  %v3506_v38 = vld [vmem:[#allocation11 + $0x1678] sm:$0xff] }
 0x484   : > { %8280 = vmatpush1.bf16.msra.mxu0 %v8279_v55  ;;  %v3444_v55 = vld [vmem:[#allocation11 + $0x1488] sm:$0xff]  ;;  %v3575_v35 = vsel %vm3563_vm2, %v3573_v25, %v3574_v53  ;;  %v3503_v54 = vld [vmem:[#allocation11 + $0x1660] sm:$0xff]  ;;  %v3501_v27 = vld [vmem:[#allocation11 + $0x1650] sm:$0xff] }
 0x485   : > { %8408 = vmatpush1.bf16.msra.mxu1 %v8407_v1  ;;  %8282 = vmatprep.subr.bf16.mxu0 %v8281_v57  ;;  %v3448_v1 = vld [vmem:[#allocation11 + $0x14a8] sm:$0xff]  ;;  %v3446_v57 = vld [vmem:[#allocation11 + $0x1498] sm:$0xff]  ;;  %v3521_v19 = vld [vmem:[#allocation11 + $0x16f0] sm:$0xff] }
 0x486   : > { %8410 = vmatprep.subr.bf16.mxu1 %v8409_v23  ;;  %v3577_v23 = vsel %vm3563_vm2, %v3565_v28, %v3576_v0  ;;  %v8297_v11 = vpack.c.bf16 %v3448_v1, %v3444_v55  ;;  %v8425_v18 = vpack.c.bf16 %v3450_v59, %v3446_v57  ;;  %v3469_v0 = vld [vmem:[#allocation11 + $0x1550] sm:$0xff]  ;;  %v8313_v1 = vpack.c.bf16 %v3480_v50, %v3476_v49  ;;  %v3475_v57 = vld [vmem:[#allocation11 + $0x1580] sm:$0xff] }
 0x487   : > { %v8439_v55 = vpack.c.bf16 %v3473_v46, %v3469_v0  ;;  %v3479_v59 = vld [vmem:[#allocation11 + $0x15a0] sm:$0xff]  ;;  %v3509_v50 = vld [vmem:[#allocation11 + $0x1690] sm:$0xff] }
 0x488   : > { %8284 = vmatpush1.bf16.msra.mxu0 %v8283_v12  ;;  %v3449_v12 = vld [vmem:[#allocation11 + $0x14b0] sm:$0xff]  ;;  %v3507_v46 = vld [vmem:[#allocation11 + $0x1680] sm:$0xff] }
 0x489   : > { %8412 = vmatpush1.bf16.msra.mxu1 %v8411_v16  ;;  %8286 = vmatprep.subr.bf16.mxu0 %v8285_v42  ;;  %v3452_v16 = vld [vmem:[#allocation11 + $0x14c8] sm:$0xff]  ;;  %v3511_v49 = vld [vmem:[#allocation11 + $0x16a0] sm:$0xff] }
 0x48a   : > { %8414 = vmatprep.subr.bf16.mxu1 %v8413_v5  ;;  %v3456_v42 = vld [vmem:[#allocation11 + $0x14e8] sm:$0xff]  ;;  %v8427_v5 = vpack.c.bf16 %v3449_v12, %v3445_v48  ;;  %v8315_v48 = vpack.c.bf16 %v3479_v59, %v3475_v57  ;;  %v3483_v12 = vld [vmem:[#allocation11 + $0x15c0] sm:$0xff]  ;;  %v3522_v57 = vld [vmem:[#allocation11 + $0x16f8] sm:$0xff]  ;;  %v8331_v59 = vpack.c.bf16 %v3511_v49, %v3507_v46 }
 0x48b   : > { %v8301_v17 = vpack.c.bf16 %v3456_v42, %v3452_v16  ;;  %v3487_v16 = vld [vmem:[#allocation11 + $0x15e0] sm:$0xff]  ;;  %v3485_v42 = vld [vmem:[#allocation11 + $0x15d0] sm:$0xff]  ;;  %v3554_v46 = vld [vmem:[#allocation11 + $0x17f8] sm:$0xff] }
 0x48c   : > { %8288 = vmatpush1.bf16.msra.mxu0 %v8287_v22  ;;  %v3457_v22 = vld [vmem:[#allocation11 + $0x14f0] sm:$0xff]  ;;  %v8319_v20 = vpack.c.bf16 %v3487_v16, %v3483_v12  ;;  %v3530_v12 = vld [vmem:[#allocation11 + $0x1738] sm:$0xff] }
 0x48d   : > { %8416 = vmatpush1.bf16.msra.mxu1 %v8415_v24  ;;  %8290 = vmatprep.subr.bf16.mxu0 %v8289_v8  ;;  %v3464_v24 = vld [vmem:[#allocation11 + $0x1528] sm:$0xff]  ;;  %v3466_v8 = vld [vmem:[#allocation11 + $0x1538] sm:$0xff]  ;;  %v8431_v28 = vpack.c.bf16 %v3457_v22, %v3453_v14  ;;  %v8447_v14 = vpack.c.bf16 %v3489_v4, %v3485_v42  ;;  %v3491_v22 = vld [vmem:[#allocation11 + $0x1600] sm:$0xff] }
 0x48e   : > { %8418 = vmatprep.subr.bf16.mxu1 %v8417_v29  ;;  %v8305_v29 = vpack.c.bf16 %v3464_v24, %v3460_v58  ;;  %v8433_v37 = vpack.c.bf16 %v3466_v8, %v3462_v26  ;;  %v3495_v58 = vld [vmem:[#allocation11 + $0x1620] sm:$0xff]  ;;  %v3493_v24 = vld [vmem:[#allocation11 + $0x1610] sm:$0xff] }
 0x48f   : > { %3657 = vmatmul.mubr.f32.vlgmr.msra.gmra.mrb[16].mxu0 %v3566_v6  ;;  %v3497_v8 = vld [vmem:[#allocation11 + $0x1630] sm:$0xff]  ;;  %v8323_v40 = vpack.c.bf16 %v3495_v58, %v3491_v22  ;;  %v3523_v4 = vld [vmem:[#allocation11 + $0x1700] sm:$0xff]  ;;  %v3538_v22 = vld [vmem:[#allocation11 + $0x1778] sm:$0xff] }
 0x490   : > { %3811 = vmatmul.mubr.f32.vlgmr.msra.gmra.mrb[16].mxu1 %v3566_v6  ;;  %3662 = vmatprep.mubr.f32.mxu0 %v3579_v51  ;;  %v3467_v6 = vld [vmem:[#allocation11 + $0x1540] sm:$0xff] }
 0x491   : > { %8292 = vmatpush1.bf16.msra.mxu0 %v8291_v13  ;;  %3816 = vmatprep.mubr.f32.mxu1 %v3579_v51  ;;  %v8435_v13 = vpack.c.bf16 %v3465_v32, %v3461_v3  ;;  %v3478_v51 = vld [vmem:[#allocation11 + $0x1598] sm:$0xff]  ;;  %v8451_v3 = vpack.c.bf16 %v3497_v8, %v3493_v24  ;;  %v3499_v32 = vld [vmem:[#allocation11 + $0x1640] sm:$0xff] }
 0x492   : > { %8420 = vmatpush1.bf16.msra.mxu1 %v8419_v56  ;;  %8294 = vmatprep.subr.bf16.mxu0 %v8293_v44  ;;  %v3471_v56 = vld [vmem:[#allocation11 + $0x1560] sm:$0xff]  ;;  %v8437_v44 = vpack.c.bf16 %v3474_v2, %v3470_v33  ;;  %v3505_v2 = vld [vmem:[#allocation11 + $0x1670] sm:$0xff] }
 0x493   : > { %3663 = vmatmul.mubr.f32.gmra.mrb[18].mxu0 %v3577_v23  ;;  %8422 = vmatprep.subr.bf16.mxu1 %v8421_v52  ;;  %v3482_v52 = vld [vmem:[#allocation11 + $0x15b8] sm:$0xff]  ;;  %v8311_v39 = vpack.c.bf16 %v3471_v56, %v3467_v6  ;;  %v8327_v56 = vpack.c.bf16 %v3503_v54, %v3499_v32  ;;  %v8455_v0 = vpack.c.bf16 %v3505_v2, %v3501_v27  ;;  %v3531_v8 = vld [vmem:[#allocation11 + $0x1740] sm:$0xff] }
 0x494   : > { %3817 = vmatmul.mubr.f32.gmra.mrb[18].mxu1 %v3577_v23  ;;  %3733 = vmatprep.mubr.f32.mxu0 %v3575_v35  ;;  %v8441_v25 = vpack.c.bf16 %v3482_v52, %v3478_v51  ;;  %v3481_v23 = vld [vmem:[#allocation11 + $0x15b0] sm:$0xff]  ;;  %v3514_v6 = vld [vmem:[#allocation11 + $0x16b8] sm:$0xff]  ;;  %v3539_v2 = vld [vmem:[#allocation11 + $0x1780] sm:$0xff] }
 0x495   : > { %8296 = vmatpush1.bf16.msra.mxu0 %v8295_v9  ;;  %3887 = vmatprep.mubr.f32.mxu1 %v3575_v35  ;;  %v3477_v9 = vld [vmem:[#allocation11 + $0x1590] sm:$0xff]  ;;  %v3546_v32 = vld [vmem:[#allocation11 + $0x17b8] sm:$0xff] }
 0x496   : > { %8424 = vmatpush1.bf16.msra.mxu1 %v8423_v43  ;;  %8298 = vmatprep.subr.bf16.mxu0 %v8297_v11  ;;  %v3484_v43 = vld [vmem:[#allocation11 + $0x15c8] sm:$0xff]  ;;  %v8443_v35 = vpack.c.bf16 %v3481_v23, %v3477_v9  ;;  %v3513_v52 = vld [vmem:[#allocation11 + $0x16b0] sm:$0xff]  ;;  %v3515_v23 = vld [vmem:[#allocation11 + $0x16c0] sm:$0xff] }
 0x497   : > { %8426 = vmatprep.subr.bf16.mxu1 %v8425_v18  ;;  %v3488_v11 = vld [vmem:[#allocation11 + $0x15e8] sm:$0xff]  ;;  %v8459_v9 = vpack.c.bf16 %v3513_v52, %v3509_v50  ;;  %v3547_v52 = vld [vmem:[#allocation11 + $0x17c0] sm:$0xff] }
 0x498   : > { %v8317_v18 = vpack.c.bf16 %v3488_v11, %v3484_v43  ;;  %v3519_v43 = vld [vmem:[#allocation11 + $0x16e0] sm:$0xff]  ;;  %v3517_v11 = vld [vmem:[#allocation11 + $0x16d0] sm:$0xff] }
 0x499   : > { %8300 = vmatpush1.bf16.msra.mxu0 %v8299_v30  ;;  %v3492_v30 = vld [vmem:[#allocation11 + $0x1608] sm:$0xff]  ;;  %v8335_v16 = vpack.c.bf16 %v3519_v43, %v3515_v23  ;;  %v8463_v42 = vpack.c.bf16 %v3521_v19, %v3517_v11  ;;  %v3953_v23 = vld [vmem:[#allocation14 + $0x38] sm:$0xff]  ;;  %v3297_v11 = vld [vmem:[#allocation3 + $0x58] sm:$0x3] }
 0x49a   : > { %8428 = vmatpush1.bf16.msra.mxu1 %v8427_v5  ;;  %8302 = vmatprep.subr.bf16.mxu0 %v8301_v17  ;;  %v3496_v5 = vld [vmem:[#allocation11 + $0x1628] sm:$0xff]  ;;  %v3494_v17 = vld [vmem:[#allocation11 + $0x1618] sm:$0xff] }
 0x49b   : > { %8430 = vmatprep.subr.bf16.mxu1 %v8429_v21  ;;  %v8321_v21 = vpack.c.bf16 %v3496_v5, %v3492_v30  ;;  %v8449_v26 = vpack.c.bf16 %v3498_v61, %v3494_v17  ;;  %v3527_v30 = vld [vmem:[#allocation11 + $0x1720] sm:$0xff]  ;;  %v3525_v5 = vld [vmem:[#allocation11 + $0x1710] sm:$0xff] }
 0x49c   : > { %v3529_v61 = vld [vmem:[#allocation11 + $0x1730] sm:$0xff]  ;;  %v8339_v58 = vpack.c.bf16 %v3527_v30, %v3523_v4  ;;  %v3582_v4 = vrot.slane %v3297_v11, 2 }
 0x49d   : > { %8304 = vmatpush1.bf16.msra.mxu0 %v8303_v45  ;;  %v3500_v45 = vld [vmem:[#allocation11 + $0x1648] sm:$0xff]  ;;  %v8467_v24 = vpack.c.bf16 %v3529_v61, %v3525_v5  ;;  %v3952_v30 = vld [vmem:[#allocation14 + $0x30] sm:$0xff] }
 0x49e   : > { %8432 = vmatpush1.bf16.msra.mxu1 %v8431_v28  ;;  %8306 = vmatprep.subr.bf16.mxu0 %v8305_v29  ;;  %v3504_v28 = vld [vmem:[#allocation11 + $0x1668] sm:$0xff]  ;;  %v3502_v29 = vld [vmem:[#allocation11 + $0x1658] sm:$0xff] }
 0x49f   : > { %8434 = vmatprep.subr.bf16.mxu1 %v8433_v37  ;;  %v8325_v37 = vpack.c.bf16 %v3504_v28, %v3500_v45  ;;  %v8453_v33 = vpack.c.bf16 %v3506_v38, %v3502_v29  ;;  %v3535_v45 = vld [vmem:[#allocation11 + $0x1760] sm:$0xff]  ;;  %v3533_v28 = vld [vmem:[#allocation11 + $0x1750] sm:$0xff] }
 0x4a0   : > { %v3537_v38 = vld [vmem:[#allocation11 + $0x1770] sm:$0xff]  ;;  %v8343_v54 = vpack.c.bf16 %v3535_v45, %v3531_v8  ;;  %v3958_v8 = vld [vmem:[#allocation14 + $0x60] sm:$0xff] }
 0x4a1   : > { %8308 = vmatpush1.bf16.msra.mxu0 %v8307_v34  ;;  %v3508_v34 = vld [vmem:[#allocation11 + $0x1688] sm:$0xff]  ;;  %v8471_v27 = vpack.c.bf16 %v3537_v38, %v3533_v28  ;;  %v3956_v45 = vld [vmem:[#allocation14 + $0x50] sm:$0xff]  ;;  %v3583_v28 = vsel %vm3563_vm2, %v3574_v53, %v3582_v4 }
 0x4a2   : > { %8436 = vmatpush1.bf16.msra.mxu1 %v8435_v13  ;;  %8310 = vmatprep.subr.bf16.mxu0 %v8309_v15  ;;  %v3512_v13 = vld [vmem:[#allocation11 + $0x16a8] sm:$0xff]  ;;  %v3510_v15 = vld [vmem:[#allocation11 + $0x1698] sm:$0xff] }
 0x4a3   : > { %8438 = vmatprep.subr.bf16.mxu1 %v8437_v44  ;;  %v8329_v44 = vpack.c.bf16 %v3512_v13, %v3508_v34  ;;  %v8457_v51 = vpack.c.bf16 %v3514_v6, %v3510_v15  ;;  %v3543_v34 = vld [vmem:[#allocation11 + $0x17a0] sm:$0xff]  ;;  %v3541_v13 = vld [vmem:[#allocation11 + $0x1790] sm:$0xff] }
 0x4a4   : > { %v3545_v6 = vld [vmem:[#allocation11 + $0x17b0] sm:$0xff]  ;;  %v8347_v49 = vpack.c.bf16 %v3543_v34, %v3539_v2  ;;  %v3966_v34 = vld [vmem:[#allocation14 + $0xa0] sm:$0xff] }
 0x4a5   : > { %8312 = vmatpush1.bf16.msra.mxu0 %v8311_v39  ;;  %v3516_v39 = vld [vmem:[#allocation11 + $0x16c8] sm:$0xff]  ;;  %v8475_v50 = vpack.c.bf16 %v3545_v6, %v3541_v13  ;;  %v3960_v38 = vld [vmem:[#allocation14 + $0x70] sm:$0xff] }
 0x4a6   : > { %8440 = vmatpush1.bf16.msra.mxu1 %v8439_v55  ;;  %8314 = vmatprep.subr.bf16.mxu0 %v8313_v1  ;;  %v3520_v55 = vld [vmem:[#allocation11 + $0x16e8] sm:$0xff]  ;;  %v3518_v1 = vld [vmem:[#allocation11 + $0x16d8] sm:$0xff] }
 0x4a7   : > { %8442 = vmatprep.subr.bf16.mxu1 %v8441_v25  ;;  %v8333_v25 = vpack.c.bf16 %v3520_v55, %v3516_v39  ;;  %v8461_v10 = vpack.c.bf16 %v3522_v57, %v3518_v1  ;;  %v3551_v39 = vld [vmem:[#allocation11 + $0x17e0] sm:$0xff]  ;;  %v3549_v55 = vld [vmem:[#allocation11 + $0x17d0] sm:$0xff] }
 0x4a8   : > { %v3553_v57 = vld [vmem:[#allocation11 + $0x17f0] sm:$0xff]  ;;  %v8351_v43 = vpack.c.bf16 %v3551_v39, %v3547_v52  ;;  %v3974_v52 = vld [vmem:[#allocation14 + $0xe0] sm:$0xff] }
 0x4a9   : > { %8316 = vmatpush1.bf16.msra.mxu0 %v8315_v48  ;;  %v3524_v48 = vld [vmem:[#allocation11 + $0x1708] sm:$0xff]  ;;  %v3964_v53 = vld [vmem:[#allocation14 + $0x90] sm:$0xff] }
 0x4aa   : > { %8444 = vmatpush1.bf16.msra.mxu1 %v8443_v35  ;;  %8318 = vmatprep.subr.bf16.mxu0 %v8317_v18  ;;  %v3528_v35 = vld [vmem:[#allocation11 + $0x1728] sm:$0xff]  ;;  %v3526_v18 = vld [vmem:[#allocation11 + $0x1718] sm:$0xff] }
 0x4ab   : > { %8446 = vmatprep.subr.bf16.mxu1 %v8445_v31  ;;  %v8337_v31 = vpack.c.bf16 %v3528_v35, %v3524_v48  ;;  %v8465_v17 = vpack.c.bf16 %v3530_v12, %v3526_v18  ;;  %v3292_v19 = vld [vmem:[#allocation3 + $0x10] sm:$0xfc]  ;;  %v3296_v48 = vld [vmem:[#allocation3 + $0x50] sm:$0x3]  ;;  %v3571_v18 = vrot.slane %v10472_v7, 2  ;;  %v3972_v39 = vld [vmem:[#allocation14 + $0xd0] sm:$0xff] }
 0x4ac   : > { %v3955_v5 = vld [vmem:[#allocation14 + $0x48] sm:$0xff]  ;;  %v3570_v61 = vrot.slane %v3292_v19, 2  ;;  %v3982_v19 = vld [vmem:[#allocation14 + $0x120] sm:$0xff] }
 0x4ad   : > { %8320 = vmatpush1.bf16.msra.mxu0 %v8319_v20  ;;  %v3532_v20 = vld [vmem:[#allocation11 + $0x1748] sm:$0xff] }
 0x4ae   : > { %8448 = vmatpush1.bf16.msra.mxu1 %v8447_v14  ;;  %8322 = vmatprep.subr.bf16.mxu0 %v8321_v21  ;;  %v3536_v14 = vld [vmem:[#allocation11 + $0x1768] sm:$0xff]  ;;  %v3534_v21 = vld [vmem:[#allocation11 + $0x1758] sm:$0xff] }
 0x4af   : > { %8450 = vmatprep.subr.bf16.mxu1 %v8449_v26  ;;  %v8341_v26 = vpack.c.bf16 %v3536_v14, %v3532_v20  ;;  %v8469_v29 = vpack.c.bf16 %v3538_v22, %v3534_v21  ;;  %v3957_v20 = vld [vmem:[#allocation14 + $0x58] sm:$0xff]  ;;  %v3572_v22 = vsel %vm3563_vm2, %v3570_v61, %v3571_v18  ;;  %v3971_v6 = vld [vmem:[#allocation14 + $0xc8] sm:$0xff]  ;;  %v3990_v61 = vld [vmem:[#allocation14 + $0x160] sm:$0xff] }
 0x4b0   : > { %v3961_v14 = vld [vmem:[#allocation14 + $0x78] sm:$0xff] }
 0x4b1   : > { %8324 = vmatpush1.bf16.msra.mxu0 %v8323_v40  ;;  %v3540_v40 = vld [vmem:[#allocation11 + $0x1788] sm:$0xff] }
 0x4b2   : > { %8452 = vmatpush1.bf16.msra.mxu1 %v8451_v3  ;;  %8326 = vmatprep.subr.bf16.mxu0 %v8325_v37  ;;  %v3544_v3 = vld [vmem:[#allocation11 + $0x17a8] sm:$0xff]  ;;  %v3542_v37 = vld [vmem:[#allocation11 + $0x1798] sm:$0xff] }
 0x4b3   : > { %8454 = vmatprep.subr.bf16.mxu1 %v8453_v33  ;;  %v8345_v33 = vpack.c.bf16 %v3544_v3, %v3540_v40  ;;  %v8473_v15 = vpack.c.bf16 %v3546_v32, %v3542_v37  ;;  %v3963_v40 = vld [vmem:[#allocation14 + $0x88] sm:$0xff]  ;;  %v3965_v37 = vld [vmem:[#allocation14 + $0x98] sm:$0xff] }
 0x4b4   : > { %v3967_v3 = vld [vmem:[#allocation14 + $0xa8] sm:$0xff]  ;;  %v3969_v32 = vld [vmem:[#allocation14 + $0xb8] sm:$0xff] }
 0x4b5   : > { %8328 = vmatpush1.bf16.msra.mxu0 %v8327_v56  ;;  %v3548_v56 = vld [vmem:[#allocation11 + $0x17c8] sm:$0xff]  ;;  %v8489_v2 = vpack.c.bf16 %v3967_v3, %v3963_v40  ;;  %v8617_v13 = vpack.c.bf16 %v3969_v32, %v3965_v37  ;;  %v4000_v3 = vld [vmem:[#allocation14 + $0x1b0] sm:$0xff] }
 0x4b6   : > { %8456 = vmatpush1.bf16.msra.mxu1 %v8455_v0  ;;  %8330 = vmatprep.subr.bf16.mxu0 %v8329_v44  ;;  %v3552_v0 = vld [vmem:[#allocation11 + $0x17e8] sm:$0xff]  ;;  %v3550_v44 = vld [vmem:[#allocation11 + $0x17d8] sm:$0xff] }
 0x4b7   : > { %8458 = vmatprep.subr.bf16.mxu1 %v8457_v51  ;;  %v8349_v51 = vpack.c.bf16 %v3552_v0, %v3548_v56  ;;  %v8477_v1 = vpack.c.bf16 %v3554_v46, %v3550_v44  ;;  %v3975_v56 = vld [vmem:[#allocation14 + $0xe8] sm:$0xff]  ;;  %v3973_v0 = vld [vmem:[#allocation14 + $0xd8] sm:$0xff]  ;;  %v8491_v46 = vpack.c.bf16 %v3966_v34, %v3962_v47  ;;  %v4002_v34 = vld [vmem:[#allocation14 + $0x1c0] sm:$0xff] }
 0x4b8   : > { %v3977_v44 = vld [vmem:[#allocation14 + $0xf8] sm:$0xff]  ;;  %v4003_v37 = vld [vmem:[#allocation14 + $0x1c8] sm:$0xff] }
 0x4b9   : > { %8332 = vmatpush1.bf16.msra.mxu0 %v8331_v59  ;;  %v3947_v59 = vld [vmem:[#allocation14 + $0x8] sm:$0xff] }
 0x4ba   : > { %8460 = vmatpush1.bf16.msra.mxu1 %v8459_v9  ;;  %8334 = vmatprep.subr.bf16.mxu0 %v8333_v25  ;;  %v3951_v9 = vld [vmem:[#allocation14 + $0x28] sm:$0xff]  ;;  %v3949_v25 = vld [vmem:[#allocation14 + $0x18] sm:$0xff] }
 0x4bb   : > { %8462 = vmatprep.subr.bf16.mxu1 %v8461_v10  ;;  %v8479_v10 = vpack.c.bf16 %v3553_v57, %v3549_v55  ;;  %v8481_v35 = vpack.c.bf16 %v3951_v9, %v3947_v59  ;;  %v8609_v12 = vpack.c.bf16 %v3953_v23, %v3949_v25  ;;  %v8621_v55 = vpack.c.bf16 %v3977_v44, %v3973_v0  ;;  %v3979_v57 = vld [vmem:[#allocation14 + $0x108] sm:$0xff]  ;;  %v3981_v9 = vld [vmem:[#allocation14 + $0x118] sm:$0xff] }
 0x4bc   : > { %v3983_v59 = vld [vmem:[#allocation14 + $0x128] sm:$0xff]  ;;  %v3985_v25 = vld [vmem:[#allocation14 + $0x138] sm:$0xff] }
 0x4bd   : > { %8336 = vmatpush1.bf16.msra.mxu0 %v8335_v16  ;;  %v3946_v16 = vld [vmem:[#allocation14] sm:$0xff]  ;;  %v8497_v11 = vpack.c.bf16 %v3983_v59, %v3979_v57  ;;  %v4007_v32 = vld [vmem:[#allocation14 + $0x1e8] sm:$0xff]  ;;  %v4013_v44 = vld [vmem:[#allocation14 + $0x218] sm:$0xff] }
 0x4be   : > { %8464 = vmatpush1.bf16.msra.mxu1 %v8463_v42  ;;  %8338 = vmatprep.subr.bf16.mxu0 %v8337_v31  ;;  %v3950_v42 = vld [vmem:[#allocation14 + $0x20] sm:$0xff]  ;;  %v3948_v31 = vld [vmem:[#allocation14 + $0x10] sm:$0xff]  ;;  %v8509_v47 = vpack.c.bf16 %v4007_v32, %v4003_v37  ;;  %v4015_v0 = vld [vmem:[#allocation14 + $0x228] sm:$0xff] }
 0x4bf   : > { %8466 = vmatprep.subr.bf16.mxu1 %v8465_v17  ;;  %v3959_v17 = vld [vmem:[#allocation14 + $0x68] sm:$0xff]  ;;  %v8483_v21 = vpack.c.bf16 %v3950_v42, %v3946_v16  ;;  %v8611_v7 = vpack.c.bf16 %v3952_v30, %v3948_v31  ;;  %v3989_v42 = vld [vmem:[#allocation14 + $0x158] sm:$0xff]  ;;  %v4016_v57 = vld [vmem:[#allocation14 + $0x230] sm:$0xff] }
 0x4c0   : > { %v3991_v16 = vld [vmem:[#allocation14 + $0x168] sm:$0xff]  ;;  %v3993_v31 = vld [vmem:[#allocation14 + $0x178] sm:$0xff]  ;;  %v4040_v37 = vld [vmem:[#allocation14 + $0x2f0] sm:$0xff] }
 0x4c1   : > { %8340 = vmatpush1.bf16.msra.mxu0 %v8339_v58  ;;  %v3580_v58 = vrot.slane %v3296_v48, 2  ;;  %v3980_v48 = vld [vmem:[#allocation14 + $0x110] sm:$0xff]  ;;  %v4019_v59 = vld [vmem:[#allocation14 + $0x248] sm:$0xff] }
 0x4c2   : > { %8468 = vmatpush1.bf16.msra.mxu1 %v8467_v24  ;;  %8342 = vmatprep.subr.bf16.mxu0 %v8341_v26  ;;  %v8485_v24 = vpack.c.bf16 %v3959_v17, %v3955_v5  ;;  %v3954_v26 = vld [vmem:[#allocation14 + $0x40] sm:$0xff]  ;;  %v4043_v32 = vld [vmem:[#allocation14 + $0x308] sm:$0xff] }
 0x4c3   : > { %8470 = vmatprep.subr.bf16.mxu1 %v8469_v29  ;;  %v8613_v29 = vpack.c.bf16 %v3961_v14, %v3957_v20  ;;  %v3986_v17 = vld [vmem:[#allocation14 + $0x140] sm:$0xff]  ;;  %v3988_v20 = vld [vmem:[#allocation14 + $0x150] sm:$0xff]  ;;  %v8629_v14 = vpack.c.bf16 %v3993_v31, %v3989_v42  ;;  %v4031_v42 = vld [vmem:[#allocation14 + $0x2a8] sm:$0xff] }
 0x4c4   : > { %v4029_v31 = vld [vmem:[#allocation14 + $0x298] sm:$0xff] }
 0x4c5   : > { %8344 = vmatpush1.bf16.msra.mxu0 %v8343_v54  ;;  %v8487_v54 = vpack.c.bf16 %v3958_v8, %v3954_v26  ;;  %v8503_v26 = vpack.c.bf16 %v3990_v61, %v3986_v17  ;;  %v4026_v61 = vld [vmem:[#allocation14 + $0x280] sm:$0xff] }
 0x4c6   : > { %8472 = vmatpush1.bf16.msra.mxu1 %v8471_v27  ;;  %8346 = vmatprep.subr.bf16.mxu0 %v8345_v33  ;;  %v3581_v27 = vsel %vm3563_vm2, %v3571_v18, %v3580_v58  ;;  %v8615_v33 = vpack.c.bf16 %v3960_v38, %v3956_v45  ;;  %v3984_v18 = vld [vmem:[#allocation14 + $0x130] sm:$0xff]  ;;  %v3999_v58 = vld [vmem:[#allocation14 + $0x1a8] sm:$0xff] }
 0x4c7   : > { %8474 = vmatprep.subr.bf16.mxu1 %v8473_v15  ;;  %v3968_v15 = vld [vmem:[#allocation14 + $0xb0] sm:$0xff]  ;;  %v8627_v30 = vpack.c.bf16 %v3984_v18, %v3980_v48  ;;  %v4022_v48 = vld [vmem:[#allocation14 + $0x260] sm:$0xff] }
 0x4c8   : > { %v3996_v38 = vld [vmem:[#allocation14 + $0x190] sm:$0xff] }
 0x4c9   : > { %8348 = vmatpush1.bf16.msra.mxu0 %v8347_v49  ;;  %v8619_v49 = vpack.c.bf16 %v3968_v15, %v3964_v53  ;;  %v4006_v53 = vld [vmem:[#allocation14 + $0x1e0] sm:$0xff] }
 0x4ca   : > { %8476 = vmatpush1.bf16.msra.mxu1 %v8475_v50  ;;  %8350 = vmatprep.subr.bf16.mxu0 %v8349_v51  ;;  %v8493_v50 = vpack.c.bf16 %v3975_v56, %v3971_v6  ;;  %v3970_v51 = vld [vmem:[#allocation14 + $0xc0] sm:$0xff]  ;;  %v4008_v6 = vld [vmem:[#allocation14 + $0x1f0] sm:$0xff]  ;;  %v4011_v56 = vld [vmem:[#allocation14 + $0x208] sm:$0xff] }
 0x4cb   : > { %8478 = vmatprep.subr.bf16.mxu1 %v8477_v1  ;;  %v3976_v1 = vld [vmem:[#allocation14 + $0xf0] sm:$0xff]  ;;  %v8495_v23 = vpack.c.bf16 %v3974_v52, %v3970_v51  ;;  %v8513_v51 = vpack.c.bf16 %v4015_v0, %v4011_v56  ;;  %v4010_v52 = vld [vmem:[#allocation14 + $0x200] sm:$0xff]  ;;  %v4051_v0 = vld [vmem:[#allocation14 + $0x348] sm:$0xff] }
 0x4cc   : > { %v4048_v56 = vld [vmem:[#allocation14 + $0x330] sm:$0xff] }
 0x4cd   : > { %8352 = vmatpush1.bf16.msra.mxu0 %v8351_v43  ;;  %v8623_v43 = vpack.c.bf16 %v3976_v1, %v3972_v39  ;;  %v4014_v39 = vld [vmem:[#allocation14 + $0x220] sm:$0xff] }
 0x4ce   : > { %8480 = vmatpush1.bf16.msra.mxu1 %v8479_v10  ;;  %8482 = vmatprep.subr.bf16.mxu0 %v8481_v35  ;;  %v3978_v10 = vld [vmem:[#allocation14 + $0x100] sm:$0xff]  ;;  %v8625_v35 = vpack.c.bf16 %v3985_v25, %v3981_v9  ;;  %v4023_v9 = vld [vmem:[#allocation14 + $0x268] sm:$0xff]  ;;  %v4021_v25 = vld [vmem:[#allocation14 + $0x258] sm:$0xff] }
 0x4cf   : > { %8610 = vmatprep.subr.bf16.mxu1 %v8609_v12  ;;  %v3987_v12 = vld [vmem:[#allocation14 + $0x148] sm:$0xff]  ;;  %v8499_v4 = vpack.c.bf16 %v3982_v19, %v3978_v10  ;;  %v8517_v10 = vpack.c.bf16 %v4023_v9, %v4019_v59  ;;  %v4018_v19 = vld [vmem:[#allocation14 + $0x240] sm:$0xff]  ;;  %v4056_v59 = vld [vmem:[#allocation14 + $0x370] sm:$0xff] }
 0x4d0   : > { %3734 = vmatmul.mubr.f32.vlgmr.msra.gmra.mrb[16].mxu0 %v3572_v22  ;;  %v8501_v5 = vpack.c.bf16 %v3991_v16, %v3987_v12  ;;  %v4024_v12 = vld [vmem:[#allocation14 + $0x270] sm:$0xff]  ;;  %v4027_v16 = vld [vmem:[#allocation14 + $0x288] sm:$0xff] }
 0x4d1   : > { %3888 = vmatmul.mubr.f32.vlgmr.msra.gmra.mrb[16].mxu1 %v3572_v22  ;;  %3739 = vmatprep.mubr.f32.mxu0 %v3583_v28  ;;  %v3995_v22 = vld [vmem:[#allocation14 + $0x188] sm:$0xff]  ;;  %v8521_v17 = vpack.c.bf16 %v4031_v42, %v4027_v16  ;;  %v4064_v16 = vld [vmem:[#allocation14 + $0x3b0] sm:$0xff] }
 0x4d2   : > { %3893 = vmatprep.mubr.f32.mxu1 %v3583_v28  ;;  %8484 = vmatpush1.bf16.msra.mxu0 %v8483_v21  ;;  %v3992_v21 = vld [vmem:[#allocation14 + $0x170] sm:$0xff]  ;;  %v8505_v45 = vpack.c.bf16 %v3999_v58, %v3995_v22  ;;  %v3994_v28 = vld [vmem:[#allocation14 + $0x180] sm:$0xff]  ;;  %v4035_v58 = vld [vmem:[#allocation14 + $0x2c8] sm:$0xff] }
 0x4d3   : > { %8612 = vmatpush1.bf16.msra.mxu1 %v8611_v7  ;;  %8486 = vmatprep.subr.bf16.mxu0 %v8485_v24  ;;  %v3997_v7 = vld [vmem:[#allocation14 + $0x198] sm:$0xff]  ;;  %v8631_v8 = vpack.c.bf16 %v3992_v21, %v3988_v20  ;;  %v4030_v20 = vld [vmem:[#allocation14 + $0x2a0] sm:$0xff]  ;;  %v4032_v22 = vld [vmem:[#allocation14 + $0x2b0] sm:$0xff] }
 0x4d4   : > { %3740 = vmatmul.mubr.f32.gmra.mrb[18].mxu0 %v3581_v27  ;;  %8614 = vmatprep.subr.bf16.mxu1 %v8613_v29  ;;  %v4001_v24 = vld [vmem:[#allocation14 + $0x1b8] sm:$0xff]  ;;  %v3998_v29 = vld [vmem:[#allocation14 + $0x1a0] sm:$0xff]  ;;  %v4059_v9 = vld [vmem:[#allocation14 + $0x388] sm:$0xff] }
 0x4d5   : > { %3894 = vmatmul.mubr.f32.gmra.mrb[18].mxu1 %v3581_v27  ;;  %v8633_v40 = vpack.c.bf16 %v4001_v24, %v3997_v7  ;;  %v4009_v27 = vld [vmem:[#allocation14 + $0x1f8] sm:$0xff]  ;;  %v4039_v7 = vld [vmem:[#allocation14 + $0x2e8] sm:$0xff] }
 0x4d6   : > { %8488 = vmatpush1.bf16.msra.mxu0 %v8487_v54  ;;  %v4005_v54 = vld [vmem:[#allocation14 + $0x1d8] sm:$0xff] }
 0x4d7   : > { %8616 = vmatpush1.bf16.msra.mxu1 %v8615_v33  ;;  %8490 = vmatprep.subr.bf16.mxu0 %v8489_v2  ;;  %v8507_v33 = vpack.c.bf16 %v3998_v29, %v3994_v28  ;;  %v8635_v2 = vpack.c.bf16 %v4000_v3, %v3996_v38  ;;  %v8637_v15 = vpack.c.bf16 %v4009_v27, %v4005_v54  ;;  %v4037_v24 = vld [vmem:[#allocation14 + $0x2d8] sm:$0xff]  ;;  %v4034_v29 = vld [vmem:[#allocation14 + $0x2c0] sm:$0xff]  ;;  %v4047_v54 = vld [vmem:[#allocation14 + $0x328] sm:$0xff] }
 0x4d8   : > { %8618 = vmatprep.subr.bf16.mxu1 %v8617_v13  ;;  %v4004_v13 = vld [vmem:[#allocation14 + $0x1d0] sm:$0xff]  ;;  %v8525_v28 = vpack.c.bf16 %v4039_v7, %v4035_v58  ;;  %v4038_v38 = vld [vmem:[#allocation14 + $0x2e0] sm:$0xff]  ;;  %v4045_v27 = vld [vmem:[#allocation14 + $0x318] sm:$0xff] }
 0x4d9   : > { %v4068_v58 = vld [vmem:[#allocation14 + $0x3d0] sm:$0xff] }
 0x4da   : > { %8492 = vmatpush1.bf16.msra.mxu0 %v8491_v46  ;;  %v4017_v46 = vld [vmem:[#allocation14 + $0x238] sm:$0xff]  ;;  %v4072_v7 = vld [vmem:[#allocation14 + $0x3f0] sm:$0xff] }
 0x4db   : > { %8620 = vmatpush1.bf16.msra.mxu1 %v8619_v49  ;;  %8494 = vmatprep.subr.bf16.mxu0 %v8493_v50  ;;  %v8511_v49 = vpack.c.bf16 %v4006_v53, %v4002_v34  ;;  %v8639_v50 = vpack.c.bf16 %v4008_v6, %v4004_v13  ;;  %v8641_v1 = vpack.c.bf16 %v4017_v46, %v4013_v44  ;;  %v4042_v53 = vld [vmem:[#allocation14 + $0x300] sm:$0xff]  ;;  %v4055_v44 = vld [vmem:[#allocation14 + $0x368] sm:$0xff]  ;;  %v4053_v46 = vld [vmem:[#allocation14 + $0x358] sm:$0xff] }
 0x4dc   : > { %8622 = vmatprep.subr.bf16.mxu1 %v8621_v55  ;;  %v4012_v55 = vld [vmem:[#allocation14 + $0x210] sm:$0xff]  ;;  %v8529_v34 = vpack.c.bf16 %v4047_v54, %v4043_v32  ;;  %v4046_v13 = vld [vmem:[#allocation14 + $0x320] sm:$0xff] }
 0x4de   : > { %8496 = vmatpush1.bf16.msra.mxu0 %v8495_v23  ;;  %v4025_v23 = vld [vmem:[#allocation14 + $0x278] sm:$0xff] }
 0x4df   : > { %8624 = vmatpush1.bf16.msra.mxu1 %v8623_v43  ;;  %8498 = vmatprep.subr.bf16.mxu0 %v8497_v11  ;;  %v8515_v43 = vpack.c.bf16 %v4014_v39, %v4010_v52  ;;  %v8643_v11 = vpack.c.bf16 %v4016_v57, %v4012_v55  ;;  %v8645_v18 = vpack.c.bf16 %v4025_v23, %v4021_v25  ;;  %v4050_v39 = vld [vmem:[#allocation14 + $0x340] sm:$0xff]  ;;  %v4063_v25 = vld [vmem:[#allocation14 + $0x3a8] sm:$0xff]  ;;  %v4061_v23 = vld [vmem:[#allocation14 + $0x398] sm:$0xff] }
 0x4e0   : > { %8626 = vmatprep.subr.bf16.mxu1 %v8625_v35  ;;  %v4020_v35 = vld [vmem:[#allocation14 + $0x250] sm:$0xff]  ;;  %v8533_v52 = vpack.c.bf16 %v4055_v44, %v4051_v0  ;;  %v4054_v55 = vld [vmem:[#allocation14 + $0x360] sm:$0xff]  ;;  %v4087_v44 = vld [vmem:[#allocation14 + $0x468] sm:$0xff] }
 0x4e2   : > { %8500 = vmatpush1.bf16.msra.mxu0 %v8499_v4  ;;  %v4033_v4 = vld [vmem:[#allocation14 + $0x2b8] sm:$0xff] }
 0x4e3   : > { %8628 = vmatpush1.bf16.msra.mxu1 %v8627_v30  ;;  %8502 = vmatprep.subr.bf16.mxu0 %v8501_v5  ;;  %v8519_v30 = vpack.c.bf16 %v4022_v48, %v4018_v19  ;;  %v8647_v5 = vpack.c.bf16 %v4024_v12, %v4020_v35  ;;  %v8649_v21 = vpack.c.bf16 %v4033_v4, %v4029_v31  ;;  %v4058_v48 = vld [vmem:[#allocation14 + $0x380] sm:$0xff]  ;;  %v4060_v12 = vld [vmem:[#allocation14 + $0x390] sm:$0xff]  ;;  %v4067_v4 = vld [vmem:[#allocation14 + $0x3c8] sm:$0xff] }
 0x4e4   : > { %8630 = vmatprep.subr.bf16.mxu1 %v8629_v14  ;;  %v4028_v14 = vld [vmem:[#allocation14 + $0x290] sm:$0xff]  ;;  %v8537_v19 = vpack.c.bf16 %v4063_v25, %v4059_v9  ;;  %v4062_v35 = vld [vmem:[#allocation14 + $0x3a0] sm:$0xff]  ;;  %v8667_v31 = vpack.c.bf16 %v4064_v16, %v4060_v12  ;;  %v4091_v12 = vld [vmem:[#allocation14 + $0x488] sm:$0xff] }
 0x4e5   : > { %v8539_v42 = vpack.c.bf16 %v4062_v35, %v4058_v48 }
 0x4e6   : > { %8504 = vmatpush1.bf16.msra.mxu0 %v8503_v26  ;;  %v4041_v26 = vld [vmem:[#allocation14 + $0x2f8] sm:$0xff] }
 0x4e7   : > { %8632 = vmatpush1.bf16.msra.mxu1 %v8631_v8  ;;  %8506 = vmatprep.subr.bf16.mxu0 %v8505_v45  ;;  %v8523_v8 = vpack.c.bf16 %v4030_v20, %v4026_v61  ;;  %v8651_v45 = vpack.c.bf16 %v4032_v22, %v4028_v14  ;;  %v8653_v3 = vpack.c.bf16 %v4041_v26, %v4037_v24  ;;  %v4073_v61 = vld [vmem:[#allocation14 + $0x3f8] sm:$0xff]  ;;  %v4066_v20 = vld [vmem:[#allocation14 + $0x3c0] sm:$0xff]  ;;  %v4075_v26 = vld [vmem:[#allocation14 + $0x408] sm:$0xff] }
 0x4e8   : > { %8634 = vmatprep.subr.bf16.mxu1 %v8633_v40  ;;  %v4036_v40 = vld [vmem:[#allocation14 + $0x2d0] sm:$0xff]  ;;  %v4070_v14 = vld [vmem:[#allocation14 + $0x3e0] sm:$0xff]  ;;  %v8671_v24 = vpack.c.bf16 %v4072_v7, %v4068_v58  ;;  %v4099_v58 = vld [vmem:[#allocation14 + $0x4c8] sm:$0xff] }
 0x4e9   : > { %v8543_v22 = vpack.c.bf16 %v4070_v14, %v4066_v20  ;;  %v4094_v20 = vld [vmem:[#allocation14 + $0x4a0] sm:$0xff] }
 0x4ea   : > { %8508 = vmatpush1.bf16.msra.mxu0 %v8507_v33  ;;  %v4049_v33 = vld [vmem:[#allocation14 + $0x338] sm:$0xff] }
 0x4eb   : > { %8636 = vmatpush1.bf16.msra.mxu1 %v8635_v2  ;;  %8510 = vmatprep.subr.bf16.mxu0 %v8509_v47  ;;  %v8527_v2 = vpack.c.bf16 %v4038_v38, %v4034_v29  ;;  %v8655_v47 = vpack.c.bf16 %v4040_v37, %v4036_v40  ;;  %v8657_v6 = vpack.c.bf16 %v4049_v33, %v4045_v27  ;;  %v4081_v29 = vld [vmem:[#allocation14 + $0x438] sm:$0xff]  ;;  %v4074_v27 = vld [vmem:[#allocation14 + $0x400] sm:$0xff] }
 0x4ec   : > { %8638 = vmatprep.subr.bf16.mxu1 %v8637_v15  ;;  %v4044_v15 = vld [vmem:[#allocation14 + $0x310] sm:$0xff]  ;;  %v3908_v40 = vld [vmem:[#allocation13] sm:$0xf]  ;;  %v4078_v33 = vld [vmem:[#allocation14 + $0x420] sm:$0xff] }
 0x4ed   : > { %v3921_v37 = vrot.slane %v3908_v40, %v10265_v62  ;;  %v3917_v32 = vrot.slane %v3908_v40, %v10267_v63 }
 0x4ee   : > { %8512 = vmatpush1.bf16.msra.mxu0 %v8511_v49  ;;  %v4057_v49 = vld [vmem:[#allocation14 + $0x378] sm:$0xff] }
 0x4ef   : > { %8640 = vmatpush1.bf16.msra.mxu1 %v8639_v50  ;;  %8514 = vmatprep.subr.bf16.mxu0 %v8513_v51  ;;  %v8531_v50 = vpack.c.bf16 %v4046_v13, %v4042_v53  ;;  %v8659_v51 = vpack.c.bf16 %v4048_v56, %v4044_v15  ;;  %v8661_v57 = vpack.c.bf16 %v4057_v49, %v4053_v46  ;;  %v4076_v53 = vld [vmem:[#allocation14 + $0x410] sm:$0xff]  ;;  %v4083_v15 = vld [vmem:[#allocation14 + $0x448] sm:$0xff]  ;;  %v4085_v46 = vld [vmem:[#allocation14 + $0x458] sm:$0xff] }
 0x4f0   : > { %8642 = vmatprep.subr.bf16.mxu1 %v8641_v1  ;;  %v4052_v1 = vld [vmem:[#allocation14 + $0x350] sm:$0xff]  ;;  %v4089_v49 = vld [vmem:[#allocation14 + $0x478] sm:$0xff] }
 0x4f1   : > { %v4080_v13 = vld [vmem:[#allocation14 + $0x430] sm:$0xff] }
 0x4f2   : > { %8516 = vmatpush1.bf16.msra.mxu0 %v8515_v43  ;;  %v4065_v43 = vld [vmem:[#allocation14 + $0x3b8] sm:$0xff] }
 0x4f3   : > { %8644 = vmatpush1.bf16.msra.mxu1 %v8643_v11  ;;  %8518 = vmatprep.subr.bf16.mxu0 %v8517_v10  ;;  %v8535_v11 = vpack.c.bf16 %v4054_v55, %v4050_v39  ;;  %v8663_v10 = vpack.c.bf16 %v4056_v59, %v4052_v1  ;;  %v8547_v39 = vpack.c.bf16 %v4078_v33, %v4074_v27  ;;  %v4082_v1 = vld [vmem:[#allocation14 + $0x440] sm:$0xff]  ;;  %v4104_v27 = vld [vmem:[#allocation14 + $0x4f0] sm:$0xff]  ;;  %v4107_v33 = vld [vmem:[#allocation14 + $0x508] sm:$0xff] }
 0x4f4   : > { %8646 = vmatprep.subr.bf16.mxu1 %v8645_v18  ;;  %v8665_v18 = vpack.c.bf16 %v4065_v43, %v4061_v23  ;;  %v8675_v55 = vpack.c.bf16 %v4080_v13, %v4076_v53  ;;  %v8549_v23 = vpack.c.bf16 %v4087_v44, %v4083_v15  ;;  %v8677_v43 = vpack.c.bf16 %v4089_v49, %v4085_v46  ;;  %v4106_v15 = vld [vmem:[#allocation14 + $0x500] sm:$0xff]  ;;  %v4108_v46 = vld [vmem:[#allocation14 + $0x510] sm:$0xff] }
 0x4f5   : > { %v4112_v49 = vld [vmem:[#allocation14 + $0x530] sm:$0xff] }
 0x4f6   : > { %8520 = vmatpush1.bf16.msra.mxu0 %v8519_v30  ;;  %v4071_v30 = vld [vmem:[#allocation14 + $0x3e8] sm:$0xff] }
 0x4f7   : > { %8648 = vmatpush1.bf16.msra.mxu1 %v8647_v5  ;;  %8522 = vmatprep.subr.bf16.mxu0 %v8521_v17  ;;  %v4069_v5 = vld [vmem:[#allocation14 + $0x3d8] sm:$0xff]  ;;  %v8541_v17 = vpack.c.bf16 %v4071_v30, %v4067_v4 }
 0x4f8   : > { %8650 = vmatprep.subr.bf16.mxu1 %v8649_v21  ;;  %v8669_v21 = vpack.c.bf16 %v4073_v61, %v4069_v5  ;;  %v4097_v4 = vld [vmem:[#allocation14 + $0x4b8] sm:$0xff]  ;;  %v4090_v61 = vld [vmem:[#allocation14 + $0x480] sm:$0xff] }
 0x4fa   : > { %8524 = vmatpush1.bf16.msra.mxu0 %v8523_v8  ;;  %v4079_v8 = vld [vmem:[#allocation14 + $0x428] sm:$0xff] }
 0x4fb   : > { %8652 = vmatpush1.bf16.msra.mxu1 %v8651_v45  ;;  %8526 = vmatprep.subr.bf16.mxu0 %v8525_v28  ;;  %v4077_v45 = vld [vmem:[#allocation14 + $0x418] sm:$0xff]  ;;  %v8545_v28 = vpack.c.bf16 %v4079_v8, %v4075_v26  ;;  %v4103_v26 = vld [vmem:[#allocation14 + $0x4e8] sm:$0xff] }
 0x4fc   : > { %8654 = vmatprep.subr.bf16.mxu1 %v8653_v3  ;;  %v8673_v38 = vpack.c.bf16 %v4081_v29, %v4077_v45  ;;  %v3913_v3 = vrot.slane %v3908_v40, %v10261_v60  ;;  %v4101_v8 = vld [vmem:[#allocation14 + $0x4d8] sm:$0xff]  ;;  %v8555_v29 = vpack.c.bf16 %v4094_v20, %v4090_v61 }
 0x4fd   : > { %v4105_v45 = vld [vmem:[#allocation14 + $0x4f8] sm:$0xff] }
 0x4fe   : > { %8528 = vmatpush1.bf16.msra.mxu0 %v8527_v2 }
 0x4ff   : > { %8656 = vmatpush1.bf16.msra.mxu1 %v8655_v47  ;;  %8530 = vmatprep.subr.bf16.mxu0 %v8529_v34 }
 0x500   : > { %8658 = vmatprep.subr.bf16.mxu1 %v8657_v6 }
 0x502   : > { %8532 = vmatpush1.bf16.msra.mxu0 %v8531_v50  ;;  %v10501_v50 = vrot.slane %v3908_v40, %v10301_v41  ;;  %v4098_v40 = vld [vmem:[#allocation14 + $0x4c0] sm:$0xff] }
 0x503   : > { %8660 = vmatpush1.bf16.msra.mxu1 %v8659_v51  ;;  %8534 = vmatprep.subr.bf16.mxu0 %v8533_v52 }
 0x504   : > { %8662 = vmatprep.subr.bf16.mxu1 %v8661_v57 }
 0x506   : > { %8536 = vmatpush1.bf16.msra.mxu0 %v8535_v11  ;;  %v4086_v11 = vld [vmem:[#allocation14 + $0x460] sm:$0xff] }
 0x507   : > { %8664 = vmatpush1.bf16.msra.mxu1 %v8663_v10  ;;  %8538 = vmatprep.subr.bf16.mxu0 %v8537_v19  ;;  %v4084_v10 = vld [vmem:[#allocation14 + $0x450] sm:$0xff]  ;;  %v8551_v5 = vpack.c.bf16 %v4086_v11, %v4082_v1  ;;  %v4121_v1 = vld [vmem:[#allocation14 + $0x578] sm:$0xff] }
 0x508   : > { %8666 = vmatprep.subr.bf16.mxu1 %v8665_v18  ;;  %v4088_v19 = vld [vmem:[#allocation14 + $0x470] sm:$0xff] }
 0x50a   : > { %8540 = vmatpush1.bf16.msra.mxu0 %v8539_v42  ;;  %v4095_v42 = vld [vmem:[#allocation14 + $0x4a8] sm:$0xff] }
 0x50b   : > { %8668 = vmatpush1.bf16.msra.mxu1 %v8667_v31  ;;  %8542 = vmatprep.subr.bf16.mxu0 %v8541_v17  ;;  %v4093_v31 = vld [vmem:[#allocation14 + $0x498] sm:$0xff]  ;;  %v8679_v17 = vpack.c.bf16 %v4088_v19, %v4084_v10  ;;  %v8553_v7 = vpack.c.bf16 %v4095_v42, %v4091_v12  ;;  %v4116_v10 = vld [vmem:[#allocation14 + $0x550] sm:$0xff]  ;;  %v4127_v12 = vld [vmem:[#allocation14 + $0x5a8] sm:$0xff] }
 0x50c   : > { %8670 = vmatprep.subr.bf16.mxu1 %v8669_v21  ;;  %v4092_v21 = vld [vmem:[#allocation14 + $0x490] sm:$0xff]  ;;  %v4129_v42 = vld [vmem:[#allocation14 + $0x5b8] sm:$0xff] }
 0x50d   : > { %v4120_v19 = vld [vmem:[#allocation14 + $0x570] sm:$0xff] }
 0x50e   : > { %8544 = vmatpush1.bf16.msra.mxu0 %v8543_v22  ;;  %v4096_v22 = vld [vmem:[#allocation14 + $0x4b0] sm:$0xff] }
 0x50f   : > { %8672 = vmatpush1.bf16.msra.mxu1 %v8671_v24  ;;  %8546 = vmatprep.subr.bf16.mxu0 %v8545_v28  ;;  %v8681_v24 = vpack.c.bf16 %v4097_v4, %v4093_v31  ;;  %v8695_v4 = vpack.c.bf16 %v4120_v19, %v4116_v10  ;;  %v4155_v10 = vld [vmem:[#allocation14 + $0x688] sm:$0xff] }
 0x510   : > { %8674 = vmatprep.subr.bf16.mxu1 %v8673_v38  ;;  %v8683_v38 = vpack.c.bf16 %v4096_v22, %v4092_v21  ;;  %v4124_v21 = vld [vmem:[#allocation14 + $0x590] sm:$0xff]  ;;  %v4159_v19 = vld [vmem:[#allocation14 + $0x6a8] sm:$0xff] }
 0x511   : > { %v4128_v22 = vld [vmem:[#allocation14 + $0x5b0] sm:$0xff] }
 0x5a3   : > { %v3735_v54 = vpop.f32.mrb[16].mxu0 }
 0x5a4   : > { %v3930_v2 = vadd.f32 %v3913_v3, %v3735_v54  ;;  %v3889_v47 = vpop.f32.mrb[16].mxu1  ;;  %v3737_v34 = vpop.f32.mrb[17].mxu0  ;;  %v4100_v54 = vld [vmem:[#allocation14 + $0x4d0] sm:$0xff] }
 0x5a5   : > { %v10498_v6 = vadd.f32 %v3921_v37, %v3889_v47  ;;  %v3931_v56 = vadd.f32 %v3917_v32, %v3737_v34  ;;  %v3891_v0 = vpop.f32.mrb[17].mxu1  ;;  %v4109_v47 = vld [vmem:[#allocation14 + $0x518] sm:$0xff]  ;;  %v8687_v13 = vpack.c.bf16 %v4104_v27, %v4100_v54  ;;  %v4139_v54 = vld [vmem:[#allocation14 + $0x608] sm:$0xff] }
 0x5a6   : > { %v10505_v57 = vmax.f32 %v3930_v2, 0.0  ;;  %v3933_v16 = vadd.f32 %v10501_v50, %v3891_v0  ;;  %v4111_v2 = vld [vmem:[#allocation14 + $0x528] sm:$0xff]  ;;  %v4113_v34 = vld [vmem:[#allocation14 + $0x538] sm:$0xff] }
 0x5a7   : > { %v10503_v51 = vmax.f32 %v3931_v56, 0.0  ;;  %v3741_v52 = vpop.f32.mrb[18].mxu0  ;;  %v4110_v56 = vld [vmem:[#allocation14 + $0x520] sm:$0xff]  ;;  %v8561_v0 = vpack.c.bf16 %v4111_v2, %v4107_v33  ;;  %v8689_v44 = vpack.c.bf16 %v4113_v34, %v4109_v47  ;;  %v4143_v27 = vld [vmem:[#allocation14 + $0x628] sm:$0xff]  ;;  %v4141_v33 = vld [vmem:[#allocation14 + $0x618] sm:$0xff] }
 0x5a8   : > { %v3934_v59 = vadd.f32 %v3913_v3, %v3741_v52  ;;  %v3895_v9 = vpop.f32.mrb[18].mxu1  ;;  %v3743_v25 = vpop.f32.mrb[19].mxu0  ;;  %v10522_v28 = vmax.f32 %v3933_v16, 0.0  ;;  %v4102_v3 = vld [vmem:[#allocation14 + $0x4e0] sm:$0xff]  ;;  %v4115_v52 = vld [vmem:[#allocation14 + $0x548] sm:$0xff]  ;;  %v4125_v16 = vld [vmem:[#allocation14 + $0x598] sm:$0xff] }
 0x5a9   : > { %v10507_v48 = vadd.f32 %v3921_v37, %v3895_v9  ;;  %v3935_v35 = vadd.f32 %v3917_v32, %v3743_v25  ;;  %v10509_v18 = vpop.f32.mrb[19].mxu1  ;;  %4266 = vmatprep.mubr.f32.mxu0 %v10503_v51  ;;  %4420 = vmatprep.mubr.f32.mxu1 %v10503_v51  ;;  %v8557_v37 = vpack.c.bf16 %v4103_v26, %v4099_v58  ;;  %v4114_v25 = vld [vmem:[#allocation14 + $0x540] sm:$0xff]  ;;  %v4131_v58 = vld [vmem:[#allocation14 + $0x5c8] sm:$0xff]  ;;  %v4137_v26 = vld [vmem:[#allocation14 + $0x5f8] sm:$0xff] }
 0x5aa   : > { %4267 = vmatmul.mubr.f32.vlgmr.msra.gmra.mrb[20].mxu0 %v10505_v57  ;;  %4421 = vmatmul.mubr.f32.vlgmr.msra.gmra.mrb[20].mxu1 %v10505_v57  ;;  %v10518_v14 = vmax.f32 %v3934_v59, 0.0  ;;  %v8685_v32 = vpack.c.bf16 %v4105_v45, %v4101_v8  ;;  %v8559_v53 = vpack.c.bf16 %v4102_v3, %v4098_v40  ;;  %v8563_v59 = vpack.c.bf16 %v4110_v56, %v4106_v15  ;;  %v4145_v2 = vld [vmem:[#allocation14 + $0x638] sm:$0xff] }
 0x5ab   : > { %v10516_v30 = vmax.f32 %v3935_v35, 0.0  ;;  %8548 = vmatpush1.bf16.msra.mxu0 %v8547_v39  ;;  %8676 = vmatpush1.bf16.msra.mxu1 %v8675_v55  ;;  %v4119_v39 = vld [vmem:[#allocation14 + $0x568] sm:$0xff]  ;;  %v4117_v55 = vld [vmem:[#allocation14 + $0x558] sm:$0xff]  ;;  %v8691_v9 = vpack.c.bf16 %v4112_v49, %v4108_v46  ;;  %v8697_v20 = vpack.c.bf16 %v4129_v42, %v4125_v16  ;;  %v8699_v45 = vpack.c.bf16 %v4128_v22, %v4124_v21 }
 0x5ac   : > { %8550 = vmatprep.subr.bf16.mxu0 %v8549_v23  ;;  %8678 = vmatprep.subr.bf16.mxu1 %v8677_v43  ;;  %v4118_v23 = vld [vmem:[#allocation14 + $0x560] sm:$0xff]  ;;  %v8565_v43 = vpack.c.bf16 %v4119_v39, %v4115_v52  ;;  %v8693_v11 = vpack.c.bf16 %v4121_v1, %v4117_v55  ;;  %v4123_v35 = vld [vmem:[#allocation14 + $0x588] sm:$0xff]  ;;  %v8577_v15 = vpack.c.bf16 %v4143_v27, %v4139_v54  ;;  %v4149_v52 = vld [vmem:[#allocation14 + $0x658] sm:$0xff] }
 0x5ad   : > { %4272 = vmatprep.mubr.f32.mxu0 %v10516_v30  ;;  %4426 = vmatprep.mubr.f32.mxu1 %v10516_v30  ;;  %v8567_v31 = vpack.c.bf16 %v4118_v23, %v4114_v25  ;;  %v8569_v61 = vpack.c.bf16 %v4127_v12, %v4123_v35  ;;  %v8705_v56 = vpack.c.bf16 %v4145_v2, %v4141_v33  ;;  %v4147_v46 = vld [vmem:[#allocation14 + $0x648] sm:$0xff]  ;;  %v4153_v39 = vld [vmem:[#allocation14 + $0x678] sm:$0xff] }
 0x5ae   : > { %4273 = vmatmul.mubr.f32.gmra.mrb[22].mxu0 %v10518_v14  ;;  %4427 = vmatmul.mubr.f32.gmra.mrb[22].mxu1 %v10518_v14  ;;  %v4151_v49 = vld [vmem:[#allocation14 + $0x668] sm:$0xff]  ;;  %v8709_v23 = vpack.c.bf16 %v4153_v39, %v4149_v52  ;;  %v4157_v35 = vld [vmem:[#allocation14 + $0x698] sm:$0xff] }
 0x5af   : > { %8552 = vmatpush1.bf16.msra.mxu0 %v8551_v5  ;;  %8680 = vmatpush1.bf16.msra.mxu1 %v8679_v17  ;;  %v4122_v5 = vld [vmem:[#allocation14 + $0x580] sm:$0xff]  ;;  %v8581_v25 = vpack.c.bf16 %v4151_v49, %v4147_v46  ;;  %v4161_v12 = vld [vmem:[#allocation14 + $0x6b8] sm:$0xff]  ;;  %v4163_v21 = vld [vmem:[#allocation14 + $0x6c8] sm:$0xff] }
 0x5b0   : > { %4343 = vmatprep.mubr.f32.mxu0 %v10522_v28  ;;  %4497 = vmatprep.mubr.f32.mxu1 %v10522_v28  ;;  %v4126_v17 = vld [vmem:[#allocation14 + $0x5a0] sm:$0xff]  ;;  %v4167_v22 = vld [vmem:[#allocation14 + $0x6e8] sm:$0xff]  ;;  %v4173_v54 = vld [vmem:[#allocation14 + $0x718] sm:$0xff] }
 0x5b1   : > { %8554 = vmatprep.subr.bf16.mxu0 %v8553_v7  ;;  %8682 = vmatprep.subr.bf16.mxu1 %v8681_v24  ;;  %v4135_v7 = vld [vmem:[#allocation14 + $0x5e8] sm:$0xff]  ;;  %v4133_v24 = vld [vmem:[#allocation14 + $0x5d8] sm:$0xff]  ;;  %v8571_v8 = vpack.c.bf16 %v4126_v17, %v4122_v5  ;;  %v8585_v5 = vpack.c.bf16 %v4159_v19, %v4155_v10  ;;  %v8713_v17 = vpack.c.bf16 %v4161_v12, %v4157_v35 }
 0x5b2   : > { %v8573_v40 = vpack.c.bf16 %v4135_v7, %v4131_v58  ;;  %v8701_v3 = vpack.c.bf16 %v4137_v26, %v4133_v24  ;;  %v4165_v58 = vld [vmem:[#allocation14 + $0x6d8] sm:$0xff] }
 0x5b3   : > { %8556 = vmatpush1.bf16.msra.mxu0 %v8555_v29  ;;  %8684 = vmatpush1.bf16.msra.mxu1 %v8683_v38  ;;  %v4130_v29 = vld [vmem:[#allocation14 + $0x5c0] sm:$0xff]  ;;  %v4169_v7 = vld [vmem:[#allocation14 + $0x6f8] sm:$0xff] }
 0x5b4   : > { %8558 = vmatprep.subr.bf16.mxu0 %v8557_v37  ;;  %8686 = vmatprep.subr.bf16.mxu1 %v8685_v32  ;;  %v4134_v38 = vld [vmem:[#allocation14 + $0x5e0] sm:$0xff]  ;;  %v4132_v37 = vld [vmem:[#allocation14 + $0x5d0] sm:$0xff]  ;;  %v4177_v27 = vld [vmem:[#allocation14 + $0x738] sm:$0xff] }
 0x5b5   : > { %v4136_v32 = vld [vmem:[#allocation14 + $0x5f0] sm:$0xff]  ;;  %v8575_v47 = vpack.c.bf16 %v4134_v38, %v4130_v29  ;;  %v8589_v29 = vpack.c.bf16 %v4167_v22, %v4163_v21  ;;  %v8717_v38 = vpack.c.bf16 %v4169_v7, %v4165_v58  ;;  %v4181_v46 = vld [vmem:[#allocation14 + $0x758] sm:$0xff] }
 0x5b6   : > { %v8703_v34 = vpack.c.bf16 %v4136_v32, %v4132_v37  ;;  %v4171_v37 = vld [vmem:[#allocation14 + $0x708] sm:$0xff]  ;;  %v4185_v49 = vld [vmem:[#allocation14 + $0x778] sm:$0xff] }
 0x5b7   : > { %8560 = vmatpush1.bf16.msra.mxu0 %v8559_v53  ;;  %8688 = vmatpush1.bf16.msra.mxu1 %v8687_v13  ;;  %v4138_v53 = vld [vmem:[#allocation14 + $0x600] sm:$0xff]  ;;  %v4175_v32 = vld [vmem:[#allocation14 + $0x728] sm:$0xff]  ;;  %v4189_v10 = vld [vmem:[#allocation14 + $0x798] sm:$0xff] }
 0x5b8   : > { %8562 = vmatprep.subr.bf16.mxu0 %v8561_v0  ;;  %8690 = vmatprep.subr.bf16.mxu1 %v8689_v44  ;;  %v4142_v13 = vld [vmem:[#allocation14 + $0x620] sm:$0xff]  ;;  %v4140_v0 = vld [vmem:[#allocation14 + $0x610] sm:$0xff]  ;;  %v4193_v19 = vld [vmem:[#allocation14 + $0x7b8] sm:$0xff] }
 0x5b9   : > { %v4144_v44 = vld [vmem:[#allocation14 + $0x630] sm:$0xff]  ;;  %v8579_v55 = vpack.c.bf16 %v4142_v13, %v4138_v53  ;;  %v8593_v53 = vpack.c.bf16 %v4175_v32, %v4171_v37  ;;  %v8721_v13 = vpack.c.bf16 %v4177_v27, %v4173_v54  ;;  %v4197_v21 = vld [vmem:[#allocation14 + $0x7d8] sm:$0xff]  ;;  %v4579_v37 = vld [vmem:[#allocation16 + $0x180] sm:$0xff] }
 0x5ba   : > { %v8707_v1 = vpack.c.bf16 %v4144_v44, %v4140_v0  ;;  %v4179_v0 = vld [vmem:[#allocation14 + $0x748] sm:$0xff]  ;;  %v4201_v22 = vld [vmem:[#allocation14 + $0x7f8] sm:$0xff] }
 0x5bb   : > { %8564 = vmatpush1.bf16.msra.mxu0 %v8563_v59  ;;  %8692 = vmatpush1.bf16.msra.mxu1 %v8691_v9  ;;  %v4146_v59 = vld [vmem:[#allocation14 + $0x640] sm:$0xff]  ;;  %v4183_v44 = vld [vmem:[#allocation14 + $0x768] sm:$0xff] }
 0x5bc   : > { %8566 = vmatprep.subr.bf16.mxu0 %v8565_v43  ;;  %8694 = vmatprep.subr.bf16.mxu1 %v8693_v11  ;;  %v4150_v9 = vld [vmem:[#allocation14 + $0x660] sm:$0xff]  ;;  %v4148_v43 = vld [vmem:[#allocation14 + $0x650] sm:$0xff]  ;;  %v4580_v32 = vld [vmem:[#allocation16 + $0x188] sm:$0xff] }
 0x5bd   : > { %v4152_v11 = vld [vmem:[#allocation14 + $0x670] sm:$0xff]  ;;  %v8583_v16 = vpack.c.bf16 %v4150_v9, %v4146_v59  ;;  %v8597_v59 = vpack.c.bf16 %v4183_v44, %v4179_v0  ;;  %v8725_v9 = vpack.c.bf16 %v4185_v49, %v4181_v46  ;;  %v4550_v0 = vld [vmem:[#allocation16 + $0x98] sm:$0xff]  ;;  %v10531_v49 = vmax.f32 %v10498_v6, 0.0  ;;  %v4583_v6 = vld [vmem:[#allocation16 + $0x1a0] sm:$0xff] }
 0x5be   : > { %v8711_v42 = vpack.c.bf16 %v4152_v11, %v4148_v43  ;;  %v4187_v43 = vld [vmem:[#allocation14 + $0x788] sm:$0xff]  ;;  %v4581_v44 = vld [vmem:[#allocation16 + $0x190] sm:$0xff]  ;;  %v4582_v46 = vld [vmem:[#allocation16 + $0x198] sm:$0xff] }
 0x5bf   : > { %8568 = vmatpush1.bf16.msra.mxu0 %v8567_v31  ;;  %8696 = vmatpush1.bf16.msra.mxu1 %v8695_v4  ;;  %v4154_v31 = vld [vmem:[#allocation14 + $0x680] sm:$0xff]  ;;  %v4191_v11 = vld [vmem:[#allocation14 + $0x7a8] sm:$0xff] }
 0x5c0   : > { %8570 = vmatprep.subr.bf16.mxu0 %v8569_v61  ;;  %8698 = vmatprep.subr.bf16.mxu1 %v8697_v20  ;;  %v4158_v4 = vld [vmem:[#allocation14 + $0x6a0] sm:$0xff]  ;;  %v4156_v61 = vld [vmem:[#allocation14 + $0x690] sm:$0xff] }
 0x5c1   : > { %v4160_v20 = vld [vmem:[#allocation14 + $0x6b0] sm:$0xff]  ;;  %v8587_v24 = vpack.c.bf16 %v4158_v4, %v4154_v31  ;;  %v8601_v31 = vpack.c.bf16 %v4191_v11, %v4187_v43  ;;  %v8729_v4 = vpack.c.bf16 %v4193_v19, %v4189_v10  ;;  %v4552_v43 = vld [vmem:[#allocation16 + $0xa8] sm:$0xff]  ;;  %v10540_v10 = vmax.f32 %v10507_v48, 0.0 }
 0x5c2   : > { %v8715_v26 = vpack.c.bf16 %v4160_v20, %v4156_v61  ;;  %v4195_v61 = vld [vmem:[#allocation14 + $0x7c8] sm:$0xff]  ;;  %v4585_v48 = vld [vmem:[#allocation16 + $0x1b0] sm:$0xff] }
 0x5c3   : > { %8572 = vmatpush1.bf16.msra.mxu0 %v8571_v8  ;;  %8700 = vmatpush1.bf16.msra.mxu1 %v8699_v45  ;;  %v4162_v8 = vld [vmem:[#allocation14 + $0x6c0] sm:$0xff]  ;;  %v4199_v20 = vld [vmem:[#allocation14 + $0x7e8] sm:$0xff] }
 0x5c4   : > { %8574 = vmatprep.subr.bf16.mxu0 %v8573_v40  ;;  %8702 = vmatprep.subr.bf16.mxu1 %v8701_v3  ;;  %v4166_v45 = vld [vmem:[#allocation14 + $0x6e0] sm:$0xff]  ;;  %v4164_v40 = vld [vmem:[#allocation14 + $0x6d0] sm:$0xff]  ;;  %v4584_v11 = vld [vmem:[#allocation16 + $0x1a8] sm:$0xff] }
 0x5c5   : > { %v4168_v3 = vld [vmem:[#allocation14 + $0x6f0] sm:$0xff]  ;;  %v8591_v33 = vpack.c.bf16 %v4166_v45, %v4162_v8  ;;  %v8605_v8 = vpack.c.bf16 %v4199_v20, %v4195_v61  ;;  %v8733_v45 = vpack.c.bf16 %v4201_v22, %v4197_v21  ;;  %v4554_v61 = vld [vmem:[#allocation16 + $0xb8] sm:$0xff] }
 0x5c6   : > { %v8719_v2 = vpack.c.bf16 %v4168_v3, %v4164_v40  ;;  %v4547_v40 = vld [vmem:[#allocation16 + $0x80] sm:$0xff]  ;;  %v4548_v3 = vld [vmem:[#allocation16 + $0x88] sm:$0xff]  ;;  %v4586_v20 = vld [vmem:[#allocation16 + $0x1b8] sm:$0xff] }
 0x5c7   : > { %8576 = vmatpush1.bf16.msra.mxu0 %v8575_v47  ;;  %8704 = vmatpush1.bf16.msra.mxu1 %v8703_v34  ;;  %v4170_v47 = vld [vmem:[#allocation14 + $0x700] sm:$0xff] }
 0x5c8   : > { %8578 = vmatprep.subr.bf16.mxu0 %v8577_v15  ;;  %8706 = vmatprep.subr.bf16.mxu1 %v8705_v56  ;;  %v4174_v34 = vld [vmem:[#allocation14 + $0x720] sm:$0xff]  ;;  %v4172_v15 = vld [vmem:[#allocation14 + $0x710] sm:$0xff] }
 0x5c9   : > { %v4176_v56 = vld [vmem:[#allocation14 + $0x730] sm:$0xff]  ;;  %v8595_v52 = vpack.c.bf16 %v4174_v34, %v4170_v47  ;;  %v4531_v47 = vld [vmem:[#allocation16] sm:$0xff]  ;;  %v4532_v34 = vld [vmem:[#allocation16 + $0x8] sm:$0xff] }
 0x5ca   : > { %v8723_v39 = vpack.c.bf16 %v4176_v56, %v4172_v15  ;;  %v4564_v15 = vld [vmem:[#allocation16 + $0x108] sm:$0xff]  ;;  %v4549_v56 = vld [vmem:[#allocation16 + $0x90] sm:$0xff] }
 0x5cb   : > { %8580 = vmatpush1.bf16.msra.mxu0 %v8579_v55  ;;  %8708 = vmatpush1.bf16.msra.mxu1 %v8707_v1  ;;  %v4178_v55 = vld [vmem:[#allocation14 + $0x740] sm:$0xff] }
 0x5cc   : > { %8582 = vmatprep.subr.bf16.mxu0 %v8581_v25  ;;  %8710 = vmatprep.subr.bf16.mxu1 %v8709_v23  ;;  %v4182_v1 = vld [vmem:[#allocation14 + $0x760] sm:$0xff]  ;;  %v4180_v25 = vld [vmem:[#allocation14 + $0x750] sm:$0xff] }
 0x5cd   : > { %v4184_v23 = vld [vmem:[#allocation14 + $0x770] sm:$0xff]  ;;  %v8599_v35 = vpack.c.bf16 %v4182_v1, %v4178_v55  ;;  %v4534_v1 = vld [vmem:[#allocation16 + $0x18] sm:$0xff] }
 0x5ce   : > { %v8727_v12 = vpack.c.bf16 %v4184_v23, %v4180_v25  ;;  %v4533_v55 = vld [vmem:[#allocation16 + $0x10] sm:$0xff]  ;;  %v4566_v25 = vld [vmem:[#allocation16 + $0x118] sm:$0xff]  ;;  %v4551_v23 = vld [vmem:[#allocation16 + $0xa0] sm:$0xff] }
 0x5cf   : > { %8584 = vmatpush1.bf16.msra.mxu0 %v8583_v16  ;;  %8712 = vmatpush1.bf16.msra.mxu1 %v8711_v42  ;;  %v4186_v16 = vld [vmem:[#allocation14 + $0x780] sm:$0xff]  ;;  %v8743_v19 = vpack.c.bf16 %v4534_v1, %v4533_v55 }
 0x5d0   : > { %8586 = vmatprep.subr.bf16.mxu0 %v8585_v5  ;;  %8714 = vmatprep.subr.bf16.mxu1 %v8713_v17  ;;  %v4190_v42 = vld [vmem:[#allocation14 + $0x7a0] sm:$0xff]  ;;  %v4188_v5 = vld [vmem:[#allocation14 + $0x790] sm:$0xff] }
 0x5d1   : > { %v4192_v17 = vld [vmem:[#allocation14 + $0x7b0] sm:$0xff]  ;;  %v8603_v58 = vpack.c.bf16 %v4190_v42, %v4186_v16  ;;  %v4536_v16 = vld [vmem:[#allocation16 + $0x28] sm:$0xff]  ;;  %v8745_v42 = vpack.c.bf16 %v4552_v43, %v4551_v23  ;;  %v4591_v43 = vld [vmem:[#allocation16 + $0x1e0] sm:$0xff] }
 0x5d2   : > { %v8731_v7 = vpack.c.bf16 %v4192_v17, %v4188_v5  ;;  %v4568_v5 = vld [vmem:[#allocation16 + $0x128] sm:$0xff]  ;;  %v4553_v17 = vld [vmem:[#allocation16 + $0xb0] sm:$0xff] }
 0x5d3   : > { %8588 = vmatpush1.bf16.msra.mxu0 %v8587_v24  ;;  %8716 = vmatpush1.bf16.msra.mxu1 %v8715_v26  ;;  %v4194_v24 = vld [vmem:[#allocation14 + $0x7c0] sm:$0xff]  ;;  %v4560_v23 = vld [vmem:[#allocation16 + $0xe8] sm:$0xff] }
 0x5d4   : > { %8590 = vmatprep.subr.bf16.mxu0 %v8589_v29  ;;  %8718 = vmatprep.subr.bf16.mxu1 %v8717_v38  ;;  %v4198_v26 = vld [vmem:[#allocation14 + $0x7e0] sm:$0xff]  ;;  %v4196_v29 = vld [vmem:[#allocation14 + $0x7d0] sm:$0xff] }
 0x5d5   : > { %v4200_v38 = vld [vmem:[#allocation14 + $0x7f0] sm:$0xff]  ;;  %v8607_v54 = vpack.c.bf16 %v4198_v26, %v4194_v24  ;;  %v8781_v24 = vpack.c.bf16 %v4586_v20, %v4585_v48  ;;  %v4538_v26 = vld [vmem:[#allocation16 + $0x38] sm:$0xff] }
 0x5d6   : > { %v8735_v27 = vpack.c.bf16 %v4200_v38, %v4196_v29  ;;  %v4593_v48 = vld [vmem:[#allocation16 + $0x1f0] sm:$0xff]  ;;  %v4594_v20 = vld [vmem:[#allocation16 + $0x1f8] sm:$0xff] }
 0x5d7   : > { %8592 = vmatpush1.bf16.msra.mxu0 %v8591_v33  ;;  %8720 = vmatpush1.bf16.msra.mxu1 %v8719_v2  ;;  %v8737_v33 = vpack.c.bf16 %v4548_v3, %v4547_v40  ;;  %v8769_v2 = vpack.c.bf16 %v4580_v32, %v4579_v37  ;;  %v4555_v40 = vld [vmem:[#allocation16 + $0xc0] sm:$0xff]  ;;  %v4556_v3 = vld [vmem:[#allocation16 + $0xc8] sm:$0xff] }
 0x5d8   : > { %8594 = vmatprep.subr.bf16.mxu0 %v8593_v53  ;;  %8722 = vmatprep.subr.bf16.mxu1 %v8721_v13  ;;  %v3937_v53 = vadd.f32 %v10501_v50, %v10509_v18  ;;  %v4563_v13 = vld [vmem:[#allocation16 + $0x100] sm:$0xff]  ;;  %v8741_v50 = vpack.c.bf16 %v4550_v0, %v4549_v56  ;;  %v8773_v18 = vpack.c.bf16 %v4582_v46, %v4581_v44  ;;  %v4558_v56 = vld [vmem:[#allocation16 + $0xd8] sm:$0xff]  ;;  %v4589_v0 = vld [vmem:[#allocation16 + $0x1d0] sm:$0xff] }
 0x5d9   : > { %v4587_v37 = vld [vmem:[#allocation16 + $0x1c0] sm:$0xff]  ;;  %v8753_v32 = vpack.c.bf16 %v4556_v3, %v4555_v40  ;;  %v4590_v46 = vld [vmem:[#allocation16 + $0x1d8] sm:$0xff]  ;;  %v4812_v3 = vld [vmem:[#allocation16 + $0x388] sm:$0xff] }
 0x5da   : > { %v8789_v55 = vpack.c.bf16 %v4590_v46, %v4589_v0 }
 0x5db   : > { %8596 = vmatpush1.bf16.msra.mxu0 %v8595_v52  ;;  %8724 = vmatpush1.bf16.msra.mxu1 %v8723_v39  ;;  %v8739_v52 = vpack.c.bf16 %v4532_v34, %v4531_v47  ;;  %v8771_v39 = vpack.c.bf16 %v4564_v15, %v4563_v13  ;;  %v4571_v34 = vld [vmem:[#allocation16 + $0x140] sm:$0xff]  ;;  %v4557_v15 = vld [vmem:[#allocation16 + $0xd0] sm:$0xff] }
 0x5dc   : > { %8598 = vmatprep.subr.bf16.mxu0 %v8597_v59  ;;  %8726 = vmatprep.subr.bf16.mxu1 %v8725_v9  ;;  %v10533_v59 = vmax.f32 %v3937_v53, 0.0  ;;  %v4565_v9 = vld [vmem:[#allocation16 + $0x110] sm:$0xff]  ;;  %v4572_v53 = vld [vmem:[#allocation16 + $0x148] sm:$0xff]  ;;  %v8757_v44 = vpack.c.bf16 %v4558_v56, %v4557_v15 }
 0x5dd   : > { %v8787_v13 = vpack.c.bf16 %v4572_v53, %v4571_v34 }
 0x5df   : > { %8600 = vmatpush1.bf16.msra.mxu0 %v8599_v35  ;;  %8728 = vmatpush1.bf16.msra.mxu1 %v8727_v12  ;;  %v8775_v35 = vpack.c.bf16 %v4566_v25, %v4565_v9  ;;  %v4535_v12 = vld [vmem:[#allocation16 + $0x20] sm:$0xff] }
 0x5e0   : > { %8602 = vmatprep.subr.bf16.mxu0 %v8601_v31  ;;  %8730 = vmatprep.subr.bf16.mxu1 %v8729_v4  ;;  %v8777_v31 = vpack.c.bf16 %v4584_v11, %v4583_v6  ;;  %v4567_v4 = vld [vmem:[#allocation16 + $0x120] sm:$0xff]  ;;  %v8747_v21 = vpack.c.bf16 %v4536_v16, %v4535_v12  ;;  %v4592_v6 = vld [vmem:[#allocation16 + $0x1e8] sm:$0xff] }
 0x5e1   : > { %v8779_v22 = vpack.c.bf16 %v4568_v5, %v4567_v4  ;;  %v4559_v9 = vld [vmem:[#allocation16 + $0xe0] sm:$0xff]  ;;  %v4544_v12 = vld [vmem:[#allocation16 + $0x68] sm:$0xff]  ;;  %v4561_v4 = vld [vmem:[#allocation16 + $0xf0] sm:$0xff] }
 0x5e2   : > { %v8761_v11 = vpack.c.bf16 %v4560_v23, %v4559_v9  ;;  %v4575_v16 = vld [vmem:[#allocation16 + $0x160] sm:$0xff]  ;;  %v4562_v5 = vld [vmem:[#allocation16 + $0xf8] sm:$0xff] }
 0x5e3   : > { %8604 = vmatpush1.bf16.msra.mxu0 %v8603_v58  ;;  %8732 = vmatpush1.bf16.msra.mxu1 %v8731_v7  ;;  %v4537_v58 = vld [vmem:[#allocation16 + $0x30] sm:$0xff]  ;;  %v8749_v7 = vpack.c.bf16 %v4554_v61, %v4553_v17  ;;  %v8765_v61 = vpack.c.bf16 %v4562_v5, %v4561_v4  ;;  %v4783_v4 = vld [vmem:[#allocation16 + $0x2a0] sm:$0xff] }
 0x5e4   : > { %8606 = vmatprep.subr.bf16.mxu0 %v8605_v8  ;;  %8734 = vmatprep.subr.bf16.mxu1 %v8733_v45  ;;  %v4569_v8 = vld [vmem:[#allocation16 + $0x130] sm:$0xff]  ;;  %v4570_v45 = vld [vmem:[#allocation16 + $0x138] sm:$0xff]  ;;  %v8751_v29 = vpack.c.bf16 %v4538_v26, %v4537_v58 }
 0x5e5   : > { %v8783_v38 = vpack.c.bf16 %v4570_v45, %v4569_v8  ;;  %v4546_v58 = vld [vmem:[#allocation16 + $0x78] sm:$0xff]  ;;  %v4779_v45 = vld [vmem:[#allocation16 + $0x280] sm:$0xff] }
 0x5e7   : > { %8608 = vmatpush1.bf16.msra.mxu0 %v8607_v54  ;;  %8736 = vmatpush1.bf16.msra.mxu1 %v8735_v27  ;;  %v4588_v54 = vld [vmem:[#allocation16 + $0x1c8] sm:$0xff]  ;;  %v4539_v27 = vld [vmem:[#allocation16 + $0x40] sm:$0xff] }
 0x5e8   : > { %8738 = vmatprep.subr.bf16.mxu0 %v8737_v33  ;;  %8770 = vmatprep.subr.bf16.mxu1 %v8769_v2  ;;  %v4540_v33 = vld [vmem:[#allocation16 + $0x48] sm:$0xff]  ;;  %v8785_v2 = vpack.c.bf16 %v4588_v54, %v4587_v37 }
 0x5e9   : > { %v8755_v47 = vpack.c.bf16 %v4540_v33, %v4539_v27 }
 0x5ea   : > { %4344 = vmatmul.mubr.f32.vlgmr.msra.gmra.mrb[20].mxu0 %v10531_v49  ;;  %4498 = vmatmul.mubr.f32.vlgmr.msra.gmra.mrb[20].mxu1 %v10531_v49 }
 0x5eb   : > { %4349 = vmatprep.mubr.f32.mxu0 %v10533_v59  ;;  %4503 = vmatprep.mubr.f32.mxu1 %v10533_v59 }
 0x5ec   : > { %8740 = vmatpush3.bf16.msra.mxu0 %v8739_v52  ;;  %8772 = vmatpush3.bf16.msra.mxu1 %v8771_v39  ;;  %v4541_v52 = vld [vmem:[#allocation16 + $0x50] sm:$0xff]  ;;  %v4542_v39 = vld [vmem:[#allocation16 + $0x58] sm:$0xff] }
 0x5ed   : > { %8742 = vmatprep.subr.bf16.mxu0 %v8741_v50  ;;  %8774 = vmatprep.subr.bf16.mxu1 %v8773_v18  ;;  %v8759_v1 = vpack.c.bf16 %v4542_v39, %v4541_v52  ;;  %v4573_v50 = vld [vmem:[#allocation16 + $0x150] sm:$0xff]  ;;  %v4574_v18 = vld [vmem:[#allocation16 + $0x158] sm:$0xff]  ;;  %v4795_v52 = vld [vmem:[#allocation16 + $0x300] sm:$0xff] }
 0x5ee   : > { %4350 = vmatmul.mubr.f32.gmra.mrb[22].mxu0 %v10540_v10  ;;  %4504 = vmatmul.mubr.f32.gmra.mrb[22].mxu1 %v10540_v10  ;;  %v8791_v25 = vpack.c.bf16 %v4574_v18, %v4573_v50  ;;  %v4796_v39 = vld [vmem:[#allocation16 + $0x308] sm:$0xff]  ;;  %v4781_v50 = vld [vmem:[#allocation16 + $0x290] sm:$0xff] }
 0x5f0   : > { %8744 = vmatpush3.bf16.msra.mxu0 %v8743_v19  ;;  %8776 = vmatpush3.bf16.msra.mxu1 %v8775_v35  ;;  %v8793_v19 = vpack.c.bf16 %v4592_v6, %v4591_v43  ;;  %v4543_v35 = vld [vmem:[#allocation16 + $0x60] sm:$0xff]  ;;  %v4814_v43 = vld [vmem:[#allocation16 + $0x398] sm:$0xff] }
 0x5f1   : > { %8746 = vmatprep.subr.bf16.mxu0 %v8745_v42  ;;  %8778 = vmatprep.subr.bf16.mxu1 %v8777_v31  ;;  %v8763_v42 = vpack.c.bf16 %v4544_v12, %v4543_v35  ;;  %v4576_v31 = vld [vmem:[#allocation16 + $0x168] sm:$0xff]  ;;  %v4765_v12 = vld [vmem:[#allocation16 + $0x210] sm:$0xff] }
 0x5f2   : > { %v8795_v17 = vpack.c.bf16 %v4576_v31, %v4575_v16  ;;  %v4766_v16 = vld [vmem:[#allocation16 + $0x218] sm:$0xff] }
 0x5f3   : > { %v4798_v31 = vld [vmem:[#allocation16 + $0x318] sm:$0xff] }
 0x5f4   : > { %8748 = vmatpush3.bf16.msra.mxu0 %v8747_v21  ;;  %8780 = vmatpush3.bf16.msra.mxu1 %v8779_v22  ;;  %v4545_v21 = vld [vmem:[#allocation16 + $0x70] sm:$0xff]  ;;  %v8797_v22 = vpack.c.bf16 %v4594_v20, %v4593_v48  ;;  %v4815_v48 = vld [vmem:[#allocation16 + $0x3a0] sm:$0xff]  ;;  %v4816_v20 = vld [vmem:[#allocation16 + $0x3a8] sm:$0xff] }
 0x5f5   : > { %8750 = vmatprep.subr.bf16.mxu0 %v8749_v7  ;;  %8782 = vmatprep.subr.bf16.mxu1 %v8781_v24  ;;  %v4577_v7 = vld [vmem:[#allocation16 + $0x170] sm:$0xff]  ;;  %v4578_v24 = vld [vmem:[#allocation16 + $0x178] sm:$0xff]  ;;  %v8767_v26 = vpack.c.bf16 %v4546_v58, %v4545_v21  ;;  %v8807_v58 = vpack.c.bf16 %v4766_v16, %v4765_v12  ;;  %v4823_v12 = vld [vmem:[#allocation16 + $0x3e0] sm:$0xff] }
 0x5f6   : > { %v8799_v8 = vpack.c.bf16 %v4578_v24, %v4577_v7  ;;  %v4767_v24 = vld [vmem:[#allocation16 + $0x220] sm:$0xff]  ;;  %v4824_v16 = vld [vmem:[#allocation16 + $0x3e8] sm:$0xff] }
 0x5f8   : > { %8752 = vmatpush3.bf16.msra.mxu0 %v8751_v29  ;;  %8784 = vmatpush3.bf16.msra.mxu1 %v8783_v38  ;;  %v4780_v29 = vld [vmem:[#allocation16 + $0x288] sm:$0xff]  ;;  %v4811_v38 = vld [vmem:[#allocation16 + $0x380] sm:$0xff] }
 0x5f9   : > { %8754 = vmatprep.subr.bf16.mxu0 %v8753_v32  ;;  %8786 = vmatprep.subr.bf16.mxu1 %v8785_v2  ;;  %v8801_v40 = vpack.c.bf16 %v4780_v29, %v4779_v45  ;;  %v8833_v37 = vpack.c.bf16 %v4812_v3, %v4811_v38  ;;  %v8841_v45 = vpack.c.bf16 %v4816_v20, %v4815_v48  ;;  %v4799_v29 = vld [vmem:[#allocation16 + $0x320] sm:$0xff]  ;;  %v4800_v38 = vld [vmem:[#allocation16 + $0x328] sm:$0xff]  ;;  %v4786_v3 = vld [vmem:[#allocation16 + $0x2b8] sm:$0xff] }
 0x5fa   : > { %v4807_v48 = vld [vmem:[#allocation16 + $0x360] sm:$0xff]  ;;  %v4808_v20 = vld [vmem:[#allocation16 + $0x368] sm:$0xff] }
 0x5fc   : > { %8756 = vmatpush3.bf16.msra.mxu0 %v8755_v47  ;;  %8788 = vmatpush3.bf16.msra.mxu1 %v8787_v13 }
 0x5fd   : > { %8758 = vmatprep.subr.bf16.mxu0 %v8757_v44  ;;  %8790 = vmatprep.subr.bf16.mxu1 %v8789_v55 }
 0x600   : > { %8760 = vmatpush3.bf16.msra.mxu0 %v8759_v1  ;;  %8792 = vmatpush3.bf16.msra.mxu1 %v8791_v25  ;;  %v8835_v25 = vpack.c.bf16 %v4796_v39, %v4795_v52  ;;  %v4803_v39 = vld [vmem:[#allocation16 + $0x340] sm:$0xff] }
 0x601   : > { %8762 = vmatprep.subr.bf16.mxu0 %v8761_v11  ;;  %8794 = vmatprep.subr.bf16.mxu1 %v8793_v19 }
 0x604   : > { %8764 = vmatpush3.bf16.msra.mxu0 %v8763_v42  ;;  %8796 = vmatpush3.bf16.msra.mxu1 %v8795_v17  ;;  %v4797_v42 = vld [vmem:[#allocation16 + $0x310] sm:$0xff] }
 0x605   : > { %8766 = vmatprep.subr.bf16.mxu0 %v8765_v61  ;;  %8798 = vmatprep.subr.bf16.mxu1 %v8797_v22  ;;  %v4784_v61 = vld [vmem:[#allocation16 + $0x2a8] sm:$0xff]  ;;  %v8839_v7 = vpack.c.bf16 %v4798_v31, %v4797_v42 }
 0x608   : > { %8768 = vmatpush3.bf16.msra.mxu0 %v8767_v26  ;;  %8800 = vmatpush3.bf16.msra.mxu1 %v8799_v8  ;;  %v4768_v26 = vld [vmem:[#allocation16 + $0x228] sm:$0xff]  ;;  %v8809_v8 = vpack.c.bf16 %v4784_v61, %v4783_v4  ;;  %v4775_v4 = vld [vmem:[#allocation16 + $0x260] sm:$0xff]  ;;  %v8857_v61 = vpack.c.bf16 %v4824_v16, %v4823_v12 }
 0x609   : > { %8802 = vmatprep.subr.bf16.mxu0 %v8801_v40  ;;  %8834 = vmatprep.subr.bf16.mxu1 %v8833_v37  ;;  %v4785_v40 = vld [vmem:[#allocation16 + $0x2b0] sm:$0xff]  ;;  %v4999_v16 = vld [vmem:[#allocation16 + $0x420] sm:$0xff] }
 0x60a   : > { %v4817_v37 = vld [vmem:[#allocation16 + $0x3b0] sm:$0xff] }
 0x6bd   : > { %v4345_v32 = vpop.f32.mrb[20].mxu0  ;;  %v4499_v54 = vpop.f32.mrb[20].mxu1 }
 0x6be   : > { %v4510_v27 = vmax.f32 %v10505_v57, %v4345_v32  ;;  %v4512_v33 = vmax.f32 %v10531_v49, %v4499_v54  ;;  %v4347_v2 = vpop.f32.mrb[21].mxu0  ;;  %v4501_v47 = vpop.f32.mrb[21].mxu1  ;;  %v4818_v32 = vld [vmem:[#allocation16 + $0x3b8] sm:$0xff]  ;;  %v8811_v54 = vpack.c.bf16 %v4768_v26, %v4767_v24  ;;  %v8859_v26 = vpack.c.bf16 %v4808_v20, %v4807_v48  ;;  %v5049_v48 = vld [vmem:[#allocation16 + $0x5b0] sm:$0xff] }
 0x6bf   : > { %v4511_v34 = vmax.f32 %v10503_v51, %v4347_v2  ;;  %v4513_v53 = vmax.f32 %v10522_v28, %v4501_v47  ;;  %v4763_v51 = vld [vmem:[#allocation16 + $0x200] sm:$0xff]  ;;  %v4764_v28 = vld [vmem:[#allocation16 + $0x208] sm:$0xff]  ;;  %v4770_v2 = vld [vmem:[#allocation16 + $0x238] sm:$0xff]  ;;  %v8813_v47 = vpack.c.bf16 %v4786_v3, %v4785_v40 }
 0x6c0   : > { %4518 = vst [vmem:[#allocation4] sm:$0xff] %v4510_v27  ;;  %4520 = vst [vmem:[#allocation4 + $0x10] sm:$0xff] %v4512_v33  ;;  %v8803_v9 = vpack.c.bf16 %v4764_v28, %v4763_v51  ;;  %v8843_v27 = vpack.c.bf16 %v4800_v38, %v4799_v29  ;;  %v4769_v33 = vld [vmem:[#allocation16 + $0x230] sm:$0xff]  ;;  %v4772_v51 = vld [vmem:[#allocation16 + $0x248] sm:$0xff] }
 0x6c1   : > { %4519 = vst [vmem:[#allocation4 + $0x8] sm:$0xff] %v4511_v34  ;;  %4521 = vst [vmem:[#allocation4 + $0x18] sm:$0xff] %v4513_v53  ;;  %v4351_v13 = vpop.f32.mrb[22].mxu0  ;;  %v4505_v15 = vpop.f32.mrb[22].mxu1  ;;  %v8845_v34 = vpack.c.bf16 %v4818_v32, %v4817_v37  ;;  %v4801_v53 = vld [vmem:[#allocation16 + $0x330] sm:$0xff]  ;;  %v4810_v3 = vld [vmem:[#allocation16 + $0x378] sm:$0xff] }
 0x6c2   : > { %v4514_v56 = vmax.f32 %v10518_v14, %v4351_v13  ;;  %v4516_v0 = vmax.f32 %v10540_v10, %v4505_v15  ;;  %v4353_v44 = vpop.f32.mrb[23].mxu0  ;;  %v4507_v57 = vpop.f32.mrb[23].mxu1  ;;  %v4802_v13 = vld [vmem:[#allocation16 + $0x338] sm:$0xff]  ;;  %v4787_v15 = vld [vmem:[#allocation16 + $0x2c0] sm:$0xff]  ;;  %v4809_v40 = vld [vmem:[#allocation16 + $0x370] sm:$0xff] }
 0x6c3   : > { %v4515_v49 = vmax.f32 %v10516_v30, %v4353_v44  ;;  %v4517_v46 = vmax.f32 %v10533_v59, %v4507_v57  ;;  %v4782_v30 = vld [vmem:[#allocation16 + $0x298] sm:$0xff]  ;;  %v4813_v59 = vld [vmem:[#allocation16 + $0x390] sm:$0xff]  ;;  %v4820_v44 = vld [vmem:[#allocation16 + $0x3c8] sm:$0xff]  ;;  %v8815_v57 = vpack.c.bf16 %v4770_v2, %v4769_v33 }
 0x6c4   : > { %4522 = vst [vmem:[#allocation4 + $0x20] sm:$0xff] %v4514_v56  ;;  %4524 = vst [vmem:[#allocation4 + $0x30] sm:$0xff] %v4516_v0  ;;  %v8805_v5 = vpack.c.bf16 %v4782_v30, %v4781_v50  ;;  %v8837_v17 = vpack.c.bf16 %v4814_v43, %v4813_v59  ;;  %v4788_v56 = vld [vmem:[#allocation16 + $0x2c8] sm:$0xff]  ;;  %v4819_v0 = vld [vmem:[#allocation16 + $0x3c0] sm:$0xff] }
 0x6c5   : > { %4523 = vst [vmem:[#allocation4 + $0x28] sm:$0xff] %v4515_v49  ;;  %4525 = vst [vmem:[#allocation4 + $0x38] sm:$0xff] %v4517_v46  ;;  %v8847_v49 = vpack.c.bf16 %v4802_v13, %v4801_v53  ;;  %v4771_v46 = vld [vmem:[#allocation16 + $0x240] sm:$0xff]  ;;  %v8817_v28 = vpack.c.bf16 %v4788_v56, %v4787_v15  ;;  %v8849_v52 = vpack.c.bf16 %v4820_v44, %v4819_v0  ;;  %v4790_v50 = vld [vmem:[#allocation16 + $0x2d8] sm:$0xff] }
 0x6c6   : > { %v4774_v30 = vld [vmem:[#allocation16 + $0x258] sm:$0xff]  ;;  %v5011_v37 = vld [vmem:[#allocation16 + $0x480] sm:$0xff]  ;;  %v5012_v32 = vld [vmem:[#allocation16 + $0x488] sm:$0xff] }
 0x6c7   : > { %v8865_v53 = vpack.c.bf16 %v5012_v32, %v5011_v37  ;;  %v4995_v15 = vld [vmem:[#allocation16 + $0x400] sm:$0xff]  ;;  %v4996_v56 = vld [vmem:[#allocation16 + $0x408] sm:$0xff]  ;;  %v5050_v20 = vld [vmem:[#allocation16 + $0x5b8] sm:$0xff] }
 0x6c8   : > { %v4527_v55 = vld [vmem:[#allocation4] ss:$8 sm:$0xf]  ;;  %v4529_v1 = vld [vmem:[#allocation4 + $0x1] ss:$8 sm:$0xf] }
 0x6c9   : > { %v4530_v14 = vmax.f32 %v4527_v55, %v4529_v1  ;;  %v4758_v18 = vld [vmem:[#allocation4 + $0x2] ss:$8 sm:$0xf]  ;;  %v4760_v10 = vld [vmem:[#allocation4 + $0x3] ss:$8 sm:$0xf] }
 0x6ca   : > { %v10552_v23 = vmax.f32 %v4758_v18, %v4760_v10  ;;  %v4804_v55 = vld [vmem:[#allocation16 + $0x348] sm:$0xff]  ;;  %v4789_v1 = vld [vmem:[#allocation16 + $0x2d0] sm:$0xff]  ;;  %v4822_v18 = vld [vmem:[#allocation16 + $0x3d8] sm:$0xff]  ;;  %v8819_v10 = vpack.c.bf16 %v4772_v51, %v4771_v46 }
 0x6cb   : > { %v4603_v6 = vrot.slane %v4530_v14, %v10267_v63  ;;  %v4611_v11 = vrot.slane %v4530_v14, %v10301_v41  ;;  %v4599_v19 = vrot.slane %v4530_v14, %v10261_v60  ;;  %v4607_v35 = vrot.slane %v4530_v14, %v10265_v62  ;;  %v4821_v14 = vld [vmem:[#allocation16 + $0x3d0] sm:$0xff]  ;;  %v5027_v44 = vld [vmem:[#allocation16 + $0x500] sm:$0xff]  ;;  %v5014_v46 = vld [vmem:[#allocation16 + $0x498] sm:$0xff] }
 0x6cc   : > { %v4835_v21 = vrot.slane %v10552_v23, %v10267_v63  ;;  %v4843_v22 = vrot.slane %v10552_v23, %v10301_v41  ;;  %v8821_v59 = vpack.c.bf16 %v4790_v50, %v4789_v1  ;;  %v8853_v43 = vpack.c.bf16 %v4822_v18, %v4821_v14  ;;  %v4990_v33 = vld [vmem:[#allocation4 + $0x4] ss:$8 sm:$0xf]  ;;  %v4992_v2 = vld [vmem:[#allocation4 + $0x5] ss:$8 sm:$0xf] }
 0x6cd   : > { %4680 = vmatprep.mubr.f32.mxu0 %v4603_v6  ;;  %4750 = vmatprep.mubr.f32.mxu1 %v4611_v11  ;;  %v4805_v6 = vld [vmem:[#allocation16 + $0x350] sm:$0xff]  ;;  %v4806_v11 = vld [vmem:[#allocation16 + $0x358] sm:$0xff]  ;;  %v10562_v0 = vmax.f32 %v4990_v33, %v4992_v2  ;;  %v5004_v33 = vld [vmem:[#allocation16 + $0x448] sm:$0xff] }
 0x6ce   : > { %4681 = vmatmul.mubr.f32.vlgmr.msra.gmra.mrb[24].mxu0 %v4599_v19  ;;  %4751 = vmatmul.mubr.f32.vlgmr.msra.gmra.mrb[24].mxu1 %v4607_v35  ;;  %v4791_v19 = vld [vmem:[#allocation16 + $0x2e0] sm:$0xff]  ;;  %v4792_v35 = vld [vmem:[#allocation16 + $0x2e8] sm:$0xff]  ;;  %v8855_v31 = vpack.c.bf16 %v4806_v11, %v4805_v6  ;;  %v5045_v51 = vld [vmem:[#allocation16 + $0x590] sm:$0xff] }
 0x6cf   : > { %8804 = vmatpush3.bf16.msra.mxu0 %v8803_v9  ;;  %8836 = vmatpush3.bf16.msra.mxu1 %v8835_v25  ;;  %v8851_v9 = vpack.c.bf16 %v4804_v55, %v4803_v39  ;;  %v4773_v25 = vld [vmem:[#allocation16 + $0x250] sm:$0xff]  ;;  %v4831_v39 = vrot.slane %v10552_v23, %v10261_v60  ;;  %v4839_v55 = vrot.slane %v10552_v23, %v10265_v62  ;;  %v4998_v14 = vld [vmem:[#allocation16 + $0x418] sm:$0xff]  ;;  %v5047_v23 = vld [vmem:[#allocation16 + $0x5a0] sm:$0xff] }
 0x6d0   : > { %4912 = vmatprep.mubr.f32.mxu0 %v4835_v21  ;;  %4982 = vmatprep.mubr.f32.mxu1 %v4843_v22  ;;  %v8823_v42 = vpack.c.bf16 %v4774_v30, %v4773_v25  ;;  %v4793_v21 = vld [vmem:[#allocation16 + $0x2f0] sm:$0xff]  ;;  %v4794_v22 = vld [vmem:[#allocation16 + $0x2f8] sm:$0xff]  ;;  %v5075_v6 = vrot.slane %v10562_v0, %v10301_v41  ;;  %v5048_v11 = vld [vmem:[#allocation16 + $0x5a8] sm:$0xff] }
 0x6d1   : > { %8806 = vmatprep.subr.bf16.mxu0 %v8805_v5  ;;  %8838 = vmatprep.subr.bf16.mxu1 %v8837_v17  ;;  %v4776_v5 = vld [vmem:[#allocation16 + $0x268] sm:$0xff]  ;;  %v8825_v17 = vpack.c.bf16 %v4792_v35, %v4791_v19  ;;  %v8829_v29 = vpack.c.bf16 %v4794_v22, %v4793_v21  ;;  %v4997_v50 = vld [vmem:[#allocation16 + $0x410] sm:$0xff]  ;;  %v5030_v30 = vld [vmem:[#allocation16 + $0x518] sm:$0xff] }
 0x6d2   : > { %v8827_v24 = vpack.c.bf16 %v4776_v5, %v4775_v4  ;;  %v5029_v18 = vld [vmem:[#allocation16 + $0x510] sm:$0xff]  ;;  %v8871_v19 = vpack.c.bf16 %v4998_v14, %v4997_v50  ;;  %v8905_v4 = vpack.c.bf16 %v5048_v11, %v5047_v23  ;;  %v5032_v5 = vld [vmem:[#allocation16 + $0x528] sm:$0xff]  ;;  %v5035_v2 = vld [vmem:[#allocation16 + $0x540] sm:$0xff] }
 0x6d3   : > { %8808 = vmatpush3.bf16.msra.mxu0 %v8807_v58  ;;  %8840 = vmatpush3.bf16.msra.mxu1 %v8839_v7  ;;  %v4825_v58 = vld [vmem:[#allocation16 + $0x3f0] sm:$0xff]  ;;  %v4826_v7 = vld [vmem:[#allocation16 + $0x3f8] sm:$0xff]  ;;  %v8903_v35 = vpack.c.bf16 %v5030_v30, %v5029_v18  ;;  %v5055_v50 = vld [vmem:[#allocation16 + $0x5e0] sm:$0xff] }
 0x6d4   : > { %8810 = vmatprep.subr.bf16.mxu0 %v8809_v8  ;;  %8842 = vmatprep.subr.bf16.mxu1 %v8841_v45  ;;  %v4777_v8 = vld [vmem:[#allocation16 + $0x270] sm:$0xff]  ;;  %v4778_v45 = vld [vmem:[#allocation16 + $0x278] sm:$0xff]  ;;  %v8861_v38 = vpack.c.bf16 %v4826_v7, %v4825_v58  ;;  %v5056_v14 = vld [vmem:[#allocation16 + $0x5e8] sm:$0xff] }
 0x6d5   : > { %v5001_v7 = vld [vmem:[#allocation16 + $0x430] sm:$0xff]  ;;  %v5008_v30 = vld [vmem:[#allocation16 + $0x468] sm:$0xff]  ;;  %v5026_v11 = vld [vmem:[#allocation16 + $0x4f8] sm:$0xff] }
 0x6d6   : > { %v5025_v23 = vld [vmem:[#allocation16 + $0x4f0] sm:$0xff] }
 0x6d7   : > { %8812 = vmatpush3.bf16.msra.mxu0 %v8811_v54  ;;  %8844 = vmatpush3.bf16.msra.mxu1 %v8843_v27  ;;  %v5043_v54 = vld [vmem:[#allocation16 + $0x580] sm:$0xff]  ;;  %v5044_v27 = vld [vmem:[#allocation16 + $0x588] sm:$0xff] }
 0x6d8   : > { %8814 = vmatprep.subr.bf16.mxu0 %v8813_v47  ;;  %8846 = vmatprep.subr.bf16.mxu1 %v8845_v34  ;;  %v8831_v47 = vpack.c.bf16 %v4778_v45, %v4777_v8  ;;  %v8863_v34 = vpack.c.bf16 %v4810_v3, %v4809_v40  ;;  %v8897_v13 = vpack.c.bf16 %v5044_v27, %v5043_v54  ;;  %v5034_v45 = vld [vmem:[#allocation16 + $0x538] sm:$0xff]  ;;  %v5051_v40 = vld [vmem:[#allocation16 + $0x5c0] sm:$0xff]  ;;  %v5052_v3 = vld [vmem:[#allocation16 + $0x5c8] sm:$0xff] }
 0x6d9   : > { %v8909_v8 = vpack.c.bf16 %v5050_v20, %v5049_v48  ;;  %v5003_v27 = vld [vmem:[#allocation16 + $0x440] sm:$0xff]  ;;  %v5244_v20 = vld [vmem:[#allocation16 + $0x688] sm:$0xff] }
 0x6da   : > { %v5243_v48 = vld [vmem:[#allocation16 + $0x680] sm:$0xff] }
 0x6db   : > { %8816 = vmatpush3.bf16.msra.mxu0 %v8815_v57  ;;  %8848 = vmatpush3.bf16.msra.mxu1 %v8847_v49  ;;  %v5028_v57 = vld [vmem:[#allocation16 + $0x508] sm:$0xff]  ;;  %v5013_v49 = vld [vmem:[#allocation16 + $0x490] sm:$0xff] }
 0x6dc   : > { %8818 = vmatprep.subr.bf16.mxu0 %v8817_v28  ;;  %8850 = vmatprep.subr.bf16.mxu1 %v8849_v52  ;;  %v5046_v28 = vld [vmem:[#allocation16 + $0x598] sm:$0xff]  ;;  %v8867_v52 = vpack.c.bf16 %v4996_v56, %v4995_v15  ;;  %v8899_v1 = vpack.c.bf16 %v5028_v57, %v5027_v44  ;;  %v5053_v15 = vld [vmem:[#allocation16 + $0x5d0] sm:$0xff]  ;;  %v8883_v44 = vpack.c.bf16 %v5004_v33, %v5003_v27 }
 0x6dd   : > { %v8901_v25 = vpack.c.bf16 %v5046_v28, %v5045_v51  ;;  %v5054_v56 = vld [vmem:[#allocation16 + $0x5d8] sm:$0xff]  ;;  %v5037_v28 = vld [vmem:[#allocation16 + $0x550] sm:$0xff] }
 0x6de   : > { %v5006_v51 = vld [vmem:[#allocation16 + $0x458] sm:$0xff]  ;;  %v5277_v33 = vld [vmem:[#allocation16 + $0x790] sm:$0xff] }
 0x6df   : > { %8820 = vmatpush3.bf16.msra.mxu0 %v8819_v10  ;;  %8852 = vmatpush3.bf16.msra.mxu1 %v8851_v9  ;;  %v5067_v10 = vrot.slane %v10562_v0, %v10267_v63  ;;  %v8869_v9 = vpack.c.bf16 %v5014_v46, %v5013_v49  ;;  %v5005_v46 = vld [vmem:[#allocation16 + $0x450] sm:$0xff] }
 0x6e0   : > { %8822 = vmatprep.subr.bf16.mxu0 %v8821_v59  ;;  %8854 = vmatprep.subr.bf16.mxu1 %v8853_v43  ;;  %v5015_v59 = vld [vmem:[#allocation16 + $0x4a0] sm:$0xff]  ;;  %v5016_v43 = vld [vmem:[#allocation16 + $0x4a8] sm:$0xff]  ;;  %v8887_v18 = vpack.c.bf16 %v5006_v51, %v5005_v46 }
 0x6e1   : > { %v8873_v12 = vpack.c.bf16 %v5016_v43, %v5015_v59  ;;  %v5039_v59 = vld [vmem:[#allocation16 + $0x560] sm:$0xff]  ;;  %v8921_v43 = vpack.c.bf16 %v5056_v14, %v5055_v50  ;;  %v5248_v46 = vld [vmem:[#allocation16 + $0x6a8] sm:$0xff] }
 0x6e2   : > { %v5231_v14 = vld [vmem:[#allocation16 + $0x620] sm:$0xff] }
 0x6e3   : > { %8824 = vmatpush3.bf16.msra.mxu0 %v8823_v42  ;;  %8856 = vmatpush3.bf16.msra.mxu1 %v8855_v31  ;;  %v5000_v42 = vld [vmem:[#allocation16 + $0x428] sm:$0xff]  ;;  %v5031_v31 = vld [vmem:[#allocation16 + $0x520] sm:$0xff] }
 0x6e4   : > { %8826 = vmatprep.subr.bf16.mxu0 %v8825_v17  ;;  %8858 = vmatprep.subr.bf16.mxu1 %v8857_v61  ;;  %v5017_v17 = vld [vmem:[#allocation16 + $0x4b0] sm:$0xff]  ;;  %v5018_v61 = vld [vmem:[#allocation16 + $0x4b8] sm:$0xff]  ;;  %v8875_v21 = vpack.c.bf16 %v5000_v42, %v4999_v16  ;;  %v8907_v22 = vpack.c.bf16 %v5032_v5, %v5031_v31  ;;  %v8893_v42 = vpack.c.bf16 %v5026_v11, %v5025_v23 }
 0x6e5   : > { %v8877_v58 = vpack.c.bf16 %v5018_v61, %v5017_v17  ;;  %v5009_v31 = vld [vmem:[#allocation16 + $0x470] sm:$0xff]  ;;  %v5042_v61 = vld [vmem:[#allocation16 + $0x578] sm:$0xff] }
 0x6e6   : > { %v5041_v5 = vld [vmem:[#allocation16 + $0x570] sm:$0xff] }
 0x6e7   : > { %8828 = vmatpush3.bf16.msra.mxu0 %v8827_v24  ;;  %8860 = vmatpush3.bf16.msra.mxu1 %v8859_v26  ;;  %v5002_v24 = vld [vmem:[#allocation16 + $0x438] sm:$0xff]  ;;  %v5033_v26 = vld [vmem:[#allocation16 + $0x530] sm:$0xff] }
 0x6e8   : > { %8830 = vmatprep.subr.bf16.mxu0 %v8829_v29  ;;  %8862 = vmatprep.subr.bf16.mxu1 %v8861_v38  ;;  %v5019_v29 = vld [vmem:[#allocation16 + $0x4c0] sm:$0xff]  ;;  %v5020_v38 = vld [vmem:[#allocation16 + $0x4c8] sm:$0xff]  ;;  %v8879_v37 = vpack.c.bf16 %v5002_v24, %v5001_v7  ;;  %v8911_v32 = vpack.c.bf16 %v5034_v45, %v5033_v26  ;;  %v8927_v26 = vpack.c.bf16 %v5042_v61, %v5041_v5 }
 0x6e9   : > { %v8881_v54 = vpack.c.bf16 %v5020_v38, %v5019_v29  ;;  %v5222_v7 = vld [vmem:[#allocation4 + $0x6] ss:$8 sm:$0xf]  ;;  %v5224_v24 = vld [vmem:[#allocation4 + $0x7] ss:$8 sm:$0xf] }
 0x6ea   : > { %v5227_v45 = vld [vmem:[#allocation16 + $0x600] sm:$0xff]  ;;  %v5228_v29 = vld [vmem:[#allocation16 + $0x608] sm:$0xff] }
 0x6eb   : > { %8832 = vmatpush3.bf16.msra.mxu0 %v8831_v47  ;;  %8864 = vmatpush3.bf16.msra.mxu1 %v8863_v34  ;;  %v8913_v47 = vpack.c.bf16 %v5052_v3, %v5051_v40  ;;  %v5036_v34 = vld [vmem:[#allocation16 + $0x548] sm:$0xff]  ;;  %v5259_v40 = vld [vmem:[#allocation16 + $0x700] sm:$0xff]  ;;  %v8931_v27 = vpack.c.bf16 %v5228_v29, %v5227_v45  ;;  %v5254_v45 = vld [vmem:[#allocation16 + $0x6d8] sm:$0xff] }
 0x6ec   : > { %8866 = vmatprep.subr.bf16.mxu0 %v8865_v53  ;;  %8898 = vmatprep.subr.bf16.mxu1 %v8897_v13  ;;  %v5021_v53 = vld [vmem:[#allocation16 + $0x4d0] sm:$0xff]  ;;  %v5022_v13 = vld [vmem:[#allocation16 + $0x4d8] sm:$0xff]  ;;  %v8915_v57 = vpack.c.bf16 %v5036_v34, %v5035_v2  ;;  %v5260_v3 = vld [vmem:[#allocation16 + $0x708] sm:$0xff] }
 0x6ed   : > { %v8885_v49 = vpack.c.bf16 %v5022_v13, %v5021_v53  ;;  %v5278_v2 = vld [vmem:[#allocation16 + $0x798] sm:$0xff]  ;;  %v8963_v34 = vpack.c.bf16 %v5260_v3, %v5259_v40  ;;  %v5229_v53 = vld [vmem:[#allocation16 + $0x610] sm:$0xff]  ;;  %v5252_v5 = vld [vmem:[#allocation16 + $0x6c8] sm:$0xff] }
 0x6ee   : > { %4913 = vmatmul.mubr.f32.vlgmr.msra.gmra.mrb[26].mxu0 %v4831_v39  ;;  %4983 = vmatmul.mubr.f32.vlgmr.msra.gmra.mrb[26].mxu1 %v4839_v55  ;;  %v5038_v39 = vld [vmem:[#allocation16 + $0x558] sm:$0xff]  ;;  %v5023_v55 = vld [vmem:[#allocation16 + $0x4e0] sm:$0xff]  ;;  %v5284_v61 = vld [vmem:[#allocation16 + $0x7c8] sm:$0xff] }
 0x6ef   : > { %8868 = vmatpush3.bf16.msra.mxu0 %v8867_v52  ;;  %5144 = vmatprep.mubr.f32.mxu0 %v5067_v10  ;;  %v8917_v52 = vpack.c.bf16 %v5054_v56, %v5053_v15  ;;  %v8919_v10 = vpack.c.bf16 %v5038_v39, %v5037_v28  ;;  %v5230_v13 = vld [vmem:[#allocation16 + $0x618] sm:$0xff]  ;;  %v5261_v15 = vld [vmem:[#allocation16 + $0x710] sm:$0xff]  ;;  %v5071_v56 = vrot.slane %v10562_v0, %v10265_v62  ;;  %v5280_v39 = vld [vmem:[#allocation16 + $0x7a8] sm:$0xff] }
 0x6f0   : > { %8900 = vmatpush3.bf16.msra.mxu1 %v8899_v1  ;;  %5214 = vmatprep.mubr.f32.mxu1 %v5075_v6  ;;  %v5024_v1 = vld [vmem:[#allocation16 + $0x4e8] sm:$0xff]  ;;  %v8965_v28 = vpack.c.bf16 %v5278_v2, %v5277_v33  ;;  %v5285_v29 = vld [vmem:[#allocation16 + $0x7d0] sm:$0xff] }
 0x6f1   : > { %8870 = vmatprep.subr.bf16.mxu0 %v8869_v9  ;;  %8902 = vmatprep.subr.bf16.mxu1 %v8901_v25  ;;  %v8889_v9 = vpack.c.bf16 %v5024_v1, %v5023_v55  ;;  %v5007_v25 = vld [vmem:[#allocation16 + $0x460] sm:$0xff]  ;;  %v5040_v6 = vld [vmem:[#allocation16 + $0x568] sm:$0xff]  ;;  %v8935_v1 = vpack.c.bf16 %v5230_v13, %v5229_v53  ;;  %v5269_v33 = vld [vmem:[#allocation16 + $0x750] sm:$0xff] }
 0x6f2   : > { %v8923_v16 = vpack.c.bf16 %v5040_v6, %v5039_v59  ;;  %v5250_v59 = vld [vmem:[#allocation16 + $0x6b8] sm:$0xff]  ;;  %v5256_v53 = vld [vmem:[#allocation16 + $0x6e8] sm:$0xff]  ;;  %v5287_v13 = vld [vmem:[#allocation16 + $0x7e0] sm:$0xff] }
 0x6f3   : > { %8872 = vmatpush3.bf16.msra.mxu0 %v8871_v19  ;;  %v5057_v19 = vld [vmem:[#allocation16 + $0x5f0] sm:$0xff]  ;;  %v5282_v6 = vld [vmem:[#allocation16 + $0x7b8] sm:$0xff] }
 0x6f4   : > { %8904 = vmatpush3.bf16.msra.mxu1 %v8903_v35  ;;  %8874 = vmatprep.subr.bf16.mxu0 %v8873_v12  ;;  %v5058_v35 = vld [vmem:[#allocation16 + $0x5f8] sm:$0xff]  ;;  %v8891_v12 = vpack.c.bf16 %v5008_v30, %v5007_v25  ;;  %v5264_v25 = vld [vmem:[#allocation16 + $0x728] sm:$0xff]  ;;  %v5249_v30 = vld [vmem:[#allocation16 + $0x6b0] sm:$0xff] }
 0x6f5   : > { %8906 = vmatprep.subr.bf16.mxu1 %v8905_v4  ;;  %v5010_v4 = vld [vmem:[#allocation16 + $0x478] sm:$0xff]  ;;  %v8925_v17 = vpack.c.bf16 %v5058_v35, %v5057_v19  ;;  %v8941_v19 = vpack.c.bf16 %v5250_v59, %v5249_v30  ;;  %v5233_v35 = vld [vmem:[#allocation16 + $0x630] sm:$0xff] }
 0x6f6   : > { %v5274_v59 = vld [vmem:[#allocation16 + $0x778] sm:$0xff] }
 0x6f7   : > { %8876 = vmatpush3.bf16.msra.mxu0 %v8875_v21  ;;  %v5275_v21 = vld [vmem:[#allocation16 + $0x780] sm:$0xff] }
 0x6f8   : > { %8908 = vmatpush3.bf16.msra.mxu1 %v8907_v22  ;;  %8878 = vmatprep.subr.bf16.mxu0 %v8877_v58  ;;  %v5276_v22 = vld [vmem:[#allocation16 + $0x788] sm:$0xff]  ;;  %v8895_v58 = vpack.c.bf16 %v5010_v4, %v5009_v31  ;;  %v5266_v31 = vld [vmem:[#allocation16 + $0x738] sm:$0xff]  ;;  %v5251_v4 = vld [vmem:[#allocation16 + $0x6c0] sm:$0xff] }
 0x6f9   : > { %8910 = vmatprep.subr.bf16.mxu1 %v8909_v8  ;;  %v8929_v8 = vpack.c.bf16 %v5244_v20, %v5243_v48  ;;  %v8961_v38 = vpack.c.bf16 %v5276_v22, %v5275_v21  ;;  %v8945_v21 = vpack.c.bf16 %v5252_v5, %v5251_v4  ;;  %v5235_v22 = vld [vmem:[#allocation16 + $0x640] sm:$0xff]  ;;  %v5460_v4 = vld [vmem:[#allocation16 + $0x808] sm:$0xff] }
 0x6fb   : > { %8880 = vmatpush3.bf16.msra.mxu0 %v8879_v37  ;;  %v10572_v37 = vmax.f32 %v5222_v7, %v5224_v24  ;;  %v5267_v7 = vld [vmem:[#allocation16 + $0x740] sm:$0xff] }
 0x6fc   : > { %8912 = vmatpush3.bf16.msra.mxu1 %v8911_v32  ;;  %8882 = vmatprep.subr.bf16.mxu0 %v8881_v54  ;;  %v5245_v32 = vld [vmem:[#allocation16 + $0x690] sm:$0xff]  ;;  %v5246_v54 = vld [vmem:[#allocation16 + $0x698] sm:$0xff] }
 0x6fd   : > { %8914 = vmatprep.subr.bf16.mxu1 %v8913_v47  ;;  %v5063_v47 = vrot.slane %v10562_v0, %v10261_v60  ;;  %v5299_v51 = vrot.slane %v10572_v37, %v10267_v63  ;;  %v5307_v55 = vrot.slane %v10572_v37, %v10301_v41 }
 0x6ff   : > { %8884 = vmatpush3.bf16.msra.mxu0 %v8883_v44  ;;  %v8933_v44 = vpack.c.bf16 %v5246_v54, %v5245_v32  ;;  %v5237_v54 = vld [vmem:[#allocation16 + $0x650] sm:$0xff] }
 0x700   : > { %8916 = vmatpush3.bf16.msra.mxu1 %v8915_v57  ;;  %8886 = vmatprep.subr.bf16.mxu0 %v8885_v49  ;;  %v5262_v57 = vld [vmem:[#allocation16 + $0x718] sm:$0xff]  ;;  %v5247_v49 = vld [vmem:[#allocation16 + $0x6a0] sm:$0xff] }
 0x701   : > { %8918 = vmatprep.subr.bf16.mxu1 %v8917_v52  ;;  %v5279_v52 = vld [vmem:[#allocation16 + $0x7a0] sm:$0xff]  ;;  %v8967_v0 = vpack.c.bf16 %v5262_v57, %v5261_v15  ;;  %v8937_v50 = vpack.c.bf16 %v5248_v46, %v5247_v49  ;;  %v5288_v15 = vld [vmem:[#allocation16 + $0x7e8] sm:$0xff] }
 0x702   : > { %v5239_v49 = vld [vmem:[#allocation16 + $0x660] sm:$0xff]  ;;  %v5240_v46 = vld [vmem:[#allocation16 + $0x668] sm:$0xff] }
 0x703   : > { %8888 = vmatpush3.bf16.msra.mxu0 %v8887_v18  ;;  %v5232_v18 = vld [vmem:[#allocation16 + $0x628] sm:$0xff] }
 0x704   : > { %8920 = vmatpush3.bf16.msra.mxu1 %v8919_v10  ;;  %8890 = vmatprep.subr.bf16.mxu0 %v8889_v9  ;;  %v5263_v10 = vld [vmem:[#allocation16 + $0x720] sm:$0xff]  ;;  %v8969_v9 = vpack.c.bf16 %v5280_v39, %v5279_v52  ;;  %v8939_v23 = vpack.c.bf16 %v5232_v18, %v5231_v14  ;;  %v5272_v52 = vld [vmem:[#allocation16 + $0x768] sm:$0xff]  ;;  %v5257_v39 = vld [vmem:[#allocation16 + $0x6f0] sm:$0xff] }
 0x705   : > { %8922 = vmatprep.subr.bf16.mxu1 %v8921_v43  ;;  %v5281_v43 = vld [vmem:[#allocation16 + $0x7b0] sm:$0xff]  ;;  %v8971_v11 = vpack.c.bf16 %v5264_v25, %v5263_v10 }
 0x706   : > { %v5241_v10 = vld [vmem:[#allocation16 + $0x670] sm:$0xff] }
 0x707   : > { %8892 = vmatpush3.bf16.msra.mxu0 %v8891_v12  ;;  %v5234_v12 = vld [vmem:[#allocation16 + $0x638] sm:$0xff]  ;;  %v5273_v25 = vld [vmem:[#allocation16 + $0x770] sm:$0xff] }
 0x708   : > { %8924 = vmatpush3.bf16.msra.mxu1 %v8923_v16  ;;  %8894 = vmatprep.subr.bf16.mxu0 %v8893_v42  ;;  %v5265_v16 = vld [vmem:[#allocation16 + $0x730] sm:$0xff]  ;;  %v8973_v42 = vpack.c.bf16 %v5282_v6, %v5281_v43  ;;  %v8943_v48 = vpack.c.bf16 %v5234_v12, %v5233_v35  ;;  %v5475_v43 = vld [vmem:[#allocation16 + $0x880] sm:$0xff]  ;;  %v5476_v6 = vld [vmem:[#allocation16 + $0x888] sm:$0xff] }
 0x709   : > { %8926 = vmatprep.subr.bf16.mxu1 %v8925_v17  ;;  %v5283_v17 = vld [vmem:[#allocation16 + $0x7c0] sm:$0xff]  ;;  %v8975_v20 = vpack.c.bf16 %v5266_v31, %v5265_v16  ;;  %v8991_v16 = vpack.c.bf16 %v5274_v59, %v5273_v25  ;;  %v5484_v25 = vld [vmem:[#allocation16 + $0x8c8] sm:$0xff] }
 0x70a   : > { %v8977_v24 = vpack.c.bf16 %v5284_v61, %v5283_v17  ;;  %v5454_v35 = vld [vmem:[#allocation4 + $0x20] ss:$8 sm:$0xf]  ;;  %v5456_v12 = vld [vmem:[#allocation4 + $0x21] ss:$8 sm:$0xf] }
 0x70b   : > { %8896 = vmatpush3.bf16.msra.mxu0 %v8895_v58  ;;  %v5236_v58 = vld [vmem:[#allocation16 + $0x648] sm:$0xff]  ;;  %v5459_v31 = vld [vmem:[#allocation16 + $0x800] sm:$0xff] }
 0x70c   : > { %8928 = vmatpush3.bf16.msra.mxu1 %v8927_v26  ;;  %8930 = vmatprep.subr.bf16.mxu0 %v8929_v8  ;;  %v5268_v26 = vld [vmem:[#allocation16 + $0x748] sm:$0xff]  ;;  %v5253_v8 = vld [vmem:[#allocation16 + $0x6d0] sm:$0xff]  ;;  %v8947_v40 = vpack.c.bf16 %v5236_v58, %v5235_v22  ;;  %v5491_v17 = vld [vmem:[#allocation16 + $0x900] sm:$0xff]  ;;  %v8995_v22 = vpack.c.bf16 %v5460_v4, %v5459_v31 }
 0x70d   : > { %8962 = vmatprep.subr.bf16.mxu1 %v8961_v38  ;;  %v5286_v38 = vld [vmem:[#allocation16 + $0x7d8] sm:$0xff]  ;;  %v8979_v3 = vpack.c.bf16 %v5268_v26, %v5267_v7  ;;  %v8949_v32 = vpack.c.bf16 %v5254_v45, %v5253_v8  ;;  %v5492_v61 = vld [vmem:[#allocation16 + $0x908] sm:$0xff]  ;;  %v5509_v58 = vld [vmem:[#allocation16 + $0x990] sm:$0xff] }
 0x70e   : > { %5145 = vmatmul.mubr.f32.vlgmr.msra.gmra.mrb[28].mxu0 %v5063_v47  ;;  %v8981_v2 = vpack.c.bf16 %v5286_v38, %v5285_v29  ;;  %v5270_v47 = vld [vmem:[#allocation16 + $0x758] sm:$0xff]  ;;  %v9027_v26 = vpack.c.bf16 %v5492_v61, %v5491_v17  ;;  %v5461_v8 = vld [vmem:[#allocation16 + $0x810] sm:$0xff]  ;;  %v5303_v38 = vrot.slane %v10572_v37, %v10265_v62  ;;  %v5516_v59 = vld [vmem:[#allocation16 + $0x9c8] sm:$0xff] }
 0x70f   : > { %5215 = vmatmul.mubr.f32.vlgmr.msra.gmra.mrb[28].mxu1 %v5071_v56  ;;  %8932 = vmatpush3.bf16.msra.mxu0 %v8931_v27  ;;  %v5238_v27 = vld [vmem:[#allocation16 + $0x658] sm:$0xff]  ;;  %v5493_v29 = vld [vmem:[#allocation16 + $0x910] sm:$0xff] }
 0x710   : > { %5376 = vmatprep.mubr.f32.mxu0 %v5299_v51  ;;  %8964 = vmatpush3.bf16.msra.mxu1 %v8963_v34  ;;  %v5255_v34 = vld [vmem:[#allocation16 + $0x6e0] sm:$0xff]  ;;  %v8951_v56 = vpack.c.bf16 %v5238_v27, %v5237_v54  ;;  %v5510_v7 = vld [vmem:[#allocation16 + $0x998] sm:$0xff]  ;;  %v5480_v54 = vld [vmem:[#allocation16 + $0x8a8] sm:$0xff] }
 0x711   : > { %5446 = vmatprep.mubr.f32.mxu1 %v5307_v55  ;;  %8934 = vmatprep.subr.bf16.mxu0 %v8933_v44  ;;  %v8983_v44 = vpack.c.bf16 %v5270_v47, %v5269_v33  ;;  %v8953_v57 = vpack.c.bf16 %v5256_v53, %v5255_v34  ;;  %v5271_v51 = vld [vmem:[#allocation16 + $0x760] sm:$0xff]  ;;  %v5258_v55 = vld [vmem:[#allocation16 + $0x6f8] sm:$0xff]  ;;  %v9029_v33 = vpack.c.bf16 %v5510_v7, %v5509_v58  ;;  %v5512_v47 = vld [vmem:[#allocation16 + $0x9a8] sm:$0xff] }
 0x712   : > { %8966 = vmatprep.subr.bf16.mxu1 %v8965_v28  ;;  %v8985_v28 = vpack.c.bf16 %v5288_v15, %v5287_v13  ;;  %v8987_v14 = vpack.c.bf16 %v5272_v52, %v5271_v51  ;;  %v8957_v18 = vpack.c.bf16 %v5258_v55, %v5257_v39  ;;  %v5462_v45 = vld [vmem:[#allocation16 + $0x818] sm:$0xff]  ;;  %v5463_v15 = vld [vmem:[#allocation16 + $0x820] sm:$0xff]  ;;  %v5517_v4 = vld [vmem:[#allocation16 + $0x9d0] sm:$0xff] }
 0x713   : > { %8936 = vmatpush3.bf16.msra.mxu0 %v8935_v1  ;;  %v5289_v1 = vld [vmem:[#allocation16 + $0x7f0] sm:$0xff]  ;;  %v8999_v53 = vpack.c.bf16 %v5462_v45, %v5461_v8  ;;  %v5482_v51 = vld [vmem:[#allocation16 + $0x8b8] sm:$0xff]  ;;  %v5488_v8 = vld [vmem:[#allocation16 + $0x8e8] sm:$0xff] }
 0x714   : > { %8968 = vmatpush3.bf16.msra.mxu1 %v8967_v0  ;;  %8938 = vmatprep.subr.bf16.mxu0 %v8937_v50  ;;  %v5290_v0 = vld [vmem:[#allocation16 + $0x7f8] sm:$0xff]  ;;  %v8955_v50 = vpack.c.bf16 %v5240_v46, %v5239_v49  ;;  %v5496_v49 = vld [vmem:[#allocation16 + $0x928] sm:$0xff]  ;;  %v5481_v46 = vld [vmem:[#allocation16 + $0x8b0] sm:$0xff] }
 0x715   : > { %8970 = vmatprep.subr.bf16.mxu1 %v8969_v9  ;;  %v5242_v9 = vld [vmem:[#allocation16 + $0x678] sm:$0xff]  ;;  %v8989_v30 = vpack.c.bf16 %v5290_v0, %v5289_v1  ;;  %v9005_v1 = vpack.c.bf16 %v5482_v51, %v5481_v46  ;;  %v5465_v0 = vld [vmem:[#allocation16 + $0x830] sm:$0xff]  ;;  %v5519_v45 = vld [vmem:[#allocation16 + $0x9e0] sm:$0xff] }
 0x716   : > { %v5514_v52 = vld [vmem:[#allocation16 + $0x9b8] sm:$0xff]  ;;  %v5501_v58 = vld [vmem:[#allocation16 + $0x950] sm:$0xff] }
 0x717   : > { %8940 = vmatpush3.bf16.msra.mxu0 %v8939_v23  ;;  %v5507_v23 = vld [vmem:[#allocation16 + $0x980] sm:$0xff]  ;;  %v5486_v31 = vld [vmem:[#allocation16 + $0x8d8] sm:$0xff] }
 0x718   : > { %8972 = vmatpush3.bf16.msra.mxu1 %v8971_v11  ;;  %8942 = vmatprep.subr.bf16.mxu0 %v8941_v19  ;;  %v5508_v11 = vld [vmem:[#allocation16 + $0x988] sm:$0xff]  ;;  %v8959_v19 = vpack.c.bf16 %v5242_v9, %v5241_v10  ;;  %v5498_v10 = vld [vmem:[#allocation16 + $0x938] sm:$0xff]  ;;  %v5483_v9 = vld [vmem:[#allocation16 + $0x8c0] sm:$0xff] }
 0x719   : > { %8974 = vmatprep.subr.bf16.mxu1 %v8973_v42  ;;  %v8993_v42 = vpack.c.bf16 %v5476_v6, %v5475_v43  ;;  %v9025_v5 = vpack.c.bf16 %v5508_v11, %v5507_v23  ;;  %v9009_v23 = vpack.c.bf16 %v5484_v25, %v5483_v9  ;;  %v5467_v11 = vld [vmem:[#allocation16 + $0x840] sm:$0xff]  ;;  %v5506_v51 = vld [vmem:[#allocation16 + $0x978] sm:$0xff]  ;;  %v5692_v9 = vld [vmem:[#allocation16 + $0xa08] sm:$0xff] }
 0x71b   : > { %8944 = vmatpush3.bf16.msra.mxu0 %v8943_v48  ;;  %v10582_v48 = vmax.f32 %v5454_v35, %v5456_v12  ;;  %v5499_v35 = vld [vmem:[#allocation16 + $0x940] sm:$0xff] }
 0x71c   : > { %8976 = vmatpush3.bf16.msra.mxu1 %v8975_v20  ;;  %8946 = vmatprep.subr.bf16.mxu0 %v8945_v21  ;;  %v5477_v20 = vld [vmem:[#allocation16 + $0x890] sm:$0xff]  ;;  %v5478_v21 = vld [vmem:[#allocation16 + $0x898] sm:$0xff] }
 0x71d   : > { %8978 = vmatprep.subr.bf16.mxu1 %v8977_v24  ;;  %v5295_v24 = vrot.slane %v10572_v37, %v10261_v60  ;;  %v5531_v27 = vrot.slane %v10582_v48, %v10267_v63  ;;  %v5539_v34 = vrot.slane %v10582_v48, %v10301_v41 }
 0x71f   : > { %8948 = vmatpush3.bf16.msra.mxu0 %v8947_v40  ;;  %v8997_v40 = vpack.c.bf16 %v5478_v21, %v5477_v20  ;;  %v5469_v21 = vld [vmem:[#allocation16 + $0x850] sm:$0xff] }
 0x720   : > { %8980 = vmatpush3.bf16.msra.mxu1 %v8979_v3  ;;  %8950 = vmatprep.subr.bf16.mxu0 %v8949_v32  ;;  %v5494_v3 = vld [vmem:[#allocation16 + $0x918] sm:$0xff]  ;;  %v5479_v32 = vld [vmem:[#allocation16 + $0x8a0] sm:$0xff] }
 0x721   : > { %8982 = vmatprep.subr.bf16.mxu1 %v8981_v2  ;;  %v5511_v2 = vld [vmem:[#allocation16 + $0x9a0] sm:$0xff]  ;;  %v9031_v37 = vpack.c.bf16 %v5494_v3, %v5493_v29  ;;  %v9001_v13 = vpack.c.bf16 %v5480_v54, %v5479_v32  ;;  %v5520_v29 = vld [vmem:[#allocation16 + $0x9e8] sm:$0xff] }
 0x722   : > { %v5471_v32 = vld [vmem:[#allocation16 + $0x860] sm:$0xff]  ;;  %v5472_v54 = vld [vmem:[#allocation16 + $0x868] sm:$0xff] }
 0x723   : > { %8952 = vmatpush3.bf16.msra.mxu0 %v8951_v56  ;;  %v5464_v56 = vld [vmem:[#allocation16 + $0x828] sm:$0xff] }
 0x724   : > { %8984 = vmatpush3.bf16.msra.mxu1 %v8983_v44  ;;  %8954 = vmatprep.subr.bf16.mxu0 %v8953_v57  ;;  %v5495_v44 = vld [vmem:[#allocation16 + $0x920] sm:$0xff]  ;;  %v9033_v57 = vpack.c.bf16 %v5512_v47, %v5511_v2  ;;  %v9003_v39 = vpack.c.bf16 %v5464_v56, %v5463_v15  ;;  %v5504_v2 = vld [vmem:[#allocation16 + $0x968] sm:$0xff]  ;;  %v5489_v47 = vld [vmem:[#allocation16 + $0x8f0] sm:$0xff] }
 0x725   : > { %8986 = vmatprep.subr.bf16.mxu1 %v8985_v28  ;;  %v5513_v28 = vld [vmem:[#allocation16 + $0x9b0] sm:$0xff]  ;;  %v9035_v55 = vpack.c.bf16 %v5496_v49, %v5495_v44 }
 0x726   : > { %v5473_v44 = vld [vmem:[#allocation16 + $0x870] sm:$0xff] }
 0x727   : > { %8956 = vmatpush3.bf16.msra.mxu0 %v8955_v50  ;;  %v5466_v50 = vld [vmem:[#allocation16 + $0x838] sm:$0xff]  ;;  %v5505_v49 = vld [vmem:[#allocation16 + $0x970] sm:$0xff] }
 0x728   : > { %8988 = vmatpush3.bf16.msra.mxu1 %v8987_v14  ;;  %8958 = vmatprep.subr.bf16.mxu0 %v8957_v18  ;;  %v5497_v14 = vld [vmem:[#allocation16 + $0x930] sm:$0xff]  ;;  %v9037_v18 = vpack.c.bf16 %v5514_v52, %v5513_v28  ;;  %v9007_v43 = vpack.c.bf16 %v5466_v50, %v5465_v0  ;;  %v5707_v28 = vld [vmem:[#allocation16 + $0xa80] sm:$0xff]  ;;  %v5708_v52 = vld [vmem:[#allocation16 + $0xa88] sm:$0xff] }
 0x729   : > { %8990 = vmatprep.subr.bf16.mxu1 %v8989_v30  ;;  %v5515_v30 = vld [vmem:[#allocation16 + $0x9c0] sm:$0xff]  ;;  %v9039_v6 = vpack.c.bf16 %v5498_v10, %v5497_v14  ;;  %v9055_v14 = vpack.c.bf16 %v5506_v51, %v5505_v49  ;;  %v5716_v49 = vld [vmem:[#allocation16 + $0xac8] sm:$0xff] }
 0x72a   : > { %v9041_v12 = vpack.c.bf16 %v5516_v59, %v5515_v30  ;;  %v5686_v0 = vld [vmem:[#allocation4 + $0x22] ss:$8 sm:$0xf]  ;;  %v5688_v50 = vld [vmem:[#allocation4 + $0x23] ss:$8 sm:$0xf] }
 0x72b   : > { %8960 = vmatpush3.bf16.msra.mxu0 %v8959_v19  ;;  %v5468_v19 = vld [vmem:[#allocation16 + $0x848] sm:$0xff]  ;;  %v5691_v10 = vld [vmem:[#allocation16 + $0xa00] sm:$0xff] }
 0x72c   : > { %8992 = vmatpush3.bf16.msra.mxu1 %v8991_v16  ;;  %8994 = vmatprep.subr.bf16.mxu0 %v8993_v42  ;;  %v5500_v16 = vld [vmem:[#allocation16 + $0x948] sm:$0xff]  ;;  %v5485_v42 = vld [vmem:[#allocation16 + $0x8d0] sm:$0xff]  ;;  %v9011_v17 = vpack.c.bf16 %v5468_v19, %v5467_v11  ;;  %v5723_v30 = vld [vmem:[#allocation16 + $0xb00] sm:$0xff]  ;;  %v9059_v11 = vpack.c.bf16 %v5692_v9, %v5691_v10 }
 0x72d   : > { %9026 = vmatprep.subr.bf16.mxu1 %v9025_v5  ;;  %v5518_v5 = vld [vmem:[#allocation16 + $0x9d8] sm:$0xff]  ;;  %v9043_v61 = vpack.c.bf16 %v5500_v16, %v5499_v35  ;;  %v9013_v20 = vpack.c.bf16 %v5486_v31, %v5485_v42  ;;  %v5724_v59 = vld [vmem:[#allocation16 + $0xb08] sm:$0xff]  ;;  %v5741_v19 = vld [vmem:[#allocation16 + $0xb90] sm:$0xff] }
 0x72e   : > { %5377 = vmatmul.mubr.f32.vlgmr.msra.gmra.mrb[30].mxu0 %v5295_v24  ;;  %v9045_v7 = vpack.c.bf16 %v5518_v5, %v5517_v4  ;;  %v5502_v24 = vld [vmem:[#allocation16 + $0x958] sm:$0xff]  ;;  %v9091_v16 = vpack.c.bf16 %v5724_v59, %v5723_v30  ;;  %v5693_v42 = vld [vmem:[#allocation16 + $0xa10] sm:$0xff]  ;;  %v5535_v5 = vrot.slane %v10582_v48, %v10265_v62  ;;  %v5748_v51 = vld [vmem:[#allocation16 + $0xbc8] sm:$0xff] }
 0x72f   : > { %5447 = vmatmul.mubr.f32.vlgmr.msra.gmra.mrb[30].mxu1 %v5303_v38  ;;  %8996 = vmatpush3.bf16.msra.mxu0 %v8995_v22  ;;  %v5470_v22 = vld [vmem:[#allocation16 + $0x858] sm:$0xff]  ;;  %v5725_v4 = vld [vmem:[#allocation16 + $0xb10] sm:$0xff] }
 0x730   : > { %5608 = vmatprep.mubr.f32.mxu0 %v5531_v27  ;;  %9028 = vmatpush3.bf16.msra.mxu1 %v9027_v26  ;;  %v5487_v26 = vld [vmem:[#allocation16 + $0x8e0] sm:$0xff]  ;;  %v9015_v38 = vpack.c.bf16 %v5470_v22, %v5469_v21  ;;  %v5742_v35 = vld [vmem:[#allocation16 + $0xb98] sm:$0xff]  ;;  %v5712_v21 = vld [vmem:[#allocation16 + $0xaa8] sm:$0xff] }
 0x731   : > { %5678 = vmatprep.mubr.f32.mxu1 %v5539_v34  ;;  %8998 = vmatprep.subr.bf16.mxu0 %v8997_v40  ;;  %v9047_v40 = vpack.c.bf16 %v5502_v24, %v5501_v58  ;;  %v9017_v3 = vpack.c.bf16 %v5488_v8, %v5487_v26  ;;  %v5503_v27 = vld [vmem:[#allocation16 + $0x960] sm:$0xff]  ;;  %v5490_v34 = vld [vmem:[#allocation16 + $0x8f8] sm:$0xff]  ;;  %v9093_v58 = vpack.c.bf16 %v5742_v35, %v5741_v19  ;;  %v5744_v24 = vld [vmem:[#allocation16 + $0xba8] sm:$0xff] }
 0x732   : > { %9030 = vmatprep.subr.bf16.mxu1 %v9029_v33  ;;  %v9049_v33 = vpack.c.bf16 %v5520_v29, %v5519_v45  ;;  %v9051_v15 = vpack.c.bf16 %v5504_v2, %v5503_v27  ;;  %v9021_v56 = vpack.c.bf16 %v5490_v34, %v5489_v47  ;;  %v5694_v31 = vld [vmem:[#allocation16 + $0xa18] sm:$0xff]  ;;  %v5695_v29 = vld [vmem:[#allocation16 + $0xa20] sm:$0xff]  ;;  %v5749_v9 = vld [vmem:[#allocation16 + $0xbd0] sm:$0xff] }
 0x733   : > { %9000 = vmatpush3.bf16.msra.mxu0 %v8999_v53  ;;  %v5521_v53 = vld [vmem:[#allocation16 + $0x9f0] sm:$0xff]  ;;  %v9063_v8 = vpack.c.bf16 %v5694_v31, %v5693_v42  ;;  %v5714_v27 = vld [vmem:[#allocation16 + $0xab8] sm:$0xff]  ;;  %v5720_v42 = vld [vmem:[#allocation16 + $0xae8] sm:$0xff] }
 0x734   : > { %9032 = vmatpush3.bf16.msra.mxu1 %v9031_v37  ;;  %9002 = vmatprep.subr.bf16.mxu0 %v9001_v13  ;;  %v5522_v37 = vld [vmem:[#allocation16 + $0x9f8] sm:$0xff]  ;;  %v9019_v13 = vpack.c.bf16 %v5472_v54, %v5471_v32  ;;  %v5728_v32 = vld [vmem:[#allocation16 + $0xb28] sm:$0xff]  ;;  %v5713_v54 = vld [vmem:[#allocation16 + $0xab0] sm:$0xff] }
 0x735   : > { %9034 = vmatprep.subr.bf16.mxu1 %v9033_v57  ;;  %v5474_v57 = vld [vmem:[#allocation16 + $0x878] sm:$0xff]  ;;  %v9053_v46 = vpack.c.bf16 %v5522_v37, %v5521_v53  ;;  %v9069_v53 = vpack.c.bf16 %v5714_v27, %v5713_v54  ;;  %v5697_v37 = vld [vmem:[#allocation16 + $0xa30] sm:$0xff]  ;;  %v5751_v31 = vld [vmem:[#allocation16 + $0xbe0] sm:$0xff] }
 0x736   : > { %v5746_v2 = vld [vmem:[#allocation16 + $0xbb8] sm:$0xff]  ;;  %v5733_v19 = vld [vmem:[#allocation16 + $0xb50] sm:$0xff] }
 0x737   : > { %9004 = vmatpush3.bf16.msra.mxu0 %v9003_v39  ;;  %v5739_v39 = vld [vmem:[#allocation16 + $0xb80] sm:$0xff]  ;;  %v5718_v10 = vld [vmem:[#allocation16 + $0xad8] sm:$0xff] }
 0x738   : > { %9036 = vmatpush3.bf16.msra.mxu1 %v9035_v55  ;;  %9006 = vmatprep.subr.bf16.mxu0 %v9005_v1  ;;  %v5740_v55 = vld [vmem:[#allocation16 + $0xb88] sm:$0xff]  ;;  %v9023_v1 = vpack.c.bf16 %v5474_v57, %v5473_v44  ;;  %v5730_v44 = vld [vmem:[#allocation16 + $0xb38] sm:$0xff]  ;;  %v5715_v57 = vld [vmem:[#allocation16 + $0xac0] sm:$0xff] }
 0x739   : > { %9038 = vmatprep.subr.bf16.mxu1 %v9037_v18  ;;  %v9057_v18 = vpack.c.bf16 %v5708_v52, %v5707_v28  ;;  %v9089_v25 = vpack.c.bf16 %v5740_v55, %v5739_v39  ;;  %v9073_v39 = vpack.c.bf16 %v5716_v49, %v5715_v57  ;;  %v5699_v55 = vld [vmem:[#allocation16 + $0xa40] sm:$0xff]  ;;  %v5738_v27 = vld [vmem:[#allocation16 + $0xb78] sm:$0xff]  ;;  %v5924_v57 = vld [vmem:[#allocation16 + $0xc08] sm:$0xff] }
 0x73b   : > { %9008 = vmatpush3.bf16.msra.mxu0 %v9007_v43  ;;  %v10592_v43 = vmax.f32 %v5686_v0, %v5688_v50  ;;  %v5731_v0 = vld [vmem:[#allocation16 + $0xb40] sm:$0xff] }
 0x73c   : > { %9040 = vmatpush3.bf16.msra.mxu1 %v9039_v6  ;;  %9010 = vmatprep.subr.bf16.mxu0 %v9009_v23  ;;  %v5709_v6 = vld [vmem:[#allocation16 + $0xa90] sm:$0xff]  ;;  %v5710_v23 = vld [vmem:[#allocation16 + $0xa98] sm:$0xff] }
 0x73d   : > { %9042 = vmatprep.subr.bf16.mxu1 %v9041_v12  ;;  %v5527_v12 = vrot.slane %v10582_v48, %v10261_v60  ;;  %v5763_v22 = vrot.slane %v10592_v43, %v10267_v63  ;;  %v5771_v26 = vrot.slane %v10592_v43, %v10301_v41 }
 0x73f   : > { %9012 = vmatpush3.bf16.msra.mxu0 %v9011_v17  ;;  %v9061_v17 = vpack.c.bf16 %v5710_v23, %v5709_v6  ;;  %v5701_v23 = vld [vmem:[#allocation16 + $0xa50] sm:$0xff] }
 0x740   : > { %9044 = vmatpush3.bf16.msra.mxu1 %v9043_v61  ;;  %9014 = vmatprep.subr.bf16.mxu0 %v9013_v20  ;;  %v5726_v61 = vld [vmem:[#allocation16 + $0xb18] sm:$0xff]  ;;  %v5711_v20 = vld [vmem:[#allocation16 + $0xaa0] sm:$0xff] }
 0x741   : > { %9046 = vmatprep.subr.bf16.mxu1 %v9045_v7  ;;  %v5743_v7 = vld [vmem:[#allocation16 + $0xba0] sm:$0xff]  ;;  %v9095_v48 = vpack.c.bf16 %v5726_v61, %v5725_v4  ;;  %v9065_v45 = vpack.c.bf16 %v5712_v21, %v5711_v20  ;;  %v5752_v4 = vld [vmem:[#allocation16 + $0xbe8] sm:$0xff] }
 0x742   : > { %v5703_v20 = vld [vmem:[#allocation16 + $0xa60] sm:$0xff]  ;;  %v5704_v21 = vld [vmem:[#allocation16 + $0xa68] sm:$0xff] }
 0x743   : > { %9016 = vmatpush3.bf16.msra.mxu0 %v9015_v38  ;;  %v5696_v38 = vld [vmem:[#allocation16 + $0xa28] sm:$0xff] }
 0x744   : > { %9048 = vmatpush3.bf16.msra.mxu1 %v9047_v40  ;;  %9018 = vmatprep.subr.bf16.mxu0 %v9017_v3  ;;  %v5727_v40 = vld [vmem:[#allocation16 + $0xb20] sm:$0xff]  ;;  %v9097_v3 = vpack.c.bf16 %v5744_v24, %v5743_v7  ;;  %v9067_v47 = vpack.c.bf16 %v5696_v38, %v5695_v29  ;;  %v5736_v7 = vld [vmem:[#allocation16 + $0xb68] sm:$0xff]  ;;  %v5721_v24 = vld [vmem:[#allocation16 + $0xaf0] sm:$0xff] }
 0x745   : > { %9050 = vmatprep.subr.bf16.mxu1 %v9049_v33  ;;  %v5745_v33 = vld [vmem:[#allocation16 + $0xbb0] sm:$0xff]  ;;  %v9099_v34 = vpack.c.bf16 %v5728_v32, %v5727_v40 }
 0x746   : > { %v5705_v40 = vld [vmem:[#allocation16 + $0xa70] sm:$0xff] }
 0x747   : > { %9020 = vmatpush3.bf16.msra.mxu0 %v9019_v13  ;;  %v5698_v13 = vld [vmem:[#allocation16 + $0xa38] sm:$0xff]  ;;  %v5737_v32 = vld [vmem:[#allocation16 + $0xb70] sm:$0xff] }
 0x748   : > { %9052 = vmatpush3.bf16.msra.mxu1 %v9051_v15  ;;  %9022 = vmatprep.subr.bf16.mxu0 %v9021_v56  ;;  %v5729_v15 = vld [vmem:[#allocation16 + $0xb30] sm:$0xff]  ;;  %v9101_v56 = vpack.c.bf16 %v5746_v2, %v5745_v33  ;;  %v9071_v28 = vpack.c.bf16 %v5698_v13, %v5697_v37  ;;  %v5939_v33 = vld [vmem:[#allocation16 + $0xc80] sm:$0xff]  ;;  %v5940_v2 = vld [vmem:[#allocation16 + $0xc88] sm:$0xff] }
 0x749   : > { %9054 = vmatprep.subr.bf16.mxu1 %v9053_v46  ;;  %v5747_v46 = vld [vmem:[#allocation16 + $0xbc0] sm:$0xff]  ;;  %v9103_v52 = vpack.c.bf16 %v5730_v44, %v5729_v15  ;;  %v9119_v15 = vpack.c.bf16 %v5738_v27, %v5737_v32  ;;  %v5948_v32 = vld [vmem:[#allocation16 + $0xcc8] sm:$0xff] }
 0x74a   : > { %v9105_v50 = vpack.c.bf16 %v5748_v51, %v5747_v46  ;;  %v5918_v37 = vld [vmem:[#allocation4 + $0x24] ss:$8 sm:$0xf]  ;;  %v5920_v13 = vld [vmem:[#allocation4 + $0x25] ss:$8 sm:$0xf] }
 0x74b   : > { %9024 = vmatpush3.bf16.msra.mxu0 %v9023_v1  ;;  %v5700_v1 = vld [vmem:[#allocation16 + $0xa48] sm:$0xff]  ;;  %v5923_v44 = vld [vmem:[#allocation16 + $0xc00] sm:$0xff] }
 0x74c   : > { %9056 = vmatpush3.bf16.msra.mxu1 %v9055_v14  ;;  %9058 = vmatprep.subr.bf16.mxu0 %v9057_v18  ;;  %v5732_v14 = vld [vmem:[#allocation16 + $0xb48] sm:$0xff]  ;;  %v5717_v18 = vld [vmem:[#allocation16 + $0xad0] sm:$0xff]  ;;  %v9075_v30 = vpack.c.bf16 %v5700_v1, %v5699_v55  ;;  %v5955_v46 = vld [vmem:[#allocation16 + $0xd00] sm:$0xff]  ;;  %v9123_v55 = vpack.c.bf16 %v5924_v57, %v5923_v44 }
 0x74d   : > { %9090 = vmatprep.subr.bf16.mxu1 %v9089_v25  ;;  %v5750_v25 = vld [vmem:[#allocation16 + $0xbd8] sm:$0xff]  ;;  %v9107_v59 = vpack.c.bf16 %v5732_v14, %v5731_v0  ;;  %v9077_v6 = vpack.c.bf16 %v5718_v10, %v5717_v18  ;;  %v5956_v51 = vld [vmem:[#allocation16 + $0xd08] sm:$0xff]  ;;  %v5973_v1 = vld [vmem:[#allocation16 + $0xd90] sm:$0xff] }
 0x74e   : > { %5609 = vmatmul.mubr.f32.vlgmr.msra.gmra.mrb[32].mxu0 %v5527_v12  ;;  %v9109_v35 = vpack.c.bf16 %v5750_v25, %v5749_v9  ;;  %v5734_v12 = vld [vmem:[#allocation16 + $0xb58] sm:$0xff]  ;;  %v9155_v14 = vpack.c.bf16 %v5956_v51, %v5955_v46  ;;  %v5925_v18 = vld [vmem:[#allocation16 + $0xc10] sm:$0xff]  ;;  %v5767_v25 = vrot.slane %v10592_v43, %v10265_v62  ;;  %v5980_v27 = vld [vmem:[#allocation16 + $0xdc8] sm:$0xff] }
 0x74f   : > { %5679 = vmatmul.mubr.f32.vlgmr.msra.gmra.mrb[32].mxu1 %v5535_v5  ;;  %9060 = vmatpush3.bf16.msra.mxu0 %v9059_v11  ;;  %v5702_v11 = vld [vmem:[#allocation16 + $0xa58] sm:$0xff]  ;;  %v5957_v9 = vld [vmem:[#allocation16 + $0xd10] sm:$0xff] }
 0x750   : > { %5840 = vmatprep.mubr.f32.mxu0 %v5763_v22  ;;  %9092 = vmatpush3.bf16.msra.mxu1 %v9091_v16  ;;  %v5719_v16 = vld [vmem:[#allocation16 + $0xae0] sm:$0xff]  ;;  %v9079_v5 = vpack.c.bf16 %v5702_v11, %v5701_v23  ;;  %v5974_v0 = vld [vmem:[#allocation16 + $0xd98] sm:$0xff]  ;;  %v5944_v23 = vld [vmem:[#allocation16 + $0xca8] sm:$0xff] }
 0x751   : > { %5910 = vmatprep.mubr.f32.mxu1 %v5771_v26  ;;  %9062 = vmatprep.subr.bf16.mxu0 %v9061_v17  ;;  %v9111_v17 = vpack.c.bf16 %v5734_v12, %v5733_v19  ;;  %v9081_v61 = vpack.c.bf16 %v5720_v42, %v5719_v16  ;;  %v5735_v22 = vld [vmem:[#allocation16 + $0xb60] sm:$0xff]  ;;  %v5722_v26 = vld [vmem:[#allocation16 + $0xaf8] sm:$0xff]  ;;  %v9157_v19 = vpack.c.bf16 %v5974_v0, %v5973_v1  ;;  %v5976_v12 = vld [vmem:[#allocation16 + $0xda8] sm:$0xff] }
 0x752   : > { %9094 = vmatprep.subr.bf16.mxu1 %v9093_v58  ;;  %v9113_v58 = vpack.c.bf16 %v5752_v4, %v5751_v31  ;;  %v9115_v29 = vpack.c.bf16 %v5736_v7, %v5735_v22  ;;  %v9085_v38 = vpack.c.bf16 %v5722_v26, %v5721_v24  ;;  %v5926_v10 = vld [vmem:[#allocation16 + $0xc18] sm:$0xff]  ;;  %v5927_v4 = vld [vmem:[#allocation16 + $0xc20] sm:$0xff]  ;;  %v5981_v57 = vld [vmem:[#allocation16 + $0xdd0] sm:$0xff] }
 0x753   : > { %9064 = vmatpush3.bf16.msra.mxu0 %v9063_v8  ;;  %v5753_v8 = vld [vmem:[#allocation16 + $0xbf0] sm:$0xff]  ;;  %v9127_v42 = vpack.c.bf16 %v5926_v10, %v5925_v18  ;;  %v5946_v22 = vld [vmem:[#allocation16 + $0xcb8] sm:$0xff]  ;;  %v5952_v18 = vld [vmem:[#allocation16 + $0xce8] sm:$0xff] }
 0x754   : > { %9096 = vmatpush3.bf16.msra.mxu1 %v9095_v48  ;;  %9066 = vmatprep.subr.bf16.mxu0 %v9065_v45  ;;  %v5754_v48 = vld [vmem:[#allocation16 + $0xbf8] sm:$0xff]  ;;  %v9083_v45 = vpack.c.bf16 %v5704_v21, %v5703_v20  ;;  %v5960_v20 = vld [vmem:[#allocation16 + $0xd28] sm:$0xff]  ;;  %v5945_v21 = vld [vmem:[#allocation16 + $0xcb0] sm:$0xff] }
 0x755   : > { %9098 = vmatprep.subr.bf16.mxu1 %v9097_v3  ;;  %v5706_v3 = vld [vmem:[#allocation16 + $0xa78] sm:$0xff]  ;;  %v9117_v54 = vpack.c.bf16 %v5754_v48, %v5753_v8  ;;  %v9133_v8 = vpack.c.bf16 %v5946_v22, %v5945_v21  ;;  %v5929_v48 = vld [vmem:[#allocation16 + $0xc30] sm:$0xff]  ;;  %v5983_v10 = vld [vmem:[#allocation16 + $0xde0] sm:$0xff] }
 0x756   : > { %v5978_v7 = vld [vmem:[#allocation16 + $0xdb8] sm:$0xff]  ;;  %v5965_v1 = vld [vmem:[#allocation16 + $0xd50] sm:$0xff] }
 0x757   : > { %9068 = vmatpush3.bf16.msra.mxu0 %v9067_v47  ;;  %v5971_v47 = vld [vmem:[#allocation16 + $0xd80] sm:$0xff]  ;;  %v5950_v44 = vld [vmem:[#allocation16 + $0xcd8] sm:$0xff] }
 0x758   : > { %9100 = vmatpush3.bf16.msra.mxu1 %v9099_v34  ;;  %9070 = vmatprep.subr.bf16.mxu0 %v9069_v53  ;;  %v5972_v34 = vld [vmem:[#allocation16 + $0xd88] sm:$0xff]  ;;  %v9087_v53 = vpack.c.bf16 %v5706_v3, %v5705_v40  ;;  %v5962_v40 = vld [vmem:[#allocation16 + $0xd38] sm:$0xff]  ;;  %v5947_v3 = vld [vmem:[#allocation16 + $0xcc0] sm:$0xff] }
 0x759   : > { %9102 = vmatprep.subr.bf16.mxu1 %v9101_v56  ;;  %v9121_v56 = vpack.c.bf16 %v5940_v2, %v5939_v33  ;;  %v9153_v49 = vpack.c.bf16 %v5972_v34, %v5971_v47  ;;  %v9137_v47 = vpack.c.bf16 %v5948_v32, %v5947_v3  ;;  %v5931_v34 = vld [vmem:[#allocation16 + $0xc40] sm:$0xff]  ;;  %v5970_v22 = vld [vmem:[#allocation16 + $0xd78] sm:$0xff]  ;;  %v6156_v3 = vld [vmem:[#allocation16 + $0xe08] sm:$0xff] }
 0x75b   : > { %9072 = vmatpush3.bf16.msra.mxu0 %v9071_v28  ;;  %v10602_v28 = vmax.f32 %v5918_v37, %v5920_v13  ;;  %v5963_v37 = vld [vmem:[#allocation16 + $0xd40] sm:$0xff] }
 0x75c   : > { %9104 = vmatpush3.bf16.msra.mxu1 %v9103_v52  ;;  %9074 = vmatprep.subr.bf16.mxu0 %v9073_v39  ;;  %v5941_v52 = vld [vmem:[#allocation16 + $0xc90] sm:$0xff]  ;;  %v5942_v39 = vld [vmem:[#allocation16 + $0xc98] sm:$0xff] }
 0x75d   : > { %9106 = vmatprep.subr.bf16.mxu1 %v9105_v50  ;;  %v5759_v50 = vrot.slane %v10592_v43, %v10261_v60  ;;  %v5995_v11 = vrot.slane %v10602_v28, %v10267_v63  ;;  %v6003_v16 = vrot.slane %v10602_v28, %v10301_v41 }
 0x75f   : > { %9076 = vmatpush3.bf16.msra.mxu0 %v9075_v30  ;;  %v9125_v30 = vpack.c.bf16 %v5942_v39, %v5941_v52  ;;  %v5933_v39 = vld [vmem:[#allocation16 + $0xc50] sm:$0xff] }
 0x760   : > { %9108 = vmatpush3.bf16.msra.mxu1 %v9107_v59  ;;  %9078 = vmatprep.subr.bf16.mxu0 %v9077_v6  ;;  %v5958_v59 = vld [vmem:[#allocation16 + $0xd18] sm:$0xff]  ;;  %v5943_v6 = vld [vmem:[#allocation16 + $0xca0] sm:$0xff] }
 0x761   : > { %9110 = vmatprep.subr.bf16.mxu1 %v9109_v35  ;;  %v5975_v35 = vld [vmem:[#allocation16 + $0xda0] sm:$0xff]  ;;  %v9159_v43 = vpack.c.bf16 %v5958_v59, %v5957_v9  ;;  %v9129_v31 = vpack.c.bf16 %v5944_v23, %v5943_v6  ;;  %v5984_v9 = vld [vmem:[#allocation16 + $0xde8] sm:$0xff] }
 0x762   : > { %v5935_v6 = vld [vmem:[#allocation16 + $0xc60] sm:$0xff]  ;;  %v5936_v23 = vld [vmem:[#allocation16 + $0xc68] sm:$0xff] }
 0x763   : > { %9080 = vmatpush3.bf16.msra.mxu0 %v9079_v5  ;;  %v5928_v5 = vld [vmem:[#allocation16 + $0xc28] sm:$0xff] }
 0x764   : > { %9112 = vmatpush3.bf16.msra.mxu1 %v9111_v17  ;;  %9082 = vmatprep.subr.bf16.mxu0 %v9081_v61  ;;  %v5959_v17 = vld [vmem:[#allocation16 + $0xd20] sm:$0xff]  ;;  %v9161_v61 = vpack.c.bf16 %v5976_v12, %v5975_v35  ;;  %v9131_v24 = vpack.c.bf16 %v5928_v5, %v5927_v4  ;;  %v5968_v35 = vld [vmem:[#allocation16 + $0xd68] sm:$0xff]  ;;  %v5953_v12 = vld [vmem:[#allocation16 + $0xcf0] sm:$0xff] }
 0x765   : > { %9114 = vmatprep.subr.bf16.mxu1 %v9113_v58  ;;  %v5977_v58 = vld [vmem:[#allocation16 + $0xdb0] sm:$0xff]  ;;  %v9163_v26 = vpack.c.bf16 %v5960_v20, %v5959_v17 }
 0x766   : > { %v5937_v17 = vld [vmem:[#allocation16 + $0xc70] sm:$0xff] }
 0x767   : > { %9084 = vmatpush3.bf16.msra.mxu0 %v9083_v45  ;;  %v5930_v45 = vld [vmem:[#allocation16 + $0xc38] sm:$0xff]  ;;  %v5969_v20 = vld [vmem:[#allocation16 + $0xd70] sm:$0xff] }
 0x768   : > { %9116 = vmatpush3.bf16.msra.mxu1 %v9115_v29  ;;  %9086 = vmatprep.subr.bf16.mxu0 %v9085_v38  ;;  %v5961_v29 = vld [vmem:[#allocation16 + $0xd30] sm:$0xff]  ;;  %v9165_v38 = vpack.c.bf16 %v5978_v7, %v5977_v58  ;;  %v9135_v33 = vpack.c.bf16 %v5930_v45, %v5929_v48  ;;  %v6171_v58 = vld [vmem:[#allocation16 + $0xe80] sm:$0xff]  ;;  %v6172_v7 = vld [vmem:[#allocation16 + $0xe88] sm:$0xff] }
 0x769   : > { %9118 = vmatprep.subr.bf16.mxu1 %v9117_v54  ;;  %v5979_v54 = vld [vmem:[#allocation16 + $0xdc0] sm:$0xff]  ;;  %v9167_v2 = vpack.c.bf16 %v5962_v40, %v5961_v29  ;;  %v9183_v29 = vpack.c.bf16 %v5970_v22, %v5969_v20  ;;  %v6212_v20 = vld [vmem:[#allocation16 + $0xfc8] sm:$0xff] }
 0x76a   : > { %v9169_v13 = vpack.c.bf16 %v5980_v27, %v5979_v54  ;;  %v6150_v48 = vld [vmem:[#allocation4 + $0x26] ss:$8 sm:$0xf]  ;;  %v6152_v45 = vld [vmem:[#allocation4 + $0x27] ss:$8 sm:$0xf] }
 0x76b   : > { %9088 = vmatpush3.bf16.msra.mxu0 %v9087_v53  ;;  %v5932_v53 = vld [vmem:[#allocation16 + $0xc48] sm:$0xff]  ;;  %v6155_v40 = vld [vmem:[#allocation16 + $0xe00] sm:$0xff] }
 0x76c   : > { %9120 = vmatpush3.bf16.msra.mxu1 %v9119_v15  ;;  %9122 = vmatprep.subr.bf16.mxu0 %v9121_v56  ;;  %v5964_v15 = vld [vmem:[#allocation16 + $0xd48] sm:$0xff]  ;;  %v5949_v56 = vld [vmem:[#allocation16 + $0xcd0] sm:$0xff]  ;;  %v9139_v46 = vpack.c.bf16 %v5932_v53, %v5931_v34  ;;  %v6187_v54 = vld [vmem:[#allocation16 + $0xf00] sm:$0xff]  ;;  %v9187_v34 = vpack.c.bf16 %v6156_v3, %v6155_v40 }
 0x76d   : > { %9154 = vmatprep.subr.bf16.mxu1 %v9153_v49  ;;  %v5982_v49 = vld [vmem:[#allocation16 + $0xdd8] sm:$0xff]  ;;  %v9171_v51 = vpack.c.bf16 %v5964_v15, %v5963_v37  ;;  %v9141_v52 = vpack.c.bf16 %v5950_v44, %v5949_v56  ;;  %v6188_v27 = vld [vmem:[#allocation16 + $0xf08] sm:$0xff]  ;;  %v6205_v53 = vld [vmem:[#allocation16 + $0xf90] sm:$0xff] }
 0x76e   : > { %5841 = vmatmul.mubr.f32.vlgmr.msra.gmra.mrb[34].mxu0 %v5759_v50  ;;  %v9173_v0 = vpack.c.bf16 %v5982_v49, %v5981_v57  ;;  %v5966_v50 = vld [vmem:[#allocation16 + $0xd58] sm:$0xff]  ;;  %v9219_v15 = vpack.c.bf16 %v6188_v27, %v6187_v54  ;;  %v6157_v56 = vld [vmem:[#allocation16 + $0xe10] sm:$0xff]  ;;  %v5999_v49 = vrot.slane %v10602_v28, %v10265_v62 }
 0x76f   : > { %5911 = vmatmul.mubr.f32.vlgmr.msra.gmra.mrb[34].mxu1 %v5767_v25  ;;  %9124 = vmatpush3.bf16.msra.mxu0 %v9123_v55  ;;  %v5934_v55 = vld [vmem:[#allocation16 + $0xc58] sm:$0xff]  ;;  %v6189_v57 = vld [vmem:[#allocation16 + $0xf10] sm:$0xff] }
 0x770   : > { %6072 = vmatprep.mubr.f32.mxu0 %v5995_v11  ;;  %9156 = vmatpush3.bf16.msra.mxu1 %v9155_v14  ;;  %v5951_v14 = vld [vmem:[#allocation16 + $0xce0] sm:$0xff]  ;;  %v9143_v25 = vpack.c.bf16 %v5934_v55, %v5933_v39  ;;  %v6206_v37 = vld [vmem:[#allocation16 + $0xf98] sm:$0xff]  ;;  %v6176_v39 = vld [vmem:[#allocation16 + $0xea8] sm:$0xff] }
 0x771   : > { %6142 = vmatprep.mubr.f32.mxu1 %v6003_v16  ;;  %9126 = vmatprep.subr.bf16.mxu0 %v9125_v30  ;;  %v9175_v30 = vpack.c.bf16 %v5966_v50, %v5965_v1  ;;  %v9145_v59 = vpack.c.bf16 %v5952_v18, %v5951_v14  ;;  %v5967_v11 = vld [vmem:[#allocation16 + $0xd60] sm:$0xff]  ;;  %v5954_v16 = vld [vmem:[#allocation16 + $0xcf8] sm:$0xff]  ;;  %v9221_v1 = vpack.c.bf16 %v6206_v37, %v6205_v53  ;;  %v6208_v50 = vld [vmem:[#allocation16 + $0xfa8] sm:$0xff] }
 0x772   : > { %9158 = vmatprep.subr.bf16.mxu1 %v9157_v19  ;;  %v9177_v19 = vpack.c.bf16 %v5984_v9, %v5983_v10  ;;  %v9179_v4 = vpack.c.bf16 %v5968_v35, %v5967_v11  ;;  %v9149_v5 = vpack.c.bf16 %v5954_v16, %v5953_v12  ;;  %v6158_v44 = vld [vmem:[#allocation16 + $0xe18] sm:$0xff]  ;;  %v6159_v9 = vld [vmem:[#allocation16 + $0xe20] sm:$0xff]  ;;  %v6209_v11 = vld [vmem:[#allocation16 + $0xfb0] sm:$0xff] }
 0x773   : > { %9128 = vmatpush3.bf16.msra.mxu0 %v9127_v42  ;;  %v5985_v42 = vld [vmem:[#allocation16 + $0xdf0] sm:$0xff]  ;;  %v9191_v18 = vpack.c.bf16 %v6158_v44, %v6157_v56  ;;  %v6214_v40 = vld [vmem:[#allocation16 + $0xfd8] sm:$0xff]  ;;  %v6183_v37 = vld [vmem:[#allocation16 + $0xee0] sm:$0xff] }
 0x774   : > { %9160 = vmatpush3.bf16.msra.mxu1 %v9159_v43  ;;  %9130 = vmatprep.subr.bf16.mxu0 %v9129_v31  ;;  %v5986_v43 = vld [vmem:[#allocation16 + $0xdf8] sm:$0xff]  ;;  %v9147_v31 = vpack.c.bf16 %v5936_v23, %v5935_v6  ;;  %v6177_v6 = vld [vmem:[#allocation16 + $0xeb0] sm:$0xff]  ;;  %v6216_v56 = vld [vmem:[#allocation16 + $0xfe8] sm:$0xff] }
 0x775   : > { %9162 = vmatprep.subr.bf16.mxu1 %v9161_v61  ;;  %v5938_v61 = vld [vmem:[#allocation16 + $0xc78] sm:$0xff]  ;;  %v9181_v21 = vpack.c.bf16 %v5986_v43, %v5985_v42  ;;  %v6161_v16 = vld [vmem:[#allocation16 + $0xe30] sm:$0xff] }
 0x776   : > { %v6178_v23 = vld [vmem:[#allocation16 + $0xeb8] sm:$0xff]  ;;  %v6193_v43 = vld [vmem:[#allocation16 + $0xf30] sm:$0xff] }
 0x777   : > { %9132 = vmatpush3.bf16.msra.mxu0 %v9131_v24  ;;  %v6203_v24 = vld [vmem:[#allocation16 + $0xf80] sm:$0xff]  ;;  %v9197_v12 = vpack.c.bf16 %v6178_v23, %v6177_v6  ;;  %v6162_v42 = vld [vmem:[#allocation16 + $0xe38] sm:$0xff]  ;;  %v6165_v27 = vld [vmem:[#allocation16 + $0xe50] sm:$0xff] }
 0x778   : > { %9164 = vmatpush3.bf16.msra.mxu1 %v9163_v26  ;;  %9134 = vmatprep.subr.bf16.mxu0 %v9133_v8  ;;  %v6204_v26 = vld [vmem:[#allocation16 + $0xf88] sm:$0xff]  ;;  %v9151_v8 = vpack.c.bf16 %v5938_v61, %v5937_v17  ;;  %v6211_v61 = vld [vmem:[#allocation16 + $0xfc0] sm:$0xff]  ;;  %v6198_v53 = vld [vmem:[#allocation16 + $0xf58] sm:$0xff] }
 0x779   : > { %9166 = vmatprep.subr.bf16.mxu1 %v9165_v38  ;;  %v9185_v38 = vpack.c.bf16 %v6172_v7, %v6171_v58  ;;  %v9217_v32 = vpack.c.bf16 %v6204_v26, %v6203_v24  ;;  %v6180_v17 = vld [vmem:[#allocation16 + $0xec8] sm:$0xff]  ;;  %v6163_v7 = vld [vmem:[#allocation16 + $0xe40] sm:$0xff]  ;;  %v6169_v23 = vld [vmem:[#allocation16 + $0xe70] sm:$0xff] }
 0x77a   : > { %v6164_v24 = vld [vmem:[#allocation16 + $0xe48] sm:$0xff]  ;;  %v6195_v26 = vld [vmem:[#allocation16 + $0xf40] sm:$0xff] }
 0x77b   : > { %9136 = vmatpush3.bf16.msra.mxu0 %v9135_v33  ;;  %v10612_v33 = vmax.f32 %v6150_v48, %v6152_v45  ;;  %v6196_v48 = vld [vmem:[#allocation16 + $0xf48] sm:$0xff]  ;;  %v6181_v45 = vld [vmem:[#allocation16 + $0xed0] sm:$0xff]  ;;  %v9203_v3 = vpack.c.bf16 %v6164_v24, %v6163_v7 }
 0x77c   : > { %9168 = vmatpush3.bf16.msra.mxu1 %v9167_v2  ;;  %9138 = vmatprep.subr.bf16.mxu0 %v9137_v47  ;;  %v6173_v2 = vld [vmem:[#allocation16 + $0xe90] sm:$0xff]  ;;  %v6174_v47 = vld [vmem:[#allocation16 + $0xe98] sm:$0xff] }
 0x77d   : > { %9170 = vmatprep.subr.bf16.mxu1 %v9169_v13  ;;  %v5991_v13 = vrot.slane %v10602_v28, %v10261_v60  ;;  %v6227_v55 = vrot.slane %v10612_v33, %v10267_v63  ;;  %v6235_v14 = vrot.slane %v10612_v33, %v10301_v41  ;;  %v6192_v63 = vld [vmem:[#allocation16 + $0xf28] sm:$0xff] }
 0x77f   : > { %9140 = vmatpush3.bf16.msra.mxu0 %v9139_v46  ;;  %v9189_v46 = vpack.c.bf16 %v6174_v47, %v6173_v2  ;;  %v6166_v2 = vld [vmem:[#allocation16 + $0xe58] sm:$0xff]  ;;  %v6197_v47 = vld [vmem:[#allocation16 + $0xf50] sm:$0xff] }
 0x780   : > { %9172 = vmatpush3.bf16.msra.mxu1 %v9171_v51  ;;  %9142 = vmatprep.subr.bf16.mxu0 %v9141_v52  ;;  %v6190_v51 = vld [vmem:[#allocation16 + $0xf18] sm:$0xff]  ;;  %v6175_v52 = vld [vmem:[#allocation16 + $0xea0] sm:$0xff]  ;;  %v9207_v44 = vpack.c.bf16 %v6166_v2, %v6165_v27  ;;  %v6385_v27 = vld [vmem:[%s10731_s9 + $0x18] sm:$0xff] }
 0x781   : > { %9174 = vmatprep.subr.bf16.mxu1 %v9173_v0  ;;  %v6207_v0 = vld [vmem:[#allocation16 + $0xfa0] sm:$0xff]  ;;  %v9223_v28 = vpack.c.bf16 %v6190_v51, %v6189_v57  ;;  %v9193_v10 = vpack.c.bf16 %v6176_v39, %v6175_v52  ;;  %v9239_v57 = vpack.c.bf16 %v6198_v53, %v6197_v47  ;;  %v6168_v51 = vld [vmem:[#allocation16 + $0xe68] sm:$0xff]  ;;  %v6386_v47 = vld [vmem:[%s10731_s9 + $0x20] sm:$0xff] }
 0x782   : > { %v6199_v52 = vld [vmem:[#allocation16 + $0xf60] sm:$0xff] }
 0x783   : > { %9144 = vmatpush3.bf16.msra.mxu0 %v9143_v25  ;;  %v6160_v25 = vld [vmem:[#allocation16 + $0xe28] sm:$0xff] }
 0x784   : > { %9176 = vmatpush3.bf16.msra.mxu1 %v9175_v30  ;;  %9146 = vmatprep.subr.bf16.mxu0 %v9145_v59  ;;  %v6191_v30 = vld [vmem:[#allocation16 + $0xf20] sm:$0xff]  ;;  %v9225_v59 = vpack.c.bf16 %v6208_v50, %v6207_v0  ;;  %v9195_v35 = vpack.c.bf16 %v6160_v25, %v6159_v9  ;;  %v6200_v0 = vld [vmem:[#allocation16 + $0xf68] sm:$0xff]  ;;  %v6185_v50 = vld [vmem:[#allocation16 + $0xef0] sm:$0xff] }
 0x785   : > { %9178 = vmatprep.subr.bf16.mxu1 %v9177_v19  ;;  %v6210_v19 = vld [vmem:[#allocation16 + $0xfb8] sm:$0xff]  ;;  %v9227_v41 = vpack.c.bf16 %v6192_v63, %v6191_v30  ;;  %v9243_v63 = vpack.c.bf16 %v6200_v0, %v6199_v52 }
 0x786   : > { %v6218_v9 = vld [vmem:[#allocation16 + $0xff8] sm:$0xff] }
 0x787   : > { %9148 = vmatpush3.bf16.msra.mxu0 %v9147_v31  ;;  %v9229_v31 = vpack.c.bf16 %v6210_v19, %v6209_v11  ;;  %v6170_v11 = vld [vmem:[#allocation16 + $0xe78] sm:$0xff] }
 0x788   : > { %9180 = vmatpush3.bf16.msra.mxu1 %v9179_v4  ;;  %9150 = vmatprep.subr.bf16.mxu0 %v9149_v5  ;;  %v6194_v4 = vld [vmem:[#allocation16 + $0xf38] sm:$0xff]  ;;  %v6179_v5 = vld [vmem:[#allocation16 + $0xec0] sm:$0xff] }
 0x789   : > { %9182 = vmatprep.subr.bf16.mxu1 %v9181_v21  ;;  %v9199_v21 = vpack.c.bf16 %v6162_v42, %v6161_v16  ;;  %v9231_v22 = vpack.c.bf16 %v6194_v4, %v6193_v43  ;;  %v9201_v58 = vpack.c.bf16 %v6180_v17, %v6179_v5  ;;  %v9215_v16 = vpack.c.bf16 %v6170_v11, %v6169_v23  ;;  %v4526_v17 = vld [vmem:[#allocation17] sm:$0x1] }
 0x78a   : > { %v6223_v43 = vrot.slane %v10612_v33, %v10261_v60 }
 0x78b   : > { %9152 = vmatpush3.bf16.msra.mxu0 %v9151_v8  ;;  %v9233_v8 = vpack.c.bf16 %v6212_v20, %v6211_v61 }
 0x78c   : > { %9184 = vmatpush3.bf16.msra.mxu1 %v9183_v29  ;;  %9186 = vmatprep.subr.bf16.mxu0 %v9185_v38  ;;  %v6182_v29 = vld [vmem:[#allocation16 + $0xed8] sm:$0xff]  ;;  %v6213_v38 = vld [vmem:[#allocation16 + $0xfd0] sm:$0xff] }
 0x78d   : > { %9218 = vmatprep.subr.bf16.mxu1 %v9217_v32  ;;  %v9235_v32 = vpack.c.bf16 %v6196_v48, %v6195_v26  ;;  %v9205_v54 = vpack.c.bf16 %v6182_v29, %v6181_v45 }
 0x78e   : > { %6073 = vmatmul.mubr.f32.vlgmr.msra.gmra.mrb[36].mxu0 %v5991_v13  ;;  %v6184_v13 = vld [vmem:[#allocation16 + $0xee8] sm:$0xff] }
 0x78f   : > { %6143 = vmatmul.mubr.f32.vlgmr.msra.gmra.mrb[36].mxu1 %v5999_v49  ;;  %9188 = vmatpush3.bf16.msra.mxu0 %v9187_v34  ;;  %v9237_v34 = vpack.c.bf16 %v6214_v40, %v6213_v38  ;;  %v9209_v49 = vpack.c.bf16 %v6184_v13, %v6183_v37  ;;  %v6383_v40 = vld [vmem:[%s10731_s9 + $0x8] sm:$0xff]  ;;  %v6388_v37 = vld [vmem:[%s10731_s9 + $0x30] sm:$0xff]  ;;  %v6389_v13 = vld [vmem:[%s10731_s9 + $0x38] sm:$0xff] }
 0x790   : > { %6304 = vmatprep.mubr.f32.mxu0 %v6227_v55  ;;  %9220 = vmatpush3.bf16.msra.mxu1 %v9219_v15  ;;  %v6215_v15 = vld [vmem:[#allocation16 + $0xfe0] sm:$0xff] }
 0x791   : > { %6374 = vmatprep.mubr.f32.mxu1 %v6235_v14  ;;  %9190 = vmatprep.subr.bf16.mxu0 %v9189_v46  ;;  %v6167_v46 = vld [vmem:[#allocation16 + $0xe60] sm:$0xff]  ;;  %v6186_v14 = vld [vmem:[#allocation16 + $0xef8] sm:$0xff] }
 0x792   : > { %9222 = vmatprep.subr.bf16.mxu1 %v9221_v1  ;;  %v9241_v1 = vpack.c.bf16 %v6216_v56, %v6215_v15  ;;  %v9213_v6 = vpack.c.bf16 %v6186_v14, %v6185_v50  ;;  %v9259_v15 = vpack.c.bf16 %v6389_v13, %v6388_v37  ;;  %v6390_v56 = vld [vmem:[%s10731_s9 + $0x40] sm:$0xff] }
 0x793   : > { %9192 = vmatpush3.bf16.msra.mxu0 %v9191_v18 }
 0x794   : > { %9224 = vmatpush3.bf16.msra.mxu1 %v9223_v28  ;;  %9194 = vmatprep.subr.bf16.mxu0 %v9193_v10  ;;  %v6217_v10 = vld [vmem:[#allocation16 + $0xff0] sm:$0xff] }
 0x795   : > { %9226 = vmatprep.subr.bf16.mxu1 %v9225_v59  ;;  %v9211_v59 = vpack.c.bf16 %v6168_v51, %v6167_v46  ;;  %v6393_v46 = vld [vmem:[%s10731_s9 + $0x58] sm:$0xff] }
 0x797   : > { %9196 = vmatpush3.bf16.msra.mxu0 %v9195_v35  ;;  %v9245_v35 = vpack.c.bf16 %v6218_v9, %v6217_v10  ;;  %v6395_v10 = vld [vmem:[%s10731_s9 + $0x68] sm:$0xff]  ;;  %v6396_v9 = vld [vmem:[%s10731_s9 + $0x70] sm:$0xff] }
 0x798   : > { %9228 = vmatpush3.bf16.msra.mxu1 %v9227_v41  ;;  %9198 = vmatprep.subr.bf16.mxu0 %v9197_v12  ;;  %v6201_v41 = vld [vmem:[#allocation16 + $0xf70] sm:$0xff]  ;;  %v6202_v12 = vld [vmem:[#allocation16 + $0xf78] sm:$0xff] }
 0x799   : > { %9230 = vmatprep.subr.bf16.mxu1 %v9229_v31  ;;  %v9247_v42 = vpack.c.bf16 %v6202_v12, %v6201_v41  ;;  %v6231_v31 = vrot.slane %v10612_v33, %v10265_v62  ;;  %v6382_v33 = vld [vmem:[%s10731_s9] sm:$0xff] }
 0x79b   : > { %9200 = vmatpush3.bf16.msra.mxu0 %v9199_v21 }
 0x79c   : > { %9232 = vmatpush3.bf16.msra.mxu1 %v9231_v22  ;;  %9202 = vmatprep.subr.bf16.mxu0 %v9201_v58 }
 0x79d   : > { %9234 = vmatprep.subr.bf16.mxu1 %v9233_v8 }
 0x79f   : > { %9204 = vmatpush3.bf16.msra.mxu0 %v9203_v3  ;;  %v6384_v3 = vld [vmem:[%s10731_s9 + $0x10] sm:$0xff] }
 0x7a0   : > { %9236 = vmatpush3.bf16.msra.mxu1 %v9235_v32  ;;  %9206 = vmatprep.subr.bf16.mxu0 %v9205_v54  ;;  %v9862_v32 = vmov 0.0|0.0   ;;  %v9250_v54 = vpack.c.bf16 %v6383_v40, %v6382_v33  ;;  %v9253_v2 = vpack.c.bf16 %v6385_v27, %v6384_v3  ;;  %v6398_v3 = vld [vmem:[#allocation19] sm:$0x1] }
 0x7a1   : > { %v6685_v39 = vpop.f32.mrb[24].mxu0  ;;  %v6720_v55 = vpop.f32.mrb[24].mxu1  ;;  %9238 = vmatprep.subr.bf16.mxu1 %v9237_v34  ;;  %v6387_v34 = vld [vmem:[%s10731_s9 + $0x28] sm:$0xff] }
 0x7a2   : > { %v6686_v18 = vpop.f32.mrb[25].mxu0  ;;  %v6721_v28 = vpop.f32.mrb[25].mxu1  ;;  %v9256_v53 = vpack.c.bf16 %v6387_v34, %v6386_v47 }
 0x7a3   : > { %v6687_v25 = vadd.f32 %v6686_v18, %v6685_v39  ;;  %v6722_v30 = vadd.f32 %v6721_v28, %v6720_v55  ;;  %9208 = vmatpush3.bf16.msra.mxu0 %v9207_v44  ;;  %v6391_v44 = vld [vmem:[%s10731_s9 + $0x48] sm:$0xff]  ;;  %v6394_v28 = vld [vmem:[%s10731_s9 + $0x60] sm:$0xff] }
 0x7a4   : > { %9240 = vmatpush3.bf16.msra.mxu1 %v9239_v57  ;;  %9210 = vmatprep.subr.bf16.mxu0 %v9209_v49  ;;  %v9262_v57 = vpack.c.bf16 %v6391_v44, %v6390_v56  ;;  %v6392_v49 = vld [vmem:[%s10731_s9 + $0x50] sm:$0xff] }
 0x7a5   : > { %v4753_v19 = vadd.f32 %v6722_v30, %v6687_v25  ;;  %9242 = vmatprep.subr.bf16.mxu1 %v9241_v1  ;;  %v9265_v51 = vpack.c.bf16 %v6393_v46, %v6392_v49  ;;  %v9268_v25 = vpack.c.bf16 %v6395_v10, %v6394_v28  ;;  %v6397_v30 = vld [vmem:[%s10731_s9 + $0x78] sm:$0xff] }
 0x7a7   : > { %9212 = vmatpush3.bf16.msra.mxu0 %v9211_v59  ;;  %v4756_v58 = vadd.f32 %v4753_v19, %v4526_v17  ;;  %v9271_v59 = vpack.c.bf16 %v6397_v30, %v6396_v9 }
 0x7a8   : > { %9244 = vmatpush3.bf16.msra.mxu1 %v9243_v63  ;;  %9214 = vmatprep.subr.bf16.mxu0 %v9213_v6 }
 0x7a9   : > { %9246 = vmatprep.subr.bf16.mxu1 %v9245_v35 }
 0x7ab   : > { %9216 = vmatpush3.bf16.msra.mxu0 %v9215_v16 }
 0x7ac   : > { %9248 = vmatpush3.bf16.msra.mxu1 %v9247_v42  ;;  %9249 = vmatprep.subr.bf16.mxu0 %v9862_v32 }
 0x7ae   : > { %6305 = vmatmul.mubr.f32.vlgmr.msra.gmra.mrb[38].mxu0 %v6223_v43 }
 0x7af   : > { %6375 = vmatmul.mubr.f32.vlgmr.msra.gmra.mrb[38].mxu1 %v6231_v31  ;;  %9251 = vmatpush3.bf16.msra.mxu0 %v9250_v54 }
 0x7b0   : > { %9252 = vmatprep.subr.bf16.mxu0 %v9862_v32  ;;  %7262 = vmatprep.mubr.msk.f32.mxu0 %vm9863_vm3, %v10257_v36 }
 0x7b3   : > { %9254 = vmatpush3.bf16.msra.mxu0 %v9253_v2 }
 0x7b4   : > { %9255 = vmatprep.subr.bf16.mxu0 %v9862_v32 }
 0x7b7   : > { %9257 = vmatpush3.bf16.msra.mxu0 %v9256_v53 }
 0x7b8   : > { %9258 = vmatprep.subr.bf16.mxu0 %v9862_v32 }
 0x7bb   : > { %9260 = vmatpush3.bf16.msra.mxu0 %v9259_v15 }
 0x7bc   : > { %9261 = vmatprep.subr.bf16.mxu0 %v9862_v32 }
 0x7bf   : > { %9263 = vmatpush3.bf16.msra.mxu0 %v9262_v57 }
 0x7c0   : > { %9264 = vmatprep.subr.bf16.mxu0 %v9862_v32 }
 0x7c1   : > { %v6755_v4 = vpop.f32.mrb[26].mxu0  ;;  %v6790_v5 = vpop.f32.mrb[26].mxu1 }
 0x7c2   : > { %v6756_v61 = vpop.f32.mrb[27].mxu0  ;;  %v6791_v20 = vpop.f32.mrb[27].mxu1 }
 0x7c3   : > { %v6757_v21 = vadd.f32 %v6756_v61, %v6755_v4  ;;  %v6792_v22 = vadd.f32 %v6791_v20, %v6790_v5  ;;  %9266 = vmatpush3.bf16.msra.mxu0 %v9265_v51 }
 0x7c4   : > { %9267 = vmatprep.subr.bf16.mxu0 %v9862_v32 }
 0x7c5   : > { %v4985_v7 = vadd.f32 %v6792_v22, %v6757_v21 }
 0x7c7   : > { %v4988_v24 = vadd.f32 %v4985_v7, %v4756_v58  ;;  %9269 = vmatpush3.bf16.msra.mxu0 %v9268_v25 }
 0x7c8   : > { %9270 = vmatprep.subr.bf16.mxu0 %v9862_v32 }
 0x7cb   : > { %9272 = vmatpush3.bf16.msra.mxu0 %v9271_v59 }
 0x7e1   : > { %v6825_v26 = vpop.f32.mrb[28].mxu0 }
 0x7e2   : > { %v6860_v8 = vpop.f32.mrb[28].mxu1  ;;  %v6826_v48 = vpop.f32.mrb[29].mxu0 }
 0x7e3   : > { %v6827_v45 = vadd.f32 %v6826_v48, %v6825_v26  ;;  %v6861_v60 = vpop.f32.mrb[29].mxu1 }
 0x7e4   : > { %v6862_v29 = vadd.f32 %v6861_v60, %v6860_v8 }
 0x7e6   : > { %v5217_v38 = vadd.f32 %v6862_v29, %v6827_v45 }
 0x7e8   : > { %v5220_v62 = vadd.f32 %v5217_v38, %v4988_v24 }
 0x801   : > { %v6895_v52 = vpop.f32.mrb[30].mxu0 }
 0x802   : > { %v6930_v39 = vpop.f32.mrb[30].mxu1  ;;  %v6896_v55 = vpop.f32.mrb[31].mxu0 }
 0x803   : > { %v6897_v1 = vadd.f32 %v6896_v55, %v6895_v52  ;;  %v6931_v0 = vpop.f32.mrb[31].mxu1 }
 0x804   : > { %v6932_v50 = vadd.f32 %v6931_v0, %v6930_v39 }
 0x806   : > { %v5449_v14 = vadd.f32 %v6932_v50, %v6897_v1 }
 0x808   : > { %v5452_v18 = vadd.f32 %v5449_v14, %v5220_v62 }
 0x821   : > { %v6965_v63 = vpop.f32.mrb[32].mxu0 }
 0x822   : > { %v7000_v6 = vpop.f32.mrb[32].mxu1  ;;  %v6966_v23 = vpop.f32.mrb[33].mxu0 }
 0x823   : > { %v6967_v11 = vadd.f32 %v6966_v23, %v6965_v63  ;;  %v7001_v19 = vpop.f32.mrb[33].mxu1 }
 0x824   : > { %v7002_v35 = vadd.f32 %v7001_v19, %v7000_v6 }
 0x826   : > { %v5681_v41 = vadd.f32 %v7002_v35, %v6967_v11 }
 0x828   : > { %v5684_v12 = vadd.f32 %v5681_v41, %v5452_v18 }
 0x841   : > { %v7035_v16 = vpop.f32.mrb[34].mxu0 }
 0x842   : > { %v7070_v42 = vpop.f32.mrb[34].mxu1  ;;  %v7036_v43 = vpop.f32.mrb[35].mxu0 }
 0x843   : > { %v7037_v31 = vadd.f32 %v7036_v43, %v7035_v16  ;;  %v7071_v4 = vpop.f32.mrb[35].mxu1 }
 0x844   : > { %v7072_v5 = vadd.f32 %v7071_v4, %v7070_v42 }
 0x846   : > { %v5913_v17 = vadd.f32 %v7072_v5, %v7037_v31 }
 0x848   : > { %v5916_v36 = vadd.f32 %v5913_v17, %v5684_v12 }
 0x861   : > { %v7105_v61 = vpop.f32.mrb[36].mxu0 }
 0x862   : > { %v7140_v20 = vpop.f32.mrb[36].mxu1  ;;  %v7106_v21 = vpop.f32.mrb[37].mxu0 }
 0x863   : > { %v7107_v22 = vadd.f32 %v7106_v21, %v7105_v61  ;;  %v7141_v58 = vpop.f32.mrb[37].mxu1 }
 0x864   : > { %v7142_v7 = vadd.f32 %v7141_v58, %v7140_v20 }
 0x866   : > { %v6145_v24 = vadd.f32 %v7142_v7, %v7107_v22 }
 0x868   : > { %v6148_v26 = vadd.f32 %v6145_v24, %v5916_v36 }
 0x881   : > { %v7175_v8 = vpop.f32.mrb[38].mxu0 }
 0x882   : > { %v7210_v48 = vpop.f32.mrb[38].mxu1  ;;  %v7176_v45 = vpop.f32.mrb[39].mxu0 }
 0x883   : > { %v7177_v60 = vadd.f32 %v7176_v45, %v7175_v8  ;;  %v7211_v29 = vpop.f32.mrb[39].mxu1 }
 0x884   : > { %v7212_v38 = vadd.f32 %v7211_v29, %v7210_v48 }
 0x886   : > { %v6377_v62 = vadd.f32 %v7212_v38, %v7177_v60 }
 0x888   : > { %v6380_v33 = vadd.f32 %v6377_v62, %v6148_v26 }
 0x88a   : > { %v6381_v40 = vmax.f32 %v6380_v33, 0.0 }
 0x88c   : > { %7263 = vmatmul.mubr.f32.vlgmr.msra.gmra.mrb[40].mxu0 %v6381_v40 }
 0x95f   : > { %v6465_v32 = vpop.f32.mrb[40].mxu0 }
 0x960   : > { %v6466_v54 = vadd.f32 %v6465_v32, %v6398_v3  ;;  %v7264_v27 = vpop.f32.mrb[41].mxu0 }
 0x962   : > { %6470 = vst.msk [vmem:[%s501_s25] sm:$0x1] %vm6469_vm4, %v6466_v54 }
 0x963   : > { %9777 = shalt.err (!%p9774_p9)
}
 0x964   : > { %s9778_s12 = scalar_lea.hbm %s10680_s15, 16  ;;  %s9782_s30 = scalar_lea.hbm %s10733_s11, 32 }
 0x965   : > { %p9779_p12 = scmp.ne.s32.totalorder %s10680_s15, %s9778_s12  ;;  %p9783_p3 = scmp.lt.u32.totalorder %s10680_s15, %s10733_s11 }
 0x966   : > { %p9784_p4 = scmp.lt.u32.totalorder %s9782_s30, %s9778_s12  ;;  %p9786_p8 = scmp.lt.u32.totalorder %s9778_s12, %s10680_s15 }
 0x967   : > { %p9780_p10 = pnand %p9779_p12, %p10771_p11 }
 0x968   : > { %p9785_p7 = por %p9784_p4, %p9783_p3 }
 0x969   : > { %p9781_p2 = pneg %p9780_p10 }
 0x96a   : > { %p9787_p13 = por %p9786_p8, %p9785_p7 }
 0x96c   : > { %p9788_p1 = pnand %p9787_p13, %p9781_p2 }
 0x96e   : > { %9791 = shalt.err (!%p9788_p1)
}
 0x96f   : > { %9406 = dma.vmem_to_hbm [thread:$0]  (%p10771_p11), %s10682_s28, 16, %s10680_s15, %s6472_s4  }
 0x970 PF: > { %s10772_s23 = sld [smem:[#allocation29_spill]]  ;;  %s10773_s29 = sld [smem:[#allocation27_spill]] }
 0x971   : > { %s10774_s13 = sld [smem:[#allocation32_spill]] }
 0x976   : > { %p9458_p0 = scmp.ge.s32.totalorder %s10772_s23, 2  ;;  %s6496_s25 = sand.u32 1, %s10773_s29  }
 0x977   : > { %p10775_p6 = scmp.ne.s32.totalorder %s10774_s13, 0  ;;  %s6497_s17 = scalar_lea.sflag [#allocation7], %s6496_s25 }
 0x979   : > { %p9437_p5 = pnand %p9458_p0, %p10775_p6 }
 0x97b   : > { %9829 = dma.done.wait (!%p9437_p5), %s6497_s17, 16  }
 0x97c   : > { %9831 = vsyncadd (!%p9437_p5), %s6497_s17, 4294967280  ;;  %s10776_s20 = sld [smem:[#allocation30_spill]]  ;;  %s10777_s26 = sld [smem:[#allocation28_spill]] }
 0x97d   : > { %s10778_s19 = sld [smem:[#allocation31_spill]]  ;;  %s10779_s17 = smov %s9838_s18 }
 0x982   : > { %p26_p9 = scmp.ge.s32.totalorder %s10776_s20, 4   ;;  %s10780_s18 = smov %s10777_s26 }
 0x984   :  { %28 = sbr.rel (!%p26_p9) target bundleno = 11 (0xb), region = 209 }
 0x98b   :  { %6501 = vsyncpa [#allocation6], 1 }
 0x98c   :  { %6503 = vsyncpa [#allocation6 + $0x1], 1 }
 0x98d   :  { %6504 = vsyncpa [#allocation9], 1 }
 0x98e   :  { %6505 = vsyncpa [#allocation12], 1 }
 0x98f   :  { %6506 = vsyncpa [#allocation15], 1 }
 0x990   :  { %6507 = vsyncpa [#allocation18], 1 }
 0x991   :  { %6508 = vsyncpa [#allocation7], 1 }
 0x992   :  { %6510 = vsyncpa [#allocation7 + $0x1], 1 }

</bundles_post_ra>
